<compile_context>
chip_gen: v7x
topology: tpu7x:2x2x1
jax: 0.10.0
libtpu: 0.0.40
codegen_flags: <defaults>
</compile_context>

<pallas_src>
import functools

import jax
import jax.numpy as jnp
from jax import lax
from jax.experimental import pallas as pl
from jax.experimental.pallas import tpu as pltpu

LANE = 128
SUB = 16     # bf16 sublane packing
DM = 16      # y1 staging margin rows (>= 1 needed; 16 keeps bf16 sublane alignment)


def _round_up(x, m):
    return (x + m - 1) // m * m


def _next_pow2(v):
    return 1 << max(0, (v - 1).bit_length())


# ---------------------------------------------------------------------------
# Fused kernel: one grid step == R interior output rows of one image.
# Flattened row-major layout with row pitch Wp (power of two) and lane-padded channels.
# ---------------------------------------------------------------------------
def _bottleneck_kernel(x_lo_ref, x_hi_ref, w1_ref, b1_ref, w2_ref, b2_ref,
                       w3_ref, b3_ref, o_ref, y1_buf, acc_ref, *,
                       H, W, Wp, log2_wp, R):
    """x_lo_ref : (R*Wp,  Cin_p)  bf16  padded-image rows [ob*R, ob*R+R)
       x_hi_ref : (2*Wp,  Cin_p)  bf16  padded-image rows [ob*R+R, ob*R+R+2)  (bottom halo)
       w*_ref   : bf16 weights with BN scale folded in; b*_ref: (1, C) f32 folded biases
       o_ref    : (R*Wp,  Cout_p) bf16  interior output rows [ob*R, ob*R+R)
       y1_buf   : (2*DM + (R+2)*Wp, Cmid_p) bf16 scratch (margin-padded conv1 output)
       acc_ref  : (R*Wp,  Cmid_p) f32   conv2 accumulator."""
    f32, bf16 = jnp.float32, jnp.bfloat16
    ob = pl.program_id(1)
    Cmid = y1_buf.shape[1]
    Mo = R * Wp            # flattened output rows in this block
    M = (R + 2) * Wp       # flattened y1 rows in this block (1-row halo top & bottom)

    x_lo = x_lo_ref[...]
    x_hi = x_hi_ref[...]

    # Interior mask over the (R+2) y1 rows of this block: zero on conv2's zero-padding ring
    # (padded-image row 0 / > H, column 0 / > W).  Generated in-kernel; Wp is a power of two.
    flat = lax.broadcasted_iota(jnp.int32, (M, 1), 0)
    row = (flat >> log2_wp) + ob * R          # global padded-image row
    col = flat & (Wp - 1)                     # padded-image column
    mask = ((row >= 1) & (row <= H) & (col >= 1) & (col <= W)).astype(f32)

    # ---- conv1 (1x1) + bn1 + relu, staged as bf16 into the margin-padded flat buffer ----
    y1_lo = jnp.maximum(jnp.dot(x_lo, w1_ref[...], preferred_element_type=f32)
                        + b1_ref[...], 0.0) * mask[:Mo]
    y1_hi = jnp.maximum(jnp.dot(x_hi, w1_ref[...], preferred_element_type=f32)
                        + b1_ref[...], 0.0) * mask[Mo:]
    y1_buf[0:DM, :] = jnp.zeros((DM, Cmid), bf16)
    y1_buf[DM + M:2 * DM + M, :] = jnp.zeros((DM, Cmid), bf16)
    y1_buf[DM:DM + Mo, :] = y1_lo.astype(bf16)
    y1_buf[DM + Mo:DM + M, :] = y1_hi.astype(bf16)

    # ---- conv2 (3x3, stride 1, pad 1): 9 accumulated MXU matmuls over row-shifted windows ----
    # Output flat position p maps to y1 flat position p + Wp, so tap (ky, kx) reads the window
    # starting at DM + ky*Wp + (kx - 1).  The ky shifts are sublane aligned (Wp % 16 == 0).
    t = 0
    for ky in range(3):
        for kx in range(3):
            start = DM + ky * Wp + (kx - 1)
            win = y1_buf[start:start + Mo, :]
            part = jnp.dot(win, w2_ref[t], preferred_element_type=f32)
            if t == 0:
                acc_ref[...] = part
            else:
                acc_ref[...] += part
            t += 1
    # TODO(synk): on v6e with Cmid_p == 128, pack pairs of taps along K (K=256) to fill the MXU.
    y2 = jnp.maximum(acc_ref[...] + b2_ref[...], 0.0).astype(bf16)

    # ---- conv3 (1x1) + bn3 + identity residual + relu ----
    y3 = jnp.dot(y2, w3_ref[...], preferred_element_type=f32) + b3_ref[...]
    # Residual = x at the output rows = x_lo rows [Wp, R*Wp) ++ x_hi rows [0, Wp).
    split = (R - 1) * Wp
    o_ref[0:split, :] = jnp.maximum(
        y3[0:split] + x_lo[Wp:Mo, :].astype(f32), 0.0).astype(o_ref.dtype)
    o_ref[split:Mo, :] = jnp.maximum(
        y3[split:Mo] + x_hi[0:Wp, :].astype(f32), 0.0).astype(o_ref.dtype)


# ---------------------------------------------------------------------------
# Wrapper: BN folding, channel/row padding, row-block tiling, layout plumbing.
# ---------------------------------------------------------------------------
_CONST_SINGLE_BUFFER = True   # flips to False once if pl.Buffered(1) is rejected by this jax


def bottleneck_forward(x_nchw, params, eps=1e-5, rows_per_block=None):
    global _CONST_SINGLE_BUFFER
    N, Cin, H, W = x_nchw.shape
    planes = params["w1"].shape[0]
    Cout = params["w3"].shape[0]
    assert Cout == Cin, "identity residual requires inplanes == planes*4 (stride=1, no downsample)"

    f32, bf16 = jnp.float32, jnp.bfloat16
    Cin_p = _round_up(Cin, LANE)
    Cmid_p = _round_up(planes, LANE)
    Cout_p = _round_up(Cout, LANE)

    # ---- fold inference BN into conv weight columns (scale) + per-channel bias ----
    def fold_bn(gamma, beta, mean, var):
        s = gamma / jnp.sqrt(var + eps)
        return s, beta - mean * s

    s1, b1 = fold_bn(params["g1"], params["be1"], params["m1"], params["v1"])
    s2, b2 = fold_bn(params["g2"], params["be2"], params["m2"], params["v2"])
    s3, b3 = fold_bn(params["g3"], params["be3"], params["m3"], params["v3"])

    def pad2(a, r, c):
        return jnp.pad(a, ((0, r - a.shape[0]), (0, c - a.shape[1])))

    def padb(v, c):
        return jnp.pad(v, (0, c - v.shape[0])).reshape(1, c).astype(f32)

    w1m = pad2(params["w1"][:, :, 0, 0].T * s1[None, :], Cin_p, Cmid_p).astype(bf16)
    b1p = padb(b1, Cmid_p)
    w2t = jnp.transpose(params["w2"], (2, 3, 1, 0)) * s2[None, None, None, :]
    w2m = jnp.zeros((9, Cmid_p, Cmid_p), f32).at[:, :planes, :planes].set(
        w2t.reshape(9, planes, planes)).astype(bf16)
    b2p = padb(b2, Cmid_p)
    w3m = pad2(params["w3"][:, :, 0, 0].T * s3[None, :], Cmid_p, Cout_p).astype(bf16)
    b3p = padb(b3, Cout_p)

    # ---- spatial layout: NHWC, power-of-two row pitch, row-block tiling ----
    Wp = max(SUB, _next_pow2(W + 2))          # padded row pitch (power of two, >= 16)
    log2_wp = Wp.bit_length() - 1
    if rows_per_block is None:
        rows_per_block = max(2, (512 // Wp) // 2 * 2)   # target ~512 flat rows per block
    R = max(2, min(_round_up(H, 2), _round_up(rows_per_block, 2)))   # even row-block height
    nb = pl.cdiv(H, R)
    Hint = nb * R                              # interior rows incl. bottom padding rows
    Hp2 = Hint + 2                             # padded-image rows (1 halo top, >=1 bottom)

    x = jnp.transpose(x_nchw, (0, 2, 3, 1))    # NCHW -> NHWC (the module interface is NCHW)
    # TODO(synk): in a full NHWC network, keep activations in this padded NHWC layout across
    # blocks and drop the wrapper transposes / final slice entirely.
    xp = jnp.pad(x, ((0, 0), (1, Hp2 - 1 - H), (1, Wp - 1 - W), (0, Cin_p - Cin))).astype(bf16)
    xp = xp.reshape(N, Hp2 * Wp, Cin_p)

    kernel = functools.partial(_bottleneck_kernel, H=H, W=W, Wp=Wp, log2_wp=log2_wp, R=R)

    # VMEM budget: double-buffered x/out blocks + weights + scratch, plus slack for f32 temps.
    est = (2 * ((R * Wp + 2 * Wp) * Cin_p * 2 + R * Wp * Cout_p * 2)
           + 2 * ((Cin_p * Cmid_p + 9 * Cmid_p * Cmid_p + Cmid_p * Cout_p) * 2
                  + (2 * Cmid_p + Cout_p) * 4)
           + (2 * DM + (R + 2) * Wp) * Cmid_p * 2
           + R * Wp * Cmid_p * 4)
    vmem_limit = min(48 << 20, int(1.75 * est) + (16 << 20))

    def run(single_buffer_consts):
        def cspec(shape):
            nd = len(shape)

            def idx(n, ob):
                return (0,) * nd

            if single_buffer_consts:
                return pl.BlockSpec(shape, idx, pipeline_mode=pl.Buffered(1))
            return pl.BlockSpec(shape, idx)

        return pl.pallas_call(
            kernel,
            out_shape=jax.ShapeDtypeStruct((N, Hint * Wp, Cout_p), bf16),
            grid=(N, nb),
            in_specs=[
                # x rows [ob*R, ob*R+R) of the padded image (flattened, row pitch Wp)
                pl.BlockSpec((None, R * Wp, Cin_p), lambda n, ob: (n, ob, 0)),
                # 2-row bottom halo: padded rows [ob*R+R, ob*R+R+2)
                pl.BlockSpec((None, 2 * Wp, Cin_p),
                             lambda n, ob: (n, (ob + 1) * (R // 2), 0)),
                cspec((Cin_p, Cmid_p)),      # w1 (BN folded)
                cspec((1, Cmid_p)),          # b1
                cspec((9, Cmid_p, Cmid_p)),  # w2 taps (BN folded)
                cspec((1, Cmid_p)),          # b2
                cspec((Cmid_p, Cout_p)),     # w3 (BN folded)
                cspec((1, Cout_p)),          # b3
            ],
            out_specs=pl.BlockSpec((None, R * Wp, Cout_p), lambda n, ob: (n, ob, 0)),
            scratch_shapes=[
                pltpu.VMEM((2 * DM + (R + 2) * Wp, Cmid_p), bf16),   # y1 staging (bf16)
                pltpu.VMEM((R * Wp, Cmid_p), f32),                   # conv2 accumulator
            ],
            compiler_params=pltpu.CompilerParams(
                dimension_semantics=("parallel", "parallel"),
                vmem_limit_bytes=vmem_limit),
        )(xp, xp, w1m, b1p, w2m, b2p, w3m, b3p)

    if _CONST_SINGLE_BUFFER:
        try:
            out_p = run(True)
        except Exception:   # pl.Buffered(1) single-buffering unsupported -> default buffering
            _CONST_SINGLE_BUFFER = False
            out_p = run(False)
    else:
        out_p = run(False)

    out = out_p.reshape(N, Hint, Wp, Cout_p)[:, :H, 1:W + 1, :Cout]
    return jnp.transpose(out, (0, 3, 1, 2)).astype(x_nchw.dtype)   # back to NCHW


# ---------------------------------------------------------------------------
# Pure-JAX reference (mirrors the PyTorch module in eval mode)
# ---------------------------------------------------------------------------
def bottleneck_reference(x, p, eps=1e-5):
    def bn(y, g, b, m, v):
        sh = (1, -1, 1, 1)
        return (y - m.reshape(sh)) / jnp.sqrt(v.reshape(sh) + eps) * g.reshape(sh) + b.reshape(sh)

    dn = ("NCHW", "OIHW", "NCHW")
    y = lax.conv_general_dilated(x, p["w1"], (1, 1), "VALID", dimension_numbers=dn)
    y = jax.nn.relu(bn(y, p["g1"], p["be1"], p["m1"], p["v1"]))
    y = lax.conv_general_dilated(y, p["w2"], (1, 1), ((1, 1), (1, 1)), dimension_numbers=dn)
    y = jax.nn.relu(bn(y, p["g2"], p["be2"], p["m2"], p["v2"]))
    y = lax.conv_general_dilated(y, p["w3"], (1, 1), "VALID", dimension_numbers=dn)
    y = bn(y, p["g3"], p["be3"], p["m3"], p["v3"])
    return jax.nn.relu(y + x)


# ---------------------------------------------------------------------------
# Deterministic parameter construction + tests
# ---------------------------------------------------------------------------
def make_params(key, inplanes, planes):
    ks = jax.random.split(key, 8)
    f32 = jnp.float32

    def bn_params(k, c):
        k1, k2, k3, k4 = jax.random.split(k, 4)
        gamma = jax.random.uniform(k1, (c,), f32, 0.5, 1.5)
        beta = jax.random.normal(k2, (c,), f32) * 0.1
        mean = jax.random.normal(k3, (c,), f32) * 0.1
        var = jax.random.uniform(k4, (c,), f32, 0.5, 1.5)
        return gamma, beta, mean, var

    p = {}
    p["w1"] = jax.random.normal(ks[0], (planes, inplanes, 1, 1), f32) * 0.1
    p["w2"] = jax.random.normal(ks[1], (planes, planes, 3, 3), f32) * 0.1
    p["w3"] = jax.random.normal(ks[2], (planes * 4, planes, 1, 1), f32) * 0.1
    p["g1"], p["be1"], p["m1"], p["v1"] = bn_params(ks[3], planes)
    p["g2"], p["be2"], p["m2"], p["v2"] = bn_params(ks[4], planes)
    p["g3"], p["be3"], p["m3"], p["v3"] = bn_params(ks[5], planes * 4)
    return p


def _check(x, params, rows_per_block, tag):
    out = jax.block_until_ready(bottleneck_forward(x, params, rows_per_block=rows_per_block))
    ref = jax.block_until_ready(bottleneck_reference(x, params))
    assert out.shape == ref.shape, (out.shape, ref.shape)
    err = float(jnp.max(jnp.abs(out - ref)))
    # bf16 matmul operands / bf16 output with f32 accumulation -> loosened tolerance.
    assert jnp.allclose(out, ref, rtol=5e-2, atol=5e-2), f"{tag}: max abs err {err}"


if __name__ == "__main__":
    key = jax.random.PRNGKey(0)
    k1, k2, k3, k4 = jax.random.split(key, 4)

    # Config 1: Bottleneck(inplanes=16, planes=4), 2x16x16x16 input, two row blocks per image.
    planes, inplanes = 4, 16
    x1 = jax.random.normal(k1, (2, inplanes, 16, 16), jnp.float32)
    p1 = make_params(k2, inplanes, planes)
    _check(x1, p1, rows_per_block=8, tag="config1")

    # Config 2: non-multiple-of-8 spatial size (14x14), single row block, default heuristic.
    planes2, inplanes2 = 8, 32
    x2 = jax.random.normal(k3, (1, inplanes2, 14, 14), jnp.float32)
    p2 = make_params(k4, inplanes2, planes2)
    _check(x2, p2, rows_per_block=None, tag="config2")

    print("KERNEL_OK")
</pallas_src>

<mosaic_0001>
module attributes {stable_mosaic.version = 11 : i64} {
  func.func @_bottleneck_kernel(%arg0: i32, %arg1: i32, %arg2: memref<1x256x128xbf16, #tpu.memory_space<vmem>>, %arg3: memref<1x64x128xbf16, #tpu.memory_space<vmem>>, %arg4: memref<128x128xbf16, #tpu.memory_space<vmem>>, %arg5: memref<1x128xf32, #tpu.memory_space<vmem>>, %arg6: memref<9x128x128xbf16, #tpu.memory_space<vmem>>, %arg7: memref<1x128xf32, #tpu.memory_space<vmem>>, %arg8: memref<128x128xbf16, #tpu.memory_space<vmem>>, %arg9: memref<1x128xf32, #tpu.memory_space<vmem>>, %arg10: memref<1x256x128xbf16, #tpu.memory_space<vmem>>, %arg11: memref<352x128xbf16, #tpu.memory_space<vmem>>, %arg12: memref<256x128xf32, #tpu.memory_space<vmem>>) attributes {dimension_semantics = [#tpu.dimension_semantics<parallel>, #tpu.dimension_semantics<parallel>], iteration_bounds = array<i64: 2, 2>, scalar_prefetch = 0 : i64, scratch_operands = 2 : i64, tpu.core_type = #tpu.core_type<tc>, window_params = [{transform_indices = @transform_0, window_bounds = array<i64: 1, 256, 128>}, {transform_indices = @transform_1, window_bounds = array<i64: 1, 64, 128>}, {pipeline_mode = #tpu.pipeline_mode<synchronous>, transform_indices = @transform_2, window_bounds = array<i64: 128, 128>}, {pipeline_mode = #tpu.pipeline_mode<synchronous>, transform_indices = @transform_3, window_bounds = array<i64: 1, 128>}, {pipeline_mode = #tpu.pipeline_mode<synchronous>, transform_indices = @transform_4, window_bounds = array<i64: 9, 128, 128>}, {pipeline_mode = #tpu.pipeline_mode<synchronous>, transform_indices = @transform_5, window_bounds = array<i64: 1, 128>}, {pipeline_mode = #tpu.pipeline_mode<synchronous>, transform_indices = @transform_6, window_bounds = array<i64: 128, 128>}, {pipeline_mode = #tpu.pipeline_mode<synchronous>, transform_indices = @transform_7, window_bounds = array<i64: 1, 128>}, {transform_indices = @transform_8, window_bounds = array<i64: 1, 256, 128>}]} {
    %c0 = arith.constant 0 : index
    %c0_0 = arith.constant 0 : index
    %c0_1 = arith.constant 0 : index
    %0 = vector.load %arg2[%c0, %c0_0, %c0_1] : memref<1x256x128xbf16, #tpu.memory_space<vmem>>, vector<1x256x128xbf16>
    %1 = vector.shape_cast %0 : vector<1x256x128xbf16> to vector<256x128xbf16>
    %c0_2 = arith.constant 0 : index
    %c0_3 = arith.constant 0 : index
    %c0_4 = arith.constant 0 : index
    %2 = vector.load %arg3[%c0_2, %c0_3, %c0_4] : memref<1x64x128xbf16, #tpu.memory_space<vmem>>, vector<1x64x128xbf16>
    %3 = vector.shape_cast %2 : vector<1x64x128xbf16> to vector<64x128xbf16>
    %4 = tpu.iota {dimensions = array<i32: 0>} : vector<320x1xi32>
    %c5_i32 = arith.constant 5 : i32
    %5 = vector.broadcast %c5_i32 : i32 to vector<320x1xi32>
    %6 = arith.shrsi %4, %5 : vector<320x1xi32>
    %c8_i32 = arith.constant 8 : i32
    %7 = arith.muli %arg1, %c8_i32 : i32
    %8 = vector.broadcast %7 : i32 to vector<320x1xi32>
    %9 = arith.addi %6, %8 : vector<320x1xi32>
    %c31_i32 = arith.constant 31 : i32
    %10 = vector.broadcast %c31_i32 : i32 to vector<320x1xi32>
    %11 = arith.andi %4, %10 : vector<320x1xi32>
    %c1_i32 = arith.constant 1 : i32
    %12 = vector.broadcast %c1_i32 : i32 to vector<320x1xi32>
    %13 = arith.cmpi sge, %9, %12 : vector<320x1xi32>
    %c16_i32 = arith.constant 16 : i32
    %14 = vector.broadcast %c16_i32 : i32 to vector<320x1xi32>
    %15 = arith.cmpi sle, %9, %14 : vector<320x1xi32>
    %16 = arith.andi %13, %15 : vector<320x1xi1>
    %c1_i32_5 = arith.constant 1 : i32
    %17 = vector.broadcast %c1_i32_5 : i32 to vector<320x1xi32>
    %18 = arith.cmpi sge, %11, %17 : vector<320x1xi32>
    %19 = arith.andi %16, %18 : vector<320x1xi1>
    %c16_i32_6 = arith.constant 16 : i32
    %20 = vector.broadcast %c16_i32_6 : i32 to vector<320x1xi32>
    %21 = arith.cmpi sle, %11, %20 : vector<320x1xi32>
    %22 = arith.andi %19, %21 : vector<320x1xi1>
    %23 = arith.extui %22 : vector<320x1xi1> to vector<320x1xi32>
    %24 = arith.sitofp %23 : vector<320x1xi32> to vector<320x1xf32>
    %c0_7 = arith.constant 0 : index
    %c0_8 = arith.constant 0 : index
    %25 = vector.load %arg4[%c0_7, %c0_8] : memref<128x128xbf16, #tpu.memory_space<vmem>>, vector<128x128xbf16>
    %cst = arith.constant dense<0.000000e+00> : vector<256x128xf32>
    %26 = tpu.matmul %1, %25, %cst {dimension_numbers = #tpu.dot_dimension_numbers<[1], [0], [0], [1], [0, 0, 1, 1], [], []>} : vector<256x128xbf16>, vector<128x128xbf16>, vector<256x128xf32> -> vector<256x128xf32>
    %c0_9 = arith.constant 0 : index
    %c0_10 = arith.constant 0 : index
    %27 = vector.load %arg5[%c0_9, %c0_10] : memref<1x128xf32, #tpu.memory_space<vmem>>, vector<1x128xf32>
    %28 = vector.broadcast %27 : vector<1x128xf32> to vector<256x128xf32>
    %29 = arith.addf %26, %28 : vector<256x128xf32>
    %cst_11 = arith.constant 0.000000e+00 : f32
    %30 = vector.broadcast %cst_11 : f32 to vector<256x128xf32>
    %31 = arith.maximumf %29, %30 : vector<256x128xf32>
    %32 = vector.extract_strided_slice %24 {offsets = [0, 0], sizes = [256, 1], strides = [1, 1]} : vector<320x1xf32> to vector<256x1xf32>
    %33 = vector.broadcast %32 : vector<256x1xf32> to vector<256x128xf32>
    %34 = arith.mulf %31, %33 : vector<256x128xf32>
    %c0_12 = arith.constant 0 : index
    %c0_13 = arith.constant 0 : index
    %35 = vector.load %arg4[%c0_12, %c0_13] : memref<128x128xbf16, #tpu.memory_space<vmem>>, vector<128x128xbf16>
    %cst_14 = arith.constant dense<0.000000e+00> : vector<64x128xf32>
    %36 = tpu.matmul %3, %35, %cst_14 {dimension_numbers = #tpu.dot_dimension_numbers<[1], [0], [0], [1], [0, 0, 1, 1], [], []>} : vector<64x128xbf16>, vector<128x128xbf16>, vector<64x128xf32> -> vector<64x128xf32>
    %c0_15 = arith.constant 0 : index
    %c0_16 = arith.constant 0 : index
    %37 = vector.load %arg5[%c0_15, %c0_16] : memref<1x128xf32, #tpu.memory_space<vmem>>, vector<1x128xf32>
    %38 = vector.broadcast %37 : vector<1x128xf32> to vector<64x128xf32>
    %39 = arith.addf %36, %38 : vector<64x128xf32>
    %cst_17 = arith.constant 0.000000e+00 : f32
    %40 = vector.broadcast %cst_17 : f32 to vector<64x128xf32>
    %41 = arith.maximumf %39, %40 : vector<64x128xf32>
    %42 = vector.extract_strided_slice %24 {offsets = [256, 0], sizes = [64, 1], strides = [1, 1]} : vector<320x1xf32> to vector<64x1xf32>
    %43 = vector.broadcast %42 : vector<64x1xf32> to vector<64x128xf32>
    %44 = arith.mulf %41, %43 : vector<64x128xf32>
    %cst_18 = arith.constant 0.000000e+00 : bf16
    %45 = vector.broadcast %cst_18 : bf16 to vector<16x128xbf16>
    %c0_19 = arith.constant 0 : index
    %c0_20 = arith.constant 0 : index
    %46 = vector.load %arg11[%c0_19, %c0_20] : memref<352x128xbf16, #tpu.memory_space<vmem>>, vector<16x128xbf16>
    tpu.vector_store %arg11[%c0_19, %c0_20], %45 {strides = array<i32>} : memref<352x128xbf16, #tpu.memory_space<vmem>>, vector<16x128xbf16>,
    %cst_21 = arith.constant 0.000000e+00 : bf16
    %47 = vector.broadcast %cst_21 : bf16 to vector<16x128xbf16>
    %c336 = arith.constant 336 : index
    %c0_22 = arith.constant 0 : index
    %48 = vector.load %arg11[%c336, %c0_22] : memref<352x128xbf16, #tpu.memory_space<vmem>>, vector<16x128xbf16>
    tpu.vector_store %arg11[%c336, %c0_22], %47 {strides = array<i32>} : memref<352x128xbf16, #tpu.memory_space<vmem>>, vector<16x128xbf16>,
    %49 = arith.truncf %34 : vector<256x128xf32> to vector<256x128xbf16>
    %c16 = arith.constant 16 : index
    %c0_23 = arith.constant 0 : index
    %50 = vector.load %arg11[%c16, %c0_23] : memref<352x128xbf16, #tpu.memory_space<vmem>>, vector<256x128xbf16>
    tpu.vector_store %arg11[%c16, %c0_23], %49 {strides = array<i32>} : memref<352x128xbf16, #tpu.memory_space<vmem>>, vector<256x128xbf16>,
    %51 = arith.truncf %44 : vector<64x128xf32> to vector<64x128xbf16>
    %c272 = arith.constant 272 : index
    %c0_24 = arith.constant 0 : index
    %52 = vector.load %arg11[%c272, %c0_24] : memref<352x128xbf16, #tpu.memory_space<vmem>>, vector<64x128xbf16>
    tpu.vector_store %arg11[%c272, %c0_24], %51 {strides = array<i32>} : memref<352x128xbf16, #tpu.memory_space<vmem>>, vector<64x128xbf16>,
    %c15 = arith.constant 15 : index
    %c0_25 = arith.constant 0 : index
    %53 = vector.load %arg11[%c15, %c0_25] : memref<352x128xbf16, #tpu.memory_space<vmem>>, vector<256x128xbf16>
    %c0_26 = arith.constant 0 : index
    %c0_27 = arith.constant 0 : index
    %c0_28 = arith.constant 0 : index
    %54 = vector.load %arg6[%c0_26, %c0_27, %c0_28] : memref<9x128x128xbf16, #tpu.memory_space<vmem>>, vector<1x128x128xbf16>
    %55 = vector.shape_cast %54 : vector<1x128x128xbf16> to vector<128x128xbf16>
    %cst_29 = arith.constant dense<0.000000e+00> : vector<256x128xf32>
    %56 = tpu.matmul %53, %55, %cst_29 {dimension_numbers = #tpu.dot_dimension_numbers<[1], [0], [0], [1], [0, 0, 1, 1], [], []>} : vector<256x128xbf16>, vector<128x128xbf16>, vector<256x128xf32> -> vector<256x128xf32>
    %c0_30 = arith.constant 0 : index
    %c0_31 = arith.constant 0 : index
    %57 = vector.load %arg12[%c0_30, %c0_31] : memref<256x128xf32, #tpu.memory_space<vmem>>, vector<256x128xf32>
    tpu.vector_store %arg12[%c0_30, %c0_31], %56 {strides = array<i32>} : memref<256x128xf32, #tpu.memory_space<vmem>>, vector<256x128xf32>,
    %c16_32 = arith.constant 16 : index
    %c0_33 = arith.constant 0 : index
    %58 = vector.load %arg11[%c16_32, %c0_33] : memref<352x128xbf16, #tpu.memory_space<vmem>>, vector<256x128xbf16>
    %c1 = arith.constant 1 : index
    %c0_34 = arith.constant 0 : index
    %c0_35 = arith.constant 0 : index
    %59 = vector.load %arg6[%c1, %c0_34, %c0_35] : memref<9x128x128xbf16, #tpu.memory_space<vmem>>, vector<1x128x128xbf16>
    %60 = vector.shape_cast %59 : vector<1x128x128xbf16> to vector<128x128xbf16>
    %cst_36 = arith.constant dense<0.000000e+00> : vector<256x128xf32>
    %61 = tpu.matmul %58, %60, %cst_36 {dimension_numbers = #tpu.dot_dimension_numbers<[1], [0], [0], [1], [0, 0, 1, 1], [], []>} : vector<256x128xbf16>, vector<128x128xbf16>, vector<256x128xf32> -> vector<256x128xf32>
    %c0_37 = arith.constant 0 : index
    %c0_38 = arith.constant 0 : index
    %62 = vector.load %arg12[%c0_37, %c0_38] : memref<256x128xf32, #tpu.memory_space<vmem>>, vector<256x128xf32>
    %63 = arith.addf %62, %61 : vector<256x128xf32>
    %c0_39 = arith.constant 0 : index
    %c0_40 = arith.constant 0 : index
    %64 = vector.load %arg12[%c0_39, %c0_40] : memref<256x128xf32, #tpu.memory_space<vmem>>, vector<256x128xf32>
    tpu.vector_store %arg12[%c0_39, %c0_40], %63 {strides = array<i32>} : memref<256x128xf32, #tpu.memory_space<vmem>>, vector<256x128xf32>,
    %c17 = arith.constant 17 : index
    %c0_41 = arith.constant 0 : index
    %65 = vector.load %arg11[%c17, %c0_41] : memref<352x128xbf16, #tpu.memory_space<vmem>>, vector<256x128xbf16>
    %c2 = arith.constant 2 : index
    %c0_42 = arith.constant 0 : index
    %c0_43 = arith.constant 0 : index
    %66 = vector.load %arg6[%c2, %c0_42, %c0_43] : memref<9x128x128xbf16, #tpu.memory_space<vmem>>, vector<1x128x128xbf16>
    %67 = vector.shape_cast %66 : vector<1x128x128xbf16> to vector<128x128xbf16>
    %cst_44 = arith.constant dense<0.000000e+00> : vector<256x128xf32>
    %68 = tpu.matmul %65, %67, %cst_44 {dimension_numbers = #tpu.dot_dimension_numbers<[1], [0], [0], [1], [0, 0, 1, 1], [], []>} : vector<256x128xbf16>, vector<128x128xbf16>, vector<256x128xf32> -> vector<256x128xf32>
    %c0_45 = arith.constant 0 : index
    %c0_46 = arith.constant 0 : index
    %69 = vector.load %arg12[%c0_45, %c0_46] : memref<256x128xf32, #tpu.memory_space<vmem>>, vector<256x128xf32>
    %70 = arith.addf %69, %68 : vector<256x128xf32>
    %c0_47 = arith.constant 0 : index
    %c0_48 = arith.constant 0 : index
    %71 = vector.load %arg12[%c0_47, %c0_48] : memref<256x128xf32, #tpu.memory_space<vmem>>, vector<256x128xf32>
    tpu.vector_store %arg12[%c0_47, %c0_48], %70 {strides = array<i32>} : memref<256x128xf32, #tpu.memory_space<vmem>>, vector<256x128xf32>,
    %c47 = arith.constant 47 : index
    %c0_49 = arith.constant 0 : index
    %72 = vector.load %arg11[%c47, %c0_49] : memref<352x128xbf16, #tpu.memory_space<vmem>>, vector<256x128xbf16>
    %c3 = arith.constant 3 : index
    %c0_50 = arith.constant 0 : index
    %c0_51 = arith.constant 0 : index
    %73 = vector.load %arg6[%c3, %c0_50, %c0_51] : memref<9x128x128xbf16, #tpu.memory_space<vmem>>, vector<1x128x128xbf16>
    %74 = vector.shape_cast %73 : vector<1x128x128xbf16> to vector<128x128xbf16>
    %cst_52 = arith.constant dense<0.000000e+00> : vector<256x128xf32>
    %75 = tpu.matmul %72, %74, %cst_52 {dimension_numbers = #tpu.dot_dimension_numbers<[1], [0], [0], [1], [0, 0, 1, 1], [], []>} : vector<256x128xbf16>, vector<128x128xbf16>, vector<256x128xf32> -> vector<256x128xf32>
    %c0_53 = arith.constant 0 : index
    %c0_54 = arith.constant 0 : index
    %76 = vector.load %arg12[%c0_53, %c0_54] : memref<256x128xf32, #tpu.memory_space<vmem>>, vector<256x128xf32>
    %77 = arith.addf %76, %75 : vector<256x128xf32>
    %c0_55 = arith.constant 0 : index
    %c0_56 = arith.constant 0 : index
    %78 = vector.load %arg12[%c0_55, %c0_56] : memref<256x128xf32, #tpu.memory_space<vmem>>, vector<256x128xf32>
    tpu.vector_store %arg12[%c0_55, %c0_56], %77 {strides = array<i32>} : memref<256x128xf32, #tpu.memory_space<vmem>>, vector<256x128xf32>,
    %c48 = arith.constant 48 : index
    %c0_57 = arith.constant 0 : index
    %79 = vector.load %arg11[%c48, %c0_57] : memref<352x128xbf16, #tpu.memory_space<vmem>>, vector<256x128xbf16>
    %c4 = arith.constant 4 : index
    %c0_58 = arith.constant 0 : index
    %c0_59 = arith.constant 0 : index
    %80 = vector.load %arg6[%c4, %c0_58, %c0_59] : memref<9x128x128xbf16, #tpu.memory_space<vmem>>, vector<1x128x128xbf16>
    %81 = vector.shape_cast %80 : vector<1x128x128xbf16> to vector<128x128xbf16>
    %cst_60 = arith.constant dense<0.000000e+00> : vector<256x128xf32>
    %82 = tpu.matmul %79, %81, %cst_60 {dimension_numbers = #tpu.dot_dimension_numbers<[1], [0], [0], [1], [0, 0, 1, 1], [], []>} : vector<256x128xbf16>, vector<128x128xbf16>, vector<256x128xf32> -> vector<256x128xf32>
    %c0_61 = arith.constant 0 : index
    %c0_62 = arith.constant 0 : index
    %83 = vector.load %arg12[%c0_61, %c0_62] : memref<256x128xf32, #tpu.memory_space<vmem>>, vector<256x128xf32>
    %84 = arith.addf %83, %82 : vector<256x128xf32>
    %c0_63 = arith.constant 0 : index
    %c0_64 = arith.constant 0 : index
    %85 = vector.load %arg12[%c0_63, %c0_64] : memref<256x128xf32, #tpu.memory_space<vmem>>, vector<256x128xf32>
    tpu.vector_store %arg12[%c0_63, %c0_64], %84 {strides = array<i32>} : memref<256x128xf32, #tpu.memory_space<vmem>>, vector<256x128xf32>,
    %c49 = arith.constant 49 : index
    %c0_65 = arith.constant 0 : index
    %86 = vector.load %arg11[%c49, %c0_65] : memref<352x128xbf16, #tpu.memory_space<vmem>>, vector<256x128xbf16>
    %c5 = arith.constant 5 : index
    %c0_66 = arith.constant 0 : index
    %c0_67 = arith.constant 0 : index
    %87 = vector.load %arg6[%c5, %c0_66, %c0_67] : memref<9x128x128xbf16, #tpu.memory_space<vmem>>, vector<1x128x128xbf16>
    %88 = vector.shape_cast %87 : vector<1x128x128xbf16> to vector<128x128xbf16>
    %cst_68 = arith.constant dense<0.000000e+00> : vector<256x128xf32>
    %89 = tpu.matmul %86, %88, %cst_68 {dimension_numbers = #tpu.dot_dimension_numbers<[1], [0], [0], [1], [0, 0, 1, 1], [], []>} : vector<256x128xbf16>, vector<128x128xbf16>, vector<256x128xf32> -> vector<256x128xf32>
    %c0_69 = arith.constant 0 : index
    %c0_70 = arith.constant 0 : index
    %90 = vector.load %arg12[%c0_69, %c0_70] : memref<256x128xf32, #tpu.memory_space<vmem>>, vector<256x128xf32>
    %91 = arith.addf %90, %89 : vector<256x128xf32>
    %c0_71 = arith.constant 0 : index
    %c0_72 = arith.constant 0 : index
    %92 = vector.load %arg12[%c0_71, %c0_72] : memref<256x128xf32, #tpu.memory_space<vmem>>, vector<256x128xf32>
    tpu.vector_store %arg12[%c0_71, %c0_72], %91 {strides = array<i32>} : memref<256x128xf32, #tpu.memory_space<vmem>>, vector<256x128xf32>,
    %c79 = arith.constant 79 : index
    %c0_73 = arith.constant 0 : index
    %93 = vector.load %arg11[%c79, %c0_73] : memref<352x128xbf16, #tpu.memory_space<vmem>>, vector<256x128xbf16>
    %c6 = arith.constant 6 : index
    %c0_74 = arith.constant 0 : index
    %c0_75 = arith.constant 0 : index
    %94 = vector.load %arg6[%c6, %c0_74, %c0_75] : memref<9x128x128xbf16, #tpu.memory_space<vmem>>, vector<1x128x128xbf16>
    %95 = vector.shape_cast %94 : vector<1x128x128xbf16> to vector<128x128xbf16>
    %cst_76 = arith.constant dense<0.000000e+00> : vector<256x128xf32>
    %96 = tpu.matmul %93, %95, %cst_76 {dimension_numbers = #tpu.dot_dimension_numbers<[1], [0], [0], [1], [0, 0, 1, 1], [], []>} : vector<256x128xbf16>, vector<128x128xbf16>, vector<256x128xf32> -> vector<256x128xf32>
    %c0_77 = arith.constant 0 : index
    %c0_78 = arith.constant 0 : index
    %97 = vector.load %arg12[%c0_77, %c0_78] : memref<256x128xf32, #tpu.memory_space<vmem>>, vector<256x128xf32>
    %98 = arith.addf %97, %96 : vector<256x128xf32>
    %c0_79 = arith.constant 0 : index
    %c0_80 = arith.constant 0 : index
    %99 = vector.load %arg12[%c0_79, %c0_80] : memref<256x128xf32, #tpu.memory_space<vmem>>, vector<256x128xf32>
    tpu.vector_store %arg12[%c0_79, %c0_80], %98 {strides = array<i32>} : memref<256x128xf32, #tpu.memory_space<vmem>>, vector<256x128xf32>,
    %c80 = arith.constant 80 : index
    %c0_81 = arith.constant 0 : index
    %100 = vector.load %arg11[%c80, %c0_81] : memref<352x128xbf16, #tpu.memory_space<vmem>>, vector<256x128xbf16>
    %c7 = arith.constant 7 : index
    %c0_82 = arith.constant 0 : index
    %c0_83 = arith.constant 0 : index
    %101 = vector.load %arg6[%c7, %c0_82, %c0_83] : memref<9x128x128xbf16, #tpu.memory_space<vmem>>, vector<1x128x128xbf16>
    %102 = vector.shape_cast %101 : vector<1x128x128xbf16> to vector<128x128xbf16>
    %cst_84 = arith.constant dense<0.000000e+00> : vector<256x128xf32>
    %103 = tpu.matmul %100, %102, %cst_84 {dimension_numbers = #tpu.dot_dimension_numbers<[1], [0], [0], [1], [0, 0, 1, 1], [], []>} : vector<256x128xbf16>, vector<128x128xbf16>, vector<256x128xf32> -> vector<256x128xf32>
    %c0_85 = arith.constant 0 : index
    %c0_86 = arith.constant 0 : index
    %104 = vector.load %arg12[%c0_85, %c0_86] : memref<256x128xf32, #tpu.memory_space<vmem>>, vector<256x128xf32>
    %105 = arith.addf %104, %103 : vector<256x128xf32>
    %c0_87 = arith.constant 0 : index
    %c0_88 = arith.constant 0 : index
    %106 = vector.load %arg12[%c0_87, %c0_88] : memref<256x128xf32, #tpu.memory_space<vmem>>, vector<256x128xf32>
    tpu.vector_store %arg12[%c0_87, %c0_88], %105 {strides = array<i32>} : memref<256x128xf32, #tpu.memory_space<vmem>>, vector<256x128xf32>,
    %c81 = arith.constant 81 : index
    %c0_89 = arith.constant 0 : index
    %107 = vector.load %arg11[%c81, %c0_89] : memref<352x128xbf16, #tpu.memory_space<vmem>>, vector<256x128xbf16>
    %c8 = arith.constant 8 : index
    %c0_90 = arith.constant 0 : index
    %c0_91 = arith.constant 0 : index
    %108 = vector.load %arg6[%c8, %c0_90, %c0_91] : memref<9x128x128xbf16, #tpu.memory_space<vmem>>, vector<1x128x128xbf16>
    %109 = vector.shape_cast %108 : vector<1x128x128xbf16> to vector<128x128xbf16>
    %cst_92 = arith.constant dense<0.000000e+00> : vector<256x128xf32>
    %110 = tpu.matmul %107, %109, %cst_92 {dimension_numbers = #tpu.dot_dimension_numbers<[1], [0], [0], [1], [0, 0, 1, 1], [], []>} : vector<256x128xbf16>, vector<128x128xbf16>, vector<256x128xf32> -> vector<256x128xf32>
    %c0_93 = arith.constant 0 : index
    %c0_94 = arith.constant 0 : index
    %111 = vector.load %arg12[%c0_93, %c0_94] : memref<256x128xf32, #tpu.memory_space<vmem>>, vector<256x128xf32>
    %112 = arith.addf %111, %110 : vector<256x128xf32>
    %c0_95 = arith.constant 0 : index
    %c0_96 = arith.constant 0 : index
    %113 = vector.load %arg12[%c0_95, %c0_96] : memref<256x128xf32, #tpu.memory_space<vmem>>, vector<256x128xf32>
    tpu.vector_store %arg12[%c0_95, %c0_96], %112 {strides = array<i32>} : memref<256x128xf32, #tpu.memory_space<vmem>>, vector<256x128xf32>,
    %c0_97 = arith.constant 0 : index
    %c0_98 = arith.constant 0 : index
    %114 = vector.load %arg12[%c0_97, %c0_98] : memref<256x128xf32, #tpu.memory_space<vmem>>, vector<256x128xf32>
    %c0_99 = arith.constant 0 : index
    %c0_100 = arith.constant 0 : index
    %115 = vector.load %arg7[%c0_99, %c0_100] : memref<1x128xf32, #tpu.memory_space<vmem>>, vector<1x128xf32>
    %116 = vector.broadcast %115 : vector<1x128xf32> to vector<256x128xf32>
    %117 = arith.addf %114, %116 : vector<256x128xf32>
    %cst_101 = arith.constant 0.000000e+00 : f32
    %118 = vector.broadcast %cst_101 : f32 to vector<256x128xf32>
    %119 = arith.maximumf %117, %118 : vector<256x128xf32>
    %120 = arith.truncf %119 : vector<256x128xf32> to vector<256x128xbf16>
    %c0_102 = arith.constant 0 : index
    %c0_103 = arith.constant 0 : index
    %121 = vector.load %arg8[%c0_102, %c0_103] : memref<128x128xbf16, #tpu.memory_space<vmem>>, vector<128x128xbf16>
    %cst_104 = arith.constant dense<0.000000e+00> : vector<256x128xf32>
    %122 = tpu.matmul %120, %121, %cst_104 {dimension_numbers = #tpu.dot_dimension_numbers<[1], [0], [0], [1], [0, 0, 1, 1], [], []>} : vector<256x128xbf16>, vector<128x128xbf16>, vector<256x128xf32> -> vector<256x128xf32>
    %c0_105 = arith.constant 0 : index
    %c0_106 = arith.constant 0 : index
    %123 = vector.load %arg9[%c0_105, %c0_106] : memref<1x128xf32, #tpu.memory_space<vmem>>, vector<1x128xf32>
    %124 = vector.broadcast %123 : vector<1x128xf32> to vector<256x128xf32>
    %125 = arith.addf %122, %124 : vector<256x128xf32>
    %126 = vector.extract_strided_slice %125 {offsets = [0, 0], sizes = [224, 128], strides = [1, 1]} : vector<256x128xf32> to vector<224x128xf32>
    %127 = vector.extract_strided_slice %1 {offsets = [32, 0], sizes = [224, 128], strides = [1, 1]} : vector<256x128xbf16> to vector<224x128xbf16>
    %128 = arith.extf %127 : vector<224x128xbf16> to vector<224x128xf32>
    %129 = arith.addf %126, %128 : vector<224x128xf32>
    %cst_107 = arith.constant 0.000000e+00 : f32
    %130 = vector.broadcast %cst_107 : f32 to vector<224x128xf32>
    %131 = arith.maximumf %129, %130 : vector<224x128xf32>
    %132 = arith.truncf %131 : vector<224x128xf32> to vector<224x128xbf16>
    %c0_108 = arith.constant 0 : index
    %c0_109 = arith.constant 0 : index
    %c0_110 = arith.constant 0 : index
    %133 = vector.load %arg10[%c0_108, %c0_109, %c0_110] : memref<1x256x128xbf16, #tpu.memory_space<vmem>>, vector<1x224x128xbf16>
    %134 = vector.shape_cast %133 : vector<1x224x128xbf16> to vector<224x128xbf16>
    %135 = vector.shape_cast %132 : vector<224x128xbf16> to vector<1x224x128xbf16>
    tpu.vector_store %arg10[%c0_108, %c0_109, %c0_110], %135 {strides = array<i32>} : memref<1x256x128xbf16, #tpu.memory_space<vmem>>, vector<1x224x128xbf16>,
    %136 = vector.extract_strided_slice %125 {offsets = [224, 0], sizes = [32, 128], strides = [1, 1]} : vector<256x128xf32> to vector<32x128xf32>
    %137 = vector.extract_strided_slice %3 {offsets = [0, 0], sizes = [32, 128], strides = [1, 1]} : vector<64x128xbf16> to vector<32x128xbf16>
    %138 = arith.extf %137 : vector<32x128xbf16> to vector<32x128xf32>
    %139 = arith.addf %136, %138 : vector<32x128xf32>
    %cst_111 = arith.constant 0.000000e+00 : f32
    %140 = vector.broadcast %cst_111 : f32 to vector<32x128xf32>
    %141 = arith.maximumf %139, %140 : vector<32x128xf32>
    %142 = arith.truncf %141 : vector<32x128xf32> to vector<32x128xbf16>
    %c0_112 = arith.constant 0 : index
    %c224 = arith.constant 224 : index
    %c0_113 = arith.constant 0 : index
    %143 = vector.load %arg10[%c0_112, %c224, %c0_113] : memref<1x256x128xbf16, #tpu.memory_space<vmem>>, vector<1x32x128xbf16>
    %144 = vector.shape_cast %143 : vector<1x32x128xbf16> to vector<32x128xbf16>
    %145 = vector.shape_cast %142 : vector<32x128xbf16> to vector<1x32x128xbf16>
    tpu.vector_store %arg10[%c0_112, %c224, %c0_113], %145 {strides = array<i32>} : memref<1x256x128xbf16, #tpu.memory_space<vmem>>, vector<1x32x128xbf16>,
    return
  }
  func.func @transform_0(%arg0: i32, %arg1: i32) -> (i32, i32, i32) {
    %c0_i32 = arith.constant 0 : i32
    %c0_i32_0 = arith.constant 0 : i32
    return %arg0, %arg1, %c0_i32 : i32, i32, i32
  }
  func.func @transform_1(%arg0: i32, %arg1: i32) -> (i32, i32, i32) {
    %c1_i32 = arith.constant 1 : i32
    %0 = arith.addi %arg1, %c1_i32 : i32
    %c4_i32 = arith.constant 4 : i32
    %1 = arith.muli %0, %c4_i32 : i32
    %c0_i32 = arith.constant 0 : i32
    %c0_i32_0 = arith.constant 0 : i32
    return %arg0, %1, %c0_i32 : i32, i32, i32
  }
  func.func @transform_2(%arg0: i32, %arg1: i32) -> (i32, i32) {
    %c0_i32 = arith.constant 0 : i32
    %c0_i32_0 = arith.constant 0 : i32
    %c0_i32_1 = arith.constant 0 : i32
    return %c0_i32, %c0_i32_0 : i32, i32
  }
  func.func @transform_3(%arg0: i32, %arg1: i32) -> (i32, i32) {
    %c0_i32 = arith.constant 0 : i32
    %c0_i32_0 = arith.constant 0 : i32
    %c0_i32_1 = arith.constant 0 : i32
    return %c0_i32, %c0_i32_0 : i32, i32
  }
  func.func @transform_4(%arg0: i32, %arg1: i32) -> (i32, i32, i32) {
    %c0_i32 = arith.constant 0 : i32
    %c0_i32_0 = arith.constant 0 : i32
    %c0_i32_1 = arith.constant 0 : i32
    %c0_i32_2 = arith.constant 0 : i32
    return %c0_i32, %c0_i32_0, %c0_i32_1 : i32, i32, i32
  }
  func.func @transform_5(%arg0: i32, %arg1: i32) -> (i32, i32) {
    %c0_i32 = arith.constant 0 : i32
    %c0_i32_0 = arith.constant 0 : i32
    %c0_i32_1 = arith.constant 0 : i32
    return %c0_i32, %c0_i32_0 : i32, i32
  }
  func.func @transform_6(%arg0: i32, %arg1: i32) -> (i32, i32) {
    %c0_i32 = arith.constant 0 : i32
    %c0_i32_0 = arith.constant 0 : i32
    %c0_i32_1 = arith.constant 0 : i32
    return %c0_i32, %c0_i32_0 : i32, i32
  }
  func.func @transform_7(%arg0: i32, %arg1: i32) -> (i32, i32) {
    %c0_i32 = arith.constant 0 : i32
    %c0_i32_0 = arith.constant 0 : i32
    %c0_i32_1 = arith.constant 0 : i32
    return %c0_i32, %c0_i32_0 : i32, i32
  }
  func.func @transform_8(%arg0: i32, %arg1: i32) -> (i32, i32, i32) {
    %c0_i32 = arith.constant 0 : i32
    %c0_i32_0 = arith.constant 0 : i32
    return %arg0, %arg1, %c0_i32 : i32, i32, i32
  }
}

module attributes {stable_mosaic.version = 11 : i64} {
  func.func @_bottleneck_kernel(%arg0: i32, %arg1: i32, %arg2: memref<1x256x128xbf16, #tpu.memory_space<vmem>>, %arg3: memref<1x64x128xbf16, #tpu.memory_space<vmem>>, %arg4: memref<128x128xbf16, #tpu.memory_space<vmem>>, %arg5: memref<1x128xf32, #tpu.memory_space<vmem>>, %arg6: memref<9x128x128xbf16, #tpu.memory_space<vmem>>, %arg7: memref<1x128xf32, #tpu.memory_space<vmem>>, %arg8: memref<128x128xbf16, #tpu.memory_space<vmem>>, %arg9: memref<1x128xf32, #tpu.memory_space<vmem>>, %arg10: memref<1x256x128xbf16, #tpu.memory_space<vmem>>, %arg11: memref<352x128xbf16, #tpu.memory_space<vmem>>, %arg12: memref<256x128xf32, #tpu.memory_space<vmem>>) attributes {dimension_semantics = [#tpu.dimension_semantics<parallel>, #tpu.dimension_semantics<parallel>], iteration_bounds = array<i64: 2, 2>, scalar_prefetch = 0 : i64, scratch_operands = 2 : i64, tpu.core_type = #tpu.core_type<tc>, window_params = [{transform_indices = @transform_0, window_bounds = array<i64: 1, 256, 128>}, {transform_indices = @transform_1, window_bounds = array<i64: 1, 64, 128>}, {pipeline_mode = #tpu.pipeline_mode<synchronous>, transform_indices = @transform_2, window_bounds = array<i64: 128, 128>}, {pipeline_mode = #tpu.pipeline_mode<synchronous>, transform_indices = @transform_3, window_bounds = array<i64: 1, 128>}, {pipeline_mode = #tpu.pipeline_mode<synchronous>, transform_indices = @transform_4, window_bounds = array<i64: 9, 128, 128>}, {pipeline_mode = #tpu.pipeline_mode<synchronous>, transform_indices = @transform_5, window_bounds = array<i64: 1, 128>}, {pipeline_mode = #tpu.pipeline_mode<synchronous>, transform_indices = @transform_6, window_bounds = array<i64: 128, 128>}, {pipeline_mode = #tpu.pipeline_mode<synchronous>, transform_indices = @transform_7, window_bounds = array<i64: 1, 128>}, {transform_indices = @transform_8, window_bounds = array<i64: 1, 256, 128>}]} {
    %c0 = arith.constant 0 : index
    %c0_0 = arith.constant 0 : index
    %c0_1 = arith.constant 0 : index
    %0 = vector.load %arg2[%c0, %c0_0, %c0_1] : memref<1x256x128xbf16, #tpu.memory_space<vmem>>, vector<1x256x128xbf16>
    %1 = vector.shape_cast %0 : vector<1x256x128xbf16> to vector<256x128xbf16>
    %c0_2 = arith.constant 0 : index
    %c0_3 = arith.constant 0 : index
    %c0_4 = arith.constant 0 : index
    %2 = vector.load %arg3[%c0_2, %c0_3, %c0_4] : memref<1x64x128xbf16, #tpu.memory_space<vmem>>, vector<1x64x128xbf16>
    %3 = vector.shape_cast %2 : vector<1x64x128xbf16> to vector<64x128xbf16>
    %4 = tpu.iota {dimensions = array<i32: 0>} : vector<320x1xi32>
    %c5_i32 = arith.constant 5 : i32
    %5 = vector.broadcast %c5_i32 : i32 to vector<320x1xi32>
    %6 = arith.shrsi %4, %5 : vector<320x1xi32>
    %c8_i32 = arith.constant 8 : i32
    %7 = arith.muli %arg1, %c8_i32 : i32
    %8 = vector.broadcast %7 : i32 to vector<320x1xi32>
    %9 = arith.addi %6, %8 : vector<320x1xi32>
    %c31_i32 = arith.constant 31 : i32
    %10 = vector.broadcast %c31_i32 : i32 to vector<320x1xi32>
    %11 = arith.andi %4, %10 : vector<320x1xi32>
    %c1_i32 = arith.constant 1 : i32
    %12 = vector.broadcast %c1_i32 : i32 to vector<320x1xi32>
    %13 = arith.cmpi sge, %9, %12 : vector<320x1xi32>
    %c16_i32 = arith.constant 16 : i32
    %14 = vector.broadcast %c16_i32 : i32 to vector<320x1xi32>
    %15 = arith.cmpi sle, %9, %14 : vector<320x1xi32>
    %16 = arith.andi %13, %15 : vector<320x1xi1>
    %c1_i32_5 = arith.constant 1 : i32
    %17 = vector.broadcast %c1_i32_5 : i32 to vector<320x1xi32>
    %18 = arith.cmpi sge, %11, %17 : vector<320x1xi32>
    %19 = arith.andi %16, %18 : vector<320x1xi1>
    %c16_i32_6 = arith.constant 16 : i32
    %20 = vector.broadcast %c16_i32_6 : i32 to vector<320x1xi32>
    %21 = arith.cmpi sle, %11, %20 : vector<320x1xi32>
    %22 = arith.andi %19, %21 : vector<320x1xi1>
    %23 = arith.extui %22 : vector<320x1xi1> to vector<320x1xi32>
    %24 = arith.sitofp %23 : vector<320x1xi32> to vector<320x1xf32>
    %c0_7 = arith.constant 0 : index
    %c0_8 = arith.constant 0 : index
    %25 = vector.load %arg4[%c0_7, %c0_8] : memref<128x128xbf16, #tpu.memory_space<vmem>>, vector<128x128xbf16>
    %cst = arith.constant dense<0.000000e+00> : vector<256x128xf32>
    %26 = tpu.matmul %1, %25, %cst {dimension_numbers = #tpu.dot_dimension_numbers<[1], [0], [0], [1], [0, 0, 1, 1], [], []>} : vector<256x128xbf16>, vector<128x128xbf16>, vector<256x128xf32> -> vector<256x128xf32>
    %c0_9 = arith.constant 0 : index
    %c0_10 = arith.constant 0 : index
    %27 = vector.load %arg5[%c0_9, %c0_10] : memref<1x128xf32, #tpu.memory_space<vmem>>, vector<1x128xf32>
    %28 = vector.broadcast %27 : vector<1x128xf32> to vector<256x128xf32>
    %29 = arith.addf %26, %28 : vector<256x128xf32>
    %cst_11 = arith.constant 0.000000e+00 : f32
    %30 = vector.broadcast %cst_11 : f32 to vector<256x128xf32>
    %31 = arith.maximumf %29, %30 : vector<256x128xf32>
    %32 = vector.extract_strided_slice %24 {offsets = [0, 0], sizes = [256, 1], strides = [1, 1]} : vector<320x1xf32> to vector<256x1xf32>
    %33 = vector.broadcast %32 : vector<256x1xf32> to vector<256x128xf32>
    %34 = arith.mulf %31, %33 : vector<256x128xf32>
    %c0_12 = arith.constant 0 : index
    %c0_13 = arith.constant 0 : index
    %35 = vector.load %arg4[%c0_12, %c0_13] : memref<128x128xbf16, #tpu.memory_space<vmem>>, vector<128x128xbf16>
    %cst_14 = arith.constant dense<0.000000e+00> : vector<64x128xf32>
    %36 = tpu.matmul %3, %35, %cst_14 {dimension_numbers = #tpu.dot_dimension_numbers<[1], [0], [0], [1], [0, 0, 1, 1], [], []>} : vector<64x128xbf16>, vector<128x128xbf16>, vector<64x128xf32> -> vector<64x128xf32>
    %c0_15 = arith.constant 0 : index
    %c0_16 = arith.constant 0 : index
    %37 = vector.load %arg5[%c0_15, %c0_16] : memref<1x128xf32, #tpu.memory_space<vmem>>, vector<1x128xf32>
    %38 = vector.broadcast %37 : vector<1x128xf32> to vector<64x128xf32>
    %39 = arith.addf %36, %38 : vector<64x128xf32>
    %cst_17 = arith.constant 0.000000e+00 : f32
    %40 = vector.broadcast %cst_17 : f32 to vector<64x128xf32>
    %41 = arith.maximumf %39, %40 : vector<64x128xf32>
    %42 = vector.extract_strided_slice %24 {offsets = [256, 0], sizes = [64, 1], strides = [1, 1]} : vector<320x1xf32> to vector<64x1xf32>
    %43 = vector.broadcast %42 : vector<64x1xf32> to vector<64x128xf32>
    %44 = arith.mulf %41, %43 : vector<64x128xf32>
    %cst_18 = arith.constant 0.000000e+00 : bf16
    %45 = vector.broadcast %cst_18 : bf16 to vector<16x128xbf16>
    %c0_19 = arith.constant 0 : index
    %c0_20 = arith.constant 0 : index
    %46 = vector.load %arg11[%c0_19, %c0_20] : memref<352x128xbf16, #tpu.memory_space<vmem>>, vector<16x128xbf16>
    tpu.vector_store %arg11[%c0_19, %c0_20], %45 {strides = array<i32>} : memref<352x128xbf16, #tpu.memory_space<vmem>>, vector<16x128xbf16>,
    %cst_21 = arith.constant 0.000000e+00 : bf16
    %47 = vector.broadcast %cst_21 : bf16 to vector<16x128xbf16>
    %c336 = arith.constant 336 : index
    %c0_22 = arith.constant 0 : index
    %48 = vector.load %arg11[%c336, %c0_22] : memref<352x128xbf16, #tpu.memory_space<vmem>>, vector<16x128xbf16>
    tpu.vector_store %arg11[%c336, %c0_22], %47 {strides = array<i32>} : memref<352x128xbf16, #tpu.memory_space<vmem>>, vector<16x128xbf16>,
    %49 = arith.truncf %34 : vector<256x128xf32> to vector<256x128xbf16>
    %c16 = arith.constant 16 : index
    %c0_23 = arith.constant 0 : index
    %50 = vector.load %arg11[%c16, %c0_23] : memref<352x128xbf16, #tpu.memory_space<vmem>>, vector<256x128xbf16>
    tpu.vector_store %arg11[%c16, %c0_23], %49 {strides = array<i32>} : memref<352x128xbf16, #tpu.memory_space<vmem>>, vector<256x128xbf16>,
    %51 = arith.truncf %44 : vector<64x128xf32> to vector<64x128xbf16>
    %c272 = arith.constant 272 : index
    %c0_24 = arith.constant 0 : index
    %52 = vector.load %arg11[%c272, %c0_24] : memref<352x128xbf16, #tpu.memory_space<vmem>>, vector<64x128xbf16>
    tpu.vector_store %arg11[%c272, %c0_24], %51 {strides = array<i32>} : memref<352x128xbf16, #tpu.memory_space<vmem>>, vector<64x128xbf16>,
    %c15 = arith.constant 15 : index
    %c0_25 = arith.constant 0 : index
    %53 = vector.load %arg11[%c15, %c0_25] : memref<352x128xbf16, #tpu.memory_space<vmem>>, vector<256x128xbf16>
    %c0_26 = arith.constant 0 : index
    %c0_27 = arith.constant 0 : index
    %c0_28 = arith.constant 0 : index
    %54 = vector.load %arg6[%c0_26, %c0_27, %c0_28] : memref<9x128x128xbf16, #tpu.memory_space<vmem>>, vector<1x128x128xbf16>
    %55 = vector.shape_cast %54 : vector<1x128x128xbf16> to vector<128x128xbf16>
    %cst_29 = arith.constant dense<0.000000e+00> : vector<256x128xf32>
    %56 = tpu.matmul %53, %55, %cst_29 {dimension_numbers = #tpu.dot_dimension_numbers<[1], [0], [0], [1], [0, 0, 1, 1], [], []>} : vector<256x128xbf16>, vector<128x128xbf16>, vector<256x128xf32> -> vector<256x128xf32>
    %c0_30 = arith.constant 0 : index
    %c0_31 = arith.constant 0 : index
    %57 = vector.load %arg12[%c0_30, %c0_31] : memref<256x128xf32, #tpu.memory_space<vmem>>, vector<256x128xf32>
    tpu.vector_store %arg12[%c0_30, %c0_31], %56 {strides = array<i32>} : memref<256x128xf32, #tpu.memory_space<vmem>>, vector<256x128xf32>,
    %c16_32 = arith.constant 16 : index
    %c0_33 = arith.constant 0 : index
    %58 = vector.load %arg11[%c16_32, %c0_33] : memref<352x128xbf16, #tpu.memory_space<vmem>>, vector<256x128xbf16>
    %c1 = arith.constant 1 : index
    %c0_34 = arith.constant 0 : index
    %c0_35 = arith.constant 0 : index
    %59 = vector.load %arg6[%c1, %c0_34, %c0_35] : memref<9x128x128xbf16, #tpu.memory_space<vmem>>, vector<1x128x128xbf16>
    %60 = vector.shape_cast %59 : vector<1x128x128xbf16> to vector<128x128xbf16>
    %cst_36 = arith.constant dense<0.000000e+00> : vector<256x128xf32>
    %61 = tpu.matmul %58, %60, %cst_36 {dimension_numbers = #tpu.dot_dimension_numbers<[1], [0], [0], [1], [0, 0, 1, 1], [], []>} : vector<256x128xbf16>, vector<128x128xbf16>, vector<256x128xf32> -> vector<256x128xf32>
    %c0_37 = arith.constant 0 : index
    %c0_38 = arith.constant 0 : index
    %62 = vector.load %arg12[%c0_37, %c0_38] : memref<256x128xf32, #tpu.memory_space<vmem>>, vector<256x128xf32>
    %63 = arith.addf %62, %61 : vector<256x128xf32>
    %c0_39 = arith.constant 0 : index
    %c0_40 = arith.constant 0 : index
    %64 = vector.load %arg12[%c0_39, %c0_40] : memref<256x128xf32, #tpu.memory_space<vmem>>, vector<256x128xf32>
    tpu.vector_store %arg12[%c0_39, %c0_40], %63 {strides = array<i32>} : memref<256x128xf32, #tpu.memory_space<vmem>>, vector<256x128xf32>,
    %c17 = arith.constant 17 : index
    %c0_41 = arith.constant 0 : index
    %65 = vector.load %arg11[%c17, %c0_41] : memref<352x128xbf16, #tpu.memory_space<vmem>>, vector<256x128xbf16>
    %c2 = arith.constant 2 : index
    %c0_42 = arith.constant 0 : index
    %c0_43 = arith.constant 0 : index
    %66 = vector.load %arg6[%c2, %c0_42, %c0_43] : memref<9x128x128xbf16, #tpu.memory_space<vmem>>, vector<1x128x128xbf16>
    %67 = vector.shape_cast %66 : vector<1x128x128xbf16> to vector<128x128xbf16>
    %cst_44 = arith.constant dense<0.000000e+00> : vector<256x128xf32>
    %68 = tpu.matmul %65, %67, %cst_44 {dimension_numbers = #tpu.dot_dimension_numbers<[1], [0], [0], [1], [0, 0, 1, 1], [], []>} : vector<256x128xbf16>, vector<128x128xbf16>, vector<256x128xf32> -> vector<256x128xf32>
    %c0_45 = arith.constant 0 : index
    %c0_46 = arith.constant 0 : index
    %69 = vector.load %arg12[%c0_45, %c0_46] : memref<256x128xf32, #tpu.memory_space<vmem>>, vector<256x128xf32>
    %70 = arith.addf %69, %68 : vector<256x128xf32>
    %c0_47 = arith.constant 0 : index
    %c0_48 = arith.constant 0 : index
    %71 = vector.load %arg12[%c0_47, %c0_48] : memref<256x128xf32, #tpu.memory_space<vmem>>, vector<256x128xf32>
    tpu.vector_store %arg12[%c0_47, %c0_48], %70 {strides = array<i32>} : memref<256x128xf32, #tpu.memory_space<vmem>>, vector<256x128xf32>,
    %c47 = arith.constant 47 : index
    %c0_49 = arith.constant 0 : index
    %72 = vector.load %arg11[%c47, %c0_49] : memref<352x128xbf16, #tpu.memory_space<vmem>>, vector<256x128xbf16>
    %c3 = arith.constant 3 : index
    %c0_50 = arith.constant 0 : index
    %c0_51 = arith.constant 0 : index
    %73 = vector.load %arg6[%c3, %c0_50, %c0_51] : memref<9x128x128xbf16, #tpu.memory_space<vmem>>, vector<1x128x128xbf16>
    %74 = vector.shape_cast %73 : vector<1x128x128xbf16> to vector<128x128xbf16>
    %cst_52 = arith.constant dense<0.000000e+00> : vector<256x128xf32>
    %75 = tpu.matmul %72, %74, %cst_52 {dimension_numbers = #tpu.dot_dimension_numbers<[1], [0], [0], [1], [0, 0, 1, 1], [], []>} : vector<256x128xbf16>, vector<128x128xbf16>, vector<256x128xf32> -> vector<256x128xf32>
    %c0_53 = arith.constant 0 : index
    %c0_54 = arith.constant 0 : index
    %76 = vector.load %arg12[%c0_53, %c0_54] : memref<256x128xf32, #tpu.memory_space<vmem>>, vector<256x128xf32>
    %77 = arith.addf %76, %75 : vector<256x128xf32>
    %c0_55 = arith.constant 0 : index
    %c0_56 = arith.constant 0 : index
    %78 = vector.load %arg12[%c0_55, %c0_56] : memref<256x128xf32, #tpu.memory_space<vmem>>, vector<256x128xf32>
    tpu.vector_store %arg12[%c0_55, %c0_56], %77 {strides = array<i32>} : memref<256x128xf32, #tpu.memory_space<vmem>>, vector<256x128xf32>,
    %c48 = arith.constant 48 : index
    %c0_57 = arith.constant 0 : index
    %79 = vector.load %arg11[%c48, %c0_57] : memref<352x128xbf16, #tpu.memory_space<vmem>>, vector<256x128xbf16>
    %c4 = arith.constant 4 : index
    %c0_58 = arith.constant 0 : index
    %c0_59 = arith.constant 0 : index
    %80 = vector.load %arg6[%c4, %c0_58, %c0_59] : memref<9x128x128xbf16, #tpu.memory_space<vmem>>, vector<1x128x128xbf16>
    %81 = vector.shape_cast %80 : vector<1x128x128xbf16> to vector<128x128xbf16>
    %cst_60 = arith.constant dense<0.000000e+00> : vector<256x128xf32>
    %82 = tpu.matmul %79, %81, %cst_60 {dimension_numbers = #tpu.dot_dimension_numbers<[1], [0], [0], [1], [0, 0, 1, 1], [], []>} : vector<256x128xbf16>, vector<128x128xbf16>, vector<256x128xf32> -> vector<256x128xf32>
    %c0_61 = arith.constant 0 : index
    %c0_62 = arith.constant 0 : index
    %83 = vector.load %arg12[%c0_61, %c0_62] : memref<256x128xf32, #tpu.memory_space<vmem>>, vector<256x128xf32>
    %84 = arith.addf %83, %82 : vector<256x128xf32>
    %c0_63 = arith.constant 0 : index
    %c0_64 = arith.constant 0 : index
    %85 = vector.load %arg12[%c0_63, %c0_64] : memref<256x128xf32, #tpu.memory_space<vmem>>, vector<256x128xf32>
    tpu.vector_store %arg12[%c0_63, %c0_64], %84 {strides = array<i32>} : memref<256x128xf32, #tpu.memory_space<vmem>>, vector<256x128xf32>,
    %c49 = arith.constant 49 : index
    %c0_65 = arith.constant 0 : index
    %86 = vector.load %arg11[%c49, %c0_65] : memref<352x128xbf16, #tpu.memory_space<vmem>>, vector<256x128xbf16>
    %c5 = arith.constant 5 : index
    %c0_66 = arith.constant 0 : index
    %c0_67 = arith.constant 0 : index
    %87 = vector.load %arg6[%c5, %c0_66, %c0_67] : memref<9x128x128xbf16, #tpu.memory_space<vmem>>, vector<1x128x128xbf16>
    %88 = vector.shape_cast %87 : vector<1x128x128xbf16> to vector<128x128xbf16>
    %cst_68 = arith.constant dense<0.000000e+00> : vector<256x128xf32>
    %89 = tpu.matmul %86, %88, %cst_68 {dimension_numbers = #tpu.dot_dimension_numbers<[1], [0], [0], [1], [0, 0, 1, 1], [], []>} : vector<256x128xbf16>, vector<128x128xbf16>, vector<256x128xf32> -> vector<256x128xf32>
    %c0_69 = arith.constant 0 : index
    %c0_70 = arith.constant 0 : index
    %90 = vector.load %arg12[%c0_69, %c0_70] : memref<256x128xf32, #tpu.memory_space<vmem>>, vector<256x128xf32>
    %91 = arith.addf %90, %89 : vector<256x128xf32>
    %c0_71 = arith.constant 0 : index
    %c0_72 = arith.constant 0 : index
    %92 = vector.load %arg12[%c0_71, %c0_72] : memref<256x128xf32, #tpu.memory_space<vmem>>, vector<256x128xf32>
    tpu.vector_store %arg12[%c0_71, %c0_72], %91 {strides = array<i32>} : memref<256x128xf32, #tpu.memory_space<vmem>>, vector<256x128xf32>,
    %c79 = arith.constant 79 : index
    %c0_73 = arith.constant 0 : index
    %93 = vector.load %arg11[%c79, %c0_73] : memref<352x128xbf16, #tpu.memory_space<vmem>>, vector<256x128xbf16>
    %c6 = arith.constant 6 : index
    %c0_74 = arith.constant 0 : index
    %c0_75 = arith.constant 0 : index
    %94 = vector.load %arg6[%c6, %c0_74, %c0_75] : memref<9x128x128xbf16, #tpu.memory_space<vmem>>, vector<1x128x128xbf16>
    %95 = vector.shape_cast %94 : vector<1x128x128xbf16> to vector<128x128xbf16>
    %cst_76 = arith.constant dense<0.000000e+00> : vector<256x128xf32>
    %96 = tpu.matmul %93, %95, %cst_76 {dimension_numbers = #tpu.dot_dimension_numbers<[1], [0], [0], [1], [0, 0, 1, 1], [], []>} : vector<256x128xbf16>, vector<128x128xbf16>, vector<256x128xf32> -> vector<256x128xf32>
    %c0_77 = arith.constant 0 : index
    %c0_78 = arith.constant 0 : index
    %97 = vector.load %arg12[%c0_77, %c0_78] : memref<256x128xf32, #tpu.memory_space<vmem>>, vector<256x128xf32>
    %98 = arith.addf %97, %96 : vector<256x128xf32>
    %c0_79 = arith.constant 0 : index
    %c0_80 = arith.constant 0 : index
    %99 = vector.load %arg12[%c0_79, %c0_80] : memref<256x128xf32, #tpu.memory_space<vmem>>, vector<256x128xf32>
    tpu.vector_store %arg12[%c0_79, %c0_80], %98 {strides = array<i32>} : memref<256x128xf32, #tpu.memory_space<vmem>>, vector<256x128xf32>,
    %c80 = arith.constant 80 : index
    %c0_81 = arith.constant 0 : index
    %100 = vector.load %arg11[%c80, %c0_81] : memref<352x128xbf16, #tpu.memory_space<vmem>>, vector<256x128xbf16>
    %c7 = arith.constant 7 : index
    %c0_82 = arith.constant 0 : index
    %c0_83 = arith.constant 0 : index
    %101 = vector.load %arg6[%c7, %c0_82, %c0_83] : memref<9x128x128xbf16, #tpu.memory_space<vmem>>, vector<1x128x128xbf16>
    %102 = vector.shape_cast %101 : vector<1x128x128xbf16> to vector<128x128xbf16>
    %cst_84 = arith.constant dense<0.000000e+00> : vector<256x128xf32>
    %103 = tpu.matmul %100, %102, %cst_84 {dimension_numbers = #tpu.dot_dimension_numbers<[1], [0], [0], [1], [0, 0, 1, 1], [], []>} : vector<256x128xbf16>, vector<128x128xbf16>, vector<256x128xf32> -> vector<256x128xf32>
    %c0_85 = arith.constant 0 : index
    %c0_86 = arith.constant 0 : index
    %104 = vector.load %arg12[%c0_85, %c0_86] : memref<256x128xf32, #tpu.memory_space<vmem>>, vector<256x128xf32>
    %105 = arith.addf %104, %103 : vector<256x128xf32>
    %c0_87 = arith.constant 0 : index
    %c0_88 = arith.constant 0 : index
    %106 = vector.load %arg12[%c0_87, %c0_88] : memref<256x128xf32, #tpu.memory_space<vmem>>, vector<256x128xf32>
    tpu.vector_store %arg12[%c0_87, %c0_88], %105 {strides = array<i32>} : memref<256x128xf32, #tpu.memory_space<vmem>>, vector<256x128xf32>,
    %c81 = arith.constant 81 : index
    %c0_89 = arith.constant 0 : index
    %107 = vector.load %arg11[%c81, %c0_89] : memref<352x128xbf16, #tpu.memory_space<vmem>>, vector<256x128xbf16>
    %c8 = arith.constant 8 : index
    %c0_90 = arith.constant 0 : index
    %c0_91 = arith.constant 0 : index
    %108 = vector.load %arg6[%c8, %c0_90, %c0_91] : memref<9x128x128xbf16, #tpu.memory_space<vmem>>, vector<1x128x128xbf16>
    %109 = vector.shape_cast %108 : vector<1x128x128xbf16> to vector<128x128xbf16>
    %cst_92 = arith.constant dense<0.000000e+00> : vector<256x128xf32>
    %110 = tpu.matmul %107, %109, %cst_92 {dimension_numbers = #tpu.dot_dimension_numbers<[1], [0], [0], [1], [0, 0, 1, 1], [], []>} : vector<256x128xbf16>, vector<128x128xbf16>, vector<256x128xf32> -> vector<256x128xf32>
    %c0_93 = arith.constant 0 : index
    %c0_94 = arith.constant 0 : index
    %111 = vector.load %arg12[%c0_93, %c0_94] : memref<256x128xf32, #tpu.memory_space<vmem>>, vector<256x128xf32>
    %112 = arith.addf %111, %110 : vector<256x128xf32>
    %c0_95 = arith.constant 0 : index
    %c0_96 = arith.constant 0 : index
    %113 = vector.load %arg12[%c0_95, %c0_96] : memref<256x128xf32, #tpu.memory_space<vmem>>, vector<256x128xf32>
    tpu.vector_store %arg12[%c0_95, %c0_96], %112 {strides = array<i32>} : memref<256x128xf32, #tpu.memory_space<vmem>>, vector<256x128xf32>,
    %c0_97 = arith.constant 0 : index
    %c0_98 = arith.constant 0 : index
    %114 = vector.load %arg12[%c0_97, %c0_98] : memref<256x128xf32, #tpu.memory_space<vmem>>, vector<256x128xf32>
    %c0_99 = arith.constant 0 : index
    %c0_100 = arith.constant 0 : index
    %115 = vector.load %arg7[%c0_99, %c0_100] : memref<1x128xf32, #tpu.memory_space<vmem>>, vector<1x128xf32>
    %116 = vector.broadcast %115 : vector<1x128xf32> to vector<256x128xf32>
    %117 = arith.addf %114, %116 : vector<256x128xf32>
    %cst_101 = arith.constant 0.000000e+00 : f32
    %118 = vector.broadcast %cst_101 : f32 to vector<256x128xf32>
    %119 = arith.maximumf %117, %118 : vector<256x128xf32>
    %120 = arith.truncf %119 : vector<256x128xf32> to vector<256x128xbf16>
    %c0_102 = arith.constant 0 : index
    %c0_103 = arith.constant 0 : index
    %121 = vector.load %arg8[%c0_102, %c0_103] : memref<128x128xbf16, #tpu.memory_space<vmem>>, vector<128x128xbf16>
    %cst_104 = arith.constant dense<0.000000e+00> : vector<256x128xf32>
    %122 = tpu.matmul %120, %121, %cst_104 {dimension_numbers = #tpu.dot_dimension_numbers<[1], [0], [0], [1], [0, 0, 1, 1], [], []>} : vector<256x128xbf16>, vector<128x128xbf16>, vector<256x128xf32> -> vector<256x128xf32>
    %c0_105 = arith.constant 0 : index
    %c0_106 = arith.constant 0 : index
    %123 = vector.load %arg9[%c0_105, %c0_106] : memref<1x128xf32, #tpu.memory_space<vmem>>, vector<1x128xf32>
    %124 = vector.broadcast %123 : vector<1x128xf32> to vector<256x128xf32>
    %125 = arith.addf %122, %124 : vector<256x128xf32>
    %126 = vector.extract_strided_slice %125 {offsets = [0, 0], sizes = [224, 128], strides = [1, 1]} : vector<256x128xf32> to vector<224x128xf32>
    %127 = vector.extract_strided_slice %1 {offsets = [32, 0], sizes = [224, 128], strides = [1, 1]} : vector<256x128xbf16> to vector<224x128xbf16>
    %128 = arith.extf %127 : vector<224x128xbf16> to vector<224x128xf32>
    %129 = arith.addf %126, %128 : vector<224x128xf32>
    %cst_107 = arith.constant 0.000000e+00 : f32
    %130 = vector.broadcast %cst_107 : f32 to vector<224x128xf32>
    %131 = arith.maximumf %129, %130 : vector<224x128xf32>
    %132 = arith.truncf %131 : vector<224x128xf32> to vector<224x128xbf16>
    %c0_108 = arith.constant 0 : index
    %c0_109 = arith.constant 0 : index
    %c0_110 = arith.constant 0 : index
    %133 = vector.load %arg10[%c0_108, %c0_109, %c0_110] : memref<1x256x128xbf16, #tpu.memory_space<vmem>>, vector<1x224x128xbf16>
    %134 = vector.shape_cast %133 : vector<1x224x128xbf16> to vector<224x128xbf16>
    %135 = vector.shape_cast %132 : vector<224x128xbf16> to vector<1x224x128xbf16>
    tpu.vector_store %arg10[%c0_108, %c0_109, %c0_110], %135 {strides = array<i32>} : memref<1x256x128xbf16, #tpu.memory_space<vmem>>, vector<1x224x128xbf16>,
    %136 = vector.extract_strided_slice %125 {offsets = [224, 0], sizes = [32, 128], strides = [1, 1]} : vector<256x128xf32> to vector<32x128xf32>
    %137 = vector.extract_strided_slice %3 {offsets = [0, 0], sizes = [32, 128], strides = [1, 1]} : vector<64x128xbf16> to vector<32x128xbf16>
    %138 = arith.extf %137 : vector<32x128xbf16> to vector<32x128xf32>
    %139 = arith.addf %136, %138 : vector<32x128xf32>
    %cst_111 = arith.constant 0.000000e+00 : f32
    %140 = vector.broadcast %cst_111 : f32 to vector<32x128xf32>
    %141 = arith.maximumf %139, %140 : vector<32x128xf32>
    %142 = arith.truncf %141 : vector<32x128xf32> to vector<32x128xbf16>
    %c0_112 = arith.constant 0 : index
    %c224 = arith.constant 224 : index
    %c0_113 = arith.constant 0 : index
    %143 = vector.load %arg10[%c0_112, %c224, %c0_113] : memref<1x256x128xbf16, #tpu.memory_space<vmem>>, vector<1x32x128xbf16>
    %144 = vector.shape_cast %143 : vector<1x32x128xbf16> to vector<32x128xbf16>
    %145 = vector.shape_cast %142 : vector<32x128xbf16> to vector<1x32x128xbf16>
    tpu.vector_store %arg10[%c0_112, %c224, %c0_113], %145 {strides = array<i32>} : memref<1x256x128xbf16, #tpu.memory_space<vmem>>, vector<1x32x128xbf16>,
    return
  }
  func.func @transform_0(%arg0: i32, %arg1: i32) -> (i32, i32, i32) {
    %c0_i32 = arith.constant 0 : i32
    %c0_i32_0 = arith.constant 0 : i32
    return %arg0, %arg1, %c0_i32 : i32, i32, i32
  }
  func.func @transform_1(%arg0: i32, %arg1: i32) -> (i32, i32, i32) {
    %c1_i32 = arith.constant 1 : i32
    %0 = arith.addi %arg1, %c1_i32 : i32
    %c4_i32 = arith.constant 4 : i32
    %1 = arith.muli %0, %c4_i32 : i32
    %c0_i32 = arith.constant 0 : i32
    %c0_i32_0 = arith.constant 0 : i32
    return %arg0, %1, %c0_i32 : i32, i32, i32
  }
  func.func @transform_2(%arg0: i32, %arg1: i32) -> (i32, i32) {
    %c0_i32 = arith.constant 0 : i32
    %c0_i32_0 = arith.constant 0 : i32
    %c0_i32_1 = arith.constant 0 : i32
    return %c0_i32, %c0_i32_0 : i32, i32
  }
  func.func @transform_3(%arg0: i32, %arg1: i32) -> (i32, i32) {
    %c0_i32 = arith.constant 0 : i32
    %c0_i32_0 = arith.constant 0 : i32
    %c0_i32_1 = arith.constant 0 : i32
    return %c0_i32, %c0_i32_0 : i32, i32
  }
  func.func @transform_4(%arg0: i32, %arg1: i32) -> (i32, i32, i32) {
    %c0_i32 = arith.constant 0 : i32
    %c0_i32_0 = arith.constant 0 : i32
    %c0_i32_1 = arith.constant 0 : i32
    %c0_i32_2 = arith.constant 0 : i32
    return %c0_i32, %c0_i32_0, %c0_i32_1 : i32, i32, i32
  }
  func.func @transform_5(%arg0: i32, %arg1: i32) -> (i32, i32) {
    %c0_i32 = arith.constant 0 : i32
    %c0_i32_0 = arith.constant 0 : i32
    %c0_i32_1 = arith.constant 0 : i32
    return %c0_i32, %c0_i32_0 : i32, i32
  }
  func.func @transform_6(%arg0: i32, %arg1: i32) -> (i32, i32) {
    %c0_i32 = arith.constant 0 : i32
    %c0_i32_0 = arith.constant 0 : i32
    %c0_i32_1 = arith.constant 0 : i32
    return %c0_i32, %c0_i32_0 : i32, i32
  }
  func.func @transform_7(%arg0: i32, %arg1: i32) -> (i32, i32) {
    %c0_i32 = arith.constant 0 : i32
    %c0_i32_0 = arith.constant 0 : i32
    %c0_i32_1 = arith.constant 0 : i32
    return %c0_i32, %c0_i32_0 : i32, i32
  }
  func.func @transform_8(%arg0: i32, %arg1: i32) -> (i32, i32, i32) {
    %c0_i32 = arith.constant 0 : i32
    %c0_i32_0 = arith.constant 0 : i32
    return %arg0, %arg1, %c0_i32 : i32, i32, i32
  }
}

</mosaic_0001>

<bundles_post_ra>
// kernel: tpu_custom_call.1
= control target key start
LH: loop header
LB: loop body
LE: loop exit
PB: predicated region body
PF: predicated region fallthrough
CT: control target
= control target key end

     0   :  { %s10173_s0 = inlined_call_operand.hbm [shape: bf16[2,576,128], index: 0, kind: input, shape index: {}]   ;;  %s10174_s1 = inlined_call_operand.hbm [shape: bf16[2,576,128], index: 1, kind: input, shape index: {}]   ;;  %s10175_s2 = inlined_call_operand.hbm [shape: bf16[128,128], index: 2, kind: input, shape index: {}]   ;;  %s10176_s3 = inlined_call_operand.vmem [shape: f32[1,128], index: 3, kind: input, shape index: {}]   ;;  %s10177_s4 = inlined_call_operand.hbm [shape: bf16[9,128,128], index: 4, kind: input, shape index: {}]   ;;  %s10178_s5 = inlined_call_operand.vmem [shape: f32[1,128], index: 5, kind: input, shape index: {}]   ;;  %s10179_s6 = inlined_call_operand.hbm [shape: bf16[128,128], index: 6, kind: input, shape index: {}]   ;;  %s10180_s7 = inlined_call_operand.vmem [shape: f32[1,128], index: 7, kind: input, shape index: {}]   ;;  %s10181_s8 = inlined_call_operand.hbm [shape: bf16[2,512,128], index: 8, kind: output, shape index: {}]  }
   0x1   :  { %10242 = sst [smem:[#allocation41_spill]] %s10176_s3 }
   0x2   :  { %10243 = sst [smem:[#allocation42_spill]] %s10178_s5 }
   0x3   :  { %10244 = sst [smem:[#allocation43_spill]] %s10180_s7 }
   0x4   :  { %10245 = sst [smem:[#allocation44_spill]] %s10181_s8 }
   0x5   :  { %13 = vsyncpa [#allocation5], 0 }
   0x6   :  { %15 = vsyncpa [#allocation5 + $0x1], 0 }
   0x7   :  { %16 = vsyncpa [#allocation8], 0 }
   0x8   :  { %18 = vsyncpa [#allocation8 + $0x1], 0 }
   0x9   :  { %19 = vsyncpa [#allocation11], 0 }
   0xa   :  { %20 = vsyncpa [#allocation6], 0 }
   0xb   :  { %22 = vsyncpa [#allocation6 + $0x1], 0  ;;  %s8251_s27 = smov 0   ;;  %s8253_s28 = smov 0  }
   0xc   :  { %s8255_s29 = smov 0   ;;  %s8257_s30 = smov 0  }
   0xd   :  { %s8259_s9 = smov 0   ;;  %s8261_s10 = smov 0  }
   0xe   :  { %s8263_s11 = smov 0   ;;  %s8265_s12 = smov 0  }
   0xf   :  { %s8267_s13 = smov 0   ;;  %s8269_s14 = smov 0  }
  0x10   :  { %s8271_s15 = smov 0  }
  0x11 LB: > { %10246 = sst [smem:[#allocation19_spill]] %s8152_s28  ;;  %s8307_s16 = sadd.s32 4294967295, %s8188_s15   ;;  %s8188_s15 = sphi %s8271_s15, %s28_s15   ;;  %s8184_s14 = sphi %s8269_s14, %s10507_s14   ;;  %s8180_s13 = sphi %s8267_s13, %s10506_s13   ;;  %s8176_s12 = sphi %s8265_s12, %s10505_s12   ;;  %s8172_s11 = sphi %s8263_s11, %s10504_s11   ;;  %s8168_s10 = sphi %s8261_s10, %s10503_s10   ;;  %s8164_s9 = sphi %s8259_s9, %s10502_s9   ;;  %s8160_s30 = sphi %s8257_s30, %s10496_s30   ;;  %s8156_s29 = sphi %s8255_s29, %s10501_s29   ;;  %s8152_s28 = sphi %s8253_s28, %s10500_s28   ;;  %s8148_s27 = sphi %s8251_s27, %s10494_s27  }
  0x12   : > { %10247 = sst [smem:[#allocation20_spill]] %s8160_s30  ;;  %s37_s18 = sadd.s32 1, %s8180_s13 }
  0x13   : > { %10248 = sst [smem:[#allocation21_spill]] %s8164_s9  ;;  %s40_s19 = sadd.s32 1, %s8184_s14 }
  0x14   : > { %10249 = sst [smem:[#allocation22_spill]] %s8172_s11  ;;  %p38_p0 = scmp.ge.s32.totalorder %s37_s18, 2 }
  0x15   : > { %10250 = sst [smem:[#allocation23_spill]] %s8176_s12  ;;  %s49_s20 = sadd.s32 1, %s8168_s10 }
  0x16   : > { %10251 = sst [smem:[#allocation24_spill]] %s8307_s16  ;;  %p56_p1 = scmp.ne.s32.totalorder %s8168_s10, %s8164_s9 }
  0x17   : > { %p57_p2 = scmp.eq.s32.totalorder %s8188_s15, 0  ;;  %s10509_s18 = smov (%p38_p0, %s37_s18), 0 }
  0x18   : > { %10252 = sst [smem:[#allocation25_spill]] %s10509_s18  ;;  %s10511_s19 = smov (!%p38_p0, %s40_s19), %s8184_s14 }
  0x19   : > { %s45_s21 = ssub.s32 %s8180_s13, %s10509_s18  ;;  %p8326_p3 = por %p57_p2, %p56_p1 }
  0x1a   : > { %p42_p4 = scmp.ge.s32.totalorder %s10511_s19, 2  ;;  %p10184_p5 = scmp.ne.s32.totalorder %s8164_s9, %s8160_s30 }
  0x1b   : > { %s10253_s22 = scalar_select %p8326_p3, 1, 0 }
  0x1c   : > { %p10188_p6 = scmp.eq.s32.totalorder %s8307_s16, 0  ;;  %s6400_s23 = sshll.u32 %s8180_s13, 2 }
  0x1d   : > { %s10513_s19 = smov (%p42_p4, %s10511_s19), 0  ;;  %s6401_s25 = sadd.s32 4, %s6400_s23 }
  0x1e   : > { %10254 = sst [smem:[#allocation26_spill]] %s10513_s19  ;;  %p8341_p7 = por %p10188_p6, %p10184_p5 }
  0x1f   : > { %s44_s26 = ssub.s32 %s8184_s14, %s10513_s19  ;;  %s6402_s17 = sshll.u32 %s10509_s18, 2 }
  0x20   : > { %s10255_s24 = scalar_select %p8341_p7, 1, 0 }
  0x21   : > { %s46_s8 = sor.u32 %s45_s21, %s44_s26  ;;  %s6403_s12 = sadd.s32 4, %s6402_s17 }
  0x22   : > { %10256 = sst [smem:[#allocation27_spill]] %s10255_s24  ;;  %p47_p8 = scmp.eq.s32.totalorder %s46_s8, 0 }
  0x23   : > { %s77_s7 = ssub.s32 %s6401_s25, %s6403_s12  ;;  %s81_s3 = sadd.s32 1, %s8156_s29 }
  0x24   : > { %s78_s5 = sor.u32 %s77_s7, %s44_s26  ;;  %p88_p10 = scmp.ne.s32.totalorder %s8156_s29, %s8152_s28 }
  0x25   : > { %s8350_s11 = scalar_select %p47_p8, %s8168_s10, %s49_s20  }
  0x26   : > { %p79_p9 = scmp.eq.s32.totalorder %s78_s5, 0  ;;  %p94_p11 = scmp.ne.s32.totalorder %s8152_s28, %s8148_s27 }
  0x27   : > { %10257 = sst [smem:[#allocation28_spill]] %s8350_s11  ;;  %p246_p12 = scmp.eq.s32.totalorder %s8307_s16, 3 }
  0x28   : > { %s8358_s23 = scalar_select %p79_p9, %s8156_s29, %s81_s3  }
  0x29   : > { %p8362_p13 = por %p88_p10, %p57_p2  ;;  %p8368_p0 = por %p94_p11, %p10188_p6 }
  0x2a   : > { %10258 = sst [smem:[#allocation29_spill]] %s8358_s23  ;;  %p8375_p4 = por %p246_p12, %p56_p1 }
  0x2b   : > { %s10259_s21 = scalar_select %p8362_p13, 1, 0 }
  0x2c   : > { %s10260_s8 = scalar_select %p8368_p0, 1, 0 }
  0x2d   : > { %s10262_s7 = scalar_select %p8375_p4, 1, 0 }
  0x2e   : > { %10261 = sst [smem:[#allocation30_spill]] %s10260_s8  ;;  %s10264_s5 = sadd.s32 4294967294, %s8188_s15  }
  0x2f   : > { %10263 = sst [smem:[#allocation31_spill]] %s10262_s7  ;;  %p252_p8 = scmp.eq.s32.totalorder %s10264_s5, 3 }
  0x30   : > { %p6198_p5 = scmp.ge.s32.totalorder %s8188_s15, 1  ;;  %p259_p9 = scmp.lt.s32.totalorder %s8188_s15, 5 }
  0x31   : > { %p10265_p7 = scmp.ne.s32.totalorder %s8164_s9, %s8160_s30  ;;  %s8190_s12 = smov [#allocation10]  }
  0x32   : > { %p8390_p2 = pnand %p6198_p5, %p259_p9  ;;  %s287_s17 = sshll.u32 %s8190_s12, 4  ;;  %s288_s17 = int_to_ptr.vmem [resolvable:$true] %s287_s17 }
  0x33   : > { %p8386_p3 = por %p252_p8, %p10265_p7  ;;  %s7911_s5 = scalar_lea.hbm %s10177_s4, 9216 }
  0x34   : > { %s10268_s27 = scalar_select %p8390_p2, 1, 0 }
  0x35   : > { %s10266_s3 = scalar_select %p8386_p3, 1, 0 }
  0x36   : > { %p7649_p10 = pneg %p8390_p2  ;;  %p7912_p5 = scmp.ne.s32.totalorder %s10177_s4, %s7911_s5 }
  0x37   : > { %10267 = sst [smem:[#allocation32_spill]] %s10266_s3  ;;  %p7918_p8 = scmp.lt.u32.totalorder %s7911_s5, %s10177_s4 }
  0x38   : > { %p8398_p1 = pnand %p7649_p10, %p10188_p6 }
  0x3a   : > { %p8410_p7 = pneg %p8398_p1 }
  0x3c   : > { %p7914_p11 = pnand %p8410_p7, %p7912_p5 }
  0x3e   : > { %p7915_p12 = pneg %p7914_p11 }
  0x40   : > { %p7920_p9 = pnand %p7918_p8, %p7915_p12 }
  0x42   : > { %7923 = shalt.err (!%p7920_p9)
}
  0x43   : > { %s7924_s25 = scalar_lea.vmem %s288_s17, 9216  ;;  %p7932_p4 = scmp.lt.s32.totalorder %s288_s17, %s288_s17 }
  0x44   : > { %p7925_p10 = scmp.ne.s32.totalorder %s288_s17, %s7924_s25  ;;  %p7933_p0 = scmp.lt.s32.totalorder %s7924_s25, %s7924_s25 }
  0x46   : > { %p7927_p6 = pnand %p7925_p10, %p8410_p7  ;;  %p7934_p2 = por %p7933_p0, %p7932_p4 }
  0x48   : > { %p7928_p3 = pneg %p7927_p6 }
  0x4a   : > { %p7935_p13 = pnand %p7934_p2, %p7928_p3 }
  0x4c   : > { %7938 = shalt.err (!%p7935_p13)
}
  0x4d   : > { %s8191_s18 = smov 64   ;;  %s8192_s19 = smov 4  }
  0x4e   : > { %7655 = dma.hbm_to_vmem [thread:$0]  (!%p8398_p1), %s10177_s4, 9216, %s288_s17, [#allocation11], %s8191_s18, %s8191_s18, %s8192_s19  }
  0x4f   : > { %s8193_s5 = smov [#allocation9]   ;;  %s8194_s3 = smov [#allocation12]  }
  0x50   : > { %s271_s12 = sshll.u32 %s8193_s5, 4  ;;  %s303_s25 = sshll.u32 %s8194_s3, 4  ;;  %s272_s12 = int_to_ptr.vmem [resolvable:$true] %s271_s12  ;;  %s304_s25 = int_to_ptr.vmem [resolvable:$true] %s303_s25 }
  0x51   : > { %s7939_s8 = scalar_lea.hbm %s10175_s2, 1024 }
  0x52   : > { %p7940_p3 = scmp.ne.s32.totalorder %s10175_s2, %s7939_s8  ;;  %p7946_p0 = scmp.lt.u32.totalorder %s7939_s8, %s10175_s2 }
  0x54   : > { %p7942_p6 = pnand %p7940_p3, %p8410_p7 }
  0x56   : > { %p7943_p13 = pneg %p7942_p6 }
  0x58   : > { %p7948_p4 = pnand %p7946_p0, %p7943_p13 }
  0x5a   : > { %7951 = shalt.err (!%p7948_p4)
}
  0x5b   : > { %s7952_s17 = scalar_lea.vmem %s272_s12, 1024  ;;  %p7960_p12 = scmp.lt.s32.totalorder %s272_s12, %s272_s12 }
  0x5c   : > { %p7953_p2 = scmp.ne.s32.totalorder %s272_s12, %s7952_s17  ;;  %p7961_p8 = scmp.lt.s32.totalorder %s7952_s17, %s7952_s17 }
  0x5e   : > { %p7955_p5 = pnand %p7953_p2, %p8410_p7  ;;  %p7962_p9 = por %p7961_p8, %p7960_p12 }
  0x60   : > { %p7956_p11 = pneg %p7955_p5 }
  0x62   : > { %p7963_p10 = pnand %p7962_p9, %p7956_p11 }
  0x64   : > { %7966 = shalt.err (!%p7963_p10)
}
  0x65   : > { %7652 = dma.hbm_to_vmem [thread:$0]  (!%p8398_p1), %s10175_s2, 1024, %s272_s12, [#allocation8], %s8191_s18, %s8191_s18, %s8192_s19  }
  0x66   : > { %s7967_s24 = scalar_lea.hbm %s10179_s6, 1024 }
  0x67   : > { %p7968_p3 = scmp.ne.s32.totalorder %s10179_s6, %s7967_s24  ;;  %p7974_p0 = scmp.lt.u32.totalorder %s7967_s24, %s10179_s6 }
  0x69   : > { %p7970_p6 = pnand %p7968_p3, %p8410_p7 }
  0x6b   : > { %p7971_p13 = pneg %p7970_p6 }
  0x6d   : > { %p7976_p4 = pnand %p7974_p0, %p7971_p13 }
  0x6f   : > { %7979 = shalt.err (!%p7976_p4)
}
  0x70   : > { %s7980_s26 = scalar_lea.vmem %s304_s25, 1024  ;;  %p7988_p12 = scmp.lt.s32.totalorder %s304_s25, %s304_s25 }
  0x71   : > { %p7981_p2 = scmp.ne.s32.totalorder %s304_s25, %s7980_s26  ;;  %p7989_p8 = scmp.lt.s32.totalorder %s7980_s26, %s7980_s26 }
  0x73   : > { %p7983_p5 = pnand %p7981_p2, %p8410_p7  ;;  %p7990_p9 = por %p7989_p8, %p7988_p12 }
  0x75   : > { %p7984_p11 = pneg %p7983_p5 }
  0x77   : > { %p7991_p10 = pnand %p7990_p9, %p7984_p11 }
  0x79   : > { %7994 = shalt.err (!%p7991_p10)
}
  0x7a   : > { %7658 = dma.hbm_to_vmem [thread:$0]  (!%p8398_p1), %s10179_s6, 1024, %s304_s25, [#allocation11], %s8191_s18, %s8191_s18, %s8192_s19  }
  0x7b   : > { %p6202_p3 = scmp.ge.s32.totalorder %s8188_s15, 4 }
  0x7c   : > { %p10271_p7 = scmp.ne.s32.totalorder (!%p6202_p3), %s10253_s22, 0 }
  0x7d   : > { %316 = sbr.rel (%p6202_p3) target bundleno = 192 (0xc0), region = 40 }
  0x84   : > { %319 = sbr.rel (!%p10271_p7) target bundleno = 162 (0xa2), region = 44  ;;  %s320_s11 = sand.u32 (%p10271_p7), 1, %s8168_s10  }
  0x85   : > { %s6204_s17 = sshll.u32 (%p10271_p7), %s8180_s13, 5  ;;  %s6203_s28 = sshll.u32 (%p10271_p7), %s320_s11, 7 }
  0x86   : > { %s8476_s20 = scalar_lea.sflag (%p10271_p7), [#allocation5], %s320_s11  ;;  %s324_s30 = scalar_lea.vmem (%p10271_p7), [#allocation4], %s6203_s28 }
  0x87   : > { %s7631_s9 = smul.u32 (%p10271_p7), 72, %s8184_s14  ;;  %s339_s16 = sshll.u32 (%p10271_p7), %s324_s30, 4  ;;  %s8479_s16 = int_to_ptr.vmem [resolvable:$true] %s339_s16 }
  0x88   : > { %s7999_s23 = scalar_lea.hbm (%p10271_p7), %s10173_s0, 9216 }
  0x89   : > { %s335_s24 = sadd.s32 (%p10271_p7), %s7631_s9, %s6204_s17 }
  0x8a   : > { %s6207_s18 = sshll.u32 (%p10271_p7), %s335_s24, 6 }
  0x8b   : > { %s337_s22 = scalar_lea.hbm %s10173_s0, %s6207_s18 }
  0x8c   : > { %s7995_s8 = scalar_lea.hbm %s337_s22, 2048  ;;  %p8000_p6 = scmp.lt.u32.totalorder %s337_s22, %s10173_s0 }
  0x8d   : > { %p7996_p1 = scmp.ne.s32.totalorder %s337_s22, %s7995_s8  ;;  %p8001_p13 = scmp.lt.u32.totalorder %s7999_s23, %s7995_s8 }
  0x8e   : > { %p8003_p4 = scmp.lt.u32.totalorder %s7995_s8, %s337_s22 }
  0x8f   : > { %p8002_p0 = por %p8001_p13, %p8000_p6 }
  0x91   : > { %p8004_p2 = por %p8003_p4, %p8002_p0 }
  0x93   : > { %p8005_p5 = pnand %p8004_p2, %p7996_p1 }
  0x95   : > { %8008 = shalt.err (!%p8005_p5)
}
  0x96   : > { %s8009_s12 = scalar_lea.vmem %s8479_s16, 2048  ;;  %s8195_s11 = smov [#allocation4]  }
  0x97   : > { %p8010_p11 = scmp.ne.s32.totalorder %s8479_s16, %s8009_s12  ;;  %s8013_s17 = sshll.u32 %s8195_s11, 4  ;;  %s8014_s17 = int_to_ptr.vmem [resolvable:$false] %s8013_s17 }
  0x98   : > { %s8015_s28 = scalar_lea.vmem %s8014_s17, 4096  ;;  %p8016_p12 = scmp.lt.s32.totalorder %s8479_s16, %s8014_s17 }
  0x99   : > { %p8017_p8 = scmp.lt.s32.totalorder %s8015_s28, %s8009_s12 }
  0x9b   : > { %p8018_p9 = por %p8017_p8, %p8016_p12 }
  0x9d   : > { %p8019_p10 = pnand %p8018_p9, %p8010_p11 }
  0x9f   : > { %8022 = shalt.err (!%p8019_p10)
}
  0xa0   : > { %s8196_s30 = smov 64   ;;  %s8197_s9 = smov 4  }
  0xa1   : > { %345 = dma.hbm_to_vmem [thread:$0]  %s337_s22, 2048, %s8479_s16, %s8476_s20, %s8196_s30, %s8196_s30, %s8197_s9  }
  0xa2 PF: > { %s351_s24 = sand.u32 1, %s8156_s29   ;;  %s349_s18 = sand.u32 1, %s8188_s15  }
  0xa3   : > { %s6210_s19 = sshll.u32 %s351_s24, 5  ;;  %s6211_s25 = sshll.u32 %s8180_s13, 5 }
  0xa4   : > { %s6092_s8 = smul.u32 72, %s8184_s14  ;;  %s353_s7 = scalar_lea.vmem [#allocation7], %s6210_s19 }
  0xa5   : > { %s364_s3 = sshll.u32 %s353_s7, 4  ;;  %s8506_s22 = scalar_lea.sflag [#allocation8], %s349_s18  ;;  %s8499_s3 = int_to_ptr.vmem [resolvable:$true] %s364_s3 }
  0xa6   : > { %s6093_s23 = sadd.s32 %s6211_s25, %s6092_s8  ;;  %p10272_p7 = scmp.ne.s32.totalorder %s10259_s21, 0 }
  0xa7   : > { %s6212_s26 = sshll.u32 %s6093_s23, 6  ;;  %s8027_s30 = scalar_lea.hbm %s10174_s1, 9216 }
  0xa8   : > { %s6095_s20 = scalar_lea.hbm %s10174_s1, %s6212_s26 }
  0xa9   : > { %s8504_s16 = scalar_lea.hbm %s6095_s20, 2048  ;;  %s8051_s11 = scalar_lea.hbm %s6095_s20, 2560 }
  0xaa   : > { %p8024_p3 = scmp.ne.s32.totalorder %s8504_s16, %s8051_s11  ;;  %p8028_p13 = scmp.lt.u32.totalorder %s8504_s16, %s10174_s1 }
  0xab   : > { %p8029_p0 = scmp.lt.u32.totalorder %s8027_s30, %s8051_s11  ;;  %p8031_p2 = scmp.lt.u32.totalorder %s8051_s11, %s8504_s16 }
  0xac   : > { %p8025_p1 = pnand %p8024_p3, %p10272_p7 }
  0xad   : > { %p8030_p4 = por %p8029_p0, %p8028_p13 }
  0xae   : > { %p8026_p6 = pneg %p8025_p1 }
  0xaf   : > { %p8032_p5 = por %p8031_p2, %p8030_p4 }
  0xb1   : > { %p8033_p11 = pnand %p8032_p5, %p8026_p6 }
  0xb3   : > { %8036 = shalt.err (!%p8033_p11)
}
  0xb4   : > { %s8037_s18 = scalar_lea.vmem %s8499_s3, 512  ;;  %s8198_s19 = smov [#allocation7]  }
  0xb5   : > { %p8038_p12 = scmp.ne.s32.totalorder %s8499_s3, %s8037_s18  ;;  %s8041_s25 = sshll.u32 %s8198_s19, 4  ;;  %s8042_s25 = int_to_ptr.vmem [resolvable:$false] %s8041_s25 }
  0xb6   : > { %s8043_s8 = scalar_lea.vmem %s8042_s25, 1024  ;;  %p8044_p10 = scmp.lt.s32.totalorder %s8499_s3, %s8042_s25 }
  0xb7   : > { %p8039_p8 = pnand %p8038_p12, %p10272_p7  ;;  %p8045_p3 = scmp.lt.s32.totalorder %s8043_s8, %s8037_s18 }
  0xb9   : > { %p8040_p9 = pneg %p8039_p8  ;;  %p8046_p1 = por %p8045_p3, %p8044_p10 }
  0xbb   : > { %p8047_p13 = pnand %p8046_p1, %p8040_p9 }
  0xbd   : > { %8050 = shalt.err (!%p8047_p13)
}
  0xbe   : > { %s8199_s7 = smov 64   ;;  %s8200_s23 = smov 4  }
  0xbf   : > { %7638 = dma.hbm_to_vmem [thread:$0]  (%p10272_p7), %s8504_s16, 512, %s8499_s3, %s8506_s22, %s8199_s7, %s8199_s7, %s8200_s23  }
  0xc0 PF: > { %p10273_p6 = scmp.ne.s32.totalorder %s10268_s27, 0 }
  0xc2   : > { %376 = sbr.rel (%p10273_p6) target bundleno = 1291 (0x50b), region = 52 }
  0xc9   : > { %s10274_s26 = sld [smem:[#allocation21_spill]]  ;;  %s10275_s5 = sld [smem:[#allocation27_spill]] }
  0xcf   : > { %s8532_s12 = sand.u32 1, %s10274_s26   ;;  %p10276_p0 = scmp.ne.s32.totalorder %s10275_s5, 0 }
  0xd0   : > { %s6214_s20 = sshll.u32 %s8532_s12, 7  ;;  %s379_s11 = scalar_lea.sflag [#allocation5], %s8532_s12 }
  0xd1   : > { %s8538_s17 = scalar_lea.vmem [#allocation4], %s6214_s20 }
  0xd2   : > { %8125 = dma.done.wait (%p10276_p0), %s379_s11, 2048  }
  0xd3   : > { %8127 = vsyncadd (%p10276_p0), %s379_s11, 4294965248  ;;  %s10277_s21 = sld [smem:[#allocation24_spill]]  ;;  %s10278_s27 = sld [smem:[#allocation19_spill]] }
  0xd4   : > { %s10279_s3 = sld [smem:[#allocation30_spill]] }
  0xd9   : > { %s387_s16 = sand.u32 1, %s10277_s21   ;;  %s389_s22 = sand.u32 1, %s10278_s27  }
  0xda   : > { %s6215_s28 = sshll.u32 %s389_s22, 5  ;;  %s388_s30 = scalar_lea.sflag [#allocation8], %s387_s16 }
  0xdb   : > { %s8546_s9 = scalar_lea.vmem [#allocation7], %s6215_s28  ;;  %p10280_p7 = scmp.ne.s32.totalorder %s10279_s3, 0 }
  0xdd   : > { %8129 = dma.done.wait (%p10280_p7), %s388_s30, 512  }
  0xde   : > { %8131 = vsyncadd (%p10280_p7), %s388_s30, 4294966784  ;;  %p10281_p4 = scmp.eq.s32.totalorder %s10277_s21, 0 }
  0xe0   : > { %8133 = dma.done.wait (%p10281_p4), [#allocation8], 1024   ;;  %p10282_p2 = pmov %p10281_p4 }
  0xe2   : > { %8135 = vsyncadd (%p10282_p2), [#allocation8], 4294966272  ;;  %p10283_p5 = pmov %p10282_p2 }
  0xe3   : > { %p10284_p11 = pmov %p10282_p2 }
  0xe4   : > { %8137 = dma.done.wait (%p10283_p5), [#allocation11], 10240  }
  0xe5   : > { %8139 = vsyncadd (%p10284_p11), [#allocation11], 4294957056  ;;  %v7771_v0 = vld [vmem:[#allocation9] sm:$0xff]   ;;  %v7772_v1 = vld [vmem:[#allocation9 + $0x8] sm:$0xff]   ;;  %v8201_v38 = vmov 0   ;;  %s10285_s24 = sld [smem:[#allocation22_spill]]  ;;  %v491_v47 = vlaneseq }
  0xe6   : > { %6807 = vmatprep.subr.bf16.mxu0 %v7771_v0  ;;  %6855 = vmatprep.subr.bf16.mxu1 %v7771_v0  ;;  %v7773_v2 = vld [vmem:[#allocation9 + $0x10] sm:$0xff]   ;;  %v7774_v3 = vld [vmem:[#allocation9 + $0x18] sm:$0xff]   ;;  %v7779_v4 = vld [vmem:[%s8538_s17] sm:$0xff]   ;;  %1511 = vst [vmem:[#allocation2] sm:$0xff] %v8201_v38  ;;  %s10420_s8 = sld [smem:[#allocation41_spill]]  ;;  %s10477_s26 = sld [smem:[#allocation42_spill]] }
  0xe7   : > { %6808 = vmatpush3.bf16.msra.mxu0 %v7771_v0  ;;  %6856 = vmatpush3.bf16.msra.mxu1 %v7771_v0  ;;  %v7775_v5 = vld [vmem:[#allocation9 + $0x20] sm:$0xff]   ;;  %v7776_v7 = vld [vmem:[#allocation9 + $0x28] sm:$0xff]   ;;  %v7777_v8 = vld [vmem:[#allocation9 + $0x30] sm:$0xff]   ;;  %1512 = vst [vmem:[#allocation2 + $0xa8] sm:$0xff] %v8201_v38  ;;  %v8586_v48 = vshrl.u32 %v491_v47, 7  ;;  %s10486_s21 = sld [smem:[#allocation43_spill]] }
  0xe8   : > { %6809 = vmatprep.subr.bf16.mxu0 %v7772_v1  ;;  %6857 = vmatprep.subr.bf16.mxu1 %v7772_v1  ;;  %v483_v6 = vld [vmem:[%s8546_s9] sm:$0xff]   ;;  %v7778_v9 = vld [vmem:[#allocation9 + $0x38] sm:$0xff]   ;;  %v485_v10 = vld [vmem:[%s8546_s9 + $0x8] sm:$0xff]   ;;  %s10046_s27 = scalar_lea.vmem [#allocation13], %s6214_s20  ;;  %s10487_s20 = sld [smem:[#allocation23_spill]] }
  0xe9   : > { %6823 = vmatprep.mubr.bf16.mxu0 %v7779_v4  ;;  %6871 = vmatprep.mubr.bf16.mxu1 %v483_v6  ;;  %v455_v11 = vld [vmem:[%s8538_s17 + $0x10] sm:$0xff]   ;;  %v7799_v12 = vld [vmem:[#allocation10] sm:$0xff]   ;;  %v7780_v13 = vld [vmem:[%s8538_s17 + $0x8] sm:$0xff]   ;;  %v494_v49 = vadd.s32 16, %v8586_v48  ;;  %v493_v50 = vadd.s32 8, %v8586_v48  ;;  %v498_v52 = vadd.s32 48, %v8586_v48 }
  0xea   : > { %v7797_v14 = vld [vmem:[%s8546_s9 + $0x10] sm:$0xff]   ;;  %v457_v15 = vld [vmem:[%s8538_s17 + $0x18] sm:$0xff]   ;;  %v459_v16 = vld [vmem:[%s8538_s17 + $0x20] sm:$0xff]   ;;  %v532_v54 = vshra.s32 %v8586_v48, 5  ;;  %v496_v56 = vadd.s32 32, %v8586_v48  ;;  %v497_v60 = vadd.s32 40, %v8586_v48 }
  0xeb   : > { %6810 = vmatpush3.bf16.msra.mxu0 %v7772_v1  ;;  %6858 = vmatpush3.bf16.msra.mxu1 %v7772_v1  ;;  %v7798_v17 = vld [vmem:[%s8546_s9 + $0x18] sm:$0xff]   ;;  %v461_v18 = vld [vmem:[%s8538_s17 + $0x28] sm:$0xff]   ;;  %v463_v19 = vld [vmem:[%s8538_s17 + $0x30] sm:$0xff]   ;;  %s6220_s18 = sshll.u32 %s10285_s24, 3  ;;  %v534_v51 = vshra.s32 %v494_v49, 5  ;;  %v533_v55 = vshra.s32 %v493_v50, 5 }
  0xec   : > { %6811 = vmatprep.subr.bf16.mxu0 %v7773_v2  ;;  %6859 = vmatprep.subr.bf16.mxu1 %v7773_v2  ;;  %v465_v20 = vld [vmem:[%s8538_s17 + $0x38] sm:$0xff]   ;;  %v467_v21 = vld [vmem:[%s8538_s17 + $0x40] sm:$0xff]   ;;  %v469_v22 = vld [vmem:[%s8538_s17 + $0x48] sm:$0xff]   ;;  %v8592_v53 = vstv %s6220_s18  ;;  %v616_v58 = vand.u32 31, %v494_v49  ;;  %v538_v59 = vshra.s32 %v498_v52, 5  ;;  %v502_v62 = vadd.s32 80, %v8586_v48 }
  0xed   : > { %v471_v23 = vld [vmem:[%s8538_s17 + $0x50] sm:$0xff]   ;;  %v473_v24 = vld [vmem:[%s8538_s17 + $0x58] sm:$0xff]   ;;  %v475_v25 = vld [vmem:[%s8538_s17 + $0x60] sm:$0xff]   ;;  %v576_v57 = vadd.s32 %v8592_v53, %v534_v51  ;;  %v574_v61 = vadd.s32 %v8592_v53, %v532_v54  ;;  %v614_v63 = vand.u32 31, %v8586_v48  ;;  %v575_v0 = vadd.s32 %v8592_v53, %v533_v55  ;;  %s10488_s22 = sld [smem:[#allocation31_spill]]  ;;  %s6049_s28 = sshll.u32 %s10046_s27, 4  ;;  %s10103_s28 = int_to_ptr.vmem [resolvable:$true] %s6049_s28 }
  0xee   : > { %v477_v26 = vld [vmem:[%s8538_s17 + $0x68] sm:$0xff]   ;;  %v479_v27 = vld [vmem:[%s8538_s17 + $0x70] sm:$0xff]   ;;  %v481_v28 = vld [vmem:[%s8538_s17 + $0x78] sm:$0xff]   ;;  %v536_v1 = vshra.s32 %v496_v56, 5  ;;  %vm8603_vm1 = vcmp.le.s32.totalorder %v616_v58, 16  ;;  %v580_v4 = vadd.s32 %v8592_v53, %v538_v59  ;;  %v542_v6 = vshra.s32 %v502_v62, 5 }
  0xef   : > { %6812 = vmatpush3.bf16.msra.mxu0 %v7773_v2  ;;  %6860 = vmatpush3.bf16.msra.mxu1 %v7773_v2  ;;  %v7800_v29 = vld [vmem:[#allocation10 + $0x8] sm:$0xff]   ;;  %v7801_v30 = vld [vmem:[#allocation10 + $0xc0] sm:$0xff]   ;;  %v7802_v31 = vld [vmem:[#allocation10 + $0x10] sm:$0xff]   ;;  %v500_v2 = vadd.s32 64, %v8586_v48  ;;  %vm656_vm0 = vcmp.ge.s32.totalorder %v576_v57, 1  ;;  %vm696_vm2 = vcmp.le.s32.totalorder %v576_v57, 16 }
  0xf0   : > { %6813 = vmatprep.subr.bf16.mxu0 %v7774_v3  ;;  %6861 = vmatprep.subr.bf16.mxu1 %v7774_v3  ;;  %v7803_v32 = vld [vmem:[#allocation10 + $0xc8] sm:$0xff]   ;;  %v7804_v33 = vld [vmem:[#allocation10 + $0x18] sm:$0xff]   ;;  %v7805_v34 = vld [vmem:[#allocation10 + $0xd0] sm:$0xff]   ;;  %vm654_vm3 = vcmp.ge.s32.totalorder %v574_v61, 1  ;;  %vm694_vm4 = vcmp.le.s32.totalorder %v574_v61, 16  ;;  %vm8609_vm5 = vcmp.ge.s32.totalorder %v614_v63, 1 }
  0xf1   : > { %v7806_v35 = vld [vmem:[#allocation10 + $0x20] sm:$0xff]   ;;  %v7807_v36 = vld [vmem:[#allocation10 + $0xd8] sm:$0xff]   ;;  %v7808_v37 = vld [vmem:[#allocation10 + $0x28] sm:$0xff]   ;;  %vm695_vm7 = vcmp.le.s32.totalorder %v575_v0, 16  ;;  %vm660_vm8 = vcmp.ge.s32.totalorder %v580_v4, 1  ;;  %vm700_vm9 = vcmp.le.s32.totalorder %v580_v4, 16 }
  0xf2   : > { %v7809_v39 = vld [vmem:[#allocation10 + $0xe0] sm:$0xff]   ;;  %v7810_v40 = vld [vmem:[#allocation10 + $0x30] sm:$0xff]   ;;  %v7811_v41 = vld [vmem:[#allocation10 + $0xe8] sm:$0xff]   ;;  %v8671_v38 = vadd.s32 176, %v8586_v48  ;;  %v509_v47 = vadd.s32 136, %v8586_v48  ;;  %v10311_v51 = vmov 0 }
  0xf3   : > { %6814 = vmatpush3.bf16.msra.mxu0 %v7774_v3  ;;  %6862 = vmatpush3.bf16.msra.mxu1 %v7774_v3  ;;  %v7812_v42 = vld [vmem:[#allocation10 + $0x38] sm:$0xff]   ;;  %v7813_v43 = vld [vmem:[#allocation10 + $0xf0] sm:$0xff]   ;;  %v8580_v45 = vld [vmem:[#allocation10 + $0x100] sm:$0xff]   ;;  %v10286_v3 = vmov 0  ;;  %v513_v55 = vadd.s32 168, %v8586_v48  ;;  %v8721_v58 = vadd.s32 256, %v8586_v48 }
  0xf4   : > { %6815 = vmatprep.subr.bf16.mxu0 %v7775_v5  ;;  %6863 = vmatprep.subr.bf16.mxu1 %v7775_v5  ;;  %v7814_v44 = vld [vmem:[#allocation10 + $0xf8] sm:$0xff]   ;;  %v8583_v46 = vld [vmem:[#allocation10 + $0x40] sm:$0xff]   ;;  %v10287_v3 = vsel %vm8603_vm1, 4294967295, %v10286_v3  ;;  %vm8630_vm11 = vmand %vm656_vm0, %vm696_vm2  ;;  %v554_v54 = vshra.s32 %v8671_v38, 5  ;;  %v10319_v59 = vmov 0  ;;  %v8918_v50 = vadd.s32 192, %v8586_v48 }
  0xf5   : > { %vm8645_vm0 = vmand %vm654_vm3, %vm694_vm4  ;;  %s6396_s3 = sshll.u32 %s10487_s20, 6  ;;  %s10489_s18 = sld [smem:[#allocation44_spill]] }
  0xf6   : > { %vm8665_vm3 = vmand %vm660_vm8, %vm700_vm9  ;;  %vm10304_vm8 = vcmp.ge.s32.totalorder %v575_v0, 1  ;;  %v8740_v0 = vadd.s32 272, %v8586_v48  ;;  %v596_v4 = vadd.s32 %v8592_v53, %v554_v54  ;;  %s6034_s25 = scalar_lea.sflag [#allocation6], %s8532_s12  ;;  %p10490_p8 = scmp.ne.s32.totalorder %s10488_s22, 0 }
  0xf7   : > { %6816 = vmatpush3.bf16.msra.mxu0 %v7775_v5  ;;  %6864 = vmatpush3.bf16.msra.mxu1 %v7775_v5  ;;  %v537_v5 = vshra.s32 %v497_v60, 5  ;;  %vm8687_vm9 = vmand %vm10304_vm8, %vm695_vm7  ;;  %v10321_v60 = vmov 0  ;;  %s8203_s7 = smov [#allocation13]  }
  0xf8   : > { %6817 = vmatprep.subr.bf16.mxu0 %v7776_v7  ;;  %6865 = vmatprep.subr.bf16.mxu1 %v7776_v7  ;;  %s8056_s23 = sshll.u32 %s8203_s7, 4  ;;  %s8057_s23 = int_to_ptr.vmem [resolvable:$false] %s8056_s23 }
  0xf9   : > { %p8059_p3 = scmp.lt.s32.totalorder %s10103_s28, %s8057_s23 }
  0xfb   : > { %6818 = vmatpush3.bf16.msra.mxu0 %v7776_v7  ;;  %6866 = vmatpush3.bf16.msra.mxu1 %v7776_v7  ;;  %v501_v7 = vadd.s32 72, %v8586_v48 }
  0xfc   : > { %6819 = vmatprep.subr.bf16.mxu0 %v7777_v8  ;;  %6867 = vmatprep.subr.bf16.mxu1 %v7777_v8 }
  0xff   : > { %6820 = vmatpush3.bf16.msra.mxu0 %v7777_v8  ;;  %6868 = vmatpush3.bf16.msra.mxu1 %v7777_v8  ;;  %v10288_v8 = vmov 0 }
 0x100   : > { %6821 = vmatprep.subr.bf16.mxu0 %v7778_v9  ;;  %6869 = vmatprep.subr.bf16.mxu1 %v7778_v9  ;;  %v10289_v8 = vsel %vm8609_vm5, 4294967295, %v10288_v8 }
 0x103   : > { %6822 = vmatpush3.bf16.msra.mxu0 %v7778_v9  ;;  %6870 = vmatpush3.bf16.msra.mxu1 %v7778_v9  ;;  %v620_v9 = vand.u32 31, %v498_v52 }
 0x104   : > { %6879 = vmatprep.subr.bf16.mxu0 %v7799_v12  ;;  %7023 = vmatprep.subr.bf16.mxu1 %v7801_v30 }
 0x105   : > { %vm8621_vm10 = vcmp.le.s32.totalorder %v620_v9, 16  ;;  %v564_v9 = vshra.s32 %v8721_v58, 5 }
 0x106   : > { %6824 = vmatmul.mubr.bf16.vlgmr.msra.gmra.mrb[0].mxu0 %v7780_v13  ;;  %6872 = vmatmul.mubr.bf16.vlgmr.msra.gmra.mrb[0].mxu1 %v485_v10  ;;  %v506_v10 = vadd.s32 112, %v8586_v48  ;;  %v618_v13 = vand.u32 31, %v496_v56  ;;  %v10315_v56 = vmov 0 }
 0x107   : > { %6827 = vmatprep.mubr.bf16.mxu0 %v455_v11  ;;  %6875 = vmatprep.mubr.bf16.mxu1 %v7797_v14  ;;  %v578_v11 = vadd.s32 %v8592_v53, %v536_v1  ;;  %v8616_v14 = vadd.s32 %v8592_v53, %v537_v5  ;;  %v10325_v1 = vmov 0  ;;  %v553_v5 = vshra.s32 %v513_v55, 5 }
 0x108   : > { %6880 = vmatpush3.bf16.msra.mxu0 %v7799_v12  ;;  %7024 = vmatpush3.bf16.msra.mxu1 %v7801_v30  ;;  %v540_v12 = vshra.s32 %v500_v2, 5  ;;  %vm8638_vm14 = vcmp.ge.s32.totalorder %v618_v13, 1 }
 0x109   : > { %6881 = vmatprep.subr.bf16.mxu0 %v7800_v29  ;;  %7025 = vmatprep.subr.bf16.mxu1 %v7803_v32  ;;  %vm10307_vm7 = vcmp.le.s32.totalorder %v578_v11, 16  ;;  %vm10308_vm8 = vcmp.ge.s32.totalorder %v578_v11, 1  ;;  %v8202_v11 = vmov 0.0  }
 0x10c   : > { %6882 = vmatpush3.bf16.msra.mxu0 %v7800_v29  ;;  %7026 = vmatpush3.bf16.msra.mxu1 %v7803_v32  ;;  %v10296_v29 = vmov 0  ;;  %v10298_v32 = vmov 0 }
 0x10d   : > { %6883 = vmatprep.subr.bf16.mxu0 %v7802_v31  ;;  %7027 = vmatprep.subr.bf16.mxu1 %v7805_v34  ;;  %v10297_v29 = vsel %vm8645_vm0, 4294967295, %v10296_v29 }
 0x10e   : > { %6828 = vmatmul.mubr.bf16.gmra.mrb[4].mxu0 %v457_v15  ;;  %6876 = vmatmul.mubr.bf16.gmra.mrb[4].mxu1 %v7798_v17  ;;  %v504_v15 = vadd.s32 96, %v8586_v48  ;;  %v541_v17 = vshra.s32 %v501_v7, 5 }
 0x10f   : > { %6831 = vmatprep.mubr.bf16.mxu0 %v459_v16  ;;  %v584_v16 = vadd.s32 %v8592_v53, %v542_v6 }
 0x110   : > { %6884 = vmatpush3.bf16.msra.mxu0 %v7802_v31  ;;  %7028 = vmatpush3.bf16.msra.mxu1 %v7805_v34  ;;  %v8651_v30 = vadd.s32 %v8592_v53, %v541_v17 }
 0x111   : > { %6885 = vmatprep.subr.bf16.mxu0 %v7804_v33  ;;  %7029 = vmatprep.subr.bf16.mxu1 %v7807_v36  ;;  %vm10313_vm15 = vcmp.le.s32.totalorder %v584_v16, 16  ;;  %vm10314_vm2 = vcmp.ge.s32.totalorder %v584_v16, 1 }
 0x112   : > { %vm8715_vm13 = vmand %vm10314_vm2, %vm10313_vm15 }
 0x113   : > { %v10316_v56 = vsel %vm8715_vm13, 4294967295, %v10315_v56 }
 0x114   : > { %6886 = vmatpush3.bf16.msra.mxu0 %v7804_v33  ;;  %7030 = vmatpush3.bf16.msra.mxu1 %v7807_v36  ;;  %v628_v36 = vand.u32 31, %v506_v10 }
 0x115   : > { %6887 = vmatprep.subr.bf16.mxu0 %v7806_v35  ;;  %7031 = vmatprep.subr.bf16.mxu1 %v7809_v39 }
 0x116   : > { %6832 = vmatmul.mubr.bf16.gmra.mrb[8].mxu0 %v461_v18  ;;  %v505_v18 = vadd.s32 104, %v8586_v48  ;;  %vm8706_vm4 = vcmp.le.s32.totalorder %v628_v36, 16  ;;  %v10374_v36 = vmov 0 }
 0x117   : > { %6835 = vmatprep.mubr.bf16.mxu0 %v463_v19  ;;  %v10290_v19 = vmov 0  ;;  %v10312_v51 = vsel %vm8706_vm4, 4294967295, %v10311_v51 }
 0x118   : > { %6888 = vmatpush3.bf16.msra.mxu0 %v7806_v35  ;;  %7032 = vmatpush3.bf16.msra.mxu1 %v7809_v39  ;;  %v10291_v19 = vsel %vm8621_vm10, 4294967295, %v10290_v19  ;;  %v545_v31 = vshra.s32 %v505_v18, 5  ;;  %v10300_v35 = vmov 0  ;;  %v10302_v39 = vmov 0 }
 0x119   : > { %6889 = vmatprep.subr.bf16.mxu0 %v7808_v37  ;;  %7033 = vmatprep.subr.bf16.mxu1 %v7811_v41  ;;  %v10301_v35 = vsel %vm8665_vm3, 4294967295, %v10300_v35  ;;  %v10355_v18 = vmov 0 }
 0x11c   : > { %6890 = vmatpush3.bf16.msra.mxu0 %v7808_v37  ;;  %7034 = vmatpush3.bf16.msra.mxu1 %v7811_v41  ;;  %v8683_v41 = vadd.s32 160, %v8586_v48 }
 0x11d   : > { %6891 = vmatprep.subr.bf16.mxu0 %v7810_v40  ;;  %7035 = vmatprep.subr.bf16.mxu1 %v7813_v43 }
 0x11e   : > { %6836 = vmatmul.mubr.bf16.gmra.mrb[12].mxu0 %v465_v20  ;;  %v624_v20 = vand.u32 31, %v502_v62  ;;  %v552_v57 = vshra.s32 %v8683_v41, 5  ;;  %v549_v62 = vshra.s32 %v509_v47, 5 }
 0x11f   : > { %6839 = vmatprep.mubr.bf16.mxu0 %v467_v21  ;;  %v546_v21 = vshra.s32 %v506_v10, 5  ;;  %v525_v10 = vadd.s32 264, %v8586_v48 }
 0x120   : > { %6892 = vmatpush3.bf16.msra.mxu0 %v7810_v40  ;;  %7036 = vmatpush3.bf16.msra.mxu1 %v7813_v43  ;;  %vm8657_vm6 = vcmp.le.s32.totalorder %v624_v20, 16  ;;  %v626_v43 = vand.u32 31, %v504_v15  ;;  %v594_v7 = vadd.s32 %v8592_v53, %v552_v57  ;;  %v636_v20 = vand.u32 31, %v8671_v38 }
 0x121   : > { %6893 = vmatprep.subr.bf16.mxu0 %v7812_v42  ;;  %7037 = vmatprep.subr.bf16.mxu1 %v7814_v44  ;;  %v10299_v32 = vsel %vm8657_vm6, 4294967295, %v10298_v32  ;;  %v588_v33 = vadd.s32 %v8592_v53, %v546_v21  ;;  %v566_v21 = vshra.s32 %v8740_v0, 5  ;;  %v646_v38 = vand.u32 31, %v8721_v58 }
 0x122   : > { %vm8729_vm4 = vcmp.ge.s32.totalorder %v626_v43, 1  ;;  %v648_v43 = vand.u32 31, %v8740_v0 }
 0x123   : > { %v10322_v60 = vsel %vm8729_vm4, 4294967295, %v10321_v60  ;;  %vm10327_vm4 = vcmp.le.s32.totalorder %v588_v33, 16  ;;  %vm10328_vm0 = vcmp.ge.s32.totalorder %v588_v33, 1  ;;  %v10370_v33 = vmov 0 }
 0x124   : > { %6894 = vmatpush3.bf16.msra.mxu0 %v7812_v42  ;;  %7038 = vmatpush3.bf16.msra.mxu1 %v7814_v44  ;;  %v10305_v42 = vmov 0  ;;  %v587_v44 = vadd.s32 %v8592_v53, %v545_v31  ;;  %vm8752_vm1 = vmand %vm10328_vm0, %vm10327_vm4 }
 0x125   : > { %7071 = vmatprep.subr.bf16.mxu1 %v8580_v45  ;;  %6927 = vmatprep.subr.bf16.mxu0 %v8583_v46  ;;  %v10306_v42 = vsel %vm8687_vm9, 4294967295, %v10305_v42  ;;  %vm8702_vm9 = vmand %vm10308_vm8, %vm10307_vm7  ;;  %vm10335_vm8 = vnez %v10287_v3  ;;  %vm10340_vm7 = vcmp.le.s32.totalorder %v8651_v30, 16  ;;  %v10346_v3 = vmov 0 }
 0x126   : > { %6840 = vmatmul.mubr.bf16.gmra.mrb[16].mxu0 %v469_v22  ;;  %v8626_v22 = vadd.s32 144, %v8586_v48 }
 0x127   : > { %6843 = vmatprep.mubr.bf16.mxu0 %v471_v23  ;;  %v1553_v23 = vld [vmem:[#allocation2] sm:$0x80] }
 0x128   : > { %v550_v34 = vshra.s32 %v8626_v22, 5  ;;  %v632_v61 = vand.u32 31, %v8626_v22  ;;  %v10361_v22 = vmov 0  ;;  %v1588_v31 = vshrl.u32 %v1553_v23, 16 }
 0x12a   : > { %v592_v49 = vadd.s32 %v8592_v53, %v550_v34  ;;  %v10372_v34 = vmov 0  ;;  %v8936_v55 = vrot.slane %v1588_v31, 7 }
 0x12c   : > { %vm10344_vm6 = vcmp.le.s32.totalorder %v592_v49, 16 }
 0x12e   : > { %6844 = vmatmul.mubr.bf16.gmra.mrb[20].mxu0 %v473_v24  ;;  %v582_v24 = vadd.s32 %v8592_v53, %v540_v12 }
 0x12f   : > { %6847 = vmatprep.mubr.bf16.mxu0 %v475_v25  ;;  %v8636_v25 = vadd.s32 128, %v8586_v48 }
 0x130   : > { %vm10317_vm5 = vcmp.le.s32.totalorder %v582_v24, 16  ;;  %vm10318_vm10 = vcmp.ge.s32.totalorder %v582_v24, 1  ;;  %v634_v24 = vand.u32 31, %v8683_v41 }
 0x131   : > { %v548_v37 = vshra.s32 %v8636_v25, 5  ;;  %vm8725_vm3 = vmand %vm10318_vm10, %vm10317_vm5  ;;  %v630_v63 = vand.u32 31, %v8636_v25  ;;  %vm10323_vm5 = vcmp.le.s32.totalorder %v8616_v14, 16  ;;  %vm10324_vm10 = vcmp.ge.s32.totalorder %v8616_v14, 1 }
 0x132   : > { %v10320_v59 = vsel %vm8725_vm3, 4294967295, %v10319_v59  ;;  %vm8746_vm15 = vmand %vm10324_vm10, %vm10323_vm5  ;;  %v10342_v14 = vmov 0  ;;  %v595_v25 = vadd.s32 %v8592_v53, %v553_v5 }
 0x133   : > { %v590_v52 = vadd.s32 %v8592_v53, %v548_v37  ;;  %v10326_v1 = vsel %vm8746_vm15, 4294967295, %v10325_v1  ;;  %vm10336_vm5 = vmand %vm8630_vm11, %vm10335_vm8  ;;  %vm10345_vm11 = vcmp.ge.s32.totalorder %v592_v49, 1  ;;  %v8890_v37 = vadd.s32 208, %v8586_v48 }
 0x134   : > { %v8780_v12 = vsel %vm10336_vm5, 1.0, %v8202_v11  ;;  %vm8800_vm8 = vmand %vm10345_vm11, %vm10344_vm6  ;;  %vm8804_vm5 = vcmp.le.s32.totalorder %v632_v61, 16  ;;  %vm8820_vm6 = vcmp.ge.s32.totalorder %v630_v63, 1 }
 0x135   : > { %v10347_v3 = vsel %vm8800_vm8, 4294967295, %v10346_v3  ;;  %v10356_v18 = vsel %vm8820_vm6, 4294967295, %v10355_v18 }
 0x136   : > { %6848 = vmatmul.mubr.bf16.gmra.mrb[24].mxu0 %v477_v26  ;;  %v10376_v26 = vmov 0 }
 0x137   : > { %6851 = vmatprep.mubr.bf16.mxu0 %v479_v27  ;;  %v622_v27 = vand.u32 31, %v500_v2  ;;  %v556_v2 = vshra.s32 %v8918_v50, 5 }
 0x139   : > { %vm8677_vm12 = vcmp.ge.s32.totalorder %v622_v27, 1  ;;  %v606_v27 = vadd.s32 %v8592_v53, %v564_v9 }
 0x13a   : > { %v10303_v39 = vsel %vm8677_vm12, 4294967295, %v10302_v39  ;;  %vm10341_vm12 = vcmp.ge.s32.totalorder %v8651_v30, 1  ;;  %v8860_v30 = vadd.s32 288, %v8586_v48 }
 0x13b   : > { %vm8794_vm3 = vmand %vm10341_vm12, %vm10340_vm7  ;;  %vm10351_vm12 = vcmp.le.s32.totalorder %v590_v52, 16  ;;  %vm10352_vm7 = vcmp.ge.s32.totalorder %v590_v52, 1 }
 0x13c   : > { %v10343_v14 = vsel %vm8794_vm3, 4294967295, %v10342_v14  ;;  %vm10360_vm3 = vcmp.ge.s32.totalorder %v587_v44, 1  ;;  %v568_v47 = vshra.s32 %v8860_v30, 5  ;;  %v650_v9 = vand.u32 31, %v8860_v30 }
 0x13e   : > { %6852 = vmatmul.mubr.bf16.gmra.mrb[28].mxu0 %v481_v28  ;;  %v544_v28 = vshra.s32 %v504_v15, 5  ;;  %v10348_v15 = vmov 0  ;;  %v610_v0 = vadd.s32 %v8592_v53, %v568_v47 }
 0x13f   : > { %v10349_v15 = vsel %vm8804_vm5, 4294967295, %v10348_v15  ;;  %vm10366_vm5 = vmmov %vm8638_vm14  ;;  %vm8876_vm14 = vcmp.le.s32.totalorder %v636_v20, 16  ;;  %v640_v20 = vand.u32 31, %v8890_v37 }
 0x140   : > { %v586_v40 = vadd.s32 %v8592_v53, %v544_v28  ;;  %v565_v28 = vshra.s32 %v525_v10, 5  ;;  %vm10367_vm8 = vmand %vm8702_vm9, %vm10366_vm5  ;;  %v10373_v34 = vsel %vm8876_vm14, 4294967295, %v10372_v34  ;;  %vm8885_vm9 = vcmp.ge.s32.totalorder %v634_v24, 1 }
 0x141   : > { %v10377_v26 = vsel %vm8885_vm9, 4294967295, %v10376_v26  ;;  %vm10385_vm14 = vnez %v10303_v39  ;;  %vm10388_vm9 = vcmp.ge.s32.totalorder %v606_v27, 1 }
 0x142   : > { %vm10331_vm10 = vcmp.le.s32.totalorder %v586_v40, 16  ;;  %vm10332_vm0 = vcmp.ge.s32.totalorder %v586_v40, 1  ;;  %v10378_v40 = vmov 0  ;;  %v607_v41 = vadd.s32 %v8592_v53, %v565_v28 }
 0x143   : > { %vm8767_vm4 = vmand %vm10332_vm0, %vm10331_vm10  ;;  %vm10337_vm10 = vnez %v10297_v29  ;;  %vm10338_vm0 = vnez %v10289_v8  ;;  %v591_v8 = vadd.s32 %v8592_v53, %v549_v62 }
 0x144   : > { %vm10339_vm2 = vmand %vm10337_vm10, %vm10338_vm0  ;;  %vm674_vm0 = vcmp.ge.s32.totalorder %v594_v7, 1 }
 0x145   : > { %v8788_v13 = vsel %vm10339_vm2, 1.0, %v8202_v11  ;;  %vm10350_vm2 = vnez %v10306_v42  ;;  %vm8816_vm10 = vmand %vm10352_vm7, %vm10351_vm12  ;;  %vm10359_vm7 = vcmp.le.s32.totalorder %v587_v44, 16  ;;  %vm714_vm12 = vcmp.le.s32.totalorder %v594_v7, 16 }
 0x146   : > { %v8812_v16 = vsel %vm10350_vm2, 1.0, %v8202_v11  ;;  %vm10358_vm2 = vnez %v10322_v60  ;;  %vm8836_vm13 = vmand %vm10360_vm3, %vm10359_vm7  ;;  %vm10363_vm3 = vnez %v10301_v35  ;;  %vm10364_vm7 = vnez %v10291_v19 }
 0x147   : > { %v10362_v22 = vsel %vm8836_vm13, 4294967295, %v10361_v22  ;;  %vm10365_vm15 = vmand %vm10363_vm3, %vm10364_vm7  ;;  %vm671_vm13 = vcmp.ge.s32.totalorder %v591_v8, 1  ;;  %vm711_vm11 = vcmp.le.s32.totalorder %v591_v8, 16  ;;  %v8868_v19 = vsel %vm10367_vm8, 1.0, %v8202_v11  ;;  %v9053_v8 = vld [vmem:[%s10420_s8] ss:$0 sm:$0xff] }
 0x148   : > { %v8853_v29 = vsel %vm10365_vm15, 1.0, %v8202_v11  ;;  %vm10368_vm15 = vcmp.le.s32.totalorder %v596_v4, 16  ;;  %vm10369_vm3 = vcmp.ge.s32.totalorder %v596_v4, 1  ;;  %v608_v35 = vadd.s32 %v8592_v53, %v566_v21  ;;  %vm8881_vm6 = vmand %vm674_vm0, %vm714_vm12  ;;  %s8052_s8 = scalar_lea.vmem %s10103_s28, 2048 }
 0x149   : > { %vm8872_vm7 = vmand %vm10369_vm3, %vm10368_vm15  ;;  %v10375_v36 = vsel %vm8881_vm6, 4294967295, %v10374_v36  ;;  %v529_v42 = vadd.s32 296, %v8586_v48  ;;  %v8905_v44 = vadd.s32 304, %v8586_v48  ;;  %vm10381_vm12 = vnez %v10316_v56  ;;  %p8053_p12 = scmp.ne.s32.totalorder %s10103_s28, %s8052_s8 }
 0x14a   : > { %v10371_v33 = vsel %vm8872_vm7, 4294967295, %v10370_v33  ;;  %vm8893_vm5 = vmand %vm671_vm13, %vm711_vm11  ;;  %vm10380_vm13 = vnez %v10326_v1  ;;  %vm688_vm0 = vcmp.ge.s32.totalorder %v608_v35, 1  ;;  %vm728_vm8 = vcmp.le.s32.totalorder %v608_v35, 16 }
 0x14b   : > { %v10379_v40 = vsel %vm8893_vm5, 4294967295, %v10378_v40  ;;  %v8911_v49 = vsel %vm10380_vm13, 1.0, %v8202_v11  ;;  %vm10382_vm15 = vnez %v10299_v32  ;;  %vm10384_vm13 = vnez %v10320_v59  ;;  %p8054_p9 = pnand %p8053_p12, %p10490_p8 }
 0x14c   : > { %vm10383_vm3 = vmand %vm10381_vm12, %vm10382_vm15  ;;  %vm10387_vm11 = vcmp.le.s32.totalorder %v606_v27, 16  ;;  %vm8944_vm5 = vcmp.ge.s32.totalorder %v646_v38, 1  ;;  %vm10393_vm15 = vnez %v10343_v14  ;;  %vm687_vm12 = vcmp.ge.s32.totalorder %v607_v41, 1 }
 0x14d   : > { %v8926_v52 = vsel %vm10383_vm3, 1.0, %v8202_v11  ;;  %vm10386_vm7 = vmand %vm10384_vm13, %vm10385_vm14  ;;  %v8951_v56 = vsel %vm10393_vm15, 1.0, %v8202_v11  ;;  %vm10394_vm14 = vcmp.le.s32.totalorder %v595_v25, 16  ;;  %v569_v58 = vshra.s32 %v529_v42, 5  ;;  %p8055_p10 = pneg %p8054_p9 }
 0x14e   : > { %v8934_v54 = vsel %vm10386_vm7, 1.0, %v8202_v11  ;;  %vm8940_vm6 = vmand %vm10388_vm9, %vm10387_vm11  ;;  %vm10395_vm7 = vcmp.ge.s32.totalorder %v595_v25, 1  ;;  %vm727_vm9 = vcmp.le.s32.totalorder %v607_v41, 16  ;;  %v558_v59 = vshra.s32 %v8890_v37, 5 }
 0x14f   : > { %vm8955_vm3 = vmand %vm10395_vm7, %vm10394_vm14  ;;  %vm8964_vm13 = vcmp.le.s32.totalorder %v648_v43, 16  ;;  %v570_v63 = vshra.s32 %v8905_v44, 5  ;;  %vm10402_vm15 = vnez %v10312_v51  ;;  %vm10406_vm7 = vnez %v10347_v3 }
 0x150   : > { %vm8960_vm11 = vmand %vm688_vm0, %vm728_vm8  ;;  %vm10405_vm0 = vnez %v10362_v22  ;;  %v9043_v3 = vsel %vm8955_vm3, 1.0, %v8202_v11  ;;  %v9056_v17 = vadd.s32 %v8592_v53, %v558_v59  ;;  %vm730_vm3 = vcmp.le.s32.totalorder %v610_v0, 16 }
 0x151   : > { %vm10403_vm14 = vmand %vm8752_vm1, %vm10402_vm15  ;;  %v8989_v5 = vsel %vm10405_vm0, 1.0, %v8202_v11  ;;  %vm10407_vm15 = vnez %v10349_v15  ;;  %v611_v15 = vadd.s32 %v8592_v53, %v569_v58  ;;  %v9061_v21 = vadd.s32 %v8592_v53, %v556_v2 }
 0x152   : > { %v8976_v1 = vsel %vm10403_vm14, 1.0, %v8202_v11  ;;  %vm10404_vm8 = vmand %vm8767_vm4, %vm10358_vm2  ;;  %vm10409_vm2 = vnez %v10356_v18  ;;  %v612_v18 = vadd.s32 %v8592_v53, %v570_v63  ;;  %v9064_v22 = vadd.s32 200, %v8586_v48 }
 0x153   : > { %v8984_v4 = vsel %vm10404_vm8, 1.0, %v8202_v11  ;;  %vm846_vm1 = vmand %vm8940_vm6, %vm8944_vm5  ;;  %vm10411_vm8 = vnez %v10379_v40  ;;  %v652_v30 = vand.u32 31, %v8905_v44  ;;  %vm691_vm5 = vcmp.ge.s32.totalorder %v611_v15, 1 }
 0x154   : > { %vm10408_vm4 = vmand %vm10406_vm7, %vm10407_vm15  ;;  %v9015_v6 = vsel %vm10411_vm8, 1.0, %v8202_v11  ;;  %vm10414_vm7 = vnez %v10371_v33  ;;  %v6245_v23 = vsel %vm846_vm1, 1.0, %v8202_v11  ;;  %vm692_vm1 = vcmp.ge.s32.totalorder %v612_v18, 1 }
 0x155   : > { %v9002_v51 = vsel %vm10408_vm4, 1.0, %v8202_v11  ;;  %vm10410_vm14 = vmand %vm8816_vm10, %vm10409_vm2  ;;  %vm10415_vm10 = vnez %v10373_v34  ;;  %vm10417_vm4 = vnez %v10375_v36  ;;  %vm10418_vm2 = vnez %v10377_v26 }
 0x156   : > { %v9010_v60 = vsel %vm10410_vm14, 1.0, %v8202_v11  ;;  %vm9019_vm0 = vmand %vm687_vm12, %vm727_vm9  ;;  %vm690_vm9 = vcmp.ge.s32.totalorder %v610_v0, 1  ;;  %vm732_vm8 = vcmp.le.s32.totalorder %v612_v18, 16 }
 0x157   : > { %vm10416_vm15 = vmand %vm10414_vm7, %vm10415_vm10  ;;  %v6246_v28 = vsel %vm9019_vm0, 1.0, %v8202_v11  ;;  %vm9105_vm10 = vcmp.le.s32.totalorder %v652_v30, 16  ;;  %v557_v30 = vshra.s32 %v9064_v22, 5 }
 0x158   : > { %v9030_v10 = vsel %vm10416_vm15, 1.0, %v8202_v11  ;;  %vm10419_vm14 = vmand %vm10417_vm4, %vm10418_vm2  ;;  %vm1586_vm15 = vsmask.f32 256 }
 0x159   : > { %v9038_v14 = vsel %vm10419_vm14, 1.0, %v8202_v11  ;;  %vm928_vm12 = vmand %vm8960_vm11, %vm8964_vm13  ;;  %vm9077_vm11 = vcmp.ge.s32.totalorder %v650_v9, 1  ;;  %vm731_vm13 = vcmp.le.s32.totalorder %v611_v15, 16  ;;  %vm680_vm14 = vcmp.ge.s32.totalorder %v9056_v17, 1 }
 0x15a   : > { %v6247_v25 = vsel %vm928_vm12, 1.0, %v8202_v11  ;;  %vm9085_vm6 = vmand %vm690_vm9, %vm730_vm3  ;;  %vm720_vm12 = vcmp.le.s32.totalorder %v9056_v17, 16  ;;  %vm9173_vm9 = vcmp.le.s32.totalorder %v640_v20, 16 }
 0x15b   : > { %vm850_vm0 = vmand %vm9085_vm6, %vm9077_vm11  ;;  %vm678_vm11 = vcmp.ge.s32.totalorder %v9061_v21, 1  ;;  %vm718_vm6 = vcmp.le.s32.totalorder %v9061_v21, 16 }
 0x15c   : > { %vm9101_vm7 = vmand %vm692_vm1, %vm732_vm8 }
 0x15d   : > { %vm9112_vm4 = vmand %vm691_vm5, %vm731_vm13 }
 0x15e   : > { %vm932_vm2 = vmand %vm9101_vm7, %vm9105_vm10 }
 0x15f   : > { %vm9198_vm3 = vmand %vm680_vm14, %vm720_vm12 }
 0x160   : > { %vm920_vm5 = vmand %vm9198_vm3, %vm9173_vm9 }
 0x161   : > { %vm9226_vm13 = vmand %vm678_vm11, %vm718_vm6  ;;  %v9244_v21 = vsel %vm920_vm5, 1.0, %v8202_v11 }
 0x1d9   : > { %v6825_v24 = vpop.f32.mrb[0].mxu0  ;;  %v6873_v27 = vpop.f32.mrb[0].mxu1 }
 0x1da   : > { %v1224_v33 = vadd.f32 %v6825_v24, %v9053_v8  ;;  %v1215_v34 = vpop.f32.mrb[1].mxu0  ;;  %v1473_v35 = vadd.f32 %v6873_v27, %v9053_v8  ;;  %v1464_v36 = vpop.f32.mrb[1].mxu1  ;;  %v638_v27 = vand.u32 31, %v8918_v50 }
 0x1db   : > { %v1216_v38 = vadd.f32 %v9053_v8, %v1215_v34  ;;  %v6826_v40 = vpop.f32.mrb[2].mxu0  ;;  %v1465_v41 = vadd.f32 %v9053_v8, %v1464_v36  ;;  %v6874_v42 = vpop.f32.mrb[2].mxu1 }
 0x1dc   : > { %v1344_v43 = vmax.f32 %v1224_v33, 0.0  ;;  %v1227_v44 = vadd.f32 %v6826_v40, %v9053_v8  ;;  %v1218_v47 = vpop.f32.mrb[3].mxu0  ;;  %v1497_v57 = vmax.f32 %v1473_v35, 0.0  ;;  %v1476_v32 = vadd.f32 %v6874_v42, %v9053_v8  ;;  %v1467_v39 = vpop.f32.mrb[3].mxu1 }
 0x1dd   : > { %v1342_v58 = vmax.f32 %v1216_v38, 0.0  ;;  %v1219_v59 = vadd.f32 %v9053_v8, %v1218_v47  ;;  %v1495_v61 = vmax.f32 %v1465_v41, 0.0  ;;  %v1468_v62 = vadd.f32 %v9053_v8, %v1467_v39 }
 0x1de   : > { %v1345_v63 = vmax.f32 %v1227_v44, 0.0  ;;  %v1505_v0 = vmul.f32 %v6247_v25, %v1497_v57  ;;  %v1498_v2 = vmax.f32 %v1476_v32, 0.0  ;;  %v1376_v18 = vmul.f32 %v8780_v12, %v1344_v43 }
 0x1df   : > { %v1343_v24 = vmax.f32 %v1219_v59, 0.0  ;;  %v1503_v33 = vmul.f32 %v6245_v23, %v1495_v61  ;;  %v1496_v34 = vmax.f32 %v1468_v62, 0.0  ;;  %v1374_v38 = vmul.f32 %v8788_v13, %v1342_v58 }
 0x1e0   : > { %v1377_v35 = vmul.f32 0.0, %v1345_v63  ;;  %v1506_v36 = vmul.f32 0.0, %v1498_v2  ;;  %v9130_v12 = vsel %vm850_vm0, 1.0, %v8202_v11  ;;  %v9138_v44 = vsel %vm9112_vm4, 1.0, %v8202_v11 }
 0x1e1   : > { %v1375_v40 = vmul.f32 %v8812_v16, %v1343_v24  ;;  %v6829_v41 = vpop.f32.mrb[4].mxu0  ;;  %v1504_v42 = vmul.f32 %v6246_v28, %v1496_v34  ;;  %v6877_v15 = vpop.f32.mrb[4].mxu1  ;;  %v6250_v63 = vsel %vm932_vm2, 1.0, %v8202_v11  ;;  %vm9232_vm1 = vcmp.ge.s32.totalorder %v638_v27, 1 }
 0x1e2   : > { %v1514_v23 = vpack.c.bf16 %v1377_v35, %v1376_v18  ;;  %v1240_v13 = vadd.f32 %v6829_v41, %v9053_v8  ;;  %v1231_v16 = vpop.f32.mrb[5].mxu0  ;;  %v9133_v43 = vpack.c.bf16 %v1506_v36, %v1505_v0  ;;  %v1480_v28 = vpop.f32.mrb[5].mxu1  ;;  %v1489_v32 = vadd.f32 %v6877_v15, %v9053_v8  ;;  %vm838_vm0 = vmand %vm9226_vm13, %vm9232_vm1 }
 0x1e3   : > { %v1513_v47 = vpack.c.bf16 %v1375_v40, %v1374_v38  ;;  %v1232_v26 = vadd.f32 %v9053_v8, %v1231_v16  ;;  %v6830_v57 = vpop.f32.mrb[6].mxu0  ;;  %v9141_v31 = vpack.c.bf16 %v1504_v42, %v1503_v33  ;;  %v6878_v39 = vpop.f32.mrb[6].mxu1  ;;  %v1481_v34 = vadd.f32 %v9053_v8, %v1480_v28 }
 0x1e4   : > { %1530 = vst [vmem:[#allocation2 + $0x10] sm:$0xff] %v1514_v23  ;;  %v1348_v58 = vmax.f32 %v1240_v13, 0.0  ;;  %v1243_v59 = vadd.f32 %v6830_v57, %v9053_v8  ;;  %v1234_v61 = vpop.f32.mrb[7].mxu0  ;;  %v1600_v62 = vshrl.u32 %v1514_v23, 16  ;;  %1550 = vst [vmem:[#allocation2 + $0x90] sm:$0xff] %v9133_v43  ;;  %v1483_v0 = vpop.f32.mrb[7].mxu1  ;;  %v1492_v13 = vadd.f32 %v6878_v39, %v9053_v8 }
 0x1e5   : > { %1529 = vst [vmem:[#allocation2 + $0x8] sm:$0xff] %v1513_v47  ;;  %v1346_v2 = vmax.f32 %v1232_v26, 0.0  ;;  %v1235_v24 = vadd.f32 %v9053_v8, %v1234_v61  ;;  %v1592_v33 = vshrl.u32 %v1513_v47, 16  ;;  %1549 = vst [vmem:[#allocation2 + $0x88] sm:$0xff] %v9141_v31  ;;  %v1595_v18 = vshll.u32 %v1513_v47, 16 }
 0x1e6   : > { %v1349_v25 = vmax.f32 %v1243_v59, 0.0  ;;  %v9155_v35 = vrot.slane %v1600_v62, 7  ;;  %v1603_v36 = vshll.u32 %v1514_v23, 16  ;;  %v1380_v7 = vmul.f32 %v8853_v29, %v1348_v58 }
 0x1e7   : > { %v1347_v9 = vmax.f32 %v1235_v24, 0.0  ;;  %v1594_v38 = vrot.slane %v1592_v33, 7  ;;  %v1501_v40 = vmax.f32 %v1489_v32, 0.0  ;;  %v1378_v41 = vmul.f32 %v8868_v19, %v1346_v2  ;;  %v7820_v24 = vld [vmem:[#allocation10 + $0x48] sm:$0xff]  }
 0x1e8   : > { %v1381_v42 = vmul.f32 0.0, %v1349_v25  ;;  %v1605_v15 = vor.u32 %v1603_v36, %v9155_v35  ;;  %v1499_v23 = vmax.f32 %v1481_v34, 0.0  ;;  %v1484_v29 = vadd.f32 %v9053_v8, %v1483_v0 }
 0x1e9   : > { %v1379_v16 = vmul.f32 %v8911_v49, %v1347_v9  ;;  %v6833_v28 = vpop.f32.mrb[8].mxu0  ;;  %v1597_v26 = vor.u32 %v1595_v18, %v1594_v38  ;;  %v1502_v58 = vmax.f32 %v1492_v13, 0.0 }
 0x1ea   : > { %v1516_v47 = vpack.c.bf16 %v1381_v42, %v1380_v7  ;;  %v1256_v57 = vadd.f32 %v6833_v28, %v9053_v8  ;;  %v1247_v19 = vpop.f32.mrb[9].mxu0  ;;  %v1606_v32 = vsel %vm1586_vm15, %v1594_v38, %v1605_v15  ;;  %v1500_v2 = vmax.f32 %v1484_v29, 0.0 }
 0x1eb   : > { %v1515_v59 = vpack.c.bf16 %v1379_v16, %v1378_v41  ;;  %v1248_v39 = vadd.f32 %v9053_v8, %v1247_v19  ;;  %v6834_v49 = vpop.f32.mrb[10].mxu0  ;;  %v1598_v61 = vsel %vm1586_vm15, %v8936_v55, %v1597_v26  ;;  %v2802_v62 = vld [vmem:[#allocation2 + $0x10] sm:$0x80]  ;;  %v1509_v38 = vmul.f32 %v6250_v63, %v1501_v40  ;;  %v7822_v26 = vld [vmem:[#allocation10 + $0x50] sm:$0xff]  }
 0x1ec   : > { %1532 = vst [vmem:[#allocation2 + $0x20] sm:$0xff] %v1516_v47  ;;  %v1352_v33 = vmax.f32 %v1256_v57, 0.0  ;;  %v1259_v0 = vadd.f32 %v6834_v49, %v9053_v8  ;;  %v1250_v34 = vpop.f32.mrb[11].mxu0  ;;  %6895 = vmatprep.mubr.bf16.mxu0 %v1598_v61  ;;  %v2837_v25 = vshrl.u32 %v2802_v62, 16  ;;  %v1616_v18 = vshrl.u32 %v1516_v47, 16 }
 0x1ed   : > { %1531 = vst [vmem:[#allocation2 + $0x18] sm:$0xff] %v1515_v59  ;;  %v1350_v7 = vmax.f32 %v1248_v39, 0.0  ;;  %v1251_v55 = vadd.f32 %v9053_v8, %v1250_v34  ;;  %6896 = vmatmul.mubr.bf16.vlgmr.msra.gmra.mrb[32].mxu0 %v1606_v32  ;;  %v1608_v9 = vshrl.u32 %v1515_v59, 16  ;;  %v1611_v42 = vshll.u32 %v1515_v59, 16 }
 0x1ee   : > { %v1353_v41 = vmax.f32 %v1259_v0, 0.0  ;;  %v9178_v15 = vrot.slane %v1616_v18, 7  ;;  %v1507_v13 = vmul.f32 %v9130_v12, %v1499_v23  ;;  %6928 = vmatpush3.bf16.msra.mxu0 %v8583_v46  ;;  %v1384_v37 = vmul.f32 %v8926_v52, %v1352_v33 }
 0x1ef   : > { %v1351_v20 = vmax.f32 %v1251_v55, 0.0  ;;  %v1610_v16 = vrot.slane %v1608_v9, 7  ;;  %v1619_v28 = vshll.u32 %v1516_v47, 16  ;;  %6929 = vmatprep.subr.bf16.mxu0 %v7820_v24  ;;  %v2839_v57 = vrot.slane %v2837_v25, 7 }
 0x1f0   : > { %v1385_v29 = vmul.f32 0.0, %v1353_v41  ;;  %v1510_v19 = vmul.f32 0.0, %v1502_v58  ;;  %v1508_v63 = vmul.f32 %v9138_v44, %v1500_v2  ;;  %v1382_v40 = vmul.f32 %v8934_v54, %v1350_v7  ;;  %v7816_v44 = vld [vmem:[#allocation10 + $0x108] sm:$0xff]   ;;  %v7823_v2 = vld [vmem:[#allocation10 + $0x58] sm:$0xff]  }
 0x1f1   : > { %v1383_v32 = vmul.f32 %v8951_v56, %v1351_v20  ;;  %v6837_v59 = vpop.f32.mrb[12].mxu0  ;;  %v1613_v12 = vor.u32 %v1611_v42, %v1610_v16  ;;  %v1621_v46 = vor.u32 %v1619_v28, %v9178_v15  ;;  %v7825_v20 = vld [vmem:[#allocation10 + $0x60] sm:$0xff]  }
 0x1f2   : > { %v1518_v23 = vpack.c.bf16 %v1385_v29, %v1384_v37  ;;  %v1272_v52 = vadd.f32 %v6837_v59, %v9053_v8  ;;  %v1263_v39 = vpop.f32.mrb[13].mxu0  ;;  %v1548_v47 = vpack.c.bf16 %v1510_v19, %v1509_v38  ;;  %v1547_v49 = vpack.c.bf16 %v1508_v63, %v1507_v13  ;;  %6930 = vmatpush3.bf16.msra.mxu0 %v7820_v24 }
 0x1f3   : > { %v1517_v61 = vpack.c.bf16 %v1383_v32, %v1382_v40  ;;  %v1264_v58 = vadd.f32 %v9053_v8, %v1263_v39  ;;  %v6838_v62 = vpop.f32.mrb[14].mxu0  ;;  %v1614_v54 = vsel %vm1586_vm15, %v9155_v35, %v1613_v12  ;;  %v2847_v56 = vsel %vm1586_vm15, %v2839_v57, %v1613_v12  ;;  %6931 = vmatprep.subr.bf16.mxu0 %v7822_v26 }
 0x1f4   : > { %1534 = vst [vmem:[#allocation2 + $0x30] sm:$0xff] %v1518_v23  ;;  %v1356_v33 = vmax.f32 %v1272_v52, 0.0  ;;  %v1275_v0 = vadd.f32 %v6838_v62, %v9053_v8  ;;  %v1266_v34 = vpop.f32.mrb[15].mxu0  ;;  %6899 = vmatprep.mubr.bf16.mxu0 %v1614_v54  ;;  %7039 = vmatprep.mubr.bf16.mxu1 %v2847_v56  ;;  %v1622_v24 = vsel %vm1586_vm15, %v1610_v16, %v1621_v46  ;;  %v1632_v25 = vshrl.u32 %v1518_v23, 16  ;;  %v7818_v46 = vld [vmem:[#allocation10 + $0x118] sm:$0xff]  }
 0x1f5   : > { %1552 = vst [vmem:[#allocation2 + $0xa0] sm:$0xff] %v1548_v47  ;;  %1551 = vst [vmem:[#allocation2 + $0x98] sm:$0xff] %v1547_v49  ;;  %v1354_v18 = vmax.f32 %v1264_v58, 0.0  ;;  %v1267_v7 = vadd.f32 %v9053_v8, %v1266_v34  ;;  %6900 = vmatmul.mubr.bf16.gmra.mrb[36].mxu0 %v1622_v24  ;;  %7040 = vmatmul.mubr.bf16.vlgmr.msra.gmra.mrb[8].mxu1 %v1622_v24  ;;  %v1624_v55 = vshrl.u32 %v1517_v61, 16  ;;  %v1635_v17 = vshll.u32 %v1518_v23, 16  ;;  %v7826_v23 = vld [vmem:[#allocation10 + $0x68] sm:$0xff]  }
 0x1f6   : > { %1533 = vst [vmem:[#allocation2 + $0x28] sm:$0xff] %v1517_v61  ;;  %v1357_v9 = vmax.f32 %v1275_v0, 0.0  ;;  %7072 = vmatpush3.bf16.msra.mxu1 %v8580_v45  ;;  %v9205_v38 = vrot.slane %v1632_v25, 7  ;;  %6932 = vmatpush3.bf16.msra.mxu0 %v7822_v26  ;;  %v1627_v13 = vshll.u32 %v1517_v61, 16  ;;  %v599_v37 = vadd.s32 %v8592_v53, %v557_v30  ;;  %v7817_v45 = vld [vmem:[#allocation10 + $0x110] sm:$0xff]   ;;  %v7821_v24 = vld [vmem:[#allocation10 + $0x120] sm:$0xff]  }
 0x1f7   : > { %v1355_v41 = vmax.f32 %v1267_v7, 0.0  ;;  %v1626_v42 = vrot.slane %v1624_v55, 7  ;;  %7073 = vmatprep.subr.bf16.mxu1 %v7816_v44  ;;  %6933 = vmatprep.subr.bf16.mxu0 %v7823_v2  ;;  %v1388_v16 = vmul.f32 %v8976_v1, %v1356_v33  ;;  %v9218_v29 = vadd.s32 240, %v8586_v48  ;;  %v7828_v25 = vld [vmem:[#allocation10 + $0x70] sm:$0xff]  }
 0x1f8   : > { %v1389_v28 = vmul.f32 0.0, %v1357_v9  ;;  %v1637_v26 = vor.u32 %v1635_v17, %v9205_v38  ;;  %v1386_v57 = vmul.f32 %v8984_v4, %v1354_v18  ;;  %vm679_vm8 = vcmp.ge.s32.totalorder %v599_v37, 1 }
 0x1f9   : > { %v1387_v19 = vmul.f32 %v8989_v5, %v1355_v41  ;;  %v6841_v63 = vpop.f32.mrb[16].mxu0  ;;  %v1629_v40 = vor.u32 %v1627_v13, %v1626_v42  ;;  %vm719_vm7 = vcmp.le.s32.totalorder %v599_v37, 16  ;;  %v9267_v33 = vsel %vm838_vm0, 1.0, %v8202_v11 }
 0x1fa   : > { %v1520_v30 = vpack.c.bf16 %v1389_v28, %v1388_v16  ;;  %v1288_v4 = vadd.f32 %v6841_v63, %v9053_v8  ;;  %v1279_v5 = vpop.f32.mrb[17].mxu0  ;;  %v1638_v32 = vsel %vm1586_vm15, %v1626_v42, %v1637_v26  ;;  %7074 = vmatpush3.bf16.msra.mxu1 %v7816_v44  ;;  %6934 = vmatpush3.bf16.msra.mxu0 %v7823_v2  ;;  %v9259_v44 = vadd.s32 224, %v8586_v48  ;;  %vm9272_vm10 = vmand %vm679_vm8, %vm719_vm7  ;;  %v7829_v63 = vld [vmem:[#allocation10 + $0x78] sm:$0xff]  }
 0x1fb   : > { %v1519_v50 = vpack.c.bf16 %v1387_v19, %v1386_v57  ;;  %v1280_v27 = vadd.f32 %v9053_v8, %v1279_v5  ;;  %v6842_v59 = vpop.f32.mrb[18].mxu0  ;;  %v1630_v12 = vsel %vm1586_vm15, %v9178_v15, %v1629_v40  ;;  %7075 = vmatprep.subr.bf16.mxu1 %v7817_v45  ;;  %6935 = vmatprep.subr.bf16.mxu0 %v7825_v20  ;;  %v562_v15 = vshra.s32 %v9218_v29, 5  ;;  %v7824_v19 = vld [vmem:[#allocation10 + $0x128] sm:$0xff]  }
 0x1fc   : > { %1536 = vst [vmem:[#allocation2 + $0x40] sm:$0xff] %v1520_v30  ;;  %v1360_v52 = vmax.f32 %v1288_v4, 0.0  ;;  %v1291_v36 = vadd.f32 %v6842_v59, %v9053_v8  ;;  %v1282_v39 = vpop.f32.mrb[19].mxu0  ;;  %6903 = vmatprep.mubr.bf16.mxu0 %v1630_v12  ;;  %7043 = vmatprep.mubr.bf16.mxu1 %v1630_v12  ;;  %v1648_v47 = vshrl.u32 %v1520_v30, 16  ;;  %v1651_v56 = vshll.u32 %v1520_v30, 16 }
 0x1fd   : > { %1535 = vst [vmem:[#allocation2 + $0x38] sm:$0xff] %v1519_v50  ;;  %v1358_v49 = vmax.f32 %v1280_v27, 0.0  ;;  %v1283_v61 = vadd.f32 %v9053_v8, %v1282_v39  ;;  %6904 = vmatmul.mubr.bf16.gmra.mrb[40].mxu0 %v1638_v32  ;;  %7044 = vmatmul.mubr.bf16.gmra.mrb[12].mxu1 %v1638_v32  ;;  %v1640_v58 = vshrl.u32 %v1519_v50, 16  ;;  %v1643_v34 = vshll.u32 %v1519_v50, 16  ;;  %v9301_v39 = vld [vmem:[#allocation10 + $0x80] sm:$0xff]  }
 0x1fe   : > { %v1361_v62 = vmax.f32 %v1291_v36, 0.0  ;;  %v9256_v54 = vrot.slane %v1648_v47, 7  ;;  %7076 = vmatpush3.bf16.msra.mxu1 %v7817_v45  ;;  %6936 = vmatpush3.bf16.msra.mxu0 %v7825_v20  ;;  %v1392_v35 = vmul.f32 %v9002_v51, %v1360_v52  ;;  %v9278_v9 = vadd.s32 %v8592_v53, %v562_v15  ;;  %v7827_v36 = vld [vmem:[#allocation10 + $0x130] sm:$0xff]  }
 0x1ff   : > { %v1359_v2 = vmax.f32 %v1283_v61, 0.0  ;;  %v1642_v0 = vrot.slane %v1640_v58, 7  ;;  %7077 = vmatprep.subr.bf16.mxu1 %v7818_v46  ;;  %6937 = vmatprep.subr.bf16.mxu0 %v7826_v23  ;;  %v1390_v17 = vmul.f32 %v9010_v60, %v1358_v49  ;;  %v521_v51 = vadd.s32 232, %v8586_v48 }
 0x200   : > { %v1393_v18 = vmul.f32 0.0, %v1361_v62  ;;  %v1653_v55 = vor.u32 %v1651_v56, %v9256_v54  ;;  %v560_v28 = vshra.s32 %v9259_v44, 5  ;;  %v644_v30 = vand.u32 31, %v9218_v29 }
 0x201   : > { %v1391_v41 = vmul.f32 %v9015_v6, %v1359_v2  ;;  %v6845_v42 = vpop.f32.mrb[20].mxu0  ;;  %v1645_v13 = vor.u32 %v1643_v34, %v1642_v0  ;;  %v9290_v6 = vsel %vm9272_vm10, 1.0, %v8202_v11  ;;  %vm684_vm4 = vcmp.ge.s32.totalorder %v9278_v9, 1 }
 0x202   : > { %v1522_v45 = vpack.c.bf16 %v1393_v18, %v1392_v35  ;;  %v1304_v37 = vadd.f32 %v6845_v42, %v9053_v8  ;;  %v1295_v20 = vpop.f32.mrb[21].mxu0  ;;  %v1654_v16 = vsel %vm1586_vm15, %v1642_v0, %v1653_v55  ;;  %7078 = vmatpush3.bf16.msra.mxu1 %v7818_v46  ;;  %6938 = vmatpush3.bf16.msra.mxu0 %v7826_v23  ;;  %vm724_vm2 = vcmp.le.s32.totalorder %v9278_v9, 16  ;;  %v7830_v18 = vld [vmem:[#allocation10 + $0x138] sm:$0xff]  }
 0x203   : > { %v1521_v26 = vpack.c.bf16 %v1391_v41, %v1390_v17  ;;  %v1296_v57 = vadd.f32 %v9053_v8, %v1295_v20  ;;  %v6846_v60 = vpop.f32.mrb[22].mxu0  ;;  %v1646_v48 = vsel %vm1586_vm15, %v9205_v38, %v1645_v13  ;;  %7079 = vmatprep.subr.bf16.mxu1 %v7821_v24  ;;  %6939 = vmatprep.subr.bf16.mxu0 %v7828_v25  ;;  %v561_v38 = vshra.s32 %v521_v51, 5  ;;  %vm9327_vm9 = vmand %vm684_vm4, %vm724_vm2 }
 0x204   : > { %1538 = vst [vmem:[#allocation2 + $0x50] sm:$0xff] %v1522_v45  ;;  %v1364_v40 = vmax.f32 %v1304_v37, 0.0  ;;  %v1307_v22 = vadd.f32 %v6846_v60, %v9053_v8  ;;  %v1298_v1 = vpop.f32.mrb[23].mxu0  ;;  %6907 = vmatprep.mubr.bf16.mxu0 %v1646_v48  ;;  %7047 = vmatprep.mubr.bf16.mxu1 %v1646_v48  ;;  %v1664_v4 = vshrl.u32 %v1522_v45, 16  ;;  %v602_v59 = vadd.s32 %v8592_v53, %v560_v28  ;;  %v9350_v60 = vld [vmem:[#allocation10 + $0x140] sm:$0xff]  }
 0x205   : > { %1537 = vst [vmem:[#allocation2 + $0x48] sm:$0xff] %v1521_v26  ;;  %v1362_v5 = vmax.f32 %v1296_v57, 0.0  ;;  %v1299_v32 = vadd.f32 %v9053_v8, %v1298_v1  ;;  %6908 = vmatmul.mubr.bf16.gmra.mrb[44].mxu0 %v1654_v16  ;;  %7048 = vmatmul.mubr.bf16.gmra.mrb[16].mxu1 %v1654_v16  ;;  %v1656_v50 = vshrl.u32 %v1521_v26, 16  ;;  %v1667_v46 = vshll.u32 %v1522_v45, 16 }
 0x206   : > { %v1365_v27 = vmax.f32 %v1307_v22, 0.0  ;;  %v9298_v12 = vrot.slane %v1664_v4, 7  ;;  %7080 = vmatpush3.bf16.msra.mxu1 %v7821_v24  ;;  %6940 = vmatpush3.bf16.msra.mxu0 %v7828_v25  ;;  %v1659_v52 = vshll.u32 %v1521_v26, 16  ;;  %v1396_v47 = vmul.f32 %v9030_v10, %v1364_v40 }
 0x207   : > { %v1363_v23 = vmax.f32 %v1299_v32, 0.0  ;;  %v1658_v29 = vrot.slane %v1656_v50, 7  ;;  %7081 = vmatprep.subr.bf16.mxu1 %v7824_v19  ;;  %6941 = vmatprep.subr.bf16.mxu0 %v7829_v63  ;;  %v1394_v61 = vmul.f32 %v9038_v14, %v1362_v5  ;;  %v9309_v56 = vadd.s32 %v8592_v53, %v561_v38  ;;  %v9440_v50 = vld [vmem:[#allocation2 + $0x28] sm:$0xff] }
 0x208   : > { %v1397_v15 = vmul.f32 0.0, %v1365_v27  ;;  %v1669_v49 = vor.u32 %v1667_v46, %v9298_v12  ;;  %v642_v10 = vand.u32 31, %v9259_v44  ;;  %vm682_vm14 = vcmp.ge.s32.totalorder %v602_v59, 1 }
 0x209   : > { %v1395_v58 = vmul.f32 %v9043_v3, %v1363_v23  ;;  %v6849_v62 = vpop.f32.mrb[24].mxu0  ;;  %v1661_v2 = vor.u32 %v1659_v52, %v1658_v29  ;;  %vm722_vm12 = vcmp.le.s32.totalorder %v602_v59, 16  ;;  %vm9331_vm3 = vcmp.le.s32.totalorder %v644_v30, 16 }
 0x20a   : > { %v1524_v0 = vpack.c.bf16 %v1397_v15, %v1396_v47  ;;  %v1320_v34 = vadd.f32 %v6849_v62, %v9053_v8  ;;  %v1311_v24 = vpop.f32.mrb[25].mxu0  ;;  %v1670_v25 = vsel %vm1586_vm15, %v1658_v29, %v1669_v49  ;;  %7082 = vmatpush3.bf16.msra.mxu1 %v7824_v19  ;;  %6942 = vmatpush3.bf16.msra.mxu0 %v7829_v63  ;;  %vm9336_vm11 = vcmp.ge.s32.totalorder %v642_v10, 1  ;;  %vm9344_vm6 = vmand %vm682_vm14, %vm722_vm12 }
 0x20b   : > { %v9314_v35 = vpack.c.bf16 %v1395_v58, %v1394_v61  ;;  %v1312_v14 = vadd.f32 %v9053_v8, %v1311_v24  ;;  %v6850_v3 = vpop.f32.mrb[26].mxu0  ;;  %v1662_v53 = vsel %vm1586_vm15, %v9256_v54, %v1661_v2  ;;  %7083 = vmatprep.subr.bf16.mxu1 %v7827_v36  ;;  %6975 = vmatprep.subr.bf16.mxu0 %v9301_v39  ;;  %vm683_vm5 = vcmp.ge.s32.totalorder %v9309_v56, 1  ;;  %vm924_vm13 = vmand %vm9327_vm9, %vm9331_vm3 }
 0x20c   : > { %1540 = vst [vmem:[#allocation2 + $0x60] sm:$0xff] %v1524_v0  ;;  %v1368_v7 = vmax.f32 %v1320_v34, 0.0  ;;  %v1323_v44 = vadd.f32 %v6850_v3, %v9053_v8  ;;  %v1314_v55 = vpop.f32.mrb[27].mxu0  ;;  %6911 = vmatprep.mubr.bf16.mxu0 %v1662_v53  ;;  %7051 = vmatprep.mubr.bf16.mxu1 %v1662_v53  ;;  %v1680_v17 = vshrl.u32 %v1524_v0, 16  ;;  %v1683_v9 = vshll.u32 %v1524_v0, 16  ;;  %vm842_vm8 = vmand %vm9344_vm6, %vm9336_vm11 }
 0x20d   : > { %1539 = vst [vmem:[#allocation2 + $0x58] sm:$0xff] %v9314_v35  ;;  %v1366_v41 = vmax.f32 %v1312_v14, 0.0  ;;  %v1315_v42 = vadd.f32 %v9053_v8, %v1314_v55  ;;  %6912 = vmatmul.mubr.bf16.gmra.mrb[48].mxu0 %v1670_v25  ;;  %7052 = vmatmul.mubr.bf16.gmra.mrb[20].mxu1 %v1670_v25  ;;  %v1672_v51 = vshrl.u32 %v9314_v35, 16  ;;  %v1675_v57 = vshll.u32 %v9314_v35, 16 }
 0x20e   : > { %v1369_v45 = vmax.f32 %v1323_v44, 0.0  ;;  %v9340_v20 = vrot.slane %v1680_v17, 7  ;;  %7084 = vmatpush3.bf16.msra.mxu1 %v7827_v36  ;;  %v1400_v48 = vmul.f32 %v9244_v21, %v1368_v7  ;;  %vm723_vm1 = vcmp.le.s32.totalorder %v9309_v56, 16 }
 0x20f   : > { %v1367_v16 = vmax.f32 %v1315_v42, 0.0  ;;  %v1674_v26 = vrot.slane %v1672_v51, 7  ;;  %7085 = vmatprep.subr.bf16.mxu1 %v7830_v18  ;;  %v1398_v40 = vmul.f32 %v9267_v33, %v1366_v41  ;;  %v6244_v38 = vsel %vm924_vm13, 1.0, %v8202_v11  ;;  %vm9376_vm0 = vmand %vm683_vm5, %vm723_vm1 }
 0x210   : > { %v1401_v19 = vmul.f32 0.0, %v1369_v45  ;;  %v1685_v63 = vor.u32 %v1683_v9, %v9340_v20  ;;  %v6243_v61 = vsel %vm9376_vm0, 1.0, %v8202_v11  ;;  %v2953_v3 = vshrl.u32 %v9141_v31, 16 }
 0x211   : > { %v1399_v22 = vmul.f32 %v9290_v6, %v1367_v16  ;;  %v6853_v1 = vpop.f32.mrb[28].mxu0  ;;  %v1677_v30 = vor.u32 %v1675_v57, %v1674_v26  ;;  %v2956_v41 = vshll.u32 %v9141_v31, 16  ;;  %v2961_v37 = vshrl.u32 %v9133_v43, 16 }
 0x212   : > { %v9361_v4 = vpack.c.bf16 %v1401_v19, %v1400_v48  ;;  %v1336_v21 = vadd.f32 %v6853_v1, %v9053_v8  ;;  %v1327_v5 = vpop.f32.mrb[29].mxu0  ;;  %7086 = vmatpush3.bf16.msra.mxu1 %v7830_v18  ;;  %v1686_v29 = vsel %vm1586_vm15, %v1674_v26, %v1685_v63  ;;  %v2955_v17 = vrot.slane %v2953_v3, 7  ;;  %v9420_v48 = vld [vmem:[#allocation2 + $0x8] sm:$0xff]  ;;  %v7836_v1 = vld [vmem:[#allocation10 + $0x88] sm:$0xff]  }
 0x213   : > { %v9368_v32 = vpack.c.bf16 %v1399_v22, %v1398_v40  ;;  %v1328_v33 = vadd.f32 %v9053_v8, %v1327_v5  ;;  %v6854_v6 = vpop.f32.mrb[30].mxu0  ;;  %v1678_v27 = vsel %vm1586_vm15, %v9298_v12, %v1677_v30  ;;  %7119 = vmatprep.subr.bf16.mxu1 %v9350_v60  ;;  %v6242_v12 = vsel %vm842_vm8, 1.0, %v8202_v11  ;;  %v9424_v40 = vld [vmem:[#allocation2 + $0x10] sm:$0xff]  ;;  %v9428_v30 = vld [vmem:[#allocation2 + $0x18] sm:$0xff]  ;;  %v7838_v5 = vld [vmem:[#allocation10 + $0x90] sm:$0xff]  }
 0x214   : > { %1542 = vst [vmem:[#allocation2 + $0x70] sm:$0xff] %v9361_v4  ;;  %v1372_v59 = vmax.f32 %v1336_v21, 0.0  ;;  %v1339_v46 = vadd.f32 %v6854_v6, %v9053_v8  ;;  %v1330_v23 = vpop.f32.mrb[31].mxu0  ;;  %6915 = vmatprep.mubr.bf16.mxu0 %v1678_v27  ;;  %7055 = vmatprep.mubr.bf16.mxu1 %v1678_v27  ;;  %v1696_v52 = vshrl.u32 %v9361_v4, 16  ;;  %v1699_v62 = vshll.u32 %v9361_v4, 16  ;;  %v9433_v21 = vld [vmem:[#allocation2 + $0x90] sm:$0xff] }
 0x215   : > { %1541 = vst [vmem:[#allocation2 + $0x68] sm:$0xff] %v9368_v32  ;;  %v1370_v36 = vmax.f32 %v1328_v33, 0.0  ;;  %v1331_v47 = vadd.f32 %v9053_v8, %v1330_v23  ;;  %6916 = vmatmul.mubr.bf16.gmra.mrb[52].mxu0 %v1686_v29  ;;  %7056 = vmatmul.mubr.bf16.gmra.mrb[24].mxu1 %v1686_v29  ;;  %v1688_v15 = vshrl.u32 %v9368_v32, 16  ;;  %v1691_v0 = vshll.u32 %v9368_v32, 16  ;;  %v7832_v33 = vld [vmem:[#allocation10 + $0x148] sm:$0xff]   ;;  %v9436_v6 = vld [vmem:[#allocation2 + $0x20] sm:$0xff] }
 0x216   : > { %v1373_v49 = vmax.f32 %v1339_v46, 0.0  ;;  %v1698_v58 = vrot.slane %v1696_v52, 7  ;;  %v1404_v34 = vmul.f32 %v6244_v38, %v1372_v59  ;;  %v2958_v9 = vor.u32 %v2956_v41, %v2955_v17  ;;  %v7839_v27 = vld [vmem:[#allocation10 + $0x98] sm:$0xff]   ;;  %v7833_v59 = vld [vmem:[#allocation10 + $0x150] sm:$0xff]   ;;  %v9450_v23 = vld [vmem:[#allocation2 + $0x98] sm:$0xff] }
 0x217   : > { %v1371_v56 = vmax.f32 %v1331_v47, 0.0  ;;  %v1690_v2 = vrot.slane %v1688_v15, 7  ;;  %v1402_v8 = vmul.f32 %v6242_v12, %v1370_v36  ;;  %v2963_v26 = vrot.slane %v2961_v37, 7  ;;  %v7841_v52 = vld [vmem:[#allocation10 + $0xa0] sm:$0xff]   ;;  %v7834_v36 = vld [vmem:[#allocation10 + $0x158] sm:$0xff]   ;;  %v9466_v15 = vld [vmem:[#allocation2 + $0x38] sm:$0xff] }
 0x218   : > { %v1405_v24 = vmul.f32 0.0, %v1373_v49  ;;  %v1701_v10 = vor.u32 %v1699_v62, %v1698_v58  ;;  %v2964_v57 = vshll.u32 %v9133_v43, 16  ;;  %v10227_v38 = vshll.u32 %v9433_v21, 16  ;;  %v9458_v12 = vld [vmem:[#allocation2 + $0x30] sm:$0xff]  ;;  %v7842_v49 = vld [vmem:[#allocation10 + $0xa8] sm:$0xff]   ;;  %v7844_v62 = vld [vmem:[#allocation10 + $0xb0] sm:$0xff]  }
 0x219   : > { %v1403_v25 = vmul.f32 %v6243_v61, %v1371_v56  ;;  %v1693_v14 = vor.u32 %v1691_v0, %v1690_v2  ;;  %v10229_v46 = vshrl.u32 %v9433_v21, 16  ;;  %v10226_v29 = vshll.u32 %v9450_v23, 16  ;;  %v9475_v56 = vld [vmem:[#allocation2 + $0x40] sm:$0xff]  ;;  %v9479_v0 = vld [vmem:[#allocation2 + $0x48] sm:$0xff] }
 0x21a   : > { %v9402_v53 = vpack.c.bf16 %v1405_v24, %v1404_v34  ;;  %v1702_v7 = vsel %vm1586_vm15, %v1690_v2, %v1701_v10  ;;  %v2966_v63 = vor.u32 %v2964_v57, %v2963_v26  ;;  %vm2348_vm7 = vsmask.f32 7424  ;;  %v7840_v2 = vld [vmem:[#allocation10 + $0x168] sm:$0xff]   ;;  %v7845_v34 = vld [vmem:[#allocation10 + $0xb8] sm:$0xff]   ;;  %v7843_v24 = vld [vmem:[#allocation10 + $0x170] sm:$0xff]  }
 0x21b   : > { %v9404_v18 = vpack.c.bf16 %v1403_v25, %v1402_v8  ;;  %v1694_v11 = vsel %vm1586_vm15, %v9340_v20, %v1693_v14  ;;  %v9462_v47 = vrot.slane %v10226_v29, 1  ;;  %v9483_v10 = vld [vmem:[#allocation10 + $0x200] sm:$0xff]   ;;  %v7846_v25 = vld [vmem:[#allocation10 + $0x178] sm:$0xff]   ;;  %v9494_v3 = vld [vmem:[#allocation2 + $0x60] sm:$0xff]  ;;  %v2350_v41 = vshrl.u32 %v9420_v48, 16 }
 0x21c   : > { %1544 = vst [vmem:[#allocation2 + $0x80] sm:$0xff] %v9402_v53  ;;  %6919 = vmatprep.mubr.bf16.mxu0 %v1694_v11  ;;  %7059 = vmatprep.mubr.bf16.mxu1 %v1694_v11  ;;  %v1712_v44 = vshrl.u32 %v9402_v53, 16  ;;  %v1715_v54 = vshll.u32 %v9402_v53, 16  ;;  %v2967_v22 = vsel %vm1586_vm15, %v2955_v17, %v2966_v63  ;;  %v9485_v8 = vld [vmem:[#allocation2 + $0x50] sm:$0xff]  ;;  %v9502_v11 = vld [vmem:[#allocation2 + $0xa0] sm:$0xff]  ;;  %v2381_v57 = vshll.u32 %v9440_v50, 16 }
 0x21d   : > { %1543 = vst [vmem:[#allocation2 + $0x78] sm:$0xff] %v9404_v18  ;;  %6920 = vmatmul.mubr.bf16.gmra.mrb[56].mxu0 %v1702_v7  ;;  %7060 = vmatmul.mubr.bf16.gmra.mrb[28].mxu1 %v1702_v7  ;;  %v1704_v55 = vshrl.u32 %v9404_v18, 16  ;;  %v1707_v51 = vshll.u32 %v9404_v18, 16  ;;  %v9492_v14 = vld [vmem:[#allocation10 + $0x180] sm:$0xff]   ;;  %v10224_v7 = vshll.u32 %v9502_v11, 16  ;;  %v10225_v17 = vshrl.u32 %v9502_v11, 16 }
 0x21e   : > { %v1714_v42 = vrot.slane %v1712_v44, 7 }
 0x21f   : > { %v1706_v13 = vrot.slane %v1704_v55, 7  ;;  %v10228_v55 = vshrl.u32 %v9450_v23, 16 }
 0x220   : > { %v1717_v45 = vor.u32 %v1715_v54, %v1714_v42  ;;  %v2959_v19 = vsel %vm1586_vm15, %v1714_v42, %v2958_v9  ;;  %v2357_v42 = vshll.u32 %v9424_v40, 16  ;;  %v2369_v9 = vshrl.u32 %v9428_v30, 16 }
 0x221   : > { %v1709_v20 = vor.u32 %v1707_v51, %v1706_v13 }
 0x222   : > { %v1718_v28 = vsel %vm1586_vm15, %v1706_v13, %v1717_v45  ;;  %v2365_v13 = vshll.u32 %v9428_v30, 16  ;;  %v2359_v45 = vrot.slane %v2357_v42, 1 }
 0x223   : > { %v1710_v16 = vsel %vm1586_vm15, %v1698_v58, %v1709_v20  ;;  %v7837_v58 = vld [vmem:[#allocation10 + $0x160] sm:$0xff]  }
 0x224   : > { %6923 = vmatprep.mubr.bf16.mxu0 %v1710_v16  ;;  %7063 = vmatprep.mubr.bf16.mxu1 %v1710_v16  ;;  %v2367_v20 = vrot.slane %v2365_v13, 1  ;;  %v2373_v16 = vshll.u32 %v9436_v6, 16  ;;  %v9595_v13 = vld [vmem:[#allocation2 + $0x58] sm:$0xff] }
 0x225   : > { %6924 = vmatmul.mubr.bf16.gmra.mrb[60].mxu0 %v1718_v28  ;;  %7064 = vmatmul.mubr.bf16.gmra.mrb[32].mxu1 %v1718_v28  ;;  %v2361_v28 = vshrl.u32 %v9424_v40, 16 }
 0x226   : > { %6943 = vmatprep.mubr.bf16.mxu0 %v9420_v48  ;;  %7067 = vmatprep.mubr.bf16.mxu1 %v2959_v19  ;;  %v2371_v26 = vor.u32 %v2369_v9, %v2367_v20  ;;  %v2375_v19 = vrot.slane %v2373_v16, 1  ;;  %v7853_v9 = vld [vmem:[#allocation10 + $0x1a0] sm:$0xff]  }
 0x22d   : > { %6944 = vmatmul.mubr.bf16.vlgmr.msra.gmra.mrb[32].mxu0 %v9424_v40  ;;  %7068 = vmatmul.mubr.bf16.gmra.mrb[36].mxu1 %v2967_v22  ;;  %v2383_v22 = vrot.slane %v2381_v57, 1  ;;  %v2385_v40 = vshrl.u32 %v9440_v50, 16 }
 0x22e   : > { %6947 = vmatprep.mubr.bf16.mxu0 %v9428_v30  ;;  %7087 = vmatprep.mubr.bf16.mxu1 %v9428_v30  ;;  %v3673_v30 = vshrl.u32 %v9436_v6, 16 }
 0x22f   : > { %6976 = vmatpush3.bf16.msra.mxu0 %v9301_v39  ;;  %v9446_v39 = vrot.slane %v10227_v38, 1 }
 0x230   : > { %6977 = vmatprep.subr.bf16.mxu0 %v7836_v1 }
 0x233   : > { %6978 = vmatpush3.bf16.msra.mxu0 %v7836_v1  ;;  %v2389_v1 = vshll.u32 %v9458_v12, 16 }
 0x234   : > { %6979 = vmatprep.subr.bf16.mxu0 %v7838_v5 }
 0x235   : > { %6948 = vmatmul.mubr.bf16.gmra.mrb[36].mxu0 %v9436_v6  ;;  %7088 = vmatmul.mubr.bf16.vlgmr.msra.gmra.mrb[8].mxu1 %v9436_v6 }
 0x236   : > { %7120 = vmatpush3.bf16.msra.mxu1 %v9350_v60  ;;  %6951 = vmatprep.mubr.bf16.mxu0 %v9440_v50  ;;  %v9455_v60 = vor.u32 %v10229_v46, %v9446_v39 }
 0x237   : > { %7091 = vmatprep.mubr.bf16.mxu1 %v9440_v50  ;;  %7121 = vmatprep.subr.bf16.mxu1 %v7832_v33 }
 0x238   : > { %6980 = vmatpush3.bf16.msra.mxu0 %v7838_v5  ;;  %v9473_v61 = vsel %vm2348_vm7, %v9455_v60, %v9462_v47  ;;  %v9546_v5 = vld [vmem:[#allocation10 + $0x210] sm:$0xff]  }
 0x239   : > { %6981 = vmatprep.subr.bf16.mxu0 %v7839_v27 }
 0x23a   : > { %7122 = vmatpush3.bf16.msra.mxu1 %v7832_v33  ;;  %v2397_v33 = vshll.u32 %v9466_v15, 16 }
 0x23b   : > { %7123 = vmatprep.subr.bf16.mxu1 %v7833_v59 }
 0x23c   : > { %6982 = vmatpush3.bf16.msra.mxu0 %v7839_v27  ;;  %v3675_v27 = vor.u32 %v3673_v30, %v2375_v19 }
 0x23d   : > { %6952 = vmatmul.mubr.bf16.gmra.mrb[40].mxu0 %v9458_v12  ;;  %7092 = vmatmul.mubr.bf16.gmra.mrb[12].mxu1 %v9458_v12 }
 0x23e   : > { %6955 = vmatprep.mubr.bf16.mxu0 %v9466_v15  ;;  %7095 = vmatprep.mubr.bf16.mxu1 %v9466_v15 }
 0x23f   : > { %7124 = vmatpush3.bf16.msra.mxu1 %v7833_v59  ;;  %6983 = vmatprep.subr.bf16.mxu0 %v7841_v52  ;;  %v2391_v59 = vrot.slane %v2389_v1, 1 }
 0x240   : > { %7125 = vmatprep.subr.bf16.mxu1 %v7834_v36  ;;  %6984 = vmatpush3.bf16.msra.mxu0 %v7841_v52  ;;  %v7848_v52 = vld [vmem:[#allocation10 + $0x188] sm:$0xff]  }
 0x241   : > { %6985 = vmatprep.subr.bf16.mxu0 %v7842_v49 }
 0x243   : > { %7126 = vmatpush3.bf16.msra.mxu1 %v7834_v36  ;;  %v2384_v36 = vsel %vm2348_vm7, %v3675_v27, %v2383_v22  ;;  %v9627_v27 = vld [vmem:[#allocation2 + $0x68] sm:$0xff] }
 0x244   : > { %7127 = vmatprep.subr.bf16.mxu1 %v7837_v58  ;;  %6986 = vmatpush3.bf16.msra.mxu0 %v7842_v49  ;;  %v9561_v49 = vld [vmem:[#allocation10 + $0x218] sm:$0xff]  }
 0x245   : > { %6956 = vmatmul.mubr.bf16.gmra.mrb[44].mxu0 %v9475_v56  ;;  %7096 = vmatmul.mubr.bf16.gmra.mrb[16].mxu1 %v9475_v56 }
 0x246   : > { %6959 = vmatprep.mubr.bf16.mxu0 %v9479_v0  ;;  %7099 = vmatprep.mubr.bf16.mxu1 %v9479_v0 }
 0x247   : > { %7128 = vmatpush3.bf16.msra.mxu1 %v7837_v58  ;;  %6987 = vmatprep.subr.bf16.mxu0 %v7844_v62  ;;  %v2401_v58 = vshrl.u32 %v9466_v15, 16 }
 0x248   : > { %7129 = vmatprep.subr.bf16.mxu1 %v7840_v2  ;;  %6988 = vmatpush3.bf16.msra.mxu0 %v7844_v62  ;;  %v2405_v62 = vshll.u32 %v9475_v56, 16 }
 0x249   : > { %6989 = vmatprep.subr.bf16.mxu0 %v7845_v34 }
 0x24b   : > { %7130 = vmatpush3.bf16.msra.mxu1 %v7840_v2  ;;  %v7849_v2 = vld [vmem:[#allocation10 + $0x190] sm:$0xff]  }
 0x24c   : > { %7131 = vmatprep.subr.bf16.mxu1 %v7843_v24  ;;  %6990 = vmatpush3.bf16.msra.mxu0 %v7845_v34  ;;  %v2393_v34 = vshrl.u32 %v9458_v12, 16  ;;  %v7865_v12 = vld [vmem:[#allocation10 + $0x1d0] sm:$0xff]  }
 0x24d   : > { %6960 = vmatmul.mubr.bf16.gmra.mrb[48].mxu0 %v9485_v8  ;;  %7100 = vmatmul.mubr.bf16.gmra.mrb[20].mxu1 %v9485_v8 }
 0x24e   : > { %6963 = vmatprep.mubr.bf16.mxu0 %v9314_v35  ;;  %7103 = vmatprep.mubr.bf16.mxu1 %v9314_v35  ;;  %v2352_v35 = vshll.u32 %v9420_v48, 16  ;;  %v2363_v48 = vor.u32 %v2361_v28, %v2359_v45  ;;  %v10237_v28 = vshll.u32 %v9595_v13, 16 }
 0x24f   : > { %7132 = vmatpush3.bf16.msra.mxu1 %v7843_v24  ;;  %7263 = vmatprep.subr.bf16.mxu0 %v9483_v10 }
 0x250   : > { %7133 = vmatprep.subr.bf16.mxu1 %v7846_v25  ;;  %v2354_v44 = vrot.slane %v2352_v35, 1  ;;  %v2368_v63 = vsel %vm2348_vm7, %v2363_v48, %v2367_v20  ;;  %v2407_v35 = vrot.slane %v2405_v62, 1  ;;  %v2409_v20 = vshrl.u32 %v9475_v56, 16 }
 0x251   : > { %v2431_v30 = vrot.slane %v10237_v28, 1 }
 0x253   : > { %7134 = vmatpush3.bf16.msra.mxu1 %v7846_v25  ;;  %v2413_v25 = vshll.u32 %v9479_v0, 16 }
 0x254   : > { %7167 = vmatprep.subr.bf16.mxu1 %v9492_v14 }
 0x255   : > { %6964 = vmatmul.mubr.bf16.gmra.mrb[52].mxu0 %v9494_v3  ;;  %7104 = vmatmul.mubr.bf16.gmra.mrb[24].mxu1 %v9494_v3 }
 0x256   : > { %6967 = vmatprep.mubr.bf16.mxu0 %v9368_v32  ;;  %7107 = vmatprep.mubr.bf16.mxu1 %v9368_v32  ;;  %v5095_v32 = vrot.slane %v10224_v7, 1 }
 0x258   : > { %v9520_v54 = vor.u32 %v5095_v32, %v10225_v17 }
 0x25d   : > { %6968 = vmatmul.mubr.bf16.gmra.mrb[56].mxu0 %v9361_v4  ;;  %7108 = vmatmul.mubr.bf16.gmra.mrb[28].mxu1 %v9361_v4  ;;  %v5091_v4 = vor.u32 %v9462_v47, %v10228_v55  ;;  %v2399_v47 = vrot.slane %v2397_v33, 1  ;;  %v9670_v55 = vld [vmem:[#allocation2 + $0x80] sm:$0xff] }
 0x25e   : > { %6971 = vmatprep.mubr.bf16.mxu0 %v9404_v18  ;;  %7111 = vmatprep.mubr.bf16.mxu1 %v9404_v18  ;;  %v2355_v18 = vor.u32 %v2354_v44, %v2350_v41  ;;  %v9578_v44 = vld [vmem:[#allocation10 + $0x220] sm:$0xff]   ;;  %v7850_v41 = vld [vmem:[#allocation10 + $0x198] sm:$0xff]  }
 0x25f   : > { %v9524_v51 = vsel %vm2348_vm7, %v5091_v4, %v5095_v32  ;;  %v2403_v24 = vor.u32 %v2401_v58, %v2399_v47  ;;  %v2415_v4 = vrot.slane %v2413_v25, 1 }
 0x260   : > { %v2360_v37 = vsel %vm2348_vm7, %v2355_v18, %v2359_v45  ;;  %v9591_v18 = vld [vmem:[#allocation10 + $0x228] sm:$0xff]   ;;  %v2417_v45 = vshrl.u32 %v9479_v0, 16  ;;  %v10453_v0 = vshll.u32 %v9485_v8, 16 }
 0x261   : > { %v9587_v42 = vsel %vm2348_vm7, %v2403_v24, %v2407_v35  ;;  %v10232_v24 = vshll.u32 %v9627_v27, 16 }
 0x262   : > { %v2419_v16 = vor.u32 %v2417_v45, %v2415_v4 }
 0x265   : > { %6972 = vmatmul.mubr.bf16.gmra.mrb[60].mxu0 %v9402_v53  ;;  %7112 = vmatmul.mubr.bf16.gmra.mrb[32].mxu1 %v9402_v53  ;;  %v9535_v53 = vld [vmem:[#allocation10 + $0x208] sm:$0xff]  }
 0x266   : > { %6991 = vmatprep.mubr.bf16.mxu0 %v2360_v37  ;;  %7115 = vmatprep.mubr.bf16.mxu1 %v9141_v31  ;;  %v2376_v31 = vsel %vm2348_vm7, %v2371_v26, %v2375_v19  ;;  %v10238_v37 = vshll.u32 %v9485_v8, 16  ;;  %v2411_v26 = vor.u32 %v2409_v20, %v2407_v35  ;;  %v9610_v19 = vld [vmem:[#allocation10 + $0x230] sm:$0xff]  }
 0x268   : > { %v2423_v48 = vrot.slane %v10238_v37, 1 }
 0x26d   : > { %6992 = vmatmul.mubr.bf16.vlgmr.msra.gmra.mrb[32].mxu0 %v2368_v63  ;;  %7116 = vmatmul.mubr.bf16.gmra.mrb[36].mxu1 %v9133_v43  ;;  %v2387_v43 = vor.u32 %v2385_v40, %v2383_v22  ;;  %v9613_v63 = vsel %vm2348_vm7, %v2411_v26, %v2415_v4  ;;  %v9619_v22 = vsel %vm2348_vm7, %v2419_v16, %v2423_v48  ;;  %v9643_v4 = vld [vmem:[#allocation2 + $0x70] sm:$0xff]  ;;  %v2447_v26 = vrot.slane %v10232_v24, 1  ;;  %v9694_v24 = vld [vmem:[#allocation2 + $0x88] sm:$0xff] }
 0x26e   : > { %6995 = vmatprep.mubr.bf16.mxu0 %v2376_v31  ;;  %7135 = vmatprep.mubr.bf16.mxu1 %v2376_v31  ;;  %v7856_v31 = vld [vmem:[#allocation10 + $0x1a8] sm:$0xff]  }
 0x26f   : > { %7264 = vmatpush3.bf16.msra.mxu0 %v9483_v10  ;;  %v9557_v6 = vsel %vm2348_vm7, %v2387_v43, %v2391_v59  ;;  %v9623_v43 = vld [vmem:[#allocation10 + $0x238] sm:$0xff]  }
 0x270   : > { %7265 = vmatprep.subr.bf16.mxu0 %v9535_v53 }
 0x273   : > { %7266 = vmatpush3.bf16.msra.mxu0 %v9535_v53 }
 0x274   : > { %7267 = vmatprep.subr.bf16.mxu0 %v9546_v5 }
 0x275   : > { %6996 = vmatmul.mubr.bf16.gmra.mrb[36].mxu0 %v2384_v36  ;;  %7136 = vmatmul.mubr.bf16.vlgmr.msra.gmra.mrb[8].mxu1 %v2384_v36  ;;  %v10240_v36 = vshrl.u32 %v9485_v8, 16 }
 0x276   : > { %7168 = vmatpush3.bf16.msra.mxu1 %v9492_v14  ;;  %6999 = vmatprep.mubr.bf16.mxu0 %v9557_v6  ;;  %v2395_v14 = vor.u32 %v2393_v34, %v2391_v59  ;;  %v10239_v59 = vshrl.u32 %v9595_v13, 16 }
 0x277   : > { %7139 = vmatprep.mubr.bf16.mxu1 %v9557_v6  ;;  %7169 = vmatprep.subr.bf16.mxu1 %v7848_v52 }
 0x278   : > { %7268 = vmatpush3.bf16.msra.mxu0 %v9546_v5  ;;  %v9581_v32 = vsel %vm2348_vm7, %v2395_v14, %v2399_v47  ;;  %v7859_v47 = vld [vmem:[#allocation10 + $0x1b0] sm:$0xff]   ;;  %v2427_v14 = vor.u32 %v10240_v36, %v2423_v48  ;;  %v9655_v48 = vld [vmem:[#allocation2 + $0x78] sm:$0xff] }
 0x279   : > { %7269 = vmatprep.subr.bf16.mxu0 %v9561_v49  ;;  %v10230_v7 = vshll.u32 %v9655_v48, 16  ;;  %v4114_v36 = vld [vmem:[#allocation2 + $0x20] sm:$0x80] }
 0x27a   : > { %7170 = vmatpush3.bf16.msra.mxu1 %v7848_v52  ;;  %v2437_v52 = vshll.u32 %v9494_v3, 16 }
 0x27b   : > { %7171 = vmatprep.subr.bf16.mxu1 %v7849_v2 }
 0x27c   : > { %7270 = vmatpush3.bf16.msra.mxu0 %v9561_v49  ;;  %v2439_v35 = vrot.slane %v2437_v52, 1  ;;  %v2441_v52 = vshrl.u32 %v9494_v3, 16 }
 0x27d   : > { %7000 = vmatmul.mubr.bf16.gmra.mrb[40].mxu0 %v9581_v32  ;;  %7140 = vmatmul.mubr.bf16.gmra.mrb[12].mxu1 %v9581_v32 }
 0x27e   : > { %7003 = vmatprep.mubr.bf16.mxu0 %v9587_v42  ;;  %7143 = vmatprep.mubr.bf16.mxu1 %v9587_v42  ;;  %v2443_v17 = vor.u32 %v2441_v52, %v2439_v35  ;;  %v2330_v52 = vld [vmem:[#allocation2 + $0x88] sm:$0x1] }
 0x27f   : > { %7172 = vmatpush3.bf16.msra.mxu1 %v7849_v2  ;;  %7271 = vmatprep.subr.bf16.mxu0 %v9578_v44  ;;  %v2435_v2 = vor.u32 %v10239_v59, %v2431_v30 }
 0x280   : > { %7173 = vmatprep.subr.bf16.mxu1 %v7850_v41  ;;  %7272 = vmatpush3.bf16.msra.mxu0 %v9578_v44  ;;  %v9668_v38 = vsel %vm2348_vm7, %v2443_v17, %v2447_v26  ;;  %v10234_v17 = vshrl.u32 %v9655_v48, 16 }
 0x281   : > { %7273 = vmatprep.subr.bf16.mxu0 %v9591_v18  ;;  %v9649_v16 = vsel %vm2348_vm7, %v2435_v2, %v2439_v35  ;;  %v10235_v35 = vshll.u32 %v9670_v55, 16 }
 0x283   : > { %7174 = vmatpush3.bf16.msra.mxu1 %v7850_v41  ;;  %v9641_v41 = vsel %vm2348_vm7, %v2427_v14, %v2431_v30  ;;  %v10231_v30 = vshll.u32 %v9643_v4, 16  ;;  %v9660_v14 = vld [vmem:[#allocation10 + $0x1c0] sm:$0xff]   ;;  %v2471_v46 = vrot.slane %v10235_v35, 1 }
 0x284   : > { %7175 = vmatprep.subr.bf16.mxu1 %v7853_v9  ;;  %7274 = vmatpush3.bf16.msra.mxu0 %v9591_v18 }
 0x285   : > { %7004 = vmatmul.mubr.bf16.gmra.mrb[44].mxu0 %v9613_v63  ;;  %7144 = vmatmul.mubr.bf16.gmra.mrb[16].mxu1 %v9613_v63  ;;  %v2455_v29 = vrot.slane %v10231_v30, 1  ;;  %v2477_v30 = vshll.u32 %v2330_v52, 16  ;;  %v3777_v52 = vshrl.u32 %v9694_v24, 16 }
 0x286   : > { %7007 = vmatprep.mubr.bf16.mxu0 %v9619_v22  ;;  %7147 = vmatprep.mubr.bf16.mxu1 %v9619_v22 }
 0x287   : > { %7176 = vmatpush3.bf16.msra.mxu1 %v7853_v9  ;;  %7275 = vmatprep.subr.bf16.mxu0 %v9610_v19  ;;  %v7862_v9 = vld [vmem:[#allocation10 + $0x1b8] sm:$0xff]   ;;  %v2479_v35 = vrot.slane %v2477_v30, 1  ;;  %v4149_v30 = vshrl.u32 %v4114_v36, 16 }
 0x288   : > { %7177 = vmatprep.subr.bf16.mxu1 %v7856_v31  ;;  %7276 = vmatpush3.bf16.msra.mxu0 %v9610_v19 }
 0x289   : > { %7277 = vmatprep.subr.bf16.mxu0 %v9623_v43 }
 0x28b   : > { %7178 = vmatpush3.bf16.msra.mxu1 %v7856_v31  ;;  %v10233_v31 = vshrl.u32 %v9627_v27, 16 }
 0x28c   : > { %7179 = vmatprep.subr.bf16.mxu1 %v7859_v47  ;;  %7278 = vmatpush3.bf16.msra.mxu0 %v9623_v43 }
 0x28d   : > { %7008 = vmatmul.mubr.bf16.gmra.mrb[48].mxu0 %v9641_v41  ;;  %7148 = vmatmul.mubr.bf16.gmra.mrb[20].mxu1 %v9641_v41  ;;  %v2451_v2 = vor.u32 %v10233_v31, %v2447_v26 }
 0x28e   : > { %7011 = vmatprep.mubr.bf16.mxu0 %v9649_v16  ;;  %7151 = vmatprep.mubr.bf16.mxu1 %v9649_v16 }
 0x28f   : > { %7180 = vmatpush3.bf16.msra.mxu1 %v7859_v47  ;;  %v9676_v3 = vsel %vm2348_vm7, %v2451_v2, %v2455_v29  ;;  %v2463_v47 = vrot.slane %v10230_v7, 1 }
 0x290   : > { %7181 = vmatprep.subr.bf16.mxu1 %v7862_v9 }
 0x291   : > { %v2467_v26 = vor.u32 %v10234_v17, %v2463_v47  ;;  %v10241_v17 = vshll.u32 %v9694_v24, 16 }
 0x293   : > { %7182 = vmatpush3.bf16.msra.mxu1 %v7862_v9  ;;  %v10236_v9 = vshrl.u32 %v9643_v4, 16  ;;  %v9699_v31 = vsel %vm2348_vm7, %v2467_v26, %v2471_v46 }
 0x294   : > { %7215 = vmatprep.subr.bf16.mxu1 %v9660_v14 }
 0x295   : > { %7012 = vmatmul.mubr.bf16.gmra.mrb[52].mxu0 %v9668_v38  ;;  %7152 = vmatmul.mubr.bf16.gmra.mrb[24].mxu1 %v9668_v38  ;;  %v2459_v2 = vor.u32 %v10236_v9, %v2455_v29  ;;  %v2473_v29 = vshrl.u32 %v9670_v55, 16  ;;  %v3643_v9 = vld [vmem:[#allocation2 + $0x98] sm:$0x1] }
 0x296   : > { %7015 = vmatprep.mubr.bf16.mxu0 %v9676_v3  ;;  %7155 = vmatprep.mubr.bf16.mxu1 %v9676_v3  ;;  %v3789_v59 = vshll.u32 %v3643_v9, 16 }
 0x297   : > { %v9692_v7 = vsel %vm2348_vm7, %v2459_v2, %v2463_v47  ;;  %v3775_v47 = vrot.slane %v10241_v17, 1  ;;  %v2475_v2 = vor.u32 %v2473_v29, %v2471_v46  ;;  %v4155_v46 = vrot.slane %v2385_v40, 7 }
 0x299   : > { %v3779_v26 = vor.u32 %v3777_v52, %v3775_v47  ;;  %v2480_v28 = vsel %vm2348_vm7, %v2475_v2, %v2479_v35  ;;  %v9714_v37 = vsel %vm2348_vm7, %v2475_v2, %v3775_v47  ;;  %v3791_v35 = vrot.slane %v3789_v59, 1 }
 0x29a   : > { %v4158_v9 = vor.u32 %v4155_v46, %v2381_v57  ;;  %v4151_v47 = vrot.slane %v4149_v30, 7  ;;  %v7864_v57 = vld [vmem:[#allocation10 + $0x1c8] sm:$0xff]   ;;  %v10452_v59 = vshrl.u32 %v9595_v13, 16 }
 0x29b   : > { %v9719_v17 = vsel %vm2348_vm7, %v3779_v26, %v9446_v39  ;;  %v4163_v39 = vrot.slane %v2393_v34, 7  ;;  %v7868_v30 = vld [vmem:[#allocation10 + $0x1e8] sm:$0xff]  }
 0x29c   : > { %v4159_v40 = vsel %vm1586_vm15, %v4151_v47, %v4158_v9  ;;  %v4203_v56 = vrot.slane %v10452_v59, 7 }
 0x29d   : > { %7016 = vmatmul.mubr.bf16.gmra.mrb[56].mxu0 %v9692_v7  ;;  %7156 = vmatmul.mubr.bf16.gmra.mrb[28].mxu1 %v9692_v7  ;;  %v4166_v50 = vor.u32 %v4163_v39, %v2389_v1 }
 0x29e   : > { %7019 = vmatprep.mubr.bf16.mxu0 %v9699_v31  ;;  %7159 = vmatprep.mubr.bf16.mxu1 %v9699_v31 }
 0x29f   : > { %v4167_v34 = vsel %vm1586_vm15, %v4155_v46, %v4166_v50 }
 0x2a5   : > { %7020 = vmatmul.mubr.bf16.gmra.mrb[60].mxu0 %v2480_v28  ;;  %7160 = vmatmul.mubr.bf16.gmra.mrb[32].mxu1 %v9714_v37  ;;  %v3792_v28 = vsel %vm2348_vm7, %v9455_v60, %v3791_v35 }
 0x2a6   : > { %7163 = vmatprep.mubr.bf16.mxu1 %v9719_v17  ;;  %7279 = vmatprep.mubr.bf16.mxu0 %v9557_v6  ;;  %v4171_v6 = vrot.slane %v2401_v58, 7 }
 0x2a8   : > { %v4174_v60 = vor.u32 %v4171_v6, %v2397_v33 }
 0x2aa   : > { %v4175_v58 = vsel %vm1586_vm15, %v4163_v39, %v4174_v60  ;;  %v10456_v39 = vshll.u32 %v9627_v27, 16  ;;  %v7870_v60 = vld [vmem:[#allocation10 + $0x1f8] sm:$0xff]  }
 0x2ad   : > { %7164 = vmatmul.mubr.bf16.gmra.mrb[36].mxu1 %v3792_v28  ;;  %7280 = vmatmul.mubr.bf16.vlgmr.msra.gmra.mrb[64].mxu0 %v9581_v32  ;;  %v4179_v32 = vrot.slane %v2409_v20, 7  ;;  %v10451_v20 = vshrl.u32 %v9485_v8, 16  ;;  %v10455_v8 = vshrl.u32 %v9627_v27, 16  ;;  %v7869_v28 = vld [vmem:[#allocation10 + $0x1f0] sm:$0xff]  }
 0x2ae   : > { %7183 = vmatprep.mubr.bf16.mxu1 %v4159_v40  ;;  %7283 = vmatprep.mubr.bf16.mxu0 %v9587_v42  ;;  %v4187_v42 = vrot.slane %v2417_v45, 7 }
 0x2af   : > { %v4182_v15 = vor.u32 %v4179_v32, %v2405_v62  ;;  %v4195_v45 = vrot.slane %v10451_v20, 7  ;;  %v9760_v62 = vld [vmem:[#allocation2 + $0x60] sm:$0xff]  ;;  %v4219_v35 = vrot.slane %v10455_v8, 7 }
 0x2b0   : > { %v4190_v1 = vor.u32 %v4187_v42, %v2413_v25  ;;  %v4209_v36 = vshrl.u32 %v9760_v62, 16  ;;  %v4212_v9 = vshll.u32 %v9760_v62, 16 }
 0x2b1   : > { %v4183_v33 = vsel %vm1586_vm15, %v4171_v6, %v4182_v15  ;;  %v4198_v25 = vor.u32 %v4195_v45, %v10453_v0  ;;  %v4222_v40 = vor.u32 %v4219_v35, %v10456_v39  ;;  %v10457_v6 = vshrl.u32 %v9643_v4, 16  ;;  %v4605_v39 = vld [vmem:[#allocation2 + $0x48] sm:$0xff] }
 0x2b2   : > { %v4211_v46 = vrot.slane %v4209_v36, 7  ;;  %v10466_v36 = vshll.u32 %v9450_v23, 16 }
 0x2b3   : > { %v4199_v26 = vsel %vm1586_vm15, %v4187_v42, %v4198_v25  ;;  %v4227_v50 = vrot.slane %v10457_v6, 7  ;;  %v10460_v42 = vshll.u32 %v9655_v48, 16 }
 0x2b4   : > { %v4214_v47 = vor.u32 %v4212_v9, %v4211_v46  ;;  %v4602_v9 = vld [vmem:[#allocation2 + $0x30] sm:$0xff] }
 0x2b5   : > { %7184 = vmatmul.mubr.bf16.vlgmr.msra.gmra.mrb[8].mxu1 %v4167_v34  ;;  %7284 = vmatmul.mubr.bf16.gmra.mrb[68].mxu0 %v9613_v63  ;;  %v7866_v63 = vld [vmem:[#allocation10 + $0x1d8] sm:$0xff]  }
 0x2b6   : > { %7216 = vmatpush3.bf16.msra.mxu1 %v9660_v14  ;;  %7187 = vmatprep.mubr.bf16.mxu1 %v4175_v58  ;;  %v7867_v14 = vld [vmem:[#allocation10 + $0x1e0] sm:$0xff]  }
 0x2b7   : > { %7287 = vmatprep.mubr.bf16.mxu0 %v9619_v22  ;;  %7217 = vmatprep.subr.bf16.mxu1 %v7864_v57  ;;  %v4191_v22 = vsel %vm1586_vm15, %v4179_v32, %v4190_v1  ;;  %v10459_v32 = vshll.u32 %v9643_v4, 16  ;;  %v4251_v1 = vrot.slane %v3777_v52, 7  ;;  %v10465_v52 = vshll.u32 %v9433_v21, 16 }
 0x2b9   : > { %v4230_v58 = vor.u32 %v4227_v50, %v10459_v32 }
 0x2ba   : > { %7218 = vmatpush3.bf16.msra.mxu1 %v7864_v57  ;;  %v10458_v57 = vshrl.u32 %v9655_v48, 16 }
 0x2bb   : > { %7219 = vmatprep.subr.bf16.mxu1 %v7865_v12  ;;  %v4231_v15 = vsel %vm1586_vm15, %v4219_v35, %v4230_v58  ;;  %v4601_v35 = vld [vmem:[#allocation2 + $0x28] sm:$0xff] }
 0x2bc   : > { %v4235_v34 = vrot.slane %v10458_v57, 7 }
 0x2bd   : > { %7188 = vmatmul.mubr.bf16.gmra.mrb[12].mxu1 %v4183_v33  ;;  %7288 = vmatmul.mubr.bf16.gmra.mrb[72].mxu0 %v9641_v41  ;;  %v10454_v41 = vshll.u32 %v9595_v13, 16  ;;  %v10461_v33 = vshll.u32 %v9670_v55, 16 }
 0x2be   : > { %7191 = vmatprep.mubr.bf16.mxu1 %v4191_v22  ;;  %7291 = vmatprep.mubr.bf16.mxu0 %v9649_v16 }
 0x2bf   : > { %7220 = vmatpush3.bf16.msra.mxu1 %v7865_v12  ;;  %v4206_v2 = vor.u32 %v4203_v56, %v10454_v41  ;;  %v4238_v12 = vor.u32 %v4235_v34, %v10460_v42 }
 0x2c0   : > { %7221 = vmatprep.subr.bf16.mxu1 %v7866_v63 }
 0x2c1   : > { %v4207_v16 = vsel %vm1586_vm15, %v4195_v45, %v4206_v2  ;;  %v10462_v45 = vshll.u32 %v9694_v24, 16  ;;  %v10467_v2 = vshrl.u32 %v9502_v11, 16 }
 0x2c3   : > { %7222 = vmatpush3.bf16.msra.mxu1 %v7866_v63  ;;  %v4254_v63 = vor.u32 %v4251_v1, %v10462_v45 }
 0x2c4   : > { %7223 = vmatprep.subr.bf16.mxu1 %v7867_v14 }
 0x2c5   : > { %7192 = vmatmul.mubr.bf16.gmra.mrb[16].mxu1 %v4199_v26  ;;  %7292 = vmatmul.mubr.bf16.gmra.mrb[76].mxu0 %v9668_v38  ;;  %v4215_v38 = vsel %vm1586_vm15, %v4203_v56, %v4214_v47  ;;  %v10464_v56 = vshrl.u32 %v9450_v23, 16  ;;  %v4275_v26 = vrot.slane %v10467_v2, 7  ;;  %v4603_v47 = vld [vmem:[#allocation2 + $0x38] sm:$0xff] }
 0x2c6   : > { %7195 = vmatprep.mubr.bf16.mxu1 %v4207_v16  ;;  %7295 = vmatprep.mubr.bf16.mxu0 %v9676_v3  ;;  %v4223_v3 = vsel %vm1586_vm15, %v4211_v46, %v4222_v40  ;;  %v7876_v40 = vld [vmem:[#allocation12 + $0x28] sm:$0xff]  }
 0x2c7   : > { %7224 = vmatpush3.bf16.msra.mxu1 %v7867_v14  ;;  %v4267_v0 = vrot.slane %v10464_v56, 7 }
 0x2c8   : > { %7225 = vmatprep.subr.bf16.mxu1 %v7868_v30 }
 0x2c9   : > { %v4270_v14 = vor.u32 %v10466_v36, %v4267_v0 }
 0x2cb   : > { %7226 = vmatpush3.bf16.msra.mxu1 %v7868_v30  ;;  %v10468_v30 = vshll.u32 %v9502_v11, 16 }
 0x2cc   : > { %7227 = vmatprep.subr.bf16.mxu1 %v7869_v28 }
 0x2cd   : > { %7196 = vmatmul.mubr.bf16.gmra.mrb[20].mxu1 %v4215_v38  ;;  %7296 = vmatmul.mubr.bf16.gmra.mrb[80].mxu0 %v9692_v7  ;;  %v4243_v7 = vrot.slane %v2473_v29, 7  ;;  %v10463_v29 = vshrl.u32 %v9433_v21, 16  ;;  %v4278_v16 = vor.u32 %v10468_v30, %v4275_v26  ;;  %v7877_v38 = vld [vmem:[#allocation12 + $0x30] sm:$0xff]  }
 0x2ce   : > { %7199 = vmatprep.mubr.bf16.mxu1 %v4223_v3  ;;  %7299 = vmatprep.mubr.bf16.mxu0 %v9699_v31  ;;  %v4239_v31 = vsel %vm1586_vm15, %v4227_v50, %v4238_v12  ;;  %v7878_v3 = vld [vmem:[#allocation12 + $0x38] sm:$0xff]  }
 0x2cf   : > { %7228 = vmatpush3.bf16.msra.mxu1 %v7869_v28  ;;  %v4246_v20 = vor.u32 %v4243_v7, %v10461_v33  ;;  %v4259_v59 = vrot.slane %v10463_v29, 7  ;;  %v4279_v8 = vsel %vm1586_vm15, %v4267_v0, %v4278_v16  ;;  %v4604_v28 = vld [vmem:[#allocation2 + $0x40] sm:$0xff] }
 0x2d0   : > { %7229 = vmatprep.subr.bf16.mxu1 %v7870_v60 }
 0x2d1   : > { %v4247_v22 = vsel %vm1586_vm15, %v4235_v34, %v4246_v20  ;;  %v4262_v25 = vor.u32 %v4259_v59, %v10465_v52  ;;  %v4271_v46 = vsel %vm1586_vm15, %v4259_v59, %v4270_v14 }
 0x2d3   : > { %7230 = vmatpush3.bf16.msra.mxu1 %v7870_v60  ;;  %v4263_v41 = vsel %vm1586_vm15, %v4251_v1, %v4262_v25 }
 0x2d4   : > { %7359 = vmatprep.subr.bf16.mxu1 %v9483_v10 }
 0x2d5   : > { %7200 = vmatmul.mubr.bf16.gmra.mrb[24].mxu1 %v4231_v15  ;;  %7300 = vmatmul.mubr.bf16.gmra.mrb[84].mxu0 %v9714_v37  ;;  %v4255_v37 = vsel %vm1586_vm15, %v4243_v7, %v4254_v63 }
 0x2d6   : > { %7203 = vmatprep.mubr.bf16.mxu1 %v4239_v31 }
 0x2dd   : > { %7204 = vmatmul.mubr.bf16.gmra.mrb[28].mxu1 %v4247_v22 }
 0x2de   : > { %7207 = vmatprep.mubr.bf16.mxu1 %v4255_v37 }
 0x2e5   : > { %7208 = vmatmul.mubr.bf16.gmra.mrb[32].mxu1 %v4263_v41 }
 0x2e6   : > { %7211 = vmatprep.mubr.bf16.mxu1 %v4271_v46 }
 0x2ed   : > { %7212 = vmatmul.mubr.bf16.gmra.mrb[36].mxu1 %v4279_v8 }
 0x2ee   : > { %7231 = vmatprep.mubr.bf16.mxu1 %v4601_v35 }
 0x2f5   : > { %7232 = vmatmul.mubr.bf16.vlgmr.msra.gmra.mrb[8].mxu1 %v4602_v9 }
 0x2f6   : > { %7367 = vmatpush3.bf16.msra.mxu1 %v9483_v10  ;;  %7235 = vmatprep.mubr.bf16.mxu1 %v4603_v47  ;;  %v4606_v10 = vld [vmem:[#allocation2 + $0x50] sm:$0xff] }
 0x2f7   : > { %7360 = vmatprep.subr.bf16.mxu1 %v9535_v53 }
 0x2fa   : > { %7368 = vmatpush3.bf16.msra.mxu1 %v9535_v53  ;;  %v7871_v53 = vld [vmem:[#allocation12] sm:$0xff]  }
 0x2fb   : > { %7361 = vmatprep.subr.bf16.mxu1 %v9546_v5  ;;  %7311 = vmatprep.subr.bf16.mxu0 %v7871_v53 }
 0x2fc   : > { %7312 = vmatpush3.bf16.msra.mxu0 %v7871_v53 }
 0x2fd   : > { %7236 = vmatmul.mubr.bf16.gmra.mrb[12].mxu1 %v4604_v28 }
 0x2fe   : > { %7239 = vmatprep.mubr.bf16.mxu1 %v4605_v39  ;;  %7369 = vmatpush3.bf16.msra.mxu1 %v9546_v5  ;;  %v7872_v5 = vld [vmem:[#allocation12 + $0x8] sm:$0xff]  }
 0x2ff   : > { %7362 = vmatprep.subr.bf16.mxu1 %v9561_v49  ;;  %7313 = vmatprep.subr.bf16.mxu0 %v7872_v5 }
 0x300   : > { %7314 = vmatpush3.bf16.msra.mxu0 %v7872_v5 }
 0x302   : > { %7370 = vmatpush3.bf16.msra.mxu1 %v9561_v49  ;;  %v7873_v49 = vld [vmem:[#allocation12 + $0x10] sm:$0xff]  }
 0x303   : > { %7363 = vmatprep.subr.bf16.mxu1 %v9578_v44  ;;  %7315 = vmatprep.subr.bf16.mxu0 %v7873_v49 }
 0x304   : > { %7316 = vmatpush3.bf16.msra.mxu0 %v7873_v49 }
 0x305   : > { %7240 = vmatmul.mubr.bf16.gmra.mrb[16].mxu1 %v4606_v10 }
 0x306   : > { %7243 = vmatprep.mubr.bf16.mxu1 %v9595_v13  ;;  %7371 = vmatpush3.bf16.msra.mxu1 %v9578_v44  ;;  %v4955_v44 = vld [vmem:[#allocation2 + $0xa8] sm:$0x1] }
 0x307   : > { %7364 = vmatprep.subr.bf16.mxu1 %v9591_v18 }
 0x30a   : > { %7372 = vmatpush3.bf16.msra.mxu1 %v9591_v18  ;;  %v5101_v18 = vshll.u32 %v4955_v44, 16 }
 0x30b   : > { %7365 = vmatprep.subr.bf16.mxu1 %v9610_v19 }
 0x30d   : > { %7244 = vmatmul.mubr.bf16.gmra.mrb[20].mxu1 %v9760_v62 }
 0x30e   : > { %7247 = vmatprep.mubr.bf16.mxu1 %v9627_v27  ;;  %7373 = vmatpush3.bf16.msra.mxu1 %v9610_v19 }
 0x30f   : > { %7366 = vmatprep.subr.bf16.mxu1 %v9623_v43 }
 0x312   : > { %7374 = vmatpush3.bf16.msra.mxu1 %v9623_v43 }
 0x315   : > { %7248 = vmatmul.mubr.bf16.gmra.mrb[24].mxu1 %v9643_v4 }
 0x316   : > { %7251 = vmatprep.mubr.bf16.mxu1 %v9655_v48 }
 0x31d   : > { %7252 = vmatmul.mubr.bf16.gmra.mrb[28].mxu1 %v9670_v55  ;;  %v7874_v55 = vld [vmem:[#allocation12 + $0x18] sm:$0xff]  }
 0x31e   : > { %7255 = vmatprep.mubr.bf16.mxu1 %v9694_v24  ;;  %7317 = vmatprep.subr.bf16.mxu0 %v7874_v55 }
 0x31f   : > { %7318 = vmatpush3.bf16.msra.mxu0 %v7874_v55 }
 0x325   : > { %7256 = vmatmul.mubr.bf16.gmra.mrb[32].mxu1 %v9433_v21  ;;  %v7875_v21 = vld [vmem:[#allocation12 + $0x20] sm:$0xff]  }
 0x326   : > { %7259 = vmatprep.mubr.bf16.mxu1 %v9450_v23  ;;  %v5103_v23 = vrot.slane %v5101_v18, 1  ;;  %7319 = vmatprep.subr.bf16.mxu0 %v7875_v21 }
 0x327   : > { %7320 = vmatpush3.bf16.msra.mxu0 %v7875_v21 }
 0x328   : > { %7321 = vmatprep.subr.bf16.mxu0 %v7876_v40 }
 0x32b   : > { %7322 = vmatpush3.bf16.msra.mxu0 %v7876_v40 }
 0x32c   : > { %7323 = vmatprep.subr.bf16.mxu0 %v7877_v38 }
 0x32d   : > { %7260 = vmatmul.mubr.bf16.gmra.mrb[36].mxu1 %v9502_v11  ;;  %v5104_v11 = vsel %vm2348_vm7, %v9520_v54, %v5103_v23  ;;  %v9948_v23 = vld [vmem:[%s10477_s26] ss:$0 sm:$0xff]  ;;  %s8058_s26 = scalar_lea.vmem %s8057_s23, 4096 }
 0x32e   : > { %7303 = vmatprep.mubr.bf16.mxu1 %v9719_v17  ;;  %p8060_p1 = scmp.lt.s32.totalorder %s8058_s26, %s8052_s8 }
 0x32f   : > { %7324 = vmatpush3.bf16.msra.mxu0 %v7877_v38 }
 0x330   : > { %7325 = vmatprep.subr.bf16.mxu0 %v7878_v3  ;;  %p8061_p13 = por %p8060_p1, %p8059_p3 }
 0x332   : > { %p8062_p6 = pnand %p8061_p13, %p8055_p10 }
 0x333   : > { %7326 = vmatpush3.bf16.msra.mxu0 %v7878_v3 }
 0x335   : > { %7304 = vmatmul.mubr.bf16.vlgmr.msra.gmra.mrb[32].mxu1 %v9473_v61 }
 0x336   : > { %7307 = vmatprep.mubr.bf16.mxu1 %v9524_v51 }
 0x33d   : > { %7308 = vmatmul.mubr.bf16.gmra.mrb[36].mxu1 %v5104_v11 }
 0x340   : > { %v9848_v13 = vpop.f32.mrb[32].mxu0 }
 0x341   : > { %v9850_v19 = vpop.f32.mrb[33].mxu0 }
 0x342   : > { %v9852_v43 = vpop.f32.mrb[34].mxu0 }
 0x343   : > { %v9854_v61 = vpop.f32.mrb[35].mxu0 }
 0x348   : > { %v9856_v51 = vpop.f32.mrb[36].mxu0 }
 0x349   : > { %v9858_v27 = vpop.f32.mrb[37].mxu0 }
 0x34a   : > { %v9860_v24 = vpop.f32.mrb[38].mxu0 }
 0x34b   : > { %v9862_v4 = vpop.f32.mrb[39].mxu0 }
 0x350   : > { %v9864_v48 = vpop.f32.mrb[40].mxu0 }
 0x351   : > { %v9866_v54 = vpop.f32.mrb[41].mxu0 }
 0x352   : > { %v9868_v17 = vpop.f32.mrb[42].mxu0 }
 0x353   : > { %v9870_v62 = vpop.f32.mrb[43].mxu0 }
 0x358   : > { %v9872_v6 = vpop.f32.mrb[44].mxu0 }
 0x359   : > { %v9874_v50 = vpop.f32.mrb[45].mxu0 }
 0x35a   : > { %v9876_v60 = vpop.f32.mrb[46].mxu0 }
 0x35b   : > { %v9878_v57 = vpop.f32.mrb[47].mxu0 }
 0x360   : > { %v9880_v34 = vpop.f32.mrb[48].mxu0 }
 0x361   : > { %v9882_v32 = vpop.f32.mrb[49].mxu0 }
 0x362   : > { %v9884_v58 = vpop.f32.mrb[50].mxu0 }
 0x363   : > { %v9886_v42 = vpop.f32.mrb[51].mxu0 }
 0x368   : > { %v9888_v12 = vpop.f32.mrb[52].mxu0 }
 0x369   : > { %v9890_v15 = vpop.f32.mrb[53].mxu0 }
 0x36a   : > { %v9892_v7 = vpop.f32.mrb[54].mxu0 }
 0x36b   : > { %v9894_v31 = vpop.f32.mrb[55].mxu0 }
 0x370   : > { %v9896_v1 = vpop.f32.mrb[56].mxu0 }
 0x371   : > { %10469 = vst [vmem:[#allocation33_spill] sm:$0xff] %v9896_v1  ;;  %v9898_v33 = vpop.f32.mrb[57].mxu0 }
 0x372   : > { %10470 = vst [vmem:[#allocation34_spill] sm:$0xff] %v9898_v33  ;;  %v9900_v20 = vpop.f32.mrb[58].mxu0 }
 0x373   : > { %10471 = vst [vmem:[#allocation35_spill] sm:$0xff] %v9900_v20  ;;  %v9902_v45 = vpop.f32.mrb[59].mxu0 }
 0x374   : > { %10472 = vst [vmem:[#allocation36_spill] sm:$0xff] %v9902_v45 }
 0x378   : > { %v9904_v63 = vpop.f32.mrb[60].mxu0 }
 0x379   : > { %10473 = vst [vmem:[#allocation37_spill] sm:$0xff] %v9904_v63  ;;  %v9906_v22 = vpop.f32.mrb[61].mxu0 }
 0x37a   : > { %10474 = vst [vmem:[#allocation38_spill] sm:$0xff] %v9906_v22  ;;  %v9908_v29 = vpop.f32.mrb[62].mxu0 }
 0x37b   : > { %10475 = vst [vmem:[#allocation39_spill] sm:$0xff] %v9908_v29  ;;  %v9910_v59 = vpop.f32.mrb[63].mxu0 }
 0x37c   : > { %10476 = vst [vmem:[#allocation40_spill] sm:$0xff] %v9910_v59 }
 0x380   : > { %v7281_v37 = vpop.f32.mrb[64].mxu0 }
 0x381   : > { %v5203_v56 = vpop.f32.mrb[65].mxu0 }
 0x382   : > { %v7282_v0 = vpop.f32.mrb[66].mxu0 }
 0x383   : > { %v5206_v52 = vpop.f32.mrb[67].mxu0 }
 0x388   : > { %v7285_v25 = vpop.f32.mrb[68].mxu0 }
 0x389   : > { %v5219_v36 = vpop.f32.mrb[69].mxu0 }
 0x38a   : > { %v7286_v14 = vpop.f32.mrb[70].mxu0 }
 0x38b   : > { %v5222_v41 = vpop.f32.mrb[71].mxu0 }
 0x390   : > { %v9912_v2 = vpop.f32.mrb[72].mxu0 }
 0x391   : > { %v9914_v26 = vpop.f32.mrb[73].mxu0 }
 0x392   : > { %v9916_v46 = vpop.f32.mrb[74].mxu0 }
 0x393   : > { %v9918_v30 = vpop.f32.mrb[75].mxu0 }
 0x398   : > { %v9920_v16 = vpop.f32.mrb[76].mxu0 }
 0x399   : > { %v9922_v8 = vpop.f32.mrb[77].mxu0 }
 0x39a   : > { %v9924_v35 = vpop.f32.mrb[78].mxu0 }
 0x39b   : > { %v9926_v9 = vpop.f32.mrb[79].mxu0 }
 0x3a0   : > { %v9928_v47 = vpop.f32.mrb[80].mxu0 }
 0x3a1   : > { %v9930_v28 = vpop.f32.mrb[81].mxu0 }
 0x3a2   : > { %v9932_v39 = vpop.f32.mrb[82].mxu0 }
 0x3a3   : > { %v9934_v10 = vpop.f32.mrb[83].mxu0 }
 0x3a8   : > { %v9936_v53 = vpop.f32.mrb[84].mxu0 }
 0x3a9   : > { %v9938_v5 = vpop.f32.mrb[85].mxu0 }
 0x3aa   : > { %v9940_v49 = vpop.f32.mrb[86].mxu0 }
 0x3ab   : > { %v9942_v44 = vpop.f32.mrb[87].mxu0 }
 0x3c8   : > { %v7233_v55 = vpop.f32.mrb[8].mxu1 }
 0x3c9   : > { %v7375_v18 = vadd.f32 %v7233_v55, %v9848_v13  ;;  %v4716_v21 = vpop.f32.mrb[9].mxu1 }
 0x3ca   : > { %v7377_v11 = vadd.f32 %v4716_v21, %v9850_v19  ;;  %v7234_v40 = vpop.f32.mrb[10].mxu1 }
 0x3cb   : > { %v7376_v38 = vadd.f32 %v7375_v18, %v7281_v37  ;;  %v7379_v3 = vadd.f32 %v7234_v40, %v9852_v43  ;;  %v4719_v59 = vpop.f32.mrb[11].mxu1 }
 0x3cc   : > { %v7378_v29 = vadd.f32 %v7377_v11, %v5203_v56  ;;  %v7381_v22 = vadd.f32 %v4719_v59, %v9854_v61 }
 0x3cd   : > { %v5467_v63 = vadd.f32 %v7376_v38, %v9948_v23  ;;  %v7380_v45 = vadd.f32 %v7379_v3, %v7282_v0 }
 0x3ce   : > { %v5465_v13 = vadd.f32 %v7378_v29, %v9948_v23  ;;  %v7382_v55 = vadd.f32 %v7381_v22, %v5206_v52 }
 0x3cf   : > { %v5468_v20 = vadd.f32 %v7380_v45, %v9948_v23  ;;  %v5499_v19 = vmax.f32 %v5467_v63, 0.0 }
 0x3d0   : > { %v5466_v33 = vadd.f32 %v7382_v55, %v9948_v23  ;;  %v7237_v1 = vpop.f32.mrb[12].mxu1  ;;  %v5497_v18 = vmax.f32 %v5465_v13, 0.0 }
 0x3d1   : > { %v5500_v21 = vmax.f32 %v5468_v20, 0.0  ;;  %v7383_v37 = vadd.f32 %v7237_v1, %v9856_v51  ;;  %v4732_v43 = vpop.f32.mrb[13].mxu1 }
 0x3d2   : > { %v5498_v56 = vmax.f32 %v5466_v33, 0.0  ;;  %v7385_v61 = vadd.f32 %v4732_v43, %v9858_v27  ;;  %v7238_v59 = vpop.f32.mrb[14].mxu1 }
 0x3d3   : > { %v5530_v11 = vpack.c.bf16 %v5500_v21, %v5499_v19  ;;  %v7384_v0 = vadd.f32 %v7383_v37, %v7285_v25  ;;  %v7387_v29 = vadd.f32 %v7238_v59, %v9860_v24  ;;  %v4735_v22 = vpop.f32.mrb[15].mxu1 }
 0x3d4   : > { %v7386_v52 = vadd.f32 %v7385_v61, %v5219_v36  ;;  %v7389_v45 = vadd.f32 %v4735_v22, %v9862_v4  ;;  %v5529_v40 = vpack.c.bf16 %v5498_v56, %v5497_v18 }
 0x3d5   : > { %v5471_v63 = vadd.f32 %v7384_v0, %v9948_v23  ;;  %v7388_v20 = vadd.f32 %v7387_v29, %v7286_v14 }
 0x3d6   : > { %v5469_v51 = vadd.f32 %v7386_v52, %v9948_v23  ;;  %v7390_v1 = vadd.f32 %v7389_v45, %v5222_v41  ;;  %7327 = vmatprep.mubr.bf16.mxu0 %v5529_v40 }
 0x3d7   : > { %v5472_v33 = vadd.f32 %v7388_v20, %v9948_v23  ;;  %7328 = vmatmul.mubr.bf16.vlgmr.msra.gmra.mrb[88].mxu0 %v5530_v11  ;;  %v5503_v38 = vmax.f32 %v5471_v63, 0.0 }
 0x3d8   : > { %v5470_v27 = vadd.f32 %v7390_v1, %v9948_v23  ;;  %v7241_v25 = vpop.f32.mrb[16].mxu1  ;;  %v5501_v4 = vmax.f32 %v5469_v51, 0.0 }
 0x3d9   : > { %v5504_v24 = vmax.f32 %v5472_v33, 0.0  ;;  %v7391_v36 = vadd.f32 %v7241_v25, %v9864_v48  ;;  %v4748_v3 = vpop.f32.mrb[17].mxu1 }
 0x3da   : > { %v5502_v13 = vmax.f32 %v5470_v27, 0.0  ;;  %v7393_v55 = vadd.f32 %v4748_v3, %v9866_v54  ;;  %v7242_v14 = vpop.f32.mrb[18].mxu1 }
 0x3db   : > { %v7392_v19 = vadd.f32 %v7391_v36, %v9912_v2  ;;  %v7395_v41 = vadd.f32 %v7242_v14, %v9868_v17  ;;  %v4751_v21 = vpop.f32.mrb[19].mxu1  ;;  %v5532_v37 = vpack.c.bf16 %v5504_v24, %v5503_v38 }
 0x3dc   : > { %v7394_v43 = vadd.f32 %v7393_v55, %v9914_v26  ;;  %v7397_v18 = vadd.f32 %v4751_v21, %v9870_v62  ;;  %v5531_v56 = vpack.c.bf16 %v5502_v13, %v5501_v4 }
 0x3dd   : > { %v5475_v61 = vadd.f32 %v7392_v19, %v9948_v23  ;;  %v7396_v48 = vadd.f32 %v7395_v41, %v9916_v46 }
 0x3de   : > { %v5473_v59 = vadd.f32 %v7394_v43, %v9948_v23  ;;  %v7398_v54 = vadd.f32 %v7397_v18, %v9918_v30  ;;  %7331 = vmatprep.mubr.bf16.mxu0 %v5531_v56 }
 0x3df   : > { %v5476_v2 = vadd.f32 %v7396_v48, %v9948_v23  ;;  %7332 = vmatmul.mubr.bf16.gmra.mrb[92].mxu0 %v5532_v37  ;;  %v5507_v0 = vmax.f32 %v5475_v61, 0.0 }
 0x3e0   : > { %v5474_v17 = vadd.f32 %v7398_v54, %v9948_v23  ;;  %v7245_v11 = vpop.f32.mrb[20].mxu1  ;;  %v5505_v22 = vmax.f32 %v5473_v59, 0.0 }
 0x3e1   : > { %v5508_v26 = vmax.f32 %v5476_v2, 0.0  ;;  %v7399_v62 = vadd.f32 %v7245_v11, %v9872_v6  ;;  %v4764_v29 = vpop.f32.mrb[21].mxu1 }
 0x3e2   : > { %v5506_v52 = vmax.f32 %v5474_v17, 0.0  ;;  %v7401_v46 = vadd.f32 %v4764_v29, %v9874_v50  ;;  %v7246_v45 = vpop.f32.mrb[22].mxu1 }
 0x3e3   : > { %v7400_v40 = vadd.f32 %v7399_v62, %v9920_v16  ;;  %v7403_v30 = vadd.f32 %v7246_v45, %v9876_v60  ;;  %v4767_v63 = vpop.f32.mrb[23].mxu1  ;;  %v5534_v20 = vpack.c.bf16 %v5508_v26, %v5507_v0 }
 0x3e4   : > { %v7402_v51 = vadd.f32 %v7401_v46, %v9922_v8  ;;  %v7405_v1 = vadd.f32 %v4767_v63, %v9878_v57  ;;  %v5533_v33 = vpack.c.bf16 %v5506_v52, %v5505_v22 }
 0x3e5   : > { %v5479_v27 = vadd.f32 %v7400_v40, %v9948_v23  ;;  %v7404_v6 = vadd.f32 %v7403_v30, %v9924_v35 }
 0x3e6   : > { %v5477_v25 = vadd.f32 %v7402_v51, %v9948_v23  ;;  %v7406_v50 = vadd.f32 %v7405_v1, %v9926_v9  ;;  %7335 = vmatprep.mubr.bf16.mxu0 %v5533_v33  ;;  %v10479_v1 = vld [vmem:[#allocation34_spill] sm:$0xff] }
 0x3e7   : > { %v5480_v16 = vadd.f32 %v7404_v6, %v9948_v23  ;;  %7336 = vmatmul.mubr.bf16.gmra.mrb[96].mxu0 %v5534_v20  ;;  %v5511_v24 = vmax.f32 %v5479_v27, 0.0  ;;  %v10480_v6 = vld [vmem:[#allocation35_spill] sm:$0xff] }
 0x3e8   : > { %v5478_v60 = vadd.f32 %v7406_v50, %v9948_v23  ;;  %v7249_v38 = vpop.f32.mrb[24].mxu1  ;;  %v5509_v3 = vmax.f32 %v5477_v25, 0.0 }
 0x3e9   : > { %v5512_v8 = vmax.f32 %v5480_v16, 0.0  ;;  %v7407_v57 = vadd.f32 %v7249_v38, %v9880_v34  ;;  %v4780_v36 = vpop.f32.mrb[25].mxu1 }
 0x3ea   : > { %v5510_v4 = vmax.f32 %v5478_v60, 0.0  ;;  %v7409_v35 = vadd.f32 %v4780_v36, %v9882_v32  ;;  %v7250_v13 = vpop.f32.mrb[26].mxu1  ;;  %v10481_v60 = vld [vmem:[#allocation36_spill] sm:$0xff] }
 0x3eb   : > { %v7408_v55 = vadd.f32 %v7407_v57, %v9928_v47  ;;  %v7411_v9 = vadd.f32 %v7250_v13, %v9884_v58  ;;  %v4783_v14 = vpop.f32.mrb[27].mxu1  ;;  %v5536_v19 = vpack.c.bf16 %v5512_v8, %v5511_v24  ;;  %v10482_v13 = vld [vmem:[#allocation37_spill] sm:$0xff] }
 0x3ec   : > { %v7410_v41 = vadd.f32 %v7409_v35, %v9930_v28  ;;  %v7413_v21 = vadd.f32 %v4783_v14, %v9886_v42  ;;  %v5535_v37 = vpack.c.bf16 %v5510_v4, %v5509_v3 }
 0x3ed   : > { %v5483_v43 = vadd.f32 %v7408_v55, %v9948_v23  ;;  %v7412_v34 = vadd.f32 %v7411_v9, %v9932_v39 }
 0x3ee   : > { %v5481_v18 = vadd.f32 %v7410_v41, %v9948_v23  ;;  %v7414_v32 = vadd.f32 %v7413_v21, %v9934_v10  ;;  %7339 = vmatprep.mubr.bf16.mxu0 %v5535_v37 }
 0x3ef   : > { %v5484_v47 = vadd.f32 %v7412_v34, %v9948_v23  ;;  %7340 = vmatmul.mubr.bf16.gmra.mrb[100].mxu0 %v5536_v19  ;;  %v5515_v61 = vmax.f32 %v5483_v43, 0.0  ;;  %v10483_v19 = vld [vmem:[#allocation38_spill] sm:$0xff]  ;;  %v10484_v34 = vld [vmem:[#allocation39_spill] sm:$0xff] }
 0x3f0   : > { %v5482_v58 = vadd.f32 %v7414_v32, %v9948_v23  ;;  %v7253_v56 = vpop.f32.mrb[28].mxu1  ;;  %v5513_v59 = vmax.f32 %v5481_v18, 0.0 }
 0x3f1   : > { %v5516_v28 = vmax.f32 %v5484_v47, 0.0  ;;  %v7415_v42 = vadd.f32 %v7253_v56, %v9888_v12  ;;  %v4796_v48 = vpop.f32.mrb[29].mxu1 }
 0x3f2   : > { %v5514_v54 = vmax.f32 %v5482_v58, 0.0  ;;  %v7417_v39 = vadd.f32 %v4796_v48, %v9890_v15  ;;  %v7254_v2 = vpop.f32.mrb[30].mxu1  ;;  %v10485_v58 = vld [vmem:[#allocation40_spill] sm:$0xff] }
 0x3f3   : > { %v7416_v17 = vadd.f32 %v7415_v42, %v9936_v53  ;;  %v7419_v10 = vadd.f32 %v7254_v2, %v9892_v7  ;;  %v4799_v11 = vpop.f32.mrb[31].mxu1  ;;  %v5538_v0 = vpack.c.bf16 %v5516_v28, %v5515_v61 }
 0x3f4   : > { %v7418_v26 = vadd.f32 %v7417_v39, %v9938_v5  ;;  %v7421_v62 = vadd.f32 %v4799_v11, %v9894_v31  ;;  %v5537_v29 = vpack.c.bf16 %v5514_v54, %v5513_v59 }
 0x3f5   : > { %v5487_v22 = vadd.f32 %v7416_v17, %v9948_v23  ;;  %v7420_v12 = vadd.f32 %v7419_v10, %v9940_v49  ;;  %v10478_v49 = vld [vmem:[#allocation33_spill] sm:$0xff]  ;;  %v10032_v17 = vld [vmem:[%s10486_s21] ss:$0 sm:$0xff]  ;;  %v7895_v10 = vld [vmem:[%s8538_s17 + $0x18] sm:$0xff]  }
 0x3f6   : > { %v5485_v52 = vadd.f32 %v7418_v26, %v9948_v23  ;;  %v7422_v15 = vadd.f32 %v7421_v62, %v9942_v44  ;;  %7343 = vmatprep.mubr.bf16.mxu0 %v5537_v29  ;;  %v5779_v11 = vunpack.c.l.bf16 %v7895_v10  ;;  %v7896_v26 = vld [vmem:[%s8538_s17 + $0x10] sm:$0xff]  }
 0x3f7   : > { %v5488_v53 = vadd.f32 %v7420_v12, %v9948_v23  ;;  %7344 = vmatmul.mubr.bf16.gmra.mrb[104].mxu0 %v5538_v0  ;;  %v5519_v46 = vmax.f32 %v5487_v22, 0.0  ;;  %v5777_v62 = vunpack.c.l.bf16 %v7896_v26  ;;  %v5780_v22 = vunpack.c.h.bf16 %v7895_v10 }
 0x3f8   : > { %v5486_v7 = vadd.f32 %v7422_v15, %v9948_v23  ;;  %v5517_v5 = vmax.f32 %v5485_v52, 0.0  ;;  %v5778_v15 = vunpack.c.h.bf16 %v7896_v26 }
 0x3f9   : > { %v5520_v45 = vmax.f32 %v5488_v53, 0.0 }
 0x3fa   : > { %v5518_v40 = vmax.f32 %v5486_v7, 0.0 }
 0x3fb   : > { %v5540_v31 = vpack.c.bf16 %v5520_v45, %v5519_v46 }
 0x3fc   : > { %v5539_v30 = vpack.c.bf16 %v5518_v40, %v5517_v5 }
 0x3fe   : > { %7347 = vmatprep.mubr.bf16.mxu0 %v5539_v30 }
 0x3ff   : > { %7348 = vmatmul.mubr.bf16.gmra.mrb[108].mxu0 %v5540_v31 }
 0x408   : > { %v7305_v63 = vpop.f32.mrb[32].mxu1 }
 0x409   : > { %v7423_v20 = vadd.f32 %v7305_v63, %v10478_v49  ;;  %v5299_v51 = vpop.f32.mrb[33].mxu1  ;;  %v7897_v49 = vld [vmem:[%s8538_s17 + $0x28] sm:$0xff]  }
 0x40a   : > { %v7424_v44 = vadd.f32 %v5299_v51, %v10479_v1  ;;  %v7306_v33 = vpop.f32.mrb[34].mxu1 }
 0x40b   : > { %v5491_v27 = vadd.f32 %v7423_v20, %v9948_v23  ;;  %v7425_v25 = vadd.f32 %v7306_v33, %v10480_v6  ;;  %v5302_v50 = vpop.f32.mrb[35].mxu1  ;;  %v5783_v20 = vunpack.c.l.bf16 %v7897_v49  ;;  %v7898_v33 = vld [vmem:[%s8538_s17 + $0x20] sm:$0xff]  }
 0x40c   : > { %v5489_v16 = vadd.f32 %v7424_v44, %v9948_v23  ;;  %v7426_v38 = vadd.f32 %v5302_v50, %v10481_v60 }
 0x40d   : > { %v5492_v24 = vadd.f32 %v7425_v25, %v9948_v23  ;;  %v5523_v57 = vmax.f32 %v5491_v27, 0.0  ;;  %v5781_v27 = vunpack.c.l.bf16 %v7898_v33 }
 0x40e   : > { %v5490_v8 = vadd.f32 %v7426_v38, %v9948_v23  ;;  %v5521_v3 = vmax.f32 %v5489_v16, 0.0  ;;  %v5784_v16 = vunpack.c.h.bf16 %v7897_v49 }
 0x40f   : > { %v5524_v36 = vmax.f32 %v5492_v24, 0.0 }
 0x410   : > { %v5522_v4 = vmax.f32 %v5490_v8, 0.0  ;;  %v7309_v35 = vpop.f32.mrb[36].mxu1  ;;  %v5782_v8 = vunpack.c.h.bf16 %v7898_v33 }
 0x411   : > { %v7427_v55 = vadd.f32 %v7309_v35, %v10482_v13  ;;  %v5315_v9 = vpop.f32.mrb[37].mxu1  ;;  %v5542_v14 = vpack.c.bf16 %v5524_v36, %v5523_v57 }
 0x412   : > { %v7428_v41 = vadd.f32 %v5315_v9, %v10483_v19  ;;  %v7310_v21 = vpop.f32.mrb[38].mxu1  ;;  %v5541_v37 = vpack.c.bf16 %v5522_v4, %v5521_v3  ;;  %v7899_v19 = vld [vmem:[%s8538_s17 + $0x38] sm:$0xff]  }
 0x413   : > { %v5495_v43 = vadd.f32 %v7427_v55, %v9948_v23  ;;  %v7429_v18 = vadd.f32 %v7310_v21, %v10484_v34  ;;  %v5318_v32 = vpop.f32.mrb[39].mxu1  ;;  %v7900_v34 = vld [vmem:[%s8538_s17 + $0x30] sm:$0xff]  }
 0x414   : > { %v5493_v47 = vadd.f32 %v7428_v41, %v9948_v23  ;;  %v7430_v56 = vadd.f32 %v5318_v32, %v10485_v58  ;;  %7351 = vmatprep.mubr.bf16.mxu0 %v5541_v37  ;;  %v5787_v41 = vunpack.c.l.bf16 %v7899_v19 }
 0x415   : > { %v5496_v61 = vadd.f32 %v7429_v18, %v9948_v23  ;;  %7352 = vmatmul.mubr.bf16.gmra.mrb[112].mxu0 %v5542_v14  ;;  %v5527_v42 = vmax.f32 %v5495_v43, 0.0  ;;  %v5785_v18 = vunpack.c.l.bf16 %v7900_v34 }
 0x416   : > { %v5494_v28 = vadd.f32 %v7430_v56, %v9948_v23  ;;  %v5525_v59 = vmax.f32 %v5493_v47, 0.0  ;;  %v5788_v56 = vunpack.c.h.bf16 %v7899_v19 }
 0x417   : > { %v5528_v48 = vmax.f32 %v5496_v61, 0.0 }
 0x418   : > { %v5526_v54 = vmax.f32 %v5494_v28, 0.0 }
 0x419   : > { %v5544_v39 = vpack.c.bf16 %v5528_v48, %v5527_v42  ;;  %v5786_v48 = vunpack.c.h.bf16 %v7900_v34 }
 0x41a   : > { %v5543_v2 = vpack.c.bf16 %v5526_v54, %v5525_v59 }
 0x41c   : > { %7355 = vmatprep.mubr.bf16.mxu0 %v5543_v2 }
 0x41d   : > { %7356 = vmatmul.mubr.bf16.gmra.mrb[116].mxu0 %v5544_v39 }
 0x4aa   : > { %v7329_v0 = vpop.f32.mrb[88].mxu0 }
 0x4ab   : > { %v5659_v23 = vadd.f32 %v7329_v0, %v10032_v17  ;;  %v5650_v29 = vpop.f32.mrb[89].mxu0 }
 0x4ac   : > { %v5651_v12 = vadd.f32 %v10032_v17, %v5650_v29  ;;  %v7330_v52 = vpop.f32.mrb[90].mxu0 }
 0x4ad   : > { %v5807_v53 = vadd.f32 %v5779_v11, %v5659_v23  ;;  %v5662_v7 = vadd.f32 %v7330_v52, %v10032_v17  ;;  %v5653_v46 = vpop.f32.mrb[91].mxu0  ;;  %v7901_v23 = vld [vmem:[%s8538_s17 + $0x48] sm:$0xff]  }
 0x4ae   : > { %v5805_v45 = vadd.f32 %v5777_v62, %v5651_v12  ;;  %v5654_v5 = vadd.f32 %v10032_v17, %v5653_v46  ;;  %v5791_v29 = vunpack.c.l.bf16 %v7901_v23 }
 0x4af   : > { %v5808_v40 = vadd.f32 %v5780_v22, %v5662_v7  ;;  %v5835_v30 = vmax.f32 %v5807_v53, 0.0 }
 0x4b0   : > { %v5806_v31 = vadd.f32 %v5778_v15, %v5654_v5  ;;  %v5833_v51 = vmax.f32 %v5805_v45, 0.0  ;;  %v7902_v15 = vld [vmem:[%s8538_s17 + $0x40] sm:$0xff]   ;;  %v5792_v5 = vunpack.c.h.bf16 %v7901_v23 }
 0x4b1   : > { %v5836_v63 = vmax.f32 %v5808_v40, 0.0  ;;  %v5789_v53 = vunpack.c.l.bf16 %v7902_v15 }
 0x4b2   : > { %v5834_v1 = vmax.f32 %v5806_v31, 0.0  ;;  %v7333_v44 = vpop.f32.mrb[92].mxu0 }
 0x4b3   : > { %v6444_v6 = vpack.c.bf16 %v5836_v63, %v5835_v30  ;;  %v5675_v25 = vadd.f32 %v7333_v44, %v10032_v17  ;;  %v5666_v50 = vpop.f32.mrb[93].mxu0  ;;  %v5790_v63 = vunpack.c.h.bf16 %v7902_v15 }
 0x4b4   : > { %v6439_v60 = vpack.c.bf16 %v5834_v1, %v5833_v51  ;;  %v5667_v38 = vadd.f32 %v10032_v17, %v5666_v50  ;;  %v7334_v24 = vpop.f32.mrb[94].mxu0  ;;  %v7903_v50 = vld [vmem:[%s8538_s17 + $0x58] sm:$0xff]  }
 0x4b5   : > { %6516 = vst [vmem:[%s10046_s27 + $0x8] sm:$0xff] %v6444_v6   ;;  %v5811_v57 = vadd.f32 %v5783_v20, %v5675_v25  ;;  %v5678_v36 = vadd.f32 %v7334_v24, %v10032_v17  ;;  %v5669_v3 = vpop.f32.mrb[95].mxu0 }
 0x4b6   : > { %6440 = vst [vmem:[%s10046_s27] sm:$0xff] %v6439_v60   ;;  %v5809_v4 = vadd.f32 %v5781_v27, %v5667_v38  ;;  %v5670_v35 = vadd.f32 %v10032_v17, %v5669_v3 }
 0x4b7   : > { %v5812_v13 = vadd.f32 %v5784_v16, %v5678_v36  ;;  %v5839_v9 = vmax.f32 %v5811_v57, 0.0  ;;  %v5795_v16 = vunpack.c.l.bf16 %v7903_v50 }
 0x4b8   : > { %v5810_v55 = vadd.f32 %v5782_v8, %v5670_v35  ;;  %v5837_v21 = vmax.f32 %v5809_v4, 0.0  ;;  %v7904_v8 = vld [vmem:[%s8538_s17 + $0x50] sm:$0xff]   ;;  %v5796_v35 = vunpack.c.h.bf16 %v7903_v50 }
 0x4b9   : > { %v5840_v14 = vmax.f32 %v5812_v13, 0.0  ;;  %v5793_v57 = vunpack.c.l.bf16 %v7904_v8 }
 0x4ba   : > { %v5838_v37 = vmax.f32 %v5810_v55, 0.0  ;;  %v7337_v43 = vpop.f32.mrb[96].mxu0 }
 0x4bb   : > { %v6454_v32 = vpack.c.bf16 %v5840_v14, %v5839_v9  ;;  %v5691_v47 = vadd.f32 %v7337_v43, %v10032_v17  ;;  %v5682_v58 = vpop.f32.mrb[97].mxu0  ;;  %v5794_v14 = vunpack.c.h.bf16 %v7904_v8 }
 0x4bc   : > { %v6449_v61 = vpack.c.bf16 %v5838_v37, %v5837_v21  ;;  %v5683_v28 = vadd.f32 %v10032_v17, %v5682_v58  ;;  %v7338_v42 = vpop.f32.mrb[98].mxu0  ;;  %v7905_v58 = vld [vmem:[%s8538_s17 + $0x68] sm:$0xff]  }
 0x4bd   : > { %6518 = vst [vmem:[%s10046_s27 + $0x18] sm:$0xff] %v6454_v32   ;;  %v5815_v59 = vadd.f32 %v5787_v41, %v5691_v47  ;;  %v5694_v54 = vadd.f32 %v7338_v42, %v10032_v17  ;;  %v5685_v39 = vpop.f32.mrb[99].mxu0 }
 0x4be   : > { %6517 = vst [vmem:[%s10046_s27 + $0x10] sm:$0xff] %v6449_v61   ;;  %v5813_v2 = vadd.f32 %v5785_v18, %v5683_v28  ;;  %v5686_v10 = vadd.f32 %v10032_v17, %v5685_v39 }
 0x4bf   : > { %v5816_v11 = vadd.f32 %v5788_v56, %v5694_v54  ;;  %v5843_v26 = vmax.f32 %v5815_v59, 0.0  ;;  %v5799_v56 = vunpack.c.l.bf16 %v7905_v58 }
 0x4c0   : > { %v5814_v0 = vadd.f32 %v5786_v48, %v5686_v10  ;;  %v5841_v22 = vmax.f32 %v5813_v2, 0.0  ;;  %v7906_v48 = vld [vmem:[%s8538_s17 + $0x60] sm:$0xff]   ;;  %v5800_v10 = vunpack.c.h.bf16 %v7905_v58 }
 0x4c1   : > { %v5844_v62 = vmax.f32 %v5816_v11, 0.0  ;;  %v5797_v59 = vunpack.c.l.bf16 %v7906_v48 }
 0x4c2   : > { %v5842_v12 = vmax.f32 %v5814_v0, 0.0  ;;  %v7341_v52 = vpop.f32.mrb[100].mxu0 }
 0x4c3   : > { %v6464_v7 = vpack.c.bf16 %v5844_v62, %v5843_v26  ;;  %v5707_v46 = vadd.f32 %v7341_v52, %v10032_v17  ;;  %v5698_v45 = vpop.f32.mrb[101].mxu0  ;;  %v5798_v62 = vunpack.c.h.bf16 %v7906_v48 }
 0x4c4   : > { %v6459_v40 = vpack.c.bf16 %v5842_v12, %v5841_v22  ;;  %v5699_v31 = vadd.f32 %v10032_v17, %v5698_v45  ;;  %v7342_v30 = vpop.f32.mrb[102].mxu0 }
 0x4c5   : > { %6520 = vst [vmem:[%s10046_s27 + $0x28] sm:$0xff] %v6464_v7   ;;  %v5819_v49 = vadd.f32 %v5791_v29, %v5707_v46  ;;  %v5710_v20 = vadd.f32 %v7342_v30, %v10032_v17  ;;  %v5701_v51 = vpop.f32.mrb[103].mxu0  ;;  %v7907_v30 = vld [vmem:[%s8538_s17 + $0x78] sm:$0xff]  }
 0x4c6   : > { %6519 = vst [vmem:[%s10046_s27 + $0x20] sm:$0xff] %v6459_v40   ;;  %v5817_v1 = vadd.f32 %v5789_v53, %v5699_v31  ;;  %v5702_v44 = vadd.f32 %v10032_v17, %v5701_v51 }
 0x4c7   : > { %v5820_v33 = vadd.f32 %v5792_v5, %v5710_v20  ;;  %v5847_v6 = vmax.f32 %v5819_v49, 0.0  ;;  %v7908_v20 = vld [vmem:[%s8538_s17 + $0x70] sm:$0xff]   ;;  %s6395_s17 = sshll.u32 %s10285_s24, 5 }
 0x4c8   : > { %v5818_v27 = vadd.f32 %v5790_v63, %v5702_v44  ;;  %v5845_v60 = vmax.f32 %v5817_v1, 0.0  ;;  %v5803_v63 = vunpack.c.l.bf16 %v7907_v30  ;;  %v5801_v51 = vunpack.c.l.bf16 %v7908_v20  ;;  %s6046_s16 = sadd.s32 %s6396_s3, %s6395_s17 }
 0x4c9   : > { %v5848_v25 = vmax.f32 %v5820_v33, 0.0  ;;  %v5804_v33 = vunpack.c.h.bf16 %v7907_v30  ;;  %s6397_s30 = sshll.u32 %s6046_s16, 6 }
 0x4ca   : > { %v5846_v38 = vmax.f32 %v5818_v27, 0.0  ;;  %v7345_v24 = vpop.f32.mrb[104].mxu0  ;;  %s10108_s19 = scalar_lea.hbm %s10489_s18, %s6397_s30 }
 0x4cb   : > { %v6474_v36 = vpack.c.bf16 %v5848_v25, %v5847_v6  ;;  %v5723_v3 = vadd.f32 %v7345_v24, %v10032_v17  ;;  %v5714_v4 = vpop.f32.mrb[105].mxu0  ;;  %v5802_v25 = vunpack.c.h.bf16 %v7908_v20 }
 0x4cc   : > { %v6469_v13 = vpack.c.bf16 %v5846_v38, %v5845_v60  ;;  %v5715_v55 = vadd.f32 %v10032_v17, %v5714_v4  ;;  %v7346_v9 = vpop.f32.mrb[106].mxu0  ;;  %v7909_v4 = vld [vmem:[%s8546_s9 + $0x8] sm:$0xff]  }
 0x4cd   : > { %6522 = vst [vmem:[%s10046_s27 + $0x38] sm:$0xff] %v6474_v36   ;;  %v5823_v19 = vadd.f32 %v5795_v16, %v5723_v3  ;;  %v5726_v41 = vadd.f32 %v7346_v9, %v10032_v17  ;;  %v5717_v21 = vpop.f32.mrb[107].mxu0 }
 0x4ce   : > { %6521 = vst [vmem:[%s10046_s27 + $0x30] sm:$0xff] %v6469_v13   ;;  %v5821_v37 = vadd.f32 %v5793_v57, %v5715_v55  ;;  %v5718_v43 = vadd.f32 %v10032_v17, %v5717_v21  ;;  %v7910_v13 = vld [vmem:[%s8546_s9] sm:$0xff]  }
 0x4cf   : > { %v5824_v34 = vadd.f32 %v5796_v35, %v5726_v41  ;;  %v5851_v32 = vmax.f32 %v5823_v19, 0.0  ;;  %v6003_v35 = vunpack.c.l.bf16 %v7909_v4  ;;  %v6001_v55 = vunpack.c.l.bf16 %v7910_v13 }
 0x4d0   : > { %v5822_v18 = vadd.f32 %v5794_v14, %v5718_v43  ;;  %v5849_v61 = vmax.f32 %v5821_v37, 0.0  ;;  %v6004_v43 = vunpack.c.h.bf16 %v7909_v4 }
 0x4d1   : > { %v5852_v47 = vmax.f32 %v5824_v34, 0.0  ;;  %v6002_v34 = vunpack.c.h.bf16 %v7910_v13 }
 0x4d2   : > { %v5850_v28 = vmax.f32 %v5822_v18, 0.0  ;;  %v7349_v42 = vpop.f32.mrb[108].mxu0 }
 0x4d3   : > { %v6484_v54 = vpack.c.bf16 %v5852_v47, %v5851_v32  ;;  %v5739_v39 = vadd.f32 %v7349_v42, %v10032_v17  ;;  %v5730_v2 = vpop.f32.mrb[109].mxu0 }
 0x4d4   : > { %v6479_v11 = vpack.c.bf16 %v5850_v28, %v5849_v61  ;;  %v5731_v0 = vadd.f32 %v10032_v17, %v5730_v2  ;;  %v7350_v26 = vpop.f32.mrb[110].mxu0 }
 0x4d5   : > { %6524 = vst [vmem:[%s10046_s27 + $0x48] sm:$0xff] %v6484_v54   ;;  %v5827_v23 = vadd.f32 %v5799_v56, %v5739_v39  ;;  %v5742_v29 = vadd.f32 %v7350_v26, %v10032_v17  ;;  %v5733_v22 = vpop.f32.mrb[111].mxu0 }
 0x4d6   : > { %6523 = vst [vmem:[%s10046_s27 + $0x40] sm:$0xff] %v6479_v11   ;;  %v5825_v12 = vadd.f32 %v5797_v59, %v5731_v0  ;;  %v5734_v52 = vadd.f32 %v10032_v17, %v5733_v22 }
 0x4d7   : > { %v5828_v15 = vadd.f32 %v5800_v10, %v5742_v29  ;;  %v5855_v7 = vmax.f32 %v5827_v23, 0.0 }
 0x4d8   : > { %v5826_v53 = vadd.f32 %v5798_v62, %v5734_v52  ;;  %v5853_v45 = vmax.f32 %v5825_v12, 0.0 }
 0x4d9   : > { %v5856_v46 = vmax.f32 %v5828_v15, 0.0 }
 0x4da   : > { %v5854_v5 = vmax.f32 %v5826_v53, 0.0 }
 0x4db   : > { %v6494_v40 = vpack.c.bf16 %v5856_v46, %v5855_v7 }
 0x4dc   : > { %v6489_v31 = vpack.c.bf16 %v5854_v5, %v5853_v45 }
 0x4dd   : > { %6526 = vst [vmem:[%s10046_s27 + $0x58] sm:$0xff] %v6494_v40  }
 0x4de   : > { %6525 = vst [vmem:[%s10046_s27 + $0x50] sm:$0xff] %v6489_v31  }
 0x4e8   : > { %v7353_v49 = vpop.f32.mrb[112].mxu0 }
 0x4e9   : > { %v5755_v1 = vadd.f32 %v7353_v49, %v10032_v17  ;;  %v5746_v44 = vpop.f32.mrb[113].mxu0 }
 0x4ea   : > { %v5747_v27 = vadd.f32 %v10032_v17, %v5746_v44  ;;  %v7354_v6 = vpop.f32.mrb[114].mxu0 }
 0x4eb   : > { %v5831_v50 = vadd.f32 %v5803_v63, %v5755_v1  ;;  %v5758_v16 = vadd.f32 %v7354_v6, %v10032_v17  ;;  %v5749_v60 = vpop.f32.mrb[115].mxu0 }
 0x4ec   : > { %v5829_v38 = vadd.f32 %v5801_v51, %v5747_v27  ;;  %v5750_v24 = vadd.f32 %v10032_v17, %v5749_v60 }
 0x4ed   : > { %v5832_v8 = vadd.f32 %v5804_v33, %v5758_v16  ;;  %v5859_v36 = vmax.f32 %v5831_v50, 0.0 }
 0x4ee   : > { %v5830_v57 = vadd.f32 %v5802_v25, %v5750_v24  ;;  %v5857_v9 = vmax.f32 %v5829_v38, 0.0 }
 0x4ef   : > { %v5860_v3 = vmax.f32 %v5832_v8, 0.0 }
 0x4f0   : > { %v5858_v14 = vmax.f32 %v5830_v57, 0.0  ;;  %v7357_v19 = vpop.f32.mrb[116].mxu0 }
 0x4f1   : > { %v6504_v41 = vpack.c.bf16 %v5860_v3, %v5859_v36  ;;  %v5771_v21 = vadd.f32 %v7357_v19, %v10032_v17  ;;  %v5762_v37 = vpop.f32.mrb[117].mxu0 }
 0x4f2   : > { %v6499_v18 = vpack.c.bf16 %v5858_v14, %v5857_v9  ;;  %v5763_v32 = vadd.f32 %v10032_v17, %v5762_v37  ;;  %v7358_v47 = vpop.f32.mrb[118].mxu0 }
 0x4f3   : > { %6528 = vst [vmem:[%s10046_s27 + $0x68] sm:$0xff] %v6504_v41   ;;  %v6007_v58 = vadd.f32 %v6003_v35, %v5771_v21  ;;  %v5774_v56 = vadd.f32 %v7358_v47, %v10032_v17  ;;  %v5765_v61 = vpop.f32.mrb[119].mxu0 }
 0x4f4   : > { %6527 = vst [vmem:[%s10046_s27 + $0x60] sm:$0xff] %v6499_v18   ;;  %v6005_v28 = vadd.f32 %v6001_v55, %v5763_v32  ;;  %v5766_v42 = vadd.f32 %v10032_v17, %v5765_v61 }
 0x4f5   : > { %v6008_v48 = vadd.f32 %v6004_v43, %v5774_v56  ;;  %v6011_v54 = vmax.f32 %v6007_v58, 0.0 }
 0x4f6   : > { %v6006_v59 = vadd.f32 %v6002_v34, %v5766_v42  ;;  %v6009_v2 = vmax.f32 %v6005_v28, 0.0 }
 0x4f7   : > { %v6012_v39 = vmax.f32 %v6008_v48, 0.0 }
 0x4f8   : > { %v6010_v10 = vmax.f32 %v6006_v59, 0.0 }
 0x4f9   : > { %v6514_v11 = vpack.c.bf16 %v6012_v39, %v6011_v54 }
 0x4fa   : > { %v6509_v0 = vpack.c.bf16 %v6010_v10, %v6009_v2 }
 0x4fb   : > { %6530 = vst [vmem:[%s10046_s27 + $0x78] sm:$0xff] %v6514_v11  }
 0x4fc   : > { %6529 = vst [vmem:[%s10046_s27 + $0x70] sm:$0xff] %v6509_v0  }
 0x4fd   : > { %8065 = shalt.err (!%p8062_p6)
}
 0x4fe   : > { %s8066_s5 = scalar_lea.hbm %s10108_s19, 2048  ;;  %s8070_s27 = scalar_lea.hbm %s10489_s18, 8192 }
 0x4ff   : > { %p8067_p0 = scmp.ne.s32.totalorder %s10108_s19, %s8066_s5  ;;  %p8071_p2 = scmp.lt.u32.totalorder %s10108_s19, %s10489_s18 }
 0x500   : > { %p8072_p5 = scmp.lt.u32.totalorder %s8070_s27, %s8066_s5  ;;  %p8074_p12 = scmp.lt.u32.totalorder %s8066_s5, %s10108_s19 }
 0x501   : > { %p8068_p7 = pnand %p8067_p0, %p10490_p8 }
 0x502   : > { %p8073_p11 = por %p8072_p5, %p8071_p2 }
 0x503   : > { %p8069_p4 = pneg %p8068_p7 }
 0x504   : > { %p8075_p9 = por %p8074_p12, %p8073_p11 }
 0x506   : > { %p8076_p10 = pnand %p8075_p9, %p8069_p4 }
 0x508   : > { %8079 = shalt.err (!%p8076_p10)
}
 0x509   : > { %s8204_s3 = smov 64   ;;  %s8205_s16 = smov 4  }
 0x50a   : > { %7647 = dma.vmem_to_hbm [thread:$0]  (%p10490_p8), %s10103_s28, 2048, %s10108_s19, %s6034_s25, %s8204_s3, %s8204_s3, %s8205_s16  }
 0x50b PF: > { %s10491_s30 = sld [smem:[#allocation20_spill]]  ;;  %s10492_s9 = sld [smem:[#allocation32_spill]] }
 0x50c   : > { %p7669_p3 = scmp.ge.s32.totalorder %s8188_s15, 2 }
 0x511   : > { %s6064_s24 = sand.u32 1, %s10491_s30   ;;  %p10493_p1 = scmp.ne.s32.totalorder %s10492_s9, 0 }
 0x512   : > { %s6065_s8 = scalar_lea.sflag [#allocation6], %s6064_s24 }
 0x513   : > { %p7660_p13 = pnand %p7669_p3, %p10493_p1 }
 0x515   : > { %8141 = dma.done.wait (!%p7660_p13), %s6065_s8, 2048  }
 0x516   : > { %8143 = vsyncadd (!%p7660_p13), %s6065_s8, 4294965248  ;;  %s28_s15 = sadd.s32 1, %s8188_s15   ;;  %s10494_s27 = sld [smem:[#allocation19_spill]] }
 0x517   : > { %p25_p6 = scmp.ge.s32.totalorder %s28_s15, 6   ;;  %s10495_s7 = sld [smem:[#allocation29_spill]] }
 0x518   : > { %s10496_s30 = sld [smem:[#allocation21_spill]]  ;;  %s10497_s12 = sld [smem:[#allocation28_spill]] }
 0x519   : > { %s10498_s22 = sld [smem:[#allocation25_spill]]  ;;  %s10499_s19 = sld [smem:[#allocation26_spill]] }
 0x51a   : > { %s10500_s28 = smov %s8156_s29  ;;  %s10502_s9 = smov %s8168_s10 }
 0x51b   : > { %s10504_s11 = smov %s8180_s13  ;;  %27 = sbr.rel (!%p25_p6) target bundleno = 17 (0x11), region = 130 }
 0x51d   : > { %s10501_s29 = smov %s10495_s7 }
 0x51e   : > { %s10503_s10 = smov %s10497_s12  ;;  %s10505_s12 = smov %s8184_s14 }
 0x51f   : > { %s10506_s13 = smov %s10498_s22  ;;  %s10507_s14 = smov %s10499_s19 }
 0x522   :  { %6070 = vsyncpa [#allocation5], 1 }
 0x523   :  { %6072 = vsyncpa [#allocation5 + $0x1], 1 }
 0x524   :  { %6073 = vsyncpa [#allocation8], 1 }
 0x525   :  { %6075 = vsyncpa [#allocation8 + $0x1], 1 }
 0x526   :  { %6076 = vsyncpa [#allocation11], 1 }
 0x527   :  { %6077 = vsyncpa [#allocation6], 1 }
 0x528   :  { %6079 = vsyncpa [#allocation6 + $0x1], 1 }

// kernel: tpu_custom_call.1
= control target key start
LH: loop header
LB: loop body
LE: loop exit
PB: predicated region body
PF: predicated region fallthrough
CT: control target
= control target key end

     0   :  { %s10173_s0 = inlined_call_operand.hbm [shape: bf16[2,576,128], index: 0, kind: input, shape index: {}]   ;;  %s10174_s1 = inlined_call_operand.hbm [shape: bf16[2,576,128], index: 1, kind: input, shape index: {}]   ;;  %s10175_s2 = inlined_call_operand.hbm [shape: bf16[128,128], index: 2, kind: input, shape index: {}]   ;;  %s10176_s3 = inlined_call_operand.vmem [shape: f32[1,128], index: 3, kind: input, shape index: {}]   ;;  %s10177_s4 = inlined_call_operand.hbm [shape: bf16[9,128,128], index: 4, kind: input, shape index: {}]   ;;  %s10178_s5 = inlined_call_operand.vmem [shape: f32[1,128], index: 5, kind: input, shape index: {}]   ;;  %s10179_s6 = inlined_call_operand.hbm [shape: bf16[128,128], index: 6, kind: input, shape index: {}]   ;;  %s10180_s7 = inlined_call_operand.vmem [shape: f32[1,128], index: 7, kind: input, shape index: {}]   ;;  %s10181_s8 = inlined_call_operand.hbm [shape: bf16[2,512,128], index: 8, kind: output, shape index: {}]  }
   0x1   :  { %10242 = sst [smem:[#allocation41_spill]] %s10176_s3 }
   0x2   :  { %10243 = sst [smem:[#allocation42_spill]] %s10178_s5 }
   0x3   :  { %10244 = sst [smem:[#allocation43_spill]] %s10180_s7 }
   0x4   :  { %10245 = sst [smem:[#allocation44_spill]] %s10181_s8 }
   0x5   :  { %13 = vsyncpa [#allocation5], 0 }
   0x6   :  { %15 = vsyncpa [#allocation5 + $0x1], 0 }
   0x7   :  { %16 = vsyncpa [#allocation8], 0 }
   0x8   :  { %18 = vsyncpa [#allocation8 + $0x1], 0 }
   0x9   :  { %19 = vsyncpa [#allocation11], 0 }
   0xa   :  { %20 = vsyncpa [#allocation6], 0 }
   0xb   :  { %22 = vsyncpa [#allocation6 + $0x1], 0  ;;  %s8251_s27 = smov 0   ;;  %s8253_s28 = smov 0  }
   0xc   :  { %s8255_s29 = smov 0   ;;  %s8257_s30 = smov 0  }
   0xd   :  { %s8259_s9 = smov 0   ;;  %s8261_s10 = smov 0  }
   0xe   :  { %s8263_s11 = smov 0   ;;  %s8265_s12 = smov 0  }
   0xf   :  { %s8267_s13 = smov 0   ;;  %s8269_s14 = smov 0  }
  0x10   :  { %s8271_s15 = smov 0  }
  0x11 LB: > { %10246 = sst [smem:[#allocation19_spill]] %s8152_s28  ;;  %s8307_s16 = sadd.s32 4294967295, %s8188_s15   ;;  %s8188_s15 = sphi %s8271_s15, %s28_s15   ;;  %s8184_s14 = sphi %s8269_s14, %s10507_s14   ;;  %s8180_s13 = sphi %s8267_s13, %s10506_s13   ;;  %s8176_s12 = sphi %s8265_s12, %s10505_s12   ;;  %s8172_s11 = sphi %s8263_s11, %s10504_s11   ;;  %s8168_s10 = sphi %s8261_s10, %s10503_s10   ;;  %s8164_s9 = sphi %s8259_s9, %s10502_s9   ;;  %s8160_s30 = sphi %s8257_s30, %s10496_s30   ;;  %s8156_s29 = sphi %s8255_s29, %s10501_s29   ;;  %s8152_s28 = sphi %s8253_s28, %s10500_s28   ;;  %s8148_s27 = sphi %s8251_s27, %s10494_s27  }
  0x12   : > { %10247 = sst [smem:[#allocation20_spill]] %s8160_s30  ;;  %s37_s18 = sadd.s32 1, %s8180_s13 }
  0x13   : > { %10248 = sst [smem:[#allocation21_spill]] %s8164_s9  ;;  %s40_s19 = sadd.s32 1, %s8184_s14 }
  0x14   : > { %10249 = sst [smem:[#allocation22_spill]] %s8172_s11  ;;  %p38_p0 = scmp.ge.s32.totalorder %s37_s18, 2 }
  0x15   : > { %10250 = sst [smem:[#allocation23_spill]] %s8176_s12  ;;  %s49_s20 = sadd.s32 1, %s8168_s10 }
  0x16   : > { %10251 = sst [smem:[#allocation24_spill]] %s8307_s16  ;;  %p56_p1 = scmp.ne.s32.totalorder %s8168_s10, %s8164_s9 }
  0x17   : > { %p57_p2 = scmp.eq.s32.totalorder %s8188_s15, 0  ;;  %s10509_s18 = smov (%p38_p0, %s37_s18), 0 }
  0x18   : > { %10252 = sst [smem:[#allocation25_spill]] %s10509_s18  ;;  %s10511_s19 = smov (!%p38_p0, %s40_s19), %s8184_s14 }
  0x19   : > { %s45_s21 = ssub.s32 %s8180_s13, %s10509_s18  ;;  %p8326_p3 = por %p57_p2, %p56_p1 }
  0x1a   : > { %p42_p4 = scmp.ge.s32.totalorder %s10511_s19, 2  ;;  %p10184_p5 = scmp.ne.s32.totalorder %s8164_s9, %s8160_s30 }
  0x1b   : > { %s10253_s22 = scalar_select %p8326_p3, 1, 0 }
  0x1c   : > { %p10188_p6 = scmp.eq.s32.totalorder %s8307_s16, 0  ;;  %s6400_s23 = sshll.u32 %s8180_s13, 2 }
  0x1d   : > { %s10513_s19 = smov (%p42_p4, %s10511_s19), 0  ;;  %s6401_s25 = sadd.s32 4, %s6400_s23 }
  0x1e   : > { %10254 = sst [smem:[#allocation26_spill]] %s10513_s19  ;;  %p8341_p7 = por %p10188_p6, %p10184_p5 }
  0x1f   : > { %s44_s26 = ssub.s32 %s8184_s14, %s10513_s19  ;;  %s6402_s17 = sshll.u32 %s10509_s18, 2 }
  0x20   : > { %s10255_s24 = scalar_select %p8341_p7, 1, 0 }
  0x21   : > { %s46_s8 = sor.u32 %s45_s21, %s44_s26  ;;  %s6403_s12 = sadd.s32 4, %s6402_s17 }
  0x22   : > { %10256 = sst [smem:[#allocation27_spill]] %s10255_s24  ;;  %p47_p8 = scmp.eq.s32.totalorder %s46_s8, 0 }
  0x23   : > { %s77_s7 = ssub.s32 %s6401_s25, %s6403_s12  ;;  %s81_s3 = sadd.s32 1, %s8156_s29 }
  0x24   : > { %s78_s5 = sor.u32 %s77_s7, %s44_s26  ;;  %p88_p10 = scmp.ne.s32.totalorder %s8156_s29, %s8152_s28 }
  0x25   : > { %s8350_s11 = scalar_select %p47_p8, %s8168_s10, %s49_s20  }
  0x26   : > { %p79_p9 = scmp.eq.s32.totalorder %s78_s5, 0  ;;  %p94_p11 = scmp.ne.s32.totalorder %s8152_s28, %s8148_s27 }
  0x27   : > { %10257 = sst [smem:[#allocation28_spill]] %s8350_s11  ;;  %p246_p12 = scmp.eq.s32.totalorder %s8307_s16, 3 }
  0x28   : > { %s8358_s23 = scalar_select %p79_p9, %s8156_s29, %s81_s3  }
  0x29   : > { %p8362_p13 = por %p88_p10, %p57_p2  ;;  %p8368_p0 = por %p94_p11, %p10188_p6 }
  0x2a   : > { %10258 = sst [smem:[#allocation29_spill]] %s8358_s23  ;;  %p8375_p4 = por %p246_p12, %p56_p1 }
  0x2b   : > { %s10259_s21 = scalar_select %p8362_p13, 1, 0 }
  0x2c   : > { %s10260_s8 = scalar_select %p8368_p0, 1, 0 }
  0x2d   : > { %s10262_s7 = scalar_select %p8375_p4, 1, 0 }
  0x2e   : > { %10261 = sst [smem:[#allocation30_spill]] %s10260_s8  ;;  %s10264_s5 = sadd.s32 4294967294, %s8188_s15  }
  0x2f   : > { %10263 = sst [smem:[#allocation31_spill]] %s10262_s7  ;;  %p252_p8 = scmp.eq.s32.totalorder %s10264_s5, 3 }
  0x30   : > { %p6198_p5 = scmp.ge.s32.totalorder %s8188_s15, 1  ;;  %p259_p9 = scmp.lt.s32.totalorder %s8188_s15, 5 }
  0x31   : > { %p10265_p7 = scmp.ne.s32.totalorder %s8164_s9, %s8160_s30  ;;  %s8190_s12 = smov [#allocation10]  }
  0x32   : > { %p8390_p2 = pnand %p6198_p5, %p259_p9  ;;  %s287_s17 = sshll.u32 %s8190_s12, 4  ;;  %s288_s17 = int_to_ptr.vmem [resolvable:$true] %s287_s17 }
  0x33   : > { %p8386_p3 = por %p252_p8, %p10265_p7  ;;  %s7911_s5 = scalar_lea.hbm %s10177_s4, 9216 }
  0x34   : > { %s10268_s27 = scalar_select %p8390_p2, 1, 0 }
  0x35   : > { %s10266_s3 = scalar_select %p8386_p3, 1, 0 }
  0x36   : > { %p7649_p10 = pneg %p8390_p2  ;;  %p7912_p5 = scmp.ne.s32.totalorder %s10177_s4, %s7911_s5 }
  0x37   : > { %10267 = sst [smem:[#allocation32_spill]] %s10266_s3  ;;  %p7918_p8 = scmp.lt.u32.totalorder %s7911_s5, %s10177_s4 }
  0x38   : > { %p8398_p1 = pnand %p7649_p10, %p10188_p6 }
  0x3a   : > { %p8410_p7 = pneg %p8398_p1 }
  0x3c   : > { %p7914_p11 = pnand %p8410_p7, %p7912_p5 }
  0x3e   : > { %p7915_p12 = pneg %p7914_p11 }
  0x40   : > { %p7920_p9 = pnand %p7918_p8, %p7915_p12 }
  0x42   : > { %7923 = shalt.err (!%p7920_p9)
}
  0x43   : > { %s7924_s25 = scalar_lea.vmem %s288_s17, 9216  ;;  %p7932_p4 = scmp.lt.s32.totalorder %s288_s17, %s288_s17 }
  0x44   : > { %p7925_p10 = scmp.ne.s32.totalorder %s288_s17, %s7924_s25  ;;  %p7933_p0 = scmp.lt.s32.totalorder %s7924_s25, %s7924_s25 }
  0x46   : > { %p7927_p6 = pnand %p7925_p10, %p8410_p7  ;;  %p7934_p2 = por %p7933_p0, %p7932_p4 }
  0x48   : > { %p7928_p3 = pneg %p7927_p6 }
  0x4a   : > { %p7935_p13 = pnand %p7934_p2, %p7928_p3 }
  0x4c   : > { %7938 = shalt.err (!%p7935_p13)
}
  0x4d   : > { %s8191_s18 = smov 64   ;;  %s8192_s19 = smov 4  }
  0x4e   : > { %7655 = dma.hbm_to_vmem [thread:$0]  (!%p8398_p1), %s10177_s4, 9216, %s288_s17, [#allocation11], %s8191_s18, %s8191_s18, %s8192_s19  }
  0x4f   : > { %s8193_s5 = smov [#allocation9]   ;;  %s8194_s3 = smov [#allocation12]  }
  0x50   : > { %s271_s12 = sshll.u32 %s8193_s5, 4  ;;  %s303_s25 = sshll.u32 %s8194_s3, 4  ;;  %s272_s12 = int_to_ptr.vmem [resolvable:$true] %s271_s12  ;;  %s304_s25 = int_to_ptr.vmem [resolvable:$true] %s303_s25 }
  0x51   : > { %s7939_s8 = scalar_lea.hbm %s10175_s2, 1024 }
  0x52   : > { %p7940_p3 = scmp.ne.s32.totalorder %s10175_s2, %s7939_s8  ;;  %p7946_p0 = scmp.lt.u32.totalorder %s7939_s8, %s10175_s2 }
  0x54   : > { %p7942_p6 = pnand %p7940_p3, %p8410_p7 }
  0x56   : > { %p7943_p13 = pneg %p7942_p6 }
  0x58   : > { %p7948_p4 = pnand %p7946_p0, %p7943_p13 }
  0x5a   : > { %7951 = shalt.err (!%p7948_p4)
}
  0x5b   : > { %s7952_s17 = scalar_lea.vmem %s272_s12, 1024  ;;  %p7960_p12 = scmp.lt.s32.totalorder %s272_s12, %s272_s12 }
  0x5c   : > { %p7953_p2 = scmp.ne.s32.totalorder %s272_s12, %s7952_s17  ;;  %p7961_p8 = scmp.lt.s32.totalorder %s7952_s17, %s7952_s17 }
  0x5e   : > { %p7955_p5 = pnand %p7953_p2, %p8410_p7  ;;  %p7962_p9 = por %p7961_p8, %p7960_p12 }
  0x60   : > { %p7956_p11 = pneg %p7955_p5 }
  0x62   : > { %p7963_p10 = pnand %p7962_p9, %p7956_p11 }
  0x64   : > { %7966 = shalt.err (!%p7963_p10)
}
  0x65   : > { %7652 = dma.hbm_to_vmem [thread:$0]  (!%p8398_p1), %s10175_s2, 1024, %s272_s12, [#allocation8], %s8191_s18, %s8191_s18, %s8192_s19  }
  0x66   : > { %s7967_s24 = scalar_lea.hbm %s10179_s6, 1024 }
  0x67   : > { %p7968_p3 = scmp.ne.s32.totalorder %s10179_s6, %s7967_s24  ;;  %p7974_p0 = scmp.lt.u32.totalorder %s7967_s24, %s10179_s6 }
  0x69   : > { %p7970_p6 = pnand %p7968_p3, %p8410_p7 }
  0x6b   : > { %p7971_p13 = pneg %p7970_p6 }
  0x6d   : > { %p7976_p4 = pnand %p7974_p0, %p7971_p13 }
  0x6f   : > { %7979 = shalt.err (!%p7976_p4)
}
  0x70   : > { %s7980_s26 = scalar_lea.vmem %s304_s25, 1024  ;;  %p7988_p12 = scmp.lt.s32.totalorder %s304_s25, %s304_s25 }
  0x71   : > { %p7981_p2 = scmp.ne.s32.totalorder %s304_s25, %s7980_s26  ;;  %p7989_p8 = scmp.lt.s32.totalorder %s7980_s26, %s7980_s26 }
  0x73   : > { %p7983_p5 = pnand %p7981_p2, %p8410_p7  ;;  %p7990_p9 = por %p7989_p8, %p7988_p12 }
  0x75   : > { %p7984_p11 = pneg %p7983_p5 }
  0x77   : > { %p7991_p10 = pnand %p7990_p9, %p7984_p11 }
  0x79   : > { %7994 = shalt.err (!%p7991_p10)
}
  0x7a   : > { %7658 = dma.hbm_to_vmem [thread:$0]  (!%p8398_p1), %s10179_s6, 1024, %s304_s25, [#allocation11], %s8191_s18, %s8191_s18, %s8192_s19  }
  0x7b   : > { %p6202_p3 = scmp.ge.s32.totalorder %s8188_s15, 4 }
  0x7c   : > { %p10271_p7 = scmp.ne.s32.totalorder (!%p6202_p3), %s10253_s22, 0 }
  0x7d   : > { %316 = sbr.rel (%p6202_p3) target bundleno = 192 (0xc0), region = 40 }
  0x84   : > { %319 = sbr.rel (!%p10271_p7) target bundleno = 162 (0xa2), region = 44  ;;  %s320_s11 = sand.u32 (%p10271_p7), 1, %s8168_s10  }
  0x85   : > { %s6204_s17 = sshll.u32 (%p10271_p7), %s8180_s13, 5  ;;  %s6203_s28 = sshll.u32 (%p10271_p7), %s320_s11, 7 }
  0x86   : > { %s8476_s20 = scalar_lea.sflag (%p10271_p7), [#allocation5], %s320_s11  ;;  %s324_s30 = scalar_lea.vmem (%p10271_p7), [#allocation4], %s6203_s28 }
  0x87   : > { %s7631_s9 = smul.u32 (%p10271_p7), 72, %s8184_s14  ;;  %s339_s16 = sshll.u32 (%p10271_p7), %s324_s30, 4  ;;  %s8479_s16 = int_to_ptr.vmem [resolvable:$true] %s339_s16 }
  0x88   : > { %s7999_s23 = scalar_lea.hbm (%p10271_p7), %s10173_s0, 9216 }
  0x89   : > { %s335_s24 = sadd.s32 (%p10271_p7), %s7631_s9, %s6204_s17 }
  0x8a   : > { %s6207_s18 = sshll.u32 (%p10271_p7), %s335_s24, 6 }
  0x8b   : > { %s337_s22 = scalar_lea.hbm %s10173_s0, %s6207_s18 }
  0x8c   : > { %s7995_s8 = scalar_lea.hbm %s337_s22, 2048  ;;  %p8000_p6 = scmp.lt.u32.totalorder %s337_s22, %s10173_s0 }
  0x8d   : > { %p7996_p1 = scmp.ne.s32.totalorder %s337_s22, %s7995_s8  ;;  %p8001_p13 = scmp.lt.u32.totalorder %s7999_s23, %s7995_s8 }
  0x8e   : > { %p8003_p4 = scmp.lt.u32.totalorder %s7995_s8, %s337_s22 }
  0x8f   : > { %p8002_p0 = por %p8001_p13, %p8000_p6 }
  0x91   : > { %p8004_p2 = por %p8003_p4, %p8002_p0 }
  0x93   : > { %p8005_p5 = pnand %p8004_p2, %p7996_p1 }
  0x95   : > { %8008 = shalt.err (!%p8005_p5)
}
  0x96   : > { %s8009_s12 = scalar_lea.vmem %s8479_s16, 2048  ;;  %s8195_s11 = smov [#allocation4]  }
  0x97   : > { %p8010_p11 = scmp.ne.s32.totalorder %s8479_s16, %s8009_s12  ;;  %s8013_s17 = sshll.u32 %s8195_s11, 4  ;;  %s8014_s17 = int_to_ptr.vmem [resolvable:$false] %s8013_s17 }
  0x98   : > { %s8015_s28 = scalar_lea.vmem %s8014_s17, 4096  ;;  %p8016_p12 = scmp.lt.s32.totalorder %s8479_s16, %s8014_s17 }
  0x99   : > { %p8017_p8 = scmp.lt.s32.totalorder %s8015_s28, %s8009_s12 }
  0x9b   : > { %p8018_p9 = por %p8017_p8, %p8016_p12 }
  0x9d   : > { %p8019_p10 = pnand %p8018_p9, %p8010_p11 }
  0x9f   : > { %8022 = shalt.err (!%p8019_p10)
}
  0xa0   : > { %s8196_s30 = smov 64   ;;  %s8197_s9 = smov 4  }
  0xa1   : > { %345 = dma.hbm_to_vmem [thread:$0]  %s337_s22, 2048, %s8479_s16, %s8476_s20, %s8196_s30, %s8196_s30, %s8197_s9  }
  0xa2 PF: > { %s351_s24 = sand.u32 1, %s8156_s29   ;;  %s349_s18 = sand.u32 1, %s8188_s15  }
  0xa3   : > { %s6210_s19 = sshll.u32 %s351_s24, 5  ;;  %s6211_s25 = sshll.u32 %s8180_s13, 5 }
  0xa4   : > { %s6092_s8 = smul.u32 72, %s8184_s14  ;;  %s353_s7 = scalar_lea.vmem [#allocation7], %s6210_s19 }
  0xa5   : > { %s364_s3 = sshll.u32 %s353_s7, 4  ;;  %s8506_s22 = scalar_lea.sflag [#allocation8], %s349_s18  ;;  %s8499_s3 = int_to_ptr.vmem [resolvable:$true] %s364_s3 }
  0xa6   : > { %s6093_s23 = sadd.s32 %s6211_s25, %s6092_s8  ;;  %p10272_p7 = scmp.ne.s32.totalorder %s10259_s21, 0 }
  0xa7   : > { %s6212_s26 = sshll.u32 %s6093_s23, 6  ;;  %s8027_s30 = scalar_lea.hbm %s10174_s1, 9216 }
  0xa8   : > { %s6095_s20 = scalar_lea.hbm %s10174_s1, %s6212_s26 }
  0xa9   : > { %s8504_s16 = scalar_lea.hbm %s6095_s20, 2048  ;;  %s8051_s11 = scalar_lea.hbm %s6095_s20, 2560 }
  0xaa   : > { %p8024_p3 = scmp.ne.s32.totalorder %s8504_s16, %s8051_s11  ;;  %p8028_p13 = scmp.lt.u32.totalorder %s8504_s16, %s10174_s1 }
  0xab   : > { %p8029_p0 = scmp.lt.u32.totalorder %s8027_s30, %s8051_s11  ;;  %p8031_p2 = scmp.lt.u32.totalorder %s8051_s11, %s8504_s16 }
  0xac   : > { %p8025_p1 = pnand %p8024_p3, %p10272_p7 }
  0xad   : > { %p8030_p4 = por %p8029_p0, %p8028_p13 }
  0xae   : > { %p8026_p6 = pneg %p8025_p1 }
  0xaf   : > { %p8032_p5 = por %p8031_p2, %p8030_p4 }
  0xb1   : > { %p8033_p11 = pnand %p8032_p5, %p8026_p6 }
  0xb3   : > { %8036 = shalt.err (!%p8033_p11)
}
  0xb4   : > { %s8037_s18 = scalar_lea.vmem %s8499_s3, 512  ;;  %s8198_s19 = smov [#allocation7]  }
  0xb5   : > { %p8038_p12 = scmp.ne.s32.totalorder %s8499_s3, %s8037_s18  ;;  %s8041_s25 = sshll.u32 %s8198_s19, 4  ;;  %s8042_s25 = int_to_ptr.vmem [resolvable:$false] %s8041_s25 }
  0xb6   : > { %s8043_s8 = scalar_lea.vmem %s8042_s25, 1024  ;;  %p8044_p10 = scmp.lt.s32.totalorder %s8499_s3, %s8042_s25 }
  0xb7   : > { %p8039_p8 = pnand %p8038_p12, %p10272_p7  ;;  %p8045_p3 = scmp.lt.s32.totalorder %s8043_s8, %s8037_s18 }
  0xb9   : > { %p8040_p9 = pneg %p8039_p8  ;;  %p8046_p1 = por %p8045_p3, %p8044_p10 }
  0xbb   : > { %p8047_p13 = pnand %p8046_p1, %p8040_p9 }
  0xbd   : > { %8050 = shalt.err (!%p8047_p13)
}
  0xbe   : > { %s8199_s7 = smov 64   ;;  %s8200_s23 = smov 4  }
  0xbf   : > { %7638 = dma.hbm_to_vmem [thread:$0]  (%p10272_p7), %s8504_s16, 512, %s8499_s3, %s8506_s22, %s8199_s7, %s8199_s7, %s8200_s23  }
  0xc0 PF: > { %p10273_p6 = scmp.ne.s32.totalorder %s10268_s27, 0 }
  0xc2   : > { %376 = sbr.rel (%p10273_p6) target bundleno = 1291 (0x50b), region = 52 }
  0xc9   : > { %s10274_s26 = sld [smem:[#allocation21_spill]]  ;;  %s10275_s5 = sld [smem:[#allocation27_spill]] }
  0xcf   : > { %s8532_s12 = sand.u32 1, %s10274_s26   ;;  %p10276_p0 = scmp.ne.s32.totalorder %s10275_s5, 0 }
  0xd0   : > { %s6214_s20 = sshll.u32 %s8532_s12, 7  ;;  %s379_s11 = scalar_lea.sflag [#allocation5], %s8532_s12 }
  0xd1   : > { %s8538_s17 = scalar_lea.vmem [#allocation4], %s6214_s20 }
  0xd2   : > { %8125 = dma.done.wait (%p10276_p0), %s379_s11, 2048  }
  0xd3   : > { %8127 = vsyncadd (%p10276_p0), %s379_s11, 4294965248  ;;  %s10277_s21 = sld [smem:[#allocation24_spill]]  ;;  %s10278_s27 = sld [smem:[#allocation19_spill]] }
  0xd4   : > { %s10279_s3 = sld [smem:[#allocation30_spill]] }
  0xd9   : > { %s387_s16 = sand.u32 1, %s10277_s21   ;;  %s389_s22 = sand.u32 1, %s10278_s27  }
  0xda   : > { %s6215_s28 = sshll.u32 %s389_s22, 5  ;;  %s388_s30 = scalar_lea.sflag [#allocation8], %s387_s16 }
  0xdb   : > { %s8546_s9 = scalar_lea.vmem [#allocation7], %s6215_s28  ;;  %p10280_p7 = scmp.ne.s32.totalorder %s10279_s3, 0 }
  0xdd   : > { %8129 = dma.done.wait (%p10280_p7), %s388_s30, 512  }
  0xde   : > { %8131 = vsyncadd (%p10280_p7), %s388_s30, 4294966784  ;;  %p10281_p4 = scmp.eq.s32.totalorder %s10277_s21, 0 }
  0xe0   : > { %8133 = dma.done.wait (%p10281_p4), [#allocation8], 1024   ;;  %p10282_p2 = pmov %p10281_p4 }
  0xe2   : > { %8135 = vsyncadd (%p10282_p2), [#allocation8], 4294966272  ;;  %p10283_p5 = pmov %p10282_p2 }
  0xe3   : > { %p10284_p11 = pmov %p10282_p2 }
  0xe4   : > { %8137 = dma.done.wait (%p10283_p5), [#allocation11], 10240  }
  0xe5   : > { %8139 = vsyncadd (%p10284_p11), [#allocation11], 4294957056  ;;  %v7771_v0 = vld [vmem:[#allocation9] sm:$0xff]   ;;  %v7772_v1 = vld [vmem:[#allocation9 + $0x8] sm:$0xff]   ;;  %v8201_v38 = vmov 0   ;;  %s10285_s24 = sld [smem:[#allocation22_spill]]  ;;  %v491_v47 = vlaneseq }
  0xe6   : > { %6807 = vmatprep.subr.bf16.mxu0 %v7771_v0  ;;  %6855 = vmatprep.subr.bf16.mxu1 %v7771_v0  ;;  %v7773_v2 = vld [vmem:[#allocation9 + $0x10] sm:$0xff]   ;;  %v7774_v3 = vld [vmem:[#allocation9 + $0x18] sm:$0xff]   ;;  %v7779_v4 = vld [vmem:[%s8538_s17] sm:$0xff]   ;;  %1511 = vst [vmem:[#allocation2] sm:$0xff] %v8201_v38  ;;  %s10420_s8 = sld [smem:[#allocation41_spill]]  ;;  %s10477_s26 = sld [smem:[#allocation42_spill]] }
  0xe7   : > { %6808 = vmatpush3.bf16.msra.mxu0 %v7771_v0  ;;  %6856 = vmatpush3.bf16.msra.mxu1 %v7771_v0  ;;  %v7775_v5 = vld [vmem:[#allocation9 + $0x20] sm:$0xff]   ;;  %v7776_v7 = vld [vmem:[#allocation9 + $0x28] sm:$0xff]   ;;  %v7777_v8 = vld [vmem:[#allocation9 + $0x30] sm:$0xff]   ;;  %1512 = vst [vmem:[#allocation2 + $0xa8] sm:$0xff] %v8201_v38  ;;  %v8586_v48 = vshrl.u32 %v491_v47, 7  ;;  %s10486_s21 = sld [smem:[#allocation43_spill]] }
  0xe8   : > { %6809 = vmatprep.subr.bf16.mxu0 %v7772_v1  ;;  %6857 = vmatprep.subr.bf16.mxu1 %v7772_v1  ;;  %v483_v6 = vld [vmem:[%s8546_s9] sm:$0xff]   ;;  %v7778_v9 = vld [vmem:[#allocation9 + $0x38] sm:$0xff]   ;;  %v485_v10 = vld [vmem:[%s8546_s9 + $0x8] sm:$0xff]   ;;  %s10046_s27 = scalar_lea.vmem [#allocation13], %s6214_s20  ;;  %s10487_s20 = sld [smem:[#allocation23_spill]] }
  0xe9   : > { %6823 = vmatprep.mubr.bf16.mxu0 %v7779_v4  ;;  %6871 = vmatprep.mubr.bf16.mxu1 %v483_v6  ;;  %v455_v11 = vld [vmem:[%s8538_s17 + $0x10] sm:$0xff]   ;;  %v7799_v12 = vld [vmem:[#allocation10] sm:$0xff]   ;;  %v7780_v13 = vld [vmem:[%s8538_s17 + $0x8] sm:$0xff]   ;;  %v494_v49 = vadd.s32 16, %v8586_v48  ;;  %v493_v50 = vadd.s32 8, %v8586_v48  ;;  %v498_v52 = vadd.s32 48, %v8586_v48 }
  0xea   : > { %v7797_v14 = vld [vmem:[%s8546_s9 + $0x10] sm:$0xff]   ;;  %v457_v15 = vld [vmem:[%s8538_s17 + $0x18] sm:$0xff]   ;;  %v459_v16 = vld [vmem:[%s8538_s17 + $0x20] sm:$0xff]   ;;  %v532_v54 = vshra.s32 %v8586_v48, 5  ;;  %v496_v56 = vadd.s32 32, %v8586_v48  ;;  %v497_v60 = vadd.s32 40, %v8586_v48 }
  0xeb   : > { %6810 = vmatpush3.bf16.msra.mxu0 %v7772_v1  ;;  %6858 = vmatpush3.bf16.msra.mxu1 %v7772_v1  ;;  %v7798_v17 = vld [vmem:[%s8546_s9 + $0x18] sm:$0xff]   ;;  %v461_v18 = vld [vmem:[%s8538_s17 + $0x28] sm:$0xff]   ;;  %v463_v19 = vld [vmem:[%s8538_s17 + $0x30] sm:$0xff]   ;;  %s6220_s18 = sshll.u32 %s10285_s24, 3  ;;  %v534_v51 = vshra.s32 %v494_v49, 5  ;;  %v533_v55 = vshra.s32 %v493_v50, 5 }
  0xec   : > { %6811 = vmatprep.subr.bf16.mxu0 %v7773_v2  ;;  %6859 = vmatprep.subr.bf16.mxu1 %v7773_v2  ;;  %v465_v20 = vld [vmem:[%s8538_s17 + $0x38] sm:$0xff]   ;;  %v467_v21 = vld [vmem:[%s8538_s17 + $0x40] sm:$0xff]   ;;  %v469_v22 = vld [vmem:[%s8538_s17 + $0x48] sm:$0xff]   ;;  %v8592_v53 = vstv %s6220_s18  ;;  %v616_v58 = vand.u32 31, %v494_v49  ;;  %v538_v59 = vshra.s32 %v498_v52, 5  ;;  %v502_v62 = vadd.s32 80, %v8586_v48 }
  0xed   : > { %v471_v23 = vld [vmem:[%s8538_s17 + $0x50] sm:$0xff]   ;;  %v473_v24 = vld [vmem:[%s8538_s17 + $0x58] sm:$0xff]   ;;  %v475_v25 = vld [vmem:[%s8538_s17 + $0x60] sm:$0xff]   ;;  %v576_v57 = vadd.s32 %v8592_v53, %v534_v51  ;;  %v574_v61 = vadd.s32 %v8592_v53, %v532_v54  ;;  %v614_v63 = vand.u32 31, %v8586_v48  ;;  %v575_v0 = vadd.s32 %v8592_v53, %v533_v55  ;;  %s10488_s22 = sld [smem:[#allocation31_spill]]  ;;  %s6049_s28 = sshll.u32 %s10046_s27, 4  ;;  %s10103_s28 = int_to_ptr.vmem [resolvable:$true] %s6049_s28 }
  0xee   : > { %v477_v26 = vld [vmem:[%s8538_s17 + $0x68] sm:$0xff]   ;;  %v479_v27 = vld [vmem:[%s8538_s17 + $0x70] sm:$0xff]   ;;  %v481_v28 = vld [vmem:[%s8538_s17 + $0x78] sm:$0xff]   ;;  %v536_v1 = vshra.s32 %v496_v56, 5  ;;  %vm8603_vm1 = vcmp.le.s32.totalorder %v616_v58, 16  ;;  %v580_v4 = vadd.s32 %v8592_v53, %v538_v59  ;;  %v542_v6 = vshra.s32 %v502_v62, 5 }
  0xef   : > { %6812 = vmatpush3.bf16.msra.mxu0 %v7773_v2  ;;  %6860 = vmatpush3.bf16.msra.mxu1 %v7773_v2  ;;  %v7800_v29 = vld [vmem:[#allocation10 + $0x8] sm:$0xff]   ;;  %v7801_v30 = vld [vmem:[#allocation10 + $0xc0] sm:$0xff]   ;;  %v7802_v31 = vld [vmem:[#allocation10 + $0x10] sm:$0xff]   ;;  %v500_v2 = vadd.s32 64, %v8586_v48  ;;  %vm656_vm0 = vcmp.ge.s32.totalorder %v576_v57, 1  ;;  %vm696_vm2 = vcmp.le.s32.totalorder %v576_v57, 16 }
  0xf0   : > { %6813 = vmatprep.subr.bf16.mxu0 %v7774_v3  ;;  %6861 = vmatprep.subr.bf16.mxu1 %v7774_v3  ;;  %v7803_v32 = vld [vmem:[#allocation10 + $0xc8] sm:$0xff]   ;;  %v7804_v33 = vld [vmem:[#allocation10 + $0x18] sm:$0xff]   ;;  %v7805_v34 = vld [vmem:[#allocation10 + $0xd0] sm:$0xff]   ;;  %vm654_vm3 = vcmp.ge.s32.totalorder %v574_v61, 1  ;;  %vm694_vm4 = vcmp.le.s32.totalorder %v574_v61, 16  ;;  %vm8609_vm5 = vcmp.ge.s32.totalorder %v614_v63, 1 }
  0xf1   : > { %v7806_v35 = vld [vmem:[#allocation10 + $0x20] sm:$0xff]   ;;  %v7807_v36 = vld [vmem:[#allocation10 + $0xd8] sm:$0xff]   ;;  %v7808_v37 = vld [vmem:[#allocation10 + $0x28] sm:$0xff]   ;;  %vm695_vm7 = vcmp.le.s32.totalorder %v575_v0, 16  ;;  %vm660_vm8 = vcmp.ge.s32.totalorder %v580_v4, 1  ;;  %vm700_vm9 = vcmp.le.s32.totalorder %v580_v4, 16 }
  0xf2   : > { %v7809_v39 = vld [vmem:[#allocation10 + $0xe0] sm:$0xff]   ;;  %v7810_v40 = vld [vmem:[#allocation10 + $0x30] sm:$0xff]   ;;  %v7811_v41 = vld [vmem:[#allocation10 + $0xe8] sm:$0xff]   ;;  %v8671_v38 = vadd.s32 176, %v8586_v48  ;;  %v509_v47 = vadd.s32 136, %v8586_v48  ;;  %v10311_v51 = vmov 0 }
  0xf3   : > { %6814 = vmatpush3.bf16.msra.mxu0 %v7774_v3  ;;  %6862 = vmatpush3.bf16.msra.mxu1 %v7774_v3  ;;  %v7812_v42 = vld [vmem:[#allocation10 + $0x38] sm:$0xff]   ;;  %v7813_v43 = vld [vmem:[#allocation10 + $0xf0] sm:$0xff]   ;;  %v8580_v45 = vld [vmem:[#allocation10 + $0x100] sm:$0xff]   ;;  %v10286_v3 = vmov 0  ;;  %v513_v55 = vadd.s32 168, %v8586_v48  ;;  %v8721_v58 = vadd.s32 256, %v8586_v48 }
  0xf4   : > { %6815 = vmatprep.subr.bf16.mxu0 %v7775_v5  ;;  %6863 = vmatprep.subr.bf16.mxu1 %v7775_v5  ;;  %v7814_v44 = vld [vmem:[#allocation10 + $0xf8] sm:$0xff]   ;;  %v8583_v46 = vld [vmem:[#allocation10 + $0x40] sm:$0xff]   ;;  %v10287_v3 = vsel %vm8603_vm1, 4294967295, %v10286_v3  ;;  %vm8630_vm11 = vmand %vm656_vm0, %vm696_vm2  ;;  %v554_v54 = vshra.s32 %v8671_v38, 5  ;;  %v10319_v59 = vmov 0  ;;  %v8918_v50 = vadd.s32 192, %v8586_v48 }
  0xf5   : > { %vm8645_vm0 = vmand %vm654_vm3, %vm694_vm4  ;;  %s6396_s3 = sshll.u32 %s10487_s20, 6  ;;  %s10489_s18 = sld [smem:[#allocation44_spill]] }
  0xf6   : > { %vm8665_vm3 = vmand %vm660_vm8, %vm700_vm9  ;;  %vm10304_vm8 = vcmp.ge.s32.totalorder %v575_v0, 1  ;;  %v8740_v0 = vadd.s32 272, %v8586_v48  ;;  %v596_v4 = vadd.s32 %v8592_v53, %v554_v54  ;;  %s6034_s25 = scalar_lea.sflag [#allocation6], %s8532_s12  ;;  %p10490_p8 = scmp.ne.s32.totalorder %s10488_s22, 0 }
  0xf7   : > { %6816 = vmatpush3.bf16.msra.mxu0 %v7775_v5  ;;  %6864 = vmatpush3.bf16.msra.mxu1 %v7775_v5  ;;  %v537_v5 = vshra.s32 %v497_v60, 5  ;;  %vm8687_vm9 = vmand %vm10304_vm8, %vm695_vm7  ;;  %v10321_v60 = vmov 0  ;;  %s8203_s7 = smov [#allocation13]  }
  0xf8   : > { %6817 = vmatprep.subr.bf16.mxu0 %v7776_v7  ;;  %6865 = vmatprep.subr.bf16.mxu1 %v7776_v7  ;;  %s8056_s23 = sshll.u32 %s8203_s7, 4  ;;  %s8057_s23 = int_to_ptr.vmem [resolvable:$false] %s8056_s23 }
  0xf9   : > { %p8059_p3 = scmp.lt.s32.totalorder %s10103_s28, %s8057_s23 }
  0xfb   : > { %6818 = vmatpush3.bf16.msra.mxu0 %v7776_v7  ;;  %6866 = vmatpush3.bf16.msra.mxu1 %v7776_v7  ;;  %v501_v7 = vadd.s32 72, %v8586_v48 }
  0xfc   : > { %6819 = vmatprep.subr.bf16.mxu0 %v7777_v8  ;;  %6867 = vmatprep.subr.bf16.mxu1 %v7777_v8 }
  0xff   : > { %6820 = vmatpush3.bf16.msra.mxu0 %v7777_v8  ;;  %6868 = vmatpush3.bf16.msra.mxu1 %v7777_v8  ;;  %v10288_v8 = vmov 0 }
 0x100   : > { %6821 = vmatprep.subr.bf16.mxu0 %v7778_v9  ;;  %6869 = vmatprep.subr.bf16.mxu1 %v7778_v9  ;;  %v10289_v8 = vsel %vm8609_vm5, 4294967295, %v10288_v8 }
 0x103   : > { %6822 = vmatpush3.bf16.msra.mxu0 %v7778_v9  ;;  %6870 = vmatpush3.bf16.msra.mxu1 %v7778_v9  ;;  %v620_v9 = vand.u32 31, %v498_v52 }
 0x104   : > { %6879 = vmatprep.subr.bf16.mxu0 %v7799_v12  ;;  %7023 = vmatprep.subr.bf16.mxu1 %v7801_v30 }
 0x105   : > { %vm8621_vm10 = vcmp.le.s32.totalorder %v620_v9, 16  ;;  %v564_v9 = vshra.s32 %v8721_v58, 5 }
 0x106   : > { %6824 = vmatmul.mubr.bf16.vlgmr.msra.gmra.mrb[0].mxu0 %v7780_v13  ;;  %6872 = vmatmul.mubr.bf16.vlgmr.msra.gmra.mrb[0].mxu1 %v485_v10  ;;  %v506_v10 = vadd.s32 112, %v8586_v48  ;;  %v618_v13 = vand.u32 31, %v496_v56  ;;  %v10315_v56 = vmov 0 }
 0x107   : > { %6827 = vmatprep.mubr.bf16.mxu0 %v455_v11  ;;  %6875 = vmatprep.mubr.bf16.mxu1 %v7797_v14  ;;  %v578_v11 = vadd.s32 %v8592_v53, %v536_v1  ;;  %v8616_v14 = vadd.s32 %v8592_v53, %v537_v5  ;;  %v10325_v1 = vmov 0  ;;  %v553_v5 = vshra.s32 %v513_v55, 5 }
 0x108   : > { %6880 = vmatpush3.bf16.msra.mxu0 %v7799_v12  ;;  %7024 = vmatpush3.bf16.msra.mxu1 %v7801_v30  ;;  %v540_v12 = vshra.s32 %v500_v2, 5  ;;  %vm8638_vm14 = vcmp.ge.s32.totalorder %v618_v13, 1 }
 0x109   : > { %6881 = vmatprep.subr.bf16.mxu0 %v7800_v29  ;;  %7025 = vmatprep.subr.bf16.mxu1 %v7803_v32  ;;  %vm10307_vm7 = vcmp.le.s32.totalorder %v578_v11, 16  ;;  %vm10308_vm8 = vcmp.ge.s32.totalorder %v578_v11, 1  ;;  %v8202_v11 = vmov 0.0  }
 0x10c   : > { %6882 = vmatpush3.bf16.msra.mxu0 %v7800_v29  ;;  %7026 = vmatpush3.bf16.msra.mxu1 %v7803_v32  ;;  %v10296_v29 = vmov 0  ;;  %v10298_v32 = vmov 0 }
 0x10d   : > { %6883 = vmatprep.subr.bf16.mxu0 %v7802_v31  ;;  %7027 = vmatprep.subr.bf16.mxu1 %v7805_v34  ;;  %v10297_v29 = vsel %vm8645_vm0, 4294967295, %v10296_v29 }
 0x10e   : > { %6828 = vmatmul.mubr.bf16.gmra.mrb[4].mxu0 %v457_v15  ;;  %6876 = vmatmul.mubr.bf16.gmra.mrb[4].mxu1 %v7798_v17  ;;  %v504_v15 = vadd.s32 96, %v8586_v48  ;;  %v541_v17 = vshra.s32 %v501_v7, 5 }
 0x10f   : > { %6831 = vmatprep.mubr.bf16.mxu0 %v459_v16  ;;  %v584_v16 = vadd.s32 %v8592_v53, %v542_v6 }
 0x110   : > { %6884 = vmatpush3.bf16.msra.mxu0 %v7802_v31  ;;  %7028 = vmatpush3.bf16.msra.mxu1 %v7805_v34  ;;  %v8651_v30 = vadd.s32 %v8592_v53, %v541_v17 }
 0x111   : > { %6885 = vmatprep.subr.bf16.mxu0 %v7804_v33  ;;  %7029 = vmatprep.subr.bf16.mxu1 %v7807_v36  ;;  %vm10313_vm15 = vcmp.le.s32.totalorder %v584_v16, 16  ;;  %vm10314_vm2 = vcmp.ge.s32.totalorder %v584_v16, 1 }
 0x112   : > { %vm8715_vm13 = vmand %vm10314_vm2, %vm10313_vm15 }
 0x113   : > { %v10316_v56 = vsel %vm8715_vm13, 4294967295, %v10315_v56 }
 0x114   : > { %6886 = vmatpush3.bf16.msra.mxu0 %v7804_v33  ;;  %7030 = vmatpush3.bf16.msra.mxu1 %v7807_v36  ;;  %v628_v36 = vand.u32 31, %v506_v10 }
 0x115   : > { %6887 = vmatprep.subr.bf16.mxu0 %v7806_v35  ;;  %7031 = vmatprep.subr.bf16.mxu1 %v7809_v39 }
 0x116   : > { %6832 = vmatmul.mubr.bf16.gmra.mrb[8].mxu0 %v461_v18  ;;  %v505_v18 = vadd.s32 104, %v8586_v48  ;;  %vm8706_vm4 = vcmp.le.s32.totalorder %v628_v36, 16  ;;  %v10374_v36 = vmov 0 }
 0x117   : > { %6835 = vmatprep.mubr.bf16.mxu0 %v463_v19  ;;  %v10290_v19 = vmov 0  ;;  %v10312_v51 = vsel %vm8706_vm4, 4294967295, %v10311_v51 }
 0x118   : > { %6888 = vmatpush3.bf16.msra.mxu0 %v7806_v35  ;;  %7032 = vmatpush3.bf16.msra.mxu1 %v7809_v39  ;;  %v10291_v19 = vsel %vm8621_vm10, 4294967295, %v10290_v19  ;;  %v545_v31 = vshra.s32 %v505_v18, 5  ;;  %v10300_v35 = vmov 0  ;;  %v10302_v39 = vmov 0 }
 0x119   : > { %6889 = vmatprep.subr.bf16.mxu0 %v7808_v37  ;;  %7033 = vmatprep.subr.bf16.mxu1 %v7811_v41  ;;  %v10301_v35 = vsel %vm8665_vm3, 4294967295, %v10300_v35  ;;  %v10355_v18 = vmov 0 }
 0x11c   : > { %6890 = vmatpush3.bf16.msra.mxu0 %v7808_v37  ;;  %7034 = vmatpush3.bf16.msra.mxu1 %v7811_v41  ;;  %v8683_v41 = vadd.s32 160, %v8586_v48 }
 0x11d   : > { %6891 = vmatprep.subr.bf16.mxu0 %v7810_v40  ;;  %7035 = vmatprep.subr.bf16.mxu1 %v7813_v43 }
 0x11e   : > { %6836 = vmatmul.mubr.bf16.gmra.mrb[12].mxu0 %v465_v20  ;;  %v624_v20 = vand.u32 31, %v502_v62  ;;  %v552_v57 = vshra.s32 %v8683_v41, 5  ;;  %v549_v62 = vshra.s32 %v509_v47, 5 }
 0x11f   : > { %6839 = vmatprep.mubr.bf16.mxu0 %v467_v21  ;;  %v546_v21 = vshra.s32 %v506_v10, 5  ;;  %v525_v10 = vadd.s32 264, %v8586_v48 }
 0x120   : > { %6892 = vmatpush3.bf16.msra.mxu0 %v7810_v40  ;;  %7036 = vmatpush3.bf16.msra.mxu1 %v7813_v43  ;;  %vm8657_vm6 = vcmp.le.s32.totalorder %v624_v20, 16  ;;  %v626_v43 = vand.u32 31, %v504_v15  ;;  %v594_v7 = vadd.s32 %v8592_v53, %v552_v57  ;;  %v636_v20 = vand.u32 31, %v8671_v38 }
 0x121   : > { %6893 = vmatprep.subr.bf16.mxu0 %v7812_v42  ;;  %7037 = vmatprep.subr.bf16.mxu1 %v7814_v44  ;;  %v10299_v32 = vsel %vm8657_vm6, 4294967295, %v10298_v32  ;;  %v588_v33 = vadd.s32 %v8592_v53, %v546_v21  ;;  %v566_v21 = vshra.s32 %v8740_v0, 5  ;;  %v646_v38 = vand.u32 31, %v8721_v58 }
 0x122   : > { %vm8729_vm4 = vcmp.ge.s32.totalorder %v626_v43, 1  ;;  %v648_v43 = vand.u32 31, %v8740_v0 }
 0x123   : > { %v10322_v60 = vsel %vm8729_vm4, 4294967295, %v10321_v60  ;;  %vm10327_vm4 = vcmp.le.s32.totalorder %v588_v33, 16  ;;  %vm10328_vm0 = vcmp.ge.s32.totalorder %v588_v33, 1  ;;  %v10370_v33 = vmov 0 }
 0x124   : > { %6894 = vmatpush3.bf16.msra.mxu0 %v7812_v42  ;;  %7038 = vmatpush3.bf16.msra.mxu1 %v7814_v44  ;;  %v10305_v42 = vmov 0  ;;  %v587_v44 = vadd.s32 %v8592_v53, %v545_v31  ;;  %vm8752_vm1 = vmand %vm10328_vm0, %vm10327_vm4 }
 0x125   : > { %7071 = vmatprep.subr.bf16.mxu1 %v8580_v45  ;;  %6927 = vmatprep.subr.bf16.mxu0 %v8583_v46  ;;  %v10306_v42 = vsel %vm8687_vm9, 4294967295, %v10305_v42  ;;  %vm8702_vm9 = vmand %vm10308_vm8, %vm10307_vm7  ;;  %vm10335_vm8 = vnez %v10287_v3  ;;  %vm10340_vm7 = vcmp.le.s32.totalorder %v8651_v30, 16  ;;  %v10346_v3 = vmov 0 }
 0x126   : > { %6840 = vmatmul.mubr.bf16.gmra.mrb[16].mxu0 %v469_v22  ;;  %v8626_v22 = vadd.s32 144, %v8586_v48 }
 0x127   : > { %6843 = vmatprep.mubr.bf16.mxu0 %v471_v23  ;;  %v1553_v23 = vld [vmem:[#allocation2] sm:$0x80] }
 0x128   : > { %v550_v34 = vshra.s32 %v8626_v22, 5  ;;  %v632_v61 = vand.u32 31, %v8626_v22  ;;  %v10361_v22 = vmov 0  ;;  %v1588_v31 = vshrl.u32 %v1553_v23, 16 }
 0x12a   : > { %v592_v49 = vadd.s32 %v8592_v53, %v550_v34  ;;  %v10372_v34 = vmov 0  ;;  %v8936_v55 = vrot.slane %v1588_v31, 7 }
 0x12c   : > { %vm10344_vm6 = vcmp.le.s32.totalorder %v592_v49, 16 }
 0x12e   : > { %6844 = vmatmul.mubr.bf16.gmra.mrb[20].mxu0 %v473_v24  ;;  %v582_v24 = vadd.s32 %v8592_v53, %v540_v12 }
 0x12f   : > { %6847 = vmatprep.mubr.bf16.mxu0 %v475_v25  ;;  %v8636_v25 = vadd.s32 128, %v8586_v48 }
 0x130   : > { %vm10317_vm5 = vcmp.le.s32.totalorder %v582_v24, 16  ;;  %vm10318_vm10 = vcmp.ge.s32.totalorder %v582_v24, 1  ;;  %v634_v24 = vand.u32 31, %v8683_v41 }
 0x131   : > { %v548_v37 = vshra.s32 %v8636_v25, 5  ;;  %vm8725_vm3 = vmand %vm10318_vm10, %vm10317_vm5  ;;  %v630_v63 = vand.u32 31, %v8636_v25  ;;  %vm10323_vm5 = vcmp.le.s32.totalorder %v8616_v14, 16  ;;  %vm10324_vm10 = vcmp.ge.s32.totalorder %v8616_v14, 1 }
 0x132   : > { %v10320_v59 = vsel %vm8725_vm3, 4294967295, %v10319_v59  ;;  %vm8746_vm15 = vmand %vm10324_vm10, %vm10323_vm5  ;;  %v10342_v14 = vmov 0  ;;  %v595_v25 = vadd.s32 %v8592_v53, %v553_v5 }
 0x133   : > { %v590_v52 = vadd.s32 %v8592_v53, %v548_v37  ;;  %v10326_v1 = vsel %vm8746_vm15, 4294967295, %v10325_v1  ;;  %vm10336_vm5 = vmand %vm8630_vm11, %vm10335_vm8  ;;  %vm10345_vm11 = vcmp.ge.s32.totalorder %v592_v49, 1  ;;  %v8890_v37 = vadd.s32 208, %v8586_v48 }
 0x134   : > { %v8780_v12 = vsel %vm10336_vm5, 1.0, %v8202_v11  ;;  %vm8800_vm8 = vmand %vm10345_vm11, %vm10344_vm6  ;;  %vm8804_vm5 = vcmp.le.s32.totalorder %v632_v61, 16  ;;  %vm8820_vm6 = vcmp.ge.s32.totalorder %v630_v63, 1 }
 0x135   : > { %v10347_v3 = vsel %vm8800_vm8, 4294967295, %v10346_v3  ;;  %v10356_v18 = vsel %vm8820_vm6, 4294967295, %v10355_v18 }
 0x136   : > { %6848 = vmatmul.mubr.bf16.gmra.mrb[24].mxu0 %v477_v26  ;;  %v10376_v26 = vmov 0 }
 0x137   : > { %6851 = vmatprep.mubr.bf16.mxu0 %v479_v27  ;;  %v622_v27 = vand.u32 31, %v500_v2  ;;  %v556_v2 = vshra.s32 %v8918_v50, 5 }
 0x139   : > { %vm8677_vm12 = vcmp.ge.s32.totalorder %v622_v27, 1  ;;  %v606_v27 = vadd.s32 %v8592_v53, %v564_v9 }
 0x13a   : > { %v10303_v39 = vsel %vm8677_vm12, 4294967295, %v10302_v39  ;;  %vm10341_vm12 = vcmp.ge.s32.totalorder %v8651_v30, 1  ;;  %v8860_v30 = vadd.s32 288, %v8586_v48 }
 0x13b   : > { %vm8794_vm3 = vmand %vm10341_vm12, %vm10340_vm7  ;;  %vm10351_vm12 = vcmp.le.s32.totalorder %v590_v52, 16  ;;  %vm10352_vm7 = vcmp.ge.s32.totalorder %v590_v52, 1 }
 0x13c   : > { %v10343_v14 = vsel %vm8794_vm3, 4294967295, %v10342_v14  ;;  %vm10360_vm3 = vcmp.ge.s32.totalorder %v587_v44, 1  ;;  %v568_v47 = vshra.s32 %v8860_v30, 5  ;;  %v650_v9 = vand.u32 31, %v8860_v30 }
 0x13e   : > { %6852 = vmatmul.mubr.bf16.gmra.mrb[28].mxu0 %v481_v28  ;;  %v544_v28 = vshra.s32 %v504_v15, 5  ;;  %v10348_v15 = vmov 0  ;;  %v610_v0 = vadd.s32 %v8592_v53, %v568_v47 }
 0x13f   : > { %v10349_v15 = vsel %vm8804_vm5, 4294967295, %v10348_v15  ;;  %vm10366_vm5 = vmmov %vm8638_vm14  ;;  %vm8876_vm14 = vcmp.le.s32.totalorder %v636_v20, 16  ;;  %v640_v20 = vand.u32 31, %v8890_v37 }
 0x140   : > { %v586_v40 = vadd.s32 %v8592_v53, %v544_v28  ;;  %v565_v28 = vshra.s32 %v525_v10, 5  ;;  %vm10367_vm8 = vmand %vm8702_vm9, %vm10366_vm5  ;;  %v10373_v34 = vsel %vm8876_vm14, 4294967295, %v10372_v34  ;;  %vm8885_vm9 = vcmp.ge.s32.totalorder %v634_v24, 1 }
 0x141   : > { %v10377_v26 = vsel %vm8885_vm9, 4294967295, %v10376_v26  ;;  %vm10385_vm14 = vnez %v10303_v39  ;;  %vm10388_vm9 = vcmp.ge.s32.totalorder %v606_v27, 1 }
 0x142   : > { %vm10331_vm10 = vcmp.le.s32.totalorder %v586_v40, 16  ;;  %vm10332_vm0 = vcmp.ge.s32.totalorder %v586_v40, 1  ;;  %v10378_v40 = vmov 0  ;;  %v607_v41 = vadd.s32 %v8592_v53, %v565_v28 }
 0x143   : > { %vm8767_vm4 = vmand %vm10332_vm0, %vm10331_vm10  ;;  %vm10337_vm10 = vnez %v10297_v29  ;;  %vm10338_vm0 = vnez %v10289_v8  ;;  %v591_v8 = vadd.s32 %v8592_v53, %v549_v62 }
 0x144   : > { %vm10339_vm2 = vmand %vm10337_vm10, %vm10338_vm0  ;;  %vm674_vm0 = vcmp.ge.s32.totalorder %v594_v7, 1 }
 0x145   : > { %v8788_v13 = vsel %vm10339_vm2, 1.0, %v8202_v11  ;;  %vm10350_vm2 = vnez %v10306_v42  ;;  %vm8816_vm10 = vmand %vm10352_vm7, %vm10351_vm12  ;;  %vm10359_vm7 = vcmp.le.s32.totalorder %v587_v44, 16  ;;  %vm714_vm12 = vcmp.le.s32.totalorder %v594_v7, 16 }
 0x146   : > { %v8812_v16 = vsel %vm10350_vm2, 1.0, %v8202_v11  ;;  %vm10358_vm2 = vnez %v10322_v60  ;;  %vm8836_vm13 = vmand %vm10360_vm3, %vm10359_vm7  ;;  %vm10363_vm3 = vnez %v10301_v35  ;;  %vm10364_vm7 = vnez %v10291_v19 }
 0x147   : > { %v10362_v22 = vsel %vm8836_vm13, 4294967295, %v10361_v22  ;;  %vm10365_vm15 = vmand %vm10363_vm3, %vm10364_vm7  ;;  %vm671_vm13 = vcmp.ge.s32.totalorder %v591_v8, 1  ;;  %vm711_vm11 = vcmp.le.s32.totalorder %v591_v8, 16  ;;  %v8868_v19 = vsel %vm10367_vm8, 1.0, %v8202_v11  ;;  %v9053_v8 = vld [vmem:[%s10420_s8] ss:$0 sm:$0xff] }
 0x148   : > { %v8853_v29 = vsel %vm10365_vm15, 1.0, %v8202_v11  ;;  %vm10368_vm15 = vcmp.le.s32.totalorder %v596_v4, 16  ;;  %vm10369_vm3 = vcmp.ge.s32.totalorder %v596_v4, 1  ;;  %v608_v35 = vadd.s32 %v8592_v53, %v566_v21  ;;  %vm8881_vm6 = vmand %vm674_vm0, %vm714_vm12  ;;  %s8052_s8 = scalar_lea.vmem %s10103_s28, 2048 }
 0x149   : > { %vm8872_vm7 = vmand %vm10369_vm3, %vm10368_vm15  ;;  %v10375_v36 = vsel %vm8881_vm6, 4294967295, %v10374_v36  ;;  %v529_v42 = vadd.s32 296, %v8586_v48  ;;  %v8905_v44 = vadd.s32 304, %v8586_v48  ;;  %vm10381_vm12 = vnez %v10316_v56  ;;  %p8053_p12 = scmp.ne.s32.totalorder %s10103_s28, %s8052_s8 }
 0x14a   : > { %v10371_v33 = vsel %vm8872_vm7, 4294967295, %v10370_v33  ;;  %vm8893_vm5 = vmand %vm671_vm13, %vm711_vm11  ;;  %vm10380_vm13 = vnez %v10326_v1  ;;  %vm688_vm0 = vcmp.ge.s32.totalorder %v608_v35, 1  ;;  %vm728_vm8 = vcmp.le.s32.totalorder %v608_v35, 16 }
 0x14b   : > { %v10379_v40 = vsel %vm8893_vm5, 4294967295, %v10378_v40  ;;  %v8911_v49 = vsel %vm10380_vm13, 1.0, %v8202_v11  ;;  %vm10382_vm15 = vnez %v10299_v32  ;;  %vm10384_vm13 = vnez %v10320_v59  ;;  %p8054_p9 = pnand %p8053_p12, %p10490_p8 }
 0x14c   : > { %vm10383_vm3 = vmand %vm10381_vm12, %vm10382_vm15  ;;  %vm10387_vm11 = vcmp.le.s32.totalorder %v606_v27, 16  ;;  %vm8944_vm5 = vcmp.ge.s32.totalorder %v646_v38, 1  ;;  %vm10393_vm15 = vnez %v10343_v14  ;;  %vm687_vm12 = vcmp.ge.s32.totalorder %v607_v41, 1 }
 0x14d   : > { %v8926_v52 = vsel %vm10383_vm3, 1.0, %v8202_v11  ;;  %vm10386_vm7 = vmand %vm10384_vm13, %vm10385_vm14  ;;  %v8951_v56 = vsel %vm10393_vm15, 1.0, %v8202_v11  ;;  %vm10394_vm14 = vcmp.le.s32.totalorder %v595_v25, 16  ;;  %v569_v58 = vshra.s32 %v529_v42, 5  ;;  %p8055_p10 = pneg %p8054_p9 }
 0x14e   : > { %v8934_v54 = vsel %vm10386_vm7, 1.0, %v8202_v11  ;;  %vm8940_vm6 = vmand %vm10388_vm9, %vm10387_vm11  ;;  %vm10395_vm7 = vcmp.ge.s32.totalorder %v595_v25, 1  ;;  %vm727_vm9 = vcmp.le.s32.totalorder %v607_v41, 16  ;;  %v558_v59 = vshra.s32 %v8890_v37, 5 }
 0x14f   : > { %vm8955_vm3 = vmand %vm10395_vm7, %vm10394_vm14  ;;  %vm8964_vm13 = vcmp.le.s32.totalorder %v648_v43, 16  ;;  %v570_v63 = vshra.s32 %v8905_v44, 5  ;;  %vm10402_vm15 = vnez %v10312_v51  ;;  %vm10406_vm7 = vnez %v10347_v3 }
 0x150   : > { %vm8960_vm11 = vmand %vm688_vm0, %vm728_vm8  ;;  %vm10405_vm0 = vnez %v10362_v22  ;;  %v9043_v3 = vsel %vm8955_vm3, 1.0, %v8202_v11  ;;  %v9056_v17 = vadd.s32 %v8592_v53, %v558_v59  ;;  %vm730_vm3 = vcmp.le.s32.totalorder %v610_v0, 16 }
 0x151   : > { %vm10403_vm14 = vmand %vm8752_vm1, %vm10402_vm15  ;;  %v8989_v5 = vsel %vm10405_vm0, 1.0, %v8202_v11  ;;  %vm10407_vm15 = vnez %v10349_v15  ;;  %v611_v15 = vadd.s32 %v8592_v53, %v569_v58  ;;  %v9061_v21 = vadd.s32 %v8592_v53, %v556_v2 }
 0x152   : > { %v8976_v1 = vsel %vm10403_vm14, 1.0, %v8202_v11  ;;  %vm10404_vm8 = vmand %vm8767_vm4, %vm10358_vm2  ;;  %vm10409_vm2 = vnez %v10356_v18  ;;  %v612_v18 = vadd.s32 %v8592_v53, %v570_v63  ;;  %v9064_v22 = vadd.s32 200, %v8586_v48 }
 0x153   : > { %v8984_v4 = vsel %vm10404_vm8, 1.0, %v8202_v11  ;;  %vm846_vm1 = vmand %vm8940_vm6, %vm8944_vm5  ;;  %vm10411_vm8 = vnez %v10379_v40  ;;  %v652_v30 = vand.u32 31, %v8905_v44  ;;  %vm691_vm5 = vcmp.ge.s32.totalorder %v611_v15, 1 }
 0x154   : > { %vm10408_vm4 = vmand %vm10406_vm7, %vm10407_vm15  ;;  %v9015_v6 = vsel %vm10411_vm8, 1.0, %v8202_v11  ;;  %vm10414_vm7 = vnez %v10371_v33  ;;  %v6245_v23 = vsel %vm846_vm1, 1.0, %v8202_v11  ;;  %vm692_vm1 = vcmp.ge.s32.totalorder %v612_v18, 1 }
 0x155   : > { %v9002_v51 = vsel %vm10408_vm4, 1.0, %v8202_v11  ;;  %vm10410_vm14 = vmand %vm8816_vm10, %vm10409_vm2  ;;  %vm10415_vm10 = vnez %v10373_v34  ;;  %vm10417_vm4 = vnez %v10375_v36  ;;  %vm10418_vm2 = vnez %v10377_v26 }
 0x156   : > { %v9010_v60 = vsel %vm10410_vm14, 1.0, %v8202_v11  ;;  %vm9019_vm0 = vmand %vm687_vm12, %vm727_vm9  ;;  %vm690_vm9 = vcmp.ge.s32.totalorder %v610_v0, 1  ;;  %vm732_vm8 = vcmp.le.s32.totalorder %v612_v18, 16 }
 0x157   : > { %vm10416_vm15 = vmand %vm10414_vm7, %vm10415_vm10  ;;  %v6246_v28 = vsel %vm9019_vm0, 1.0, %v8202_v11  ;;  %vm9105_vm10 = vcmp.le.s32.totalorder %v652_v30, 16  ;;  %v557_v30 = vshra.s32 %v9064_v22, 5 }
 0x158   : > { %v9030_v10 = vsel %vm10416_vm15, 1.0, %v8202_v11  ;;  %vm10419_vm14 = vmand %vm10417_vm4, %vm10418_vm2  ;;  %vm1586_vm15 = vsmask.f32 256 }
 0x159   : > { %v9038_v14 = vsel %vm10419_vm14, 1.0, %v8202_v11  ;;  %vm928_vm12 = vmand %vm8960_vm11, %vm8964_vm13  ;;  %vm9077_vm11 = vcmp.ge.s32.totalorder %v650_v9, 1  ;;  %vm731_vm13 = vcmp.le.s32.totalorder %v611_v15, 16  ;;  %vm680_vm14 = vcmp.ge.s32.totalorder %v9056_v17, 1 }
 0x15a   : > { %v6247_v25 = vsel %vm928_vm12, 1.0, %v8202_v11  ;;  %vm9085_vm6 = vmand %vm690_vm9, %vm730_vm3  ;;  %vm720_vm12 = vcmp.le.s32.totalorder %v9056_v17, 16  ;;  %vm9173_vm9 = vcmp.le.s32.totalorder %v640_v20, 16 }
 0x15b   : > { %vm850_vm0 = vmand %vm9085_vm6, %vm9077_vm11  ;;  %vm678_vm11 = vcmp.ge.s32.totalorder %v9061_v21, 1  ;;  %vm718_vm6 = vcmp.le.s32.totalorder %v9061_v21, 16 }
 0x15c   : > { %vm9101_vm7 = vmand %vm692_vm1, %vm732_vm8 }
 0x15d   : > { %vm9112_vm4 = vmand %vm691_vm5, %vm731_vm13 }
 0x15e   : > { %vm932_vm2 = vmand %vm9101_vm7, %vm9105_vm10 }
 0x15f   : > { %vm9198_vm3 = vmand %vm680_vm14, %vm720_vm12 }
 0x160   : > { %vm920_vm5 = vmand %vm9198_vm3, %vm9173_vm9 }
 0x161   : > { %vm9226_vm13 = vmand %vm678_vm11, %vm718_vm6  ;;  %v9244_v21 = vsel %vm920_vm5, 1.0, %v8202_v11 }
 0x1d9   : > { %v6825_v24 = vpop.f32.mrb[0].mxu0  ;;  %v6873_v27 = vpop.f32.mrb[0].mxu1 }
 0x1da   : > { %v1224_v33 = vadd.f32 %v6825_v24, %v9053_v8  ;;  %v1215_v34 = vpop.f32.mrb[1].mxu0  ;;  %v1473_v35 = vadd.f32 %v6873_v27, %v9053_v8  ;;  %v1464_v36 = vpop.f32.mrb[1].mxu1  ;;  %v638_v27 = vand.u32 31, %v8918_v50 }
 0x1db   : > { %v1216_v38 = vadd.f32 %v9053_v8, %v1215_v34  ;;  %v6826_v40 = vpop.f32.mrb[2].mxu0  ;;  %v1465_v41 = vadd.f32 %v9053_v8, %v1464_v36  ;;  %v6874_v42 = vpop.f32.mrb[2].mxu1 }
 0x1dc   : > { %v1344_v43 = vmax.f32 %v1224_v33, 0.0  ;;  %v1227_v44 = vadd.f32 %v6826_v40, %v9053_v8  ;;  %v1218_v47 = vpop.f32.mrb[3].mxu0  ;;  %v1497_v57 = vmax.f32 %v1473_v35, 0.0  ;;  %v1476_v32 = vadd.f32 %v6874_v42, %v9053_v8  ;;  %v1467_v39 = vpop.f32.mrb[3].mxu1 }
 0x1dd   : > { %v1342_v58 = vmax.f32 %v1216_v38, 0.0  ;;  %v1219_v59 = vadd.f32 %v9053_v8, %v1218_v47  ;;  %v1495_v61 = vmax.f32 %v1465_v41, 0.0  ;;  %v1468_v62 = vadd.f32 %v9053_v8, %v1467_v39 }
 0x1de   : > { %v1345_v63 = vmax.f32 %v1227_v44, 0.0  ;;  %v1505_v0 = vmul.f32 %v6247_v25, %v1497_v57  ;;  %v1498_v2 = vmax.f32 %v1476_v32, 0.0  ;;  %v1376_v18 = vmul.f32 %v8780_v12, %v1344_v43 }
 0x1df   : > { %v1343_v24 = vmax.f32 %v1219_v59, 0.0  ;;  %v1503_v33 = vmul.f32 %v6245_v23, %v1495_v61  ;;  %v1496_v34 = vmax.f32 %v1468_v62, 0.0  ;;  %v1374_v38 = vmul.f32 %v8788_v13, %v1342_v58 }
 0x1e0   : > { %v1377_v35 = vmul.f32 0.0, %v1345_v63  ;;  %v1506_v36 = vmul.f32 0.0, %v1498_v2  ;;  %v9130_v12 = vsel %vm850_vm0, 1.0, %v8202_v11  ;;  %v9138_v44 = vsel %vm9112_vm4, 1.0, %v8202_v11 }
 0x1e1   : > { %v1375_v40 = vmul.f32 %v8812_v16, %v1343_v24  ;;  %v6829_v41 = vpop.f32.mrb[4].mxu0  ;;  %v1504_v42 = vmul.f32 %v6246_v28, %v1496_v34  ;;  %v6877_v15 = vpop.f32.mrb[4].mxu1  ;;  %v6250_v63 = vsel %vm932_vm2, 1.0, %v8202_v11  ;;  %vm9232_vm1 = vcmp.ge.s32.totalorder %v638_v27, 1 }
 0x1e2   : > { %v1514_v23 = vpack.c.bf16 %v1377_v35, %v1376_v18  ;;  %v1240_v13 = vadd.f32 %v6829_v41, %v9053_v8  ;;  %v1231_v16 = vpop.f32.mrb[5].mxu0  ;;  %v9133_v43 = vpack.c.bf16 %v1506_v36, %v1505_v0  ;;  %v1480_v28 = vpop.f32.mrb[5].mxu1  ;;  %v1489_v32 = vadd.f32 %v6877_v15, %v9053_v8  ;;  %vm838_vm0 = vmand %vm9226_vm13, %vm9232_vm1 }
 0x1e3   : > { %v1513_v47 = vpack.c.bf16 %v1375_v40, %v1374_v38  ;;  %v1232_v26 = vadd.f32 %v9053_v8, %v1231_v16  ;;  %v6830_v57 = vpop.f32.mrb[6].mxu0  ;;  %v9141_v31 = vpack.c.bf16 %v1504_v42, %v1503_v33  ;;  %v6878_v39 = vpop.f32.mrb[6].mxu1  ;;  %v1481_v34 = vadd.f32 %v9053_v8, %v1480_v28 }
 0x1e4   : > { %1530 = vst [vmem:[#allocation2 + $0x10] sm:$0xff] %v1514_v23  ;;  %v1348_v58 = vmax.f32 %v1240_v13, 0.0  ;;  %v1243_v59 = vadd.f32 %v6830_v57, %v9053_v8  ;;  %v1234_v61 = vpop.f32.mrb[7].mxu0  ;;  %v1600_v62 = vshrl.u32 %v1514_v23, 16  ;;  %1550 = vst [vmem:[#allocation2 + $0x90] sm:$0xff] %v9133_v43  ;;  %v1483_v0 = vpop.f32.mrb[7].mxu1  ;;  %v1492_v13 = vadd.f32 %v6878_v39, %v9053_v8 }
 0x1e5   : > { %1529 = vst [vmem:[#allocation2 + $0x8] sm:$0xff] %v1513_v47  ;;  %v1346_v2 = vmax.f32 %v1232_v26, 0.0  ;;  %v1235_v24 = vadd.f32 %v9053_v8, %v1234_v61  ;;  %v1592_v33 = vshrl.u32 %v1513_v47, 16  ;;  %1549 = vst [vmem:[#allocation2 + $0x88] sm:$0xff] %v9141_v31  ;;  %v1595_v18 = vshll.u32 %v1513_v47, 16 }
 0x1e6   : > { %v1349_v25 = vmax.f32 %v1243_v59, 0.0  ;;  %v9155_v35 = vrot.slane %v1600_v62, 7  ;;  %v1603_v36 = vshll.u32 %v1514_v23, 16  ;;  %v1380_v7 = vmul.f32 %v8853_v29, %v1348_v58 }
 0x1e7   : > { %v1347_v9 = vmax.f32 %v1235_v24, 0.0  ;;  %v1594_v38 = vrot.slane %v1592_v33, 7  ;;  %v1501_v40 = vmax.f32 %v1489_v32, 0.0  ;;  %v1378_v41 = vmul.f32 %v8868_v19, %v1346_v2  ;;  %v7820_v24 = vld [vmem:[#allocation10 + $0x48] sm:$0xff]  }
 0x1e8   : > { %v1381_v42 = vmul.f32 0.0, %v1349_v25  ;;  %v1605_v15 = vor.u32 %v1603_v36, %v9155_v35  ;;  %v1499_v23 = vmax.f32 %v1481_v34, 0.0  ;;  %v1484_v29 = vadd.f32 %v9053_v8, %v1483_v0 }
 0x1e9   : > { %v1379_v16 = vmul.f32 %v8911_v49, %v1347_v9  ;;  %v6833_v28 = vpop.f32.mrb[8].mxu0  ;;  %v1597_v26 = vor.u32 %v1595_v18, %v1594_v38  ;;  %v1502_v58 = vmax.f32 %v1492_v13, 0.0 }
 0x1ea   : > { %v1516_v47 = vpack.c.bf16 %v1381_v42, %v1380_v7  ;;  %v1256_v57 = vadd.f32 %v6833_v28, %v9053_v8  ;;  %v1247_v19 = vpop.f32.mrb[9].mxu0  ;;  %v1606_v32 = vsel %vm1586_vm15, %v1594_v38, %v1605_v15  ;;  %v1500_v2 = vmax.f32 %v1484_v29, 0.0 }
 0x1eb   : > { %v1515_v59 = vpack.c.bf16 %v1379_v16, %v1378_v41  ;;  %v1248_v39 = vadd.f32 %v9053_v8, %v1247_v19  ;;  %v6834_v49 = vpop.f32.mrb[10].mxu0  ;;  %v1598_v61 = vsel %vm1586_vm15, %v8936_v55, %v1597_v26  ;;  %v2802_v62 = vld [vmem:[#allocation2 + $0x10] sm:$0x80]  ;;  %v1509_v38 = vmul.f32 %v6250_v63, %v1501_v40  ;;  %v7822_v26 = vld [vmem:[#allocation10 + $0x50] sm:$0xff]  }
 0x1ec   : > { %1532 = vst [vmem:[#allocation2 + $0x20] sm:$0xff] %v1516_v47  ;;  %v1352_v33 = vmax.f32 %v1256_v57, 0.0  ;;  %v1259_v0 = vadd.f32 %v6834_v49, %v9053_v8  ;;  %v1250_v34 = vpop.f32.mrb[11].mxu0  ;;  %6895 = vmatprep.mubr.bf16.mxu0 %v1598_v61  ;;  %v2837_v25 = vshrl.u32 %v2802_v62, 16  ;;  %v1616_v18 = vshrl.u32 %v1516_v47, 16 }
 0x1ed   : > { %1531 = vst [vmem:[#allocation2 + $0x18] sm:$0xff] %v1515_v59  ;;  %v1350_v7 = vmax.f32 %v1248_v39, 0.0  ;;  %v1251_v55 = vadd.f32 %v9053_v8, %v1250_v34  ;;  %6896 = vmatmul.mubr.bf16.vlgmr.msra.gmra.mrb[32].mxu0 %v1606_v32  ;;  %v1608_v9 = vshrl.u32 %v1515_v59, 16  ;;  %v1611_v42 = vshll.u32 %v1515_v59, 16 }
 0x1ee   : > { %v1353_v41 = vmax.f32 %v1259_v0, 0.0  ;;  %v9178_v15 = vrot.slane %v1616_v18, 7  ;;  %v1507_v13 = vmul.f32 %v9130_v12, %v1499_v23  ;;  %6928 = vmatpush3.bf16.msra.mxu0 %v8583_v46  ;;  %v1384_v37 = vmul.f32 %v8926_v52, %v1352_v33 }
 0x1ef   : > { %v1351_v20 = vmax.f32 %v1251_v55, 0.0  ;;  %v1610_v16 = vrot.slane %v1608_v9, 7  ;;  %v1619_v28 = vshll.u32 %v1516_v47, 16  ;;  %6929 = vmatprep.subr.bf16.mxu0 %v7820_v24  ;;  %v2839_v57 = vrot.slane %v2837_v25, 7 }
 0x1f0   : > { %v1385_v29 = vmul.f32 0.0, %v1353_v41  ;;  %v1510_v19 = vmul.f32 0.0, %v1502_v58  ;;  %v1508_v63 = vmul.f32 %v9138_v44, %v1500_v2  ;;  %v1382_v40 = vmul.f32 %v8934_v54, %v1350_v7  ;;  %v7816_v44 = vld [vmem:[#allocation10 + $0x108] sm:$0xff]   ;;  %v7823_v2 = vld [vmem:[#allocation10 + $0x58] sm:$0xff]  }
 0x1f1   : > { %v1383_v32 = vmul.f32 %v8951_v56, %v1351_v20  ;;  %v6837_v59 = vpop.f32.mrb[12].mxu0  ;;  %v1613_v12 = vor.u32 %v1611_v42, %v1610_v16  ;;  %v1621_v46 = vor.u32 %v1619_v28, %v9178_v15  ;;  %v7825_v20 = vld [vmem:[#allocation10 + $0x60] sm:$0xff]  }
 0x1f2   : > { %v1518_v23 = vpack.c.bf16 %v1385_v29, %v1384_v37  ;;  %v1272_v52 = vadd.f32 %v6837_v59, %v9053_v8  ;;  %v1263_v39 = vpop.f32.mrb[13].mxu0  ;;  %v1548_v47 = vpack.c.bf16 %v1510_v19, %v1509_v38  ;;  %v1547_v49 = vpack.c.bf16 %v1508_v63, %v1507_v13  ;;  %6930 = vmatpush3.bf16.msra.mxu0 %v7820_v24 }
 0x1f3   : > { %v1517_v61 = vpack.c.bf16 %v1383_v32, %v1382_v40  ;;  %v1264_v58 = vadd.f32 %v9053_v8, %v1263_v39  ;;  %v6838_v62 = vpop.f32.mrb[14].mxu0  ;;  %v1614_v54 = vsel %vm1586_vm15, %v9155_v35, %v1613_v12  ;;  %v2847_v56 = vsel %vm1586_vm15, %v2839_v57, %v1613_v12  ;;  %6931 = vmatprep.subr.bf16.mxu0 %v7822_v26 }
 0x1f4   : > { %1534 = vst [vmem:[#allocation2 + $0x30] sm:$0xff] %v1518_v23  ;;  %v1356_v33 = vmax.f32 %v1272_v52, 0.0  ;;  %v1275_v0 = vadd.f32 %v6838_v62, %v9053_v8  ;;  %v1266_v34 = vpop.f32.mrb[15].mxu0  ;;  %6899 = vmatprep.mubr.bf16.mxu0 %v1614_v54  ;;  %7039 = vmatprep.mubr.bf16.mxu1 %v2847_v56  ;;  %v1622_v24 = vsel %vm1586_vm15, %v1610_v16, %v1621_v46  ;;  %v1632_v25 = vshrl.u32 %v1518_v23, 16  ;;  %v7818_v46 = vld [vmem:[#allocation10 + $0x118] sm:$0xff]  }
 0x1f5   : > { %1552 = vst [vmem:[#allocation2 + $0xa0] sm:$0xff] %v1548_v47  ;;  %1551 = vst [vmem:[#allocation2 + $0x98] sm:$0xff] %v1547_v49  ;;  %v1354_v18 = vmax.f32 %v1264_v58, 0.0  ;;  %v1267_v7 = vadd.f32 %v9053_v8, %v1266_v34  ;;  %6900 = vmatmul.mubr.bf16.gmra.mrb[36].mxu0 %v1622_v24  ;;  %7040 = vmatmul.mubr.bf16.vlgmr.msra.gmra.mrb[8].mxu1 %v1622_v24  ;;  %v1624_v55 = vshrl.u32 %v1517_v61, 16  ;;  %v1635_v17 = vshll.u32 %v1518_v23, 16  ;;  %v7826_v23 = vld [vmem:[#allocation10 + $0x68] sm:$0xff]  }
 0x1f6   : > { %1533 = vst [vmem:[#allocation2 + $0x28] sm:$0xff] %v1517_v61  ;;  %v1357_v9 = vmax.f32 %v1275_v0, 0.0  ;;  %7072 = vmatpush3.bf16.msra.mxu1 %v8580_v45  ;;  %v9205_v38 = vrot.slane %v1632_v25, 7  ;;  %6932 = vmatpush3.bf16.msra.mxu0 %v7822_v26  ;;  %v1627_v13 = vshll.u32 %v1517_v61, 16  ;;  %v599_v37 = vadd.s32 %v8592_v53, %v557_v30  ;;  %v7817_v45 = vld [vmem:[#allocation10 + $0x110] sm:$0xff]   ;;  %v7821_v24 = vld [vmem:[#allocation10 + $0x120] sm:$0xff]  }
 0x1f7   : > { %v1355_v41 = vmax.f32 %v1267_v7, 0.0  ;;  %v1626_v42 = vrot.slane %v1624_v55, 7  ;;  %7073 = vmatprep.subr.bf16.mxu1 %v7816_v44  ;;  %6933 = vmatprep.subr.bf16.mxu0 %v7823_v2  ;;  %v1388_v16 = vmul.f32 %v8976_v1, %v1356_v33  ;;  %v9218_v29 = vadd.s32 240, %v8586_v48  ;;  %v7828_v25 = vld [vmem:[#allocation10 + $0x70] sm:$0xff]  }
 0x1f8   : > { %v1389_v28 = vmul.f32 0.0, %v1357_v9  ;;  %v1637_v26 = vor.u32 %v1635_v17, %v9205_v38  ;;  %v1386_v57 = vmul.f32 %v8984_v4, %v1354_v18  ;;  %vm679_vm8 = vcmp.ge.s32.totalorder %v599_v37, 1 }
 0x1f9   : > { %v1387_v19 = vmul.f32 %v8989_v5, %v1355_v41  ;;  %v6841_v63 = vpop.f32.mrb[16].mxu0  ;;  %v1629_v40 = vor.u32 %v1627_v13, %v1626_v42  ;;  %vm719_vm7 = vcmp.le.s32.totalorder %v599_v37, 16  ;;  %v9267_v33 = vsel %vm838_vm0, 1.0, %v8202_v11 }
 0x1fa   : > { %v1520_v30 = vpack.c.bf16 %v1389_v28, %v1388_v16  ;;  %v1288_v4 = vadd.f32 %v6841_v63, %v9053_v8  ;;  %v1279_v5 = vpop.f32.mrb[17].mxu0  ;;  %v1638_v32 = vsel %vm1586_vm15, %v1626_v42, %v1637_v26  ;;  %7074 = vmatpush3.bf16.msra.mxu1 %v7816_v44  ;;  %6934 = vmatpush3.bf16.msra.mxu0 %v7823_v2  ;;  %v9259_v44 = vadd.s32 224, %v8586_v48  ;;  %vm9272_vm10 = vmand %vm679_vm8, %vm719_vm7  ;;  %v7829_v63 = vld [vmem:[#allocation10 + $0x78] sm:$0xff]  }
 0x1fb   : > { %v1519_v50 = vpack.c.bf16 %v1387_v19, %v1386_v57  ;;  %v1280_v27 = vadd.f32 %v9053_v8, %v1279_v5  ;;  %v6842_v59 = vpop.f32.mrb[18].mxu0  ;;  %v1630_v12 = vsel %vm1586_vm15, %v9178_v15, %v1629_v40  ;;  %7075 = vmatprep.subr.bf16.mxu1 %v7817_v45  ;;  %6935 = vmatprep.subr.bf16.mxu0 %v7825_v20  ;;  %v562_v15 = vshra.s32 %v9218_v29, 5  ;;  %v7824_v19 = vld [vmem:[#allocation10 + $0x128] sm:$0xff]  }
 0x1fc   : > { %1536 = vst [vmem:[#allocation2 + $0x40] sm:$0xff] %v1520_v30  ;;  %v1360_v52 = vmax.f32 %v1288_v4, 0.0  ;;  %v1291_v36 = vadd.f32 %v6842_v59, %v9053_v8  ;;  %v1282_v39 = vpop.f32.mrb[19].mxu0  ;;  %6903 = vmatprep.mubr.bf16.mxu0 %v1630_v12  ;;  %7043 = vmatprep.mubr.bf16.mxu1 %v1630_v12  ;;  %v1648_v47 = vshrl.u32 %v1520_v30, 16  ;;  %v1651_v56 = vshll.u32 %v1520_v30, 16 }
 0x1fd   : > { %1535 = vst [vmem:[#allocation2 + $0x38] sm:$0xff] %v1519_v50  ;;  %v1358_v49 = vmax.f32 %v1280_v27, 0.0  ;;  %v1283_v61 = vadd.f32 %v9053_v8, %v1282_v39  ;;  %6904 = vmatmul.mubr.bf16.gmra.mrb[40].mxu0 %v1638_v32  ;;  %7044 = vmatmul.mubr.bf16.gmra.mrb[12].mxu1 %v1638_v32  ;;  %v1640_v58 = vshrl.u32 %v1519_v50, 16  ;;  %v1643_v34 = vshll.u32 %v1519_v50, 16  ;;  %v9301_v39 = vld [vmem:[#allocation10 + $0x80] sm:$0xff]  }
 0x1fe   : > { %v1361_v62 = vmax.f32 %v1291_v36, 0.0  ;;  %v9256_v54 = vrot.slane %v1648_v47, 7  ;;  %7076 = vmatpush3.bf16.msra.mxu1 %v7817_v45  ;;  %6936 = vmatpush3.bf16.msra.mxu0 %v7825_v20  ;;  %v1392_v35 = vmul.f32 %v9002_v51, %v1360_v52  ;;  %v9278_v9 = vadd.s32 %v8592_v53, %v562_v15  ;;  %v7827_v36 = vld [vmem:[#allocation10 + $0x130] sm:$0xff]  }
 0x1ff   : > { %v1359_v2 = vmax.f32 %v1283_v61, 0.0  ;;  %v1642_v0 = vrot.slane %v1640_v58, 7  ;;  %7077 = vmatprep.subr.bf16.mxu1 %v7818_v46  ;;  %6937 = vmatprep.subr.bf16.mxu0 %v7826_v23  ;;  %v1390_v17 = vmul.f32 %v9010_v60, %v1358_v49  ;;  %v521_v51 = vadd.s32 232, %v8586_v48 }
 0x200   : > { %v1393_v18 = vmul.f32 0.0, %v1361_v62  ;;  %v1653_v55 = vor.u32 %v1651_v56, %v9256_v54  ;;  %v560_v28 = vshra.s32 %v9259_v44, 5  ;;  %v644_v30 = vand.u32 31, %v9218_v29 }
 0x201   : > { %v1391_v41 = vmul.f32 %v9015_v6, %v1359_v2  ;;  %v6845_v42 = vpop.f32.mrb[20].mxu0  ;;  %v1645_v13 = vor.u32 %v1643_v34, %v1642_v0  ;;  %v9290_v6 = vsel %vm9272_vm10, 1.0, %v8202_v11  ;;  %vm684_vm4 = vcmp.ge.s32.totalorder %v9278_v9, 1 }
 0x202   : > { %v1522_v45 = vpack.c.bf16 %v1393_v18, %v1392_v35  ;;  %v1304_v37 = vadd.f32 %v6845_v42, %v9053_v8  ;;  %v1295_v20 = vpop.f32.mrb[21].mxu0  ;;  %v1654_v16 = vsel %vm1586_vm15, %v1642_v0, %v1653_v55  ;;  %7078 = vmatpush3.bf16.msra.mxu1 %v7818_v46  ;;  %6938 = vmatpush3.bf16.msra.mxu0 %v7826_v23  ;;  %vm724_vm2 = vcmp.le.s32.totalorder %v9278_v9, 16  ;;  %v7830_v18 = vld [vmem:[#allocation10 + $0x138] sm:$0xff]  }
 0x203   : > { %v1521_v26 = vpack.c.bf16 %v1391_v41, %v1390_v17  ;;  %v1296_v57 = vadd.f32 %v9053_v8, %v1295_v20  ;;  %v6846_v60 = vpop.f32.mrb[22].mxu0  ;;  %v1646_v48 = vsel %vm1586_vm15, %v9205_v38, %v1645_v13  ;;  %7079 = vmatprep.subr.bf16.mxu1 %v7821_v24  ;;  %6939 = vmatprep.subr.bf16.mxu0 %v7828_v25  ;;  %v561_v38 = vshra.s32 %v521_v51, 5  ;;  %vm9327_vm9 = vmand %vm684_vm4, %vm724_vm2 }
 0x204   : > { %1538 = vst [vmem:[#allocation2 + $0x50] sm:$0xff] %v1522_v45  ;;  %v1364_v40 = vmax.f32 %v1304_v37, 0.0  ;;  %v1307_v22 = vadd.f32 %v6846_v60, %v9053_v8  ;;  %v1298_v1 = vpop.f32.mrb[23].mxu0  ;;  %6907 = vmatprep.mubr.bf16.mxu0 %v1646_v48  ;;  %7047 = vmatprep.mubr.bf16.mxu1 %v1646_v48  ;;  %v1664_v4 = vshrl.u32 %v1522_v45, 16  ;;  %v602_v59 = vadd.s32 %v8592_v53, %v560_v28  ;;  %v9350_v60 = vld [vmem:[#allocation10 + $0x140] sm:$0xff]  }
 0x205   : > { %1537 = vst [vmem:[#allocation2 + $0x48] sm:$0xff] %v1521_v26  ;;  %v1362_v5 = vmax.f32 %v1296_v57, 0.0  ;;  %v1299_v32 = vadd.f32 %v9053_v8, %v1298_v1  ;;  %6908 = vmatmul.mubr.bf16.gmra.mrb[44].mxu0 %v1654_v16  ;;  %7048 = vmatmul.mubr.bf16.gmra.mrb[16].mxu1 %v1654_v16  ;;  %v1656_v50 = vshrl.u32 %v1521_v26, 16  ;;  %v1667_v46 = vshll.u32 %v1522_v45, 16 }
 0x206   : > { %v1365_v27 = vmax.f32 %v1307_v22, 0.0  ;;  %v9298_v12 = vrot.slane %v1664_v4, 7  ;;  %7080 = vmatpush3.bf16.msra.mxu1 %v7821_v24  ;;  %6940 = vmatpush3.bf16.msra.mxu0 %v7828_v25  ;;  %v1659_v52 = vshll.u32 %v1521_v26, 16  ;;  %v1396_v47 = vmul.f32 %v9030_v10, %v1364_v40 }
 0x207   : > { %v1363_v23 = vmax.f32 %v1299_v32, 0.0  ;;  %v1658_v29 = vrot.slane %v1656_v50, 7  ;;  %7081 = vmatprep.subr.bf16.mxu1 %v7824_v19  ;;  %6941 = vmatprep.subr.bf16.mxu0 %v7829_v63  ;;  %v1394_v61 = vmul.f32 %v9038_v14, %v1362_v5  ;;  %v9309_v56 = vadd.s32 %v8592_v53, %v561_v38  ;;  %v9440_v50 = vld [vmem:[#allocation2 + $0x28] sm:$0xff] }
 0x208   : > { %v1397_v15 = vmul.f32 0.0, %v1365_v27  ;;  %v1669_v49 = vor.u32 %v1667_v46, %v9298_v12  ;;  %v642_v10 = vand.u32 31, %v9259_v44  ;;  %vm682_vm14 = vcmp.ge.s32.totalorder %v602_v59, 1 }
 0x209   : > { %v1395_v58 = vmul.f32 %v9043_v3, %v1363_v23  ;;  %v6849_v62 = vpop.f32.mrb[24].mxu0  ;;  %v1661_v2 = vor.u32 %v1659_v52, %v1658_v29  ;;  %vm722_vm12 = vcmp.le.s32.totalorder %v602_v59, 16  ;;  %vm9331_vm3 = vcmp.le.s32.totalorder %v644_v30, 16 }
 0x20a   : > { %v1524_v0 = vpack.c.bf16 %v1397_v15, %v1396_v47  ;;  %v1320_v34 = vadd.f32 %v6849_v62, %v9053_v8  ;;  %v1311_v24 = vpop.f32.mrb[25].mxu0  ;;  %v1670_v25 = vsel %vm1586_vm15, %v1658_v29, %v1669_v49  ;;  %7082 = vmatpush3.bf16.msra.mxu1 %v7824_v19  ;;  %6942 = vmatpush3.bf16.msra.mxu0 %v7829_v63  ;;  %vm9336_vm11 = vcmp.ge.s32.totalorder %v642_v10, 1  ;;  %vm9344_vm6 = vmand %vm682_vm14, %vm722_vm12 }
 0x20b   : > { %v9314_v35 = vpack.c.bf16 %v1395_v58, %v1394_v61  ;;  %v1312_v14 = vadd.f32 %v9053_v8, %v1311_v24  ;;  %v6850_v3 = vpop.f32.mrb[26].mxu0  ;;  %v1662_v53 = vsel %vm1586_vm15, %v9256_v54, %v1661_v2  ;;  %7083 = vmatprep.subr.bf16.mxu1 %v7827_v36  ;;  %6975 = vmatprep.subr.bf16.mxu0 %v9301_v39  ;;  %vm683_vm5 = vcmp.ge.s32.totalorder %v9309_v56, 1  ;;  %vm924_vm13 = vmand %vm9327_vm9, %vm9331_vm3 }
 0x20c   : > { %1540 = vst [vmem:[#allocation2 + $0x60] sm:$0xff] %v1524_v0  ;;  %v1368_v7 = vmax.f32 %v1320_v34, 0.0  ;;  %v1323_v44 = vadd.f32 %v6850_v3, %v9053_v8  ;;  %v1314_v55 = vpop.f32.mrb[27].mxu0  ;;  %6911 = vmatprep.mubr.bf16.mxu0 %v1662_v53  ;;  %7051 = vmatprep.mubr.bf16.mxu1 %v1662_v53  ;;  %v1680_v17 = vshrl.u32 %v1524_v0, 16  ;;  %v1683_v9 = vshll.u32 %v1524_v0, 16  ;;  %vm842_vm8 = vmand %vm9344_vm6, %vm9336_vm11 }
 0x20d   : > { %1539 = vst [vmem:[#allocation2 + $0x58] sm:$0xff] %v9314_v35  ;;  %v1366_v41 = vmax.f32 %v1312_v14, 0.0  ;;  %v1315_v42 = vadd.f32 %v9053_v8, %v1314_v55  ;;  %6912 = vmatmul.mubr.bf16.gmra.mrb[48].mxu0 %v1670_v25  ;;  %7052 = vmatmul.mubr.bf16.gmra.mrb[20].mxu1 %v1670_v25  ;;  %v1672_v51 = vshrl.u32 %v9314_v35, 16  ;;  %v1675_v57 = vshll.u32 %v9314_v35, 16 }
 0x20e   : > { %v1369_v45 = vmax.f32 %v1323_v44, 0.0  ;;  %v9340_v20 = vrot.slane %v1680_v17, 7  ;;  %7084 = vmatpush3.bf16.msra.mxu1 %v7827_v36  ;;  %v1400_v48 = vmul.f32 %v9244_v21, %v1368_v7  ;;  %vm723_vm1 = vcmp.le.s32.totalorder %v9309_v56, 16 }
 0x20f   : > { %v1367_v16 = vmax.f32 %v1315_v42, 0.0  ;;  %v1674_v26 = vrot.slane %v1672_v51, 7  ;;  %7085 = vmatprep.subr.bf16.mxu1 %v7830_v18  ;;  %v1398_v40 = vmul.f32 %v9267_v33, %v1366_v41  ;;  %v6244_v38 = vsel %vm924_vm13, 1.0, %v8202_v11  ;;  %vm9376_vm0 = vmand %vm683_vm5, %vm723_vm1 }
 0x210   : > { %v1401_v19 = vmul.f32 0.0, %v1369_v45  ;;  %v1685_v63 = vor.u32 %v1683_v9, %v9340_v20  ;;  %v6243_v61 = vsel %vm9376_vm0, 1.0, %v8202_v11  ;;  %v2953_v3 = vshrl.u32 %v9141_v31, 16 }
 0x211   : > { %v1399_v22 = vmul.f32 %v9290_v6, %v1367_v16  ;;  %v6853_v1 = vpop.f32.mrb[28].mxu0  ;;  %v1677_v30 = vor.u32 %v1675_v57, %v1674_v26  ;;  %v2956_v41 = vshll.u32 %v9141_v31, 16  ;;  %v2961_v37 = vshrl.u32 %v9133_v43, 16 }
 0x212   : > { %v9361_v4 = vpack.c.bf16 %v1401_v19, %v1400_v48  ;;  %v1336_v21 = vadd.f32 %v6853_v1, %v9053_v8  ;;  %v1327_v5 = vpop.f32.mrb[29].mxu0  ;;  %7086 = vmatpush3.bf16.msra.mxu1 %v7830_v18  ;;  %v1686_v29 = vsel %vm1586_vm15, %v1674_v26, %v1685_v63  ;;  %v2955_v17 = vrot.slane %v2953_v3, 7  ;;  %v9420_v48 = vld [vmem:[#allocation2 + $0x8] sm:$0xff]  ;;  %v7836_v1 = vld [vmem:[#allocation10 + $0x88] sm:$0xff]  }
 0x213   : > { %v9368_v32 = vpack.c.bf16 %v1399_v22, %v1398_v40  ;;  %v1328_v33 = vadd.f32 %v9053_v8, %v1327_v5  ;;  %v6854_v6 = vpop.f32.mrb[30].mxu0  ;;  %v1678_v27 = vsel %vm1586_vm15, %v9298_v12, %v1677_v30  ;;  %7119 = vmatprep.subr.bf16.mxu1 %v9350_v60  ;;  %v6242_v12 = vsel %vm842_vm8, 1.0, %v8202_v11  ;;  %v9424_v40 = vld [vmem:[#allocation2 + $0x10] sm:$0xff]  ;;  %v9428_v30 = vld [vmem:[#allocation2 + $0x18] sm:$0xff]  ;;  %v7838_v5 = vld [vmem:[#allocation10 + $0x90] sm:$0xff]  }
 0x214   : > { %1542 = vst [vmem:[#allocation2 + $0x70] sm:$0xff] %v9361_v4  ;;  %v1372_v59 = vmax.f32 %v1336_v21, 0.0  ;;  %v1339_v46 = vadd.f32 %v6854_v6, %v9053_v8  ;;  %v1330_v23 = vpop.f32.mrb[31].mxu0  ;;  %6915 = vmatprep.mubr.bf16.mxu0 %v1678_v27  ;;  %7055 = vmatprep.mubr.bf16.mxu1 %v1678_v27  ;;  %v1696_v52 = vshrl.u32 %v9361_v4, 16  ;;  %v1699_v62 = vshll.u32 %v9361_v4, 16  ;;  %v9433_v21 = vld [vmem:[#allocation2 + $0x90] sm:$0xff] }
 0x215   : > { %1541 = vst [vmem:[#allocation2 + $0x68] sm:$0xff] %v9368_v32  ;;  %v1370_v36 = vmax.f32 %v1328_v33, 0.0  ;;  %v1331_v47 = vadd.f32 %v9053_v8, %v1330_v23  ;;  %6916 = vmatmul.mubr.bf16.gmra.mrb[52].mxu0 %v1686_v29  ;;  %7056 = vmatmul.mubr.bf16.gmra.mrb[24].mxu1 %v1686_v29  ;;  %v1688_v15 = vshrl.u32 %v9368_v32, 16  ;;  %v1691_v0 = vshll.u32 %v9368_v32, 16  ;;  %v7832_v33 = vld [vmem:[#allocation10 + $0x148] sm:$0xff]   ;;  %v9436_v6 = vld [vmem:[#allocation2 + $0x20] sm:$0xff] }
 0x216   : > { %v1373_v49 = vmax.f32 %v1339_v46, 0.0  ;;  %v1698_v58 = vrot.slane %v1696_v52, 7  ;;  %v1404_v34 = vmul.f32 %v6244_v38, %v1372_v59  ;;  %v2958_v9 = vor.u32 %v2956_v41, %v2955_v17  ;;  %v7839_v27 = vld [vmem:[#allocation10 + $0x98] sm:$0xff]   ;;  %v7833_v59 = vld [vmem:[#allocation10 + $0x150] sm:$0xff]   ;;  %v9450_v23 = vld [vmem:[#allocation2 + $0x98] sm:$0xff] }
 0x217   : > { %v1371_v56 = vmax.f32 %v1331_v47, 0.0  ;;  %v1690_v2 = vrot.slane %v1688_v15, 7  ;;  %v1402_v8 = vmul.f32 %v6242_v12, %v1370_v36  ;;  %v2963_v26 = vrot.slane %v2961_v37, 7  ;;  %v7841_v52 = vld [vmem:[#allocation10 + $0xa0] sm:$0xff]   ;;  %v7834_v36 = vld [vmem:[#allocation10 + $0x158] sm:$0xff]   ;;  %v9466_v15 = vld [vmem:[#allocation2 + $0x38] sm:$0xff] }
 0x218   : > { %v1405_v24 = vmul.f32 0.0, %v1373_v49  ;;  %v1701_v10 = vor.u32 %v1699_v62, %v1698_v58  ;;  %v2964_v57 = vshll.u32 %v9133_v43, 16  ;;  %v10227_v38 = vshll.u32 %v9433_v21, 16  ;;  %v9458_v12 = vld [vmem:[#allocation2 + $0x30] sm:$0xff]  ;;  %v7842_v49 = vld [vmem:[#allocation10 + $0xa8] sm:$0xff]   ;;  %v7844_v62 = vld [vmem:[#allocation10 + $0xb0] sm:$0xff]  }
 0x219   : > { %v1403_v25 = vmul.f32 %v6243_v61, %v1371_v56  ;;  %v1693_v14 = vor.u32 %v1691_v0, %v1690_v2  ;;  %v10229_v46 = vshrl.u32 %v9433_v21, 16  ;;  %v10226_v29 = vshll.u32 %v9450_v23, 16  ;;  %v9475_v56 = vld [vmem:[#allocation2 + $0x40] sm:$0xff]  ;;  %v9479_v0 = vld [vmem:[#allocation2 + $0x48] sm:$0xff] }
 0x21a   : > { %v9402_v53 = vpack.c.bf16 %v1405_v24, %v1404_v34  ;;  %v1702_v7 = vsel %vm1586_vm15, %v1690_v2, %v1701_v10  ;;  %v2966_v63 = vor.u32 %v2964_v57, %v2963_v26  ;;  %vm2348_vm7 = vsmask.f32 7424  ;;  %v7840_v2 = vld [vmem:[#allocation10 + $0x168] sm:$0xff]   ;;  %v7845_v34 = vld [vmem:[#allocation10 + $0xb8] sm:$0xff]   ;;  %v7843_v24 = vld [vmem:[#allocation10 + $0x170] sm:$0xff]  }
 0x21b   : > { %v9404_v18 = vpack.c.bf16 %v1403_v25, %v1402_v8  ;;  %v1694_v11 = vsel %vm1586_vm15, %v9340_v20, %v1693_v14  ;;  %v9462_v47 = vrot.slane %v10226_v29, 1  ;;  %v9483_v10 = vld [vmem:[#allocation10 + $0x200] sm:$0xff]   ;;  %v7846_v25 = vld [vmem:[#allocation10 + $0x178] sm:$0xff]   ;;  %v9494_v3 = vld [vmem:[#allocation2 + $0x60] sm:$0xff]  ;;  %v2350_v41 = vshrl.u32 %v9420_v48, 16 }
 0x21c   : > { %1544 = vst [vmem:[#allocation2 + $0x80] sm:$0xff] %v9402_v53  ;;  %6919 = vmatprep.mubr.bf16.mxu0 %v1694_v11  ;;  %7059 = vmatprep.mubr.bf16.mxu1 %v1694_v11  ;;  %v1712_v44 = vshrl.u32 %v9402_v53, 16  ;;  %v1715_v54 = vshll.u32 %v9402_v53, 16  ;;  %v2967_v22 = vsel %vm1586_vm15, %v2955_v17, %v2966_v63  ;;  %v9485_v8 = vld [vmem:[#allocation2 + $0x50] sm:$0xff]  ;;  %v9502_v11 = vld [vmem:[#allocation2 + $0xa0] sm:$0xff]  ;;  %v2381_v57 = vshll.u32 %v9440_v50, 16 }
 0x21d   : > { %1543 = vst [vmem:[#allocation2 + $0x78] sm:$0xff] %v9404_v18  ;;  %6920 = vmatmul.mubr.bf16.gmra.mrb[56].mxu0 %v1702_v7  ;;  %7060 = vmatmul.mubr.bf16.gmra.mrb[28].mxu1 %v1702_v7  ;;  %v1704_v55 = vshrl.u32 %v9404_v18, 16  ;;  %v1707_v51 = vshll.u32 %v9404_v18, 16  ;;  %v9492_v14 = vld [vmem:[#allocation10 + $0x180] sm:$0xff]   ;;  %v10224_v7 = vshll.u32 %v9502_v11, 16  ;;  %v10225_v17 = vshrl.u32 %v9502_v11, 16 }
 0x21e   : > { %v1714_v42 = vrot.slane %v1712_v44, 7 }
 0x21f   : > { %v1706_v13 = vrot.slane %v1704_v55, 7  ;;  %v10228_v55 = vshrl.u32 %v9450_v23, 16 }
 0x220   : > { %v1717_v45 = vor.u32 %v1715_v54, %v1714_v42  ;;  %v2959_v19 = vsel %vm1586_vm15, %v1714_v42, %v2958_v9  ;;  %v2357_v42 = vshll.u32 %v9424_v40, 16  ;;  %v2369_v9 = vshrl.u32 %v9428_v30, 16 }
 0x221   : > { %v1709_v20 = vor.u32 %v1707_v51, %v1706_v13 }
 0x222   : > { %v1718_v28 = vsel %vm1586_vm15, %v1706_v13, %v1717_v45  ;;  %v2365_v13 = vshll.u32 %v9428_v30, 16  ;;  %v2359_v45 = vrot.slane %v2357_v42, 1 }
 0x223   : > { %v1710_v16 = vsel %vm1586_vm15, %v1698_v58, %v1709_v20  ;;  %v7837_v58 = vld [vmem:[#allocation10 + $0x160] sm:$0xff]  }
 0x224   : > { %6923 = vmatprep.mubr.bf16.mxu0 %v1710_v16  ;;  %7063 = vmatprep.mubr.bf16.mxu1 %v1710_v16  ;;  %v2367_v20 = vrot.slane %v2365_v13, 1  ;;  %v2373_v16 = vshll.u32 %v9436_v6, 16  ;;  %v9595_v13 = vld [vmem:[#allocation2 + $0x58] sm:$0xff] }
 0x225   : > { %6924 = vmatmul.mubr.bf16.gmra.mrb[60].mxu0 %v1718_v28  ;;  %7064 = vmatmul.mubr.bf16.gmra.mrb[32].mxu1 %v1718_v28  ;;  %v2361_v28 = vshrl.u32 %v9424_v40, 16 }
 0x226   : > { %6943 = vmatprep.mubr.bf16.mxu0 %v9420_v48  ;;  %7067 = vmatprep.mubr.bf16.mxu1 %v2959_v19  ;;  %v2371_v26 = vor.u32 %v2369_v9, %v2367_v20  ;;  %v2375_v19 = vrot.slane %v2373_v16, 1  ;;  %v7853_v9 = vld [vmem:[#allocation10 + $0x1a0] sm:$0xff]  }
 0x22d   : > { %6944 = vmatmul.mubr.bf16.vlgmr.msra.gmra.mrb[32].mxu0 %v9424_v40  ;;  %7068 = vmatmul.mubr.bf16.gmra.mrb[36].mxu1 %v2967_v22  ;;  %v2383_v22 = vrot.slane %v2381_v57, 1  ;;  %v2385_v40 = vshrl.u32 %v9440_v50, 16 }
 0x22e   : > { %6947 = vmatprep.mubr.bf16.mxu0 %v9428_v30  ;;  %7087 = vmatprep.mubr.bf16.mxu1 %v9428_v30  ;;  %v3673_v30 = vshrl.u32 %v9436_v6, 16 }
 0x22f   : > { %6976 = vmatpush3.bf16.msra.mxu0 %v9301_v39  ;;  %v9446_v39 = vrot.slane %v10227_v38, 1 }
 0x230   : > { %6977 = vmatprep.subr.bf16.mxu0 %v7836_v1 }
 0x233   : > { %6978 = vmatpush3.bf16.msra.mxu0 %v7836_v1  ;;  %v2389_v1 = vshll.u32 %v9458_v12, 16 }
 0x234   : > { %6979 = vmatprep.subr.bf16.mxu0 %v7838_v5 }
 0x235   : > { %6948 = vmatmul.mubr.bf16.gmra.mrb[36].mxu0 %v9436_v6  ;;  %7088 = vmatmul.mubr.bf16.vlgmr.msra.gmra.mrb[8].mxu1 %v9436_v6 }
 0x236   : > { %7120 = vmatpush3.bf16.msra.mxu1 %v9350_v60  ;;  %6951 = vmatprep.mubr.bf16.mxu0 %v9440_v50  ;;  %v9455_v60 = vor.u32 %v10229_v46, %v9446_v39 }
 0x237   : > { %7091 = vmatprep.mubr.bf16.mxu1 %v9440_v50  ;;  %7121 = vmatprep.subr.bf16.mxu1 %v7832_v33 }
 0x238   : > { %6980 = vmatpush3.bf16.msra.mxu0 %v7838_v5  ;;  %v9473_v61 = vsel %vm2348_vm7, %v9455_v60, %v9462_v47  ;;  %v9546_v5 = vld [vmem:[#allocation10 + $0x210] sm:$0xff]  }
 0x239   : > { %6981 = vmatprep.subr.bf16.mxu0 %v7839_v27 }
 0x23a   : > { %7122 = vmatpush3.bf16.msra.mxu1 %v7832_v33  ;;  %v2397_v33 = vshll.u32 %v9466_v15, 16 }
 0x23b   : > { %7123 = vmatprep.subr.bf16.mxu1 %v7833_v59 }
 0x23c   : > { %6982 = vmatpush3.bf16.msra.mxu0 %v7839_v27  ;;  %v3675_v27 = vor.u32 %v3673_v30, %v2375_v19 }
 0x23d   : > { %6952 = vmatmul.mubr.bf16.gmra.mrb[40].mxu0 %v9458_v12  ;;  %7092 = vmatmul.mubr.bf16.gmra.mrb[12].mxu1 %v9458_v12 }
 0x23e   : > { %6955 = vmatprep.mubr.bf16.mxu0 %v9466_v15  ;;  %7095 = vmatprep.mubr.bf16.mxu1 %v9466_v15 }
 0x23f   : > { %7124 = vmatpush3.bf16.msra.mxu1 %v7833_v59  ;;  %6983 = vmatprep.subr.bf16.mxu0 %v7841_v52  ;;  %v2391_v59 = vrot.slane %v2389_v1, 1 }
 0x240   : > { %7125 = vmatprep.subr.bf16.mxu1 %v7834_v36  ;;  %6984 = vmatpush3.bf16.msra.mxu0 %v7841_v52  ;;  %v7848_v52 = vld [vmem:[#allocation10 + $0x188] sm:$0xff]  }
 0x241   : > { %6985 = vmatprep.subr.bf16.mxu0 %v7842_v49 }
 0x243   : > { %7126 = vmatpush3.bf16.msra.mxu1 %v7834_v36  ;;  %v2384_v36 = vsel %vm2348_vm7, %v3675_v27, %v2383_v22  ;;  %v9627_v27 = vld [vmem:[#allocation2 + $0x68] sm:$0xff] }
 0x244   : > { %7127 = vmatprep.subr.bf16.mxu1 %v7837_v58  ;;  %6986 = vmatpush3.bf16.msra.mxu0 %v7842_v49  ;;  %v9561_v49 = vld [vmem:[#allocation10 + $0x218] sm:$0xff]  }
 0x245   : > { %6956 = vmatmul.mubr.bf16.gmra.mrb[44].mxu0 %v9475_v56  ;;  %7096 = vmatmul.mubr.bf16.gmra.mrb[16].mxu1 %v9475_v56 }
 0x246   : > { %6959 = vmatprep.mubr.bf16.mxu0 %v9479_v0  ;;  %7099 = vmatprep.mubr.bf16.mxu1 %v9479_v0 }
 0x247   : > { %7128 = vmatpush3.bf16.msra.mxu1 %v7837_v58  ;;  %6987 = vmatprep.subr.bf16.mxu0 %v7844_v62  ;;  %v2401_v58 = vshrl.u32 %v9466_v15, 16 }
 0x248   : > { %7129 = vmatprep.subr.bf16.mxu1 %v7840_v2  ;;  %6988 = vmatpush3.bf16.msra.mxu0 %v7844_v62  ;;  %v2405_v62 = vshll.u32 %v9475_v56, 16 }
 0x249   : > { %6989 = vmatprep.subr.bf16.mxu0 %v7845_v34 }
 0x24b   : > { %7130 = vmatpush3.bf16.msra.mxu1 %v7840_v2  ;;  %v7849_v2 = vld [vmem:[#allocation10 + $0x190] sm:$0xff]  }
 0x24c   : > { %7131 = vmatprep.subr.bf16.mxu1 %v7843_v24  ;;  %6990 = vmatpush3.bf16.msra.mxu0 %v7845_v34  ;;  %v2393_v34 = vshrl.u32 %v9458_v12, 16  ;;  %v7865_v12 = vld [vmem:[#allocation10 + $0x1d0] sm:$0xff]  }
 0x24d   : > { %6960 = vmatmul.mubr.bf16.gmra.mrb[48].mxu0 %v9485_v8  ;;  %7100 = vmatmul.mubr.bf16.gmra.mrb[20].mxu1 %v9485_v8 }
 0x24e   : > { %6963 = vmatprep.mubr.bf16.mxu0 %v9314_v35  ;;  %7103 = vmatprep.mubr.bf16.mxu1 %v9314_v35  ;;  %v2352_v35 = vshll.u32 %v9420_v48, 16  ;;  %v2363_v48 = vor.u32 %v2361_v28, %v2359_v45  ;;  %v10237_v28 = vshll.u32 %v9595_v13, 16 }
 0x24f   : > { %7132 = vmatpush3.bf16.msra.mxu1 %v7843_v24  ;;  %7263 = vmatprep.subr.bf16.mxu0 %v9483_v10 }
 0x250   : > { %7133 = vmatprep.subr.bf16.mxu1 %v7846_v25  ;;  %v2354_v44 = vrot.slane %v2352_v35, 1  ;;  %v2368_v63 = vsel %vm2348_vm7, %v2363_v48, %v2367_v20  ;;  %v2407_v35 = vrot.slane %v2405_v62, 1  ;;  %v2409_v20 = vshrl.u32 %v9475_v56, 16 }
 0x251   : > { %v2431_v30 = vrot.slane %v10237_v28, 1 }
 0x253   : > { %7134 = vmatpush3.bf16.msra.mxu1 %v7846_v25  ;;  %v2413_v25 = vshll.u32 %v9479_v0, 16 }
 0x254   : > { %7167 = vmatprep.subr.bf16.mxu1 %v9492_v14 }
 0x255   : > { %6964 = vmatmul.mubr.bf16.gmra.mrb[52].mxu0 %v9494_v3  ;;  %7104 = vmatmul.mubr.bf16.gmra.mrb[24].mxu1 %v9494_v3 }
 0x256   : > { %6967 = vmatprep.mubr.bf16.mxu0 %v9368_v32  ;;  %7107 = vmatprep.mubr.bf16.mxu1 %v9368_v32  ;;  %v5095_v32 = vrot.slane %v10224_v7, 1 }
 0x258   : > { %v9520_v54 = vor.u32 %v5095_v32, %v10225_v17 }
 0x25d   : > { %6968 = vmatmul.mubr.bf16.gmra.mrb[56].mxu0 %v9361_v4  ;;  %7108 = vmatmul.mubr.bf16.gmra.mrb[28].mxu1 %v9361_v4  ;;  %v5091_v4 = vor.u32 %v9462_v47, %v10228_v55  ;;  %v2399_v47 = vrot.slane %v2397_v33, 1  ;;  %v9670_v55 = vld [vmem:[#allocation2 + $0x80] sm:$0xff] }
 0x25e   : > { %6971 = vmatprep.mubr.bf16.mxu0 %v9404_v18  ;;  %7111 = vmatprep.mubr.bf16.mxu1 %v9404_v18  ;;  %v2355_v18 = vor.u32 %v2354_v44, %v2350_v41  ;;  %v9578_v44 = vld [vmem:[#allocation10 + $0x220] sm:$0xff]   ;;  %v7850_v41 = vld [vmem:[#allocation10 + $0x198] sm:$0xff]  }
 0x25f   : > { %v9524_v51 = vsel %vm2348_vm7, %v5091_v4, %v5095_v32  ;;  %v2403_v24 = vor.u32 %v2401_v58, %v2399_v47  ;;  %v2415_v4 = vrot.slane %v2413_v25, 1 }
 0x260   : > { %v2360_v37 = vsel %vm2348_vm7, %v2355_v18, %v2359_v45  ;;  %v9591_v18 = vld [vmem:[#allocation10 + $0x228] sm:$0xff]   ;;  %v2417_v45 = vshrl.u32 %v9479_v0, 16  ;;  %v10453_v0 = vshll.u32 %v9485_v8, 16 }
 0x261   : > { %v9587_v42 = vsel %vm2348_vm7, %v2403_v24, %v2407_v35  ;;  %v10232_v24 = vshll.u32 %v9627_v27, 16 }
 0x262   : > { %v2419_v16 = vor.u32 %v2417_v45, %v2415_v4 }
 0x265   : > { %6972 = vmatmul.mubr.bf16.gmra.mrb[60].mxu0 %v9402_v53  ;;  %7112 = vmatmul.mubr.bf16.gmra.mrb[32].mxu1 %v9402_v53  ;;  %v9535_v53 = vld [vmem:[#allocation10 + $0x208] sm:$0xff]  }
 0x266   : > { %6991 = vmatprep.mubr.bf16.mxu0 %v2360_v37  ;;  %7115 = vmatprep.mubr.bf16.mxu1 %v9141_v31  ;;  %v2376_v31 = vsel %vm2348_vm7, %v2371_v26, %v2375_v19  ;;  %v10238_v37 = vshll.u32 %v9485_v8, 16  ;;  %v2411_v26 = vor.u32 %v2409_v20, %v2407_v35  ;;  %v9610_v19 = vld [vmem:[#allocation10 + $0x230] sm:$0xff]  }
 0x268   : > { %v2423_v48 = vrot.slane %v10238_v37, 1 }
 0x26d   : > { %6992 = vmatmul.mubr.bf16.vlgmr.msra.gmra.mrb[32].mxu0 %v2368_v63  ;;  %7116 = vmatmul.mubr.bf16.gmra.mrb[36].mxu1 %v9133_v43  ;;  %v2387_v43 = vor.u32 %v2385_v40, %v2383_v22  ;;  %v9613_v63 = vsel %vm2348_vm7, %v2411_v26, %v2415_v4  ;;  %v9619_v22 = vsel %vm2348_vm7, %v2419_v16, %v2423_v48  ;;  %v9643_v4 = vld [vmem:[#allocation2 + $0x70] sm:$0xff]  ;;  %v2447_v26 = vrot.slane %v10232_v24, 1  ;;  %v9694_v24 = vld [vmem:[#allocation2 + $0x88] sm:$0xff] }
 0x26e   : > { %6995 = vmatprep.mubr.bf16.mxu0 %v2376_v31  ;;  %7135 = vmatprep.mubr.bf16.mxu1 %v2376_v31  ;;  %v7856_v31 = vld [vmem:[#allocation10 + $0x1a8] sm:$0xff]  }
 0x26f   : > { %7264 = vmatpush3.bf16.msra.mxu0 %v9483_v10  ;;  %v9557_v6 = vsel %vm2348_vm7, %v2387_v43, %v2391_v59  ;;  %v9623_v43 = vld [vmem:[#allocation10 + $0x238] sm:$0xff]  }
 0x270   : > { %7265 = vmatprep.subr.bf16.mxu0 %v9535_v53 }
 0x273   : > { %7266 = vmatpush3.bf16.msra.mxu0 %v9535_v53 }
 0x274   : > { %7267 = vmatprep.subr.bf16.mxu0 %v9546_v5 }
 0x275   : > { %6996 = vmatmul.mubr.bf16.gmra.mrb[36].mxu0 %v2384_v36  ;;  %7136 = vmatmul.mubr.bf16.vlgmr.msra.gmra.mrb[8].mxu1 %v2384_v36  ;;  %v10240_v36 = vshrl.u32 %v9485_v8, 16 }
 0x276   : > { %7168 = vmatpush3.bf16.msra.mxu1 %v9492_v14  ;;  %6999 = vmatprep.mubr.bf16.mxu0 %v9557_v6  ;;  %v2395_v14 = vor.u32 %v2393_v34, %v2391_v59  ;;  %v10239_v59 = vshrl.u32 %v9595_v13, 16 }
 0x277   : > { %7139 = vmatprep.mubr.bf16.mxu1 %v9557_v6  ;;  %7169 = vmatprep.subr.bf16.mxu1 %v7848_v52 }
 0x278   : > { %7268 = vmatpush3.bf16.msra.mxu0 %v9546_v5  ;;  %v9581_v32 = vsel %vm2348_vm7, %v2395_v14, %v2399_v47  ;;  %v7859_v47 = vld [vmem:[#allocation10 + $0x1b0] sm:$0xff]   ;;  %v2427_v14 = vor.u32 %v10240_v36, %v2423_v48  ;;  %v9655_v48 = vld [vmem:[#allocation2 + $0x78] sm:$0xff] }
 0x279   : > { %7269 = vmatprep.subr.bf16.mxu0 %v9561_v49  ;;  %v10230_v7 = vshll.u32 %v9655_v48, 16  ;;  %v4114_v36 = vld [vmem:[#allocation2 + $0x20] sm:$0x80] }
 0x27a   : > { %7170 = vmatpush3.bf16.msra.mxu1 %v7848_v52  ;;  %v2437_v52 = vshll.u32 %v9494_v3, 16 }
 0x27b   : > { %7171 = vmatprep.subr.bf16.mxu1 %v7849_v2 }
 0x27c   : > { %7270 = vmatpush3.bf16.msra.mxu0 %v9561_v49  ;;  %v2439_v35 = vrot.slane %v2437_v52, 1  ;;  %v2441_v52 = vshrl.u32 %v9494_v3, 16 }
 0x27d   : > { %7000 = vmatmul.mubr.bf16.gmra.mrb[40].mxu0 %v9581_v32  ;;  %7140 = vmatmul.mubr.bf16.gmra.mrb[12].mxu1 %v9581_v32 }
 0x27e   : > { %7003 = vmatprep.mubr.bf16.mxu0 %v9587_v42  ;;  %7143 = vmatprep.mubr.bf16.mxu1 %v9587_v42  ;;  %v2443_v17 = vor.u32 %v2441_v52, %v2439_v35  ;;  %v2330_v52 = vld [vmem:[#allocation2 + $0x88] sm:$0x1] }
 0x27f   : > { %7172 = vmatpush3.bf16.msra.mxu1 %v7849_v2  ;;  %7271 = vmatprep.subr.bf16.mxu0 %v9578_v44  ;;  %v2435_v2 = vor.u32 %v10239_v59, %v2431_v30 }
 0x280   : > { %7173 = vmatprep.subr.bf16.mxu1 %v7850_v41  ;;  %7272 = vmatpush3.bf16.msra.mxu0 %v9578_v44  ;;  %v9668_v38 = vsel %vm2348_vm7, %v2443_v17, %v2447_v26  ;;  %v10234_v17 = vshrl.u32 %v9655_v48, 16 }
 0x281   : > { %7273 = vmatprep.subr.bf16.mxu0 %v9591_v18  ;;  %v9649_v16 = vsel %vm2348_vm7, %v2435_v2, %v2439_v35  ;;  %v10235_v35 = vshll.u32 %v9670_v55, 16 }
 0x283   : > { %7174 = vmatpush3.bf16.msra.mxu1 %v7850_v41  ;;  %v9641_v41 = vsel %vm2348_vm7, %v2427_v14, %v2431_v30  ;;  %v10231_v30 = vshll.u32 %v9643_v4, 16  ;;  %v9660_v14 = vld [vmem:[#allocation10 + $0x1c0] sm:$0xff]   ;;  %v2471_v46 = vrot.slane %v10235_v35, 1 }
 0x284   : > { %7175 = vmatprep.subr.bf16.mxu1 %v7853_v9  ;;  %7274 = vmatpush3.bf16.msra.mxu0 %v9591_v18 }
 0x285   : > { %7004 = vmatmul.mubr.bf16.gmra.mrb[44].mxu0 %v9613_v63  ;;  %7144 = vmatmul.mubr.bf16.gmra.mrb[16].mxu1 %v9613_v63  ;;  %v2455_v29 = vrot.slane %v10231_v30, 1  ;;  %v2477_v30 = vshll.u32 %v2330_v52, 16  ;;  %v3777_v52 = vshrl.u32 %v9694_v24, 16 }
 0x286   : > { %7007 = vmatprep.mubr.bf16.mxu0 %v9619_v22  ;;  %7147 = vmatprep.mubr.bf16.mxu1 %v9619_v22 }
 0x287   : > { %7176 = vmatpush3.bf16.msra.mxu1 %v7853_v9  ;;  %7275 = vmatprep.subr.bf16.mxu0 %v9610_v19  ;;  %v7862_v9 = vld [vmem:[#allocation10 + $0x1b8] sm:$0xff]   ;;  %v2479_v35 = vrot.slane %v2477_v30, 1  ;;  %v4149_v30 = vshrl.u32 %v4114_v36, 16 }
 0x288   : > { %7177 = vmatprep.subr.bf16.mxu1 %v7856_v31  ;;  %7276 = vmatpush3.bf16.msra.mxu0 %v9610_v19 }
 0x289   : > { %7277 = vmatprep.subr.bf16.mxu0 %v9623_v43 }
 0x28b   : > { %7178 = vmatpush3.bf16.msra.mxu1 %v7856_v31  ;;  %v10233_v31 = vshrl.u32 %v9627_v27, 16 }
 0x28c   : > { %7179 = vmatprep.subr.bf16.mxu1 %v7859_v47  ;;  %7278 = vmatpush3.bf16.msra.mxu0 %v9623_v43 }
 0x28d   : > { %7008 = vmatmul.mubr.bf16.gmra.mrb[48].mxu0 %v9641_v41  ;;  %7148 = vmatmul.mubr.bf16.gmra.mrb[20].mxu1 %v9641_v41  ;;  %v2451_v2 = vor.u32 %v10233_v31, %v2447_v26 }
 0x28e   : > { %7011 = vmatprep.mubr.bf16.mxu0 %v9649_v16  ;;  %7151 = vmatprep.mubr.bf16.mxu1 %v9649_v16 }
 0x28f   : > { %7180 = vmatpush3.bf16.msra.mxu1 %v7859_v47  ;;  %v9676_v3 = vsel %vm2348_vm7, %v2451_v2, %v2455_v29  ;;  %v2463_v47 = vrot.slane %v10230_v7, 1 }
 0x290   : > { %7181 = vmatprep.subr.bf16.mxu1 %v7862_v9 }
 0x291   : > { %v2467_v26 = vor.u32 %v10234_v17, %v2463_v47  ;;  %v10241_v17 = vshll.u32 %v9694_v24, 16 }
 0x293   : > { %7182 = vmatpush3.bf16.msra.mxu1 %v7862_v9  ;;  %v10236_v9 = vshrl.u32 %v9643_v4, 16  ;;  %v9699_v31 = vsel %vm2348_vm7, %v2467_v26, %v2471_v46 }
 0x294   : > { %7215 = vmatprep.subr.bf16.mxu1 %v9660_v14 }
 0x295   : > { %7012 = vmatmul.mubr.bf16.gmra.mrb[52].mxu0 %v9668_v38  ;;  %7152 = vmatmul.mubr.bf16.gmra.mrb[24].mxu1 %v9668_v38  ;;  %v2459_v2 = vor.u32 %v10236_v9, %v2455_v29  ;;  %v2473_v29 = vshrl.u32 %v9670_v55, 16  ;;  %v3643_v9 = vld [vmem:[#allocation2 + $0x98] sm:$0x1] }
 0x296   : > { %7015 = vmatprep.mubr.bf16.mxu0 %v9676_v3  ;;  %7155 = vmatprep.mubr.bf16.mxu1 %v9676_v3  ;;  %v3789_v59 = vshll.u32 %v3643_v9, 16 }
 0x297   : > { %v9692_v7 = vsel %vm2348_vm7, %v2459_v2, %v2463_v47  ;;  %v3775_v47 = vrot.slane %v10241_v17, 1  ;;  %v2475_v2 = vor.u32 %v2473_v29, %v2471_v46  ;;  %v4155_v46 = vrot.slane %v2385_v40, 7 }
 0x299   : > { %v3779_v26 = vor.u32 %v3777_v52, %v3775_v47  ;;  %v2480_v28 = vsel %vm2348_vm7, %v2475_v2, %v2479_v35  ;;  %v9714_v37 = vsel %vm2348_vm7, %v2475_v2, %v3775_v47  ;;  %v3791_v35 = vrot.slane %v3789_v59, 1 }
 0x29a   : > { %v4158_v9 = vor.u32 %v4155_v46, %v2381_v57  ;;  %v4151_v47 = vrot.slane %v4149_v30, 7  ;;  %v7864_v57 = vld [vmem:[#allocation10 + $0x1c8] sm:$0xff]   ;;  %v10452_v59 = vshrl.u32 %v9595_v13, 16 }
 0x29b   : > { %v9719_v17 = vsel %vm2348_vm7, %v3779_v26, %v9446_v39  ;;  %v4163_v39 = vrot.slane %v2393_v34, 7  ;;  %v7868_v30 = vld [vmem:[#allocation10 + $0x1e8] sm:$0xff]  }
 0x29c   : > { %v4159_v40 = vsel %vm1586_vm15, %v4151_v47, %v4158_v9  ;;  %v4203_v56 = vrot.slane %v10452_v59, 7 }
 0x29d   : > { %7016 = vmatmul.mubr.bf16.gmra.mrb[56].mxu0 %v9692_v7  ;;  %7156 = vmatmul.mubr.bf16.gmra.mrb[28].mxu1 %v9692_v7  ;;  %v4166_v50 = vor.u32 %v4163_v39, %v2389_v1 }
 0x29e   : > { %7019 = vmatprep.mubr.bf16.mxu0 %v9699_v31  ;;  %7159 = vmatprep.mubr.bf16.mxu1 %v9699_v31 }
 0x29f   : > { %v4167_v34 = vsel %vm1586_vm15, %v4155_v46, %v4166_v50 }
 0x2a5   : > { %7020 = vmatmul.mubr.bf16.gmra.mrb[60].mxu0 %v2480_v28  ;;  %7160 = vmatmul.mubr.bf16.gmra.mrb[32].mxu1 %v9714_v37  ;;  %v3792_v28 = vsel %vm2348_vm7, %v9455_v60, %v3791_v35 }
 0x2a6   : > { %7163 = vmatprep.mubr.bf16.mxu1 %v9719_v17  ;;  %7279 = vmatprep.mubr.bf16.mxu0 %v9557_v6  ;;  %v4171_v6 = vrot.slane %v2401_v58, 7 }
 0x2a8   : > { %v4174_v60 = vor.u32 %v4171_v6, %v2397_v33 }
 0x2aa   : > { %v4175_v58 = vsel %vm1586_vm15, %v4163_v39, %v4174_v60  ;;  %v10456_v39 = vshll.u32 %v9627_v27, 16  ;;  %v7870_v60 = vld [vmem:[#allocation10 + $0x1f8] sm:$0xff]  }
 0x2ad   : > { %7164 = vmatmul.mubr.bf16.gmra.mrb[36].mxu1 %v3792_v28  ;;  %7280 = vmatmul.mubr.bf16.vlgmr.msra.gmra.mrb[64].mxu0 %v9581_v32  ;;  %v4179_v32 = vrot.slane %v2409_v20, 7  ;;  %v10451_v20 = vshrl.u32 %v9485_v8, 16  ;;  %v10455_v8 = vshrl.u32 %v9627_v27, 16  ;;  %v7869_v28 = vld [vmem:[#allocation10 + $0x1f0] sm:$0xff]  }
 0x2ae   : > { %7183 = vmatprep.mubr.bf16.mxu1 %v4159_v40  ;;  %7283 = vmatprep.mubr.bf16.mxu0 %v9587_v42  ;;  %v4187_v42 = vrot.slane %v2417_v45, 7 }
 0x2af   : > { %v4182_v15 = vor.u32 %v4179_v32, %v2405_v62  ;;  %v4195_v45 = vrot.slane %v10451_v20, 7  ;;  %v9760_v62 = vld [vmem:[#allocation2 + $0x60] sm:$0xff]  ;;  %v4219_v35 = vrot.slane %v10455_v8, 7 }
 0x2b0   : > { %v4190_v1 = vor.u32 %v4187_v42, %v2413_v25  ;;  %v4209_v36 = vshrl.u32 %v9760_v62, 16  ;;  %v4212_v9 = vshll.u32 %v9760_v62, 16 }
 0x2b1   : > { %v4183_v33 = vsel %vm1586_vm15, %v4171_v6, %v4182_v15  ;;  %v4198_v25 = vor.u32 %v4195_v45, %v10453_v0  ;;  %v4222_v40 = vor.u32 %v4219_v35, %v10456_v39  ;;  %v10457_v6 = vshrl.u32 %v9643_v4, 16  ;;  %v4605_v39 = vld [vmem:[#allocation2 + $0x48] sm:$0xff] }
 0x2b2   : > { %v4211_v46 = vrot.slane %v4209_v36, 7  ;;  %v10466_v36 = vshll.u32 %v9450_v23, 16 }
 0x2b3   : > { %v4199_v26 = vsel %vm1586_vm15, %v4187_v42, %v4198_v25  ;;  %v4227_v50 = vrot.slane %v10457_v6, 7  ;;  %v10460_v42 = vshll.u32 %v9655_v48, 16 }
 0x2b4   : > { %v4214_v47 = vor.u32 %v4212_v9, %v4211_v46  ;;  %v4602_v9 = vld [vmem:[#allocation2 + $0x30] sm:$0xff] }
 0x2b5   : > { %7184 = vmatmul.mubr.bf16.vlgmr.msra.gmra.mrb[8].mxu1 %v4167_v34  ;;  %7284 = vmatmul.mubr.bf16.gmra.mrb[68].mxu0 %v9613_v63  ;;  %v7866_v63 = vld [vmem:[#allocation10 + $0x1d8] sm:$0xff]  }
 0x2b6   : > { %7216 = vmatpush3.bf16.msra.mxu1 %v9660_v14  ;;  %7187 = vmatprep.mubr.bf16.mxu1 %v4175_v58  ;;  %v7867_v14 = vld [vmem:[#allocation10 + $0x1e0] sm:$0xff]  }
 0x2b7   : > { %7287 = vmatprep.mubr.bf16.mxu0 %v9619_v22  ;;  %7217 = vmatprep.subr.bf16.mxu1 %v7864_v57  ;;  %v4191_v22 = vsel %vm1586_vm15, %v4179_v32, %v4190_v1  ;;  %v10459_v32 = vshll.u32 %v9643_v4, 16  ;;  %v4251_v1 = vrot.slane %v3777_v52, 7  ;;  %v10465_v52 = vshll.u32 %v9433_v21, 16 }
 0x2b9   : > { %v4230_v58 = vor.u32 %v4227_v50, %v10459_v32 }
 0x2ba   : > { %7218 = vmatpush3.bf16.msra.mxu1 %v7864_v57  ;;  %v10458_v57 = vshrl.u32 %v9655_v48, 16 }
 0x2bb   : > { %7219 = vmatprep.subr.bf16.mxu1 %v7865_v12  ;;  %v4231_v15 = vsel %vm1586_vm15, %v4219_v35, %v4230_v58  ;;  %v4601_v35 = vld [vmem:[#allocation2 + $0x28] sm:$0xff] }
 0x2bc   : > { %v4235_v34 = vrot.slane %v10458_v57, 7 }
 0x2bd   : > { %7188 = vmatmul.mubr.bf16.gmra.mrb[12].mxu1 %v4183_v33  ;;  %7288 = vmatmul.mubr.bf16.gmra.mrb[72].mxu0 %v9641_v41  ;;  %v10454_v41 = vshll.u32 %v9595_v13, 16  ;;  %v10461_v33 = vshll.u32 %v9670_v55, 16 }
 0x2be   : > { %7191 = vmatprep.mubr.bf16.mxu1 %v4191_v22  ;;  %7291 = vmatprep.mubr.bf16.mxu0 %v9649_v16 }
 0x2bf   : > { %7220 = vmatpush3.bf16.msra.mxu1 %v7865_v12  ;;  %v4206_v2 = vor.u32 %v4203_v56, %v10454_v41  ;;  %v4238_v12 = vor.u32 %v4235_v34, %v10460_v42 }
 0x2c0   : > { %7221 = vmatprep.subr.bf16.mxu1 %v7866_v63 }
 0x2c1   : > { %v4207_v16 = vsel %vm1586_vm15, %v4195_v45, %v4206_v2  ;;  %v10462_v45 = vshll.u32 %v9694_v24, 16  ;;  %v10467_v2 = vshrl.u32 %v9502_v11, 16 }
 0x2c3   : > { %7222 = vmatpush3.bf16.msra.mxu1 %v7866_v63  ;;  %v4254_v63 = vor.u32 %v4251_v1, %v10462_v45 }
 0x2c4   : > { %7223 = vmatprep.subr.bf16.mxu1 %v7867_v14 }
 0x2c5   : > { %7192 = vmatmul.mubr.bf16.gmra.mrb[16].mxu1 %v4199_v26  ;;  %7292 = vmatmul.mubr.bf16.gmra.mrb[76].mxu0 %v9668_v38  ;;  %v4215_v38 = vsel %vm1586_vm15, %v4203_v56, %v4214_v47  ;;  %v10464_v56 = vshrl.u32 %v9450_v23, 16  ;;  %v4275_v26 = vrot.slane %v10467_v2, 7  ;;  %v4603_v47 = vld [vmem:[#allocation2 + $0x38] sm:$0xff] }
 0x2c6   : > { %7195 = vmatprep.mubr.bf16.mxu1 %v4207_v16  ;;  %7295 = vmatprep.mubr.bf16.mxu0 %v9676_v3  ;;  %v4223_v3 = vsel %vm1586_vm15, %v4211_v46, %v4222_v40  ;;  %v7876_v40 = vld [vmem:[#allocation12 + $0x28] sm:$0xff]  }
 0x2c7   : > { %7224 = vmatpush3.bf16.msra.mxu1 %v7867_v14  ;;  %v4267_v0 = vrot.slane %v10464_v56, 7 }
 0x2c8   : > { %7225 = vmatprep.subr.bf16.mxu1 %v7868_v30 }
 0x2c9   : > { %v4270_v14 = vor.u32 %v10466_v36, %v4267_v0 }
 0x2cb   : > { %7226 = vmatpush3.bf16.msra.mxu1 %v7868_v30  ;;  %v10468_v30 = vshll.u32 %v9502_v11, 16 }
 0x2cc   : > { %7227 = vmatprep.subr.bf16.mxu1 %v7869_v28 }
 0x2cd   : > { %7196 = vmatmul.mubr.bf16.gmra.mrb[20].mxu1 %v4215_v38  ;;  %7296 = vmatmul.mubr.bf16.gmra.mrb[80].mxu0 %v9692_v7  ;;  %v4243_v7 = vrot.slane %v2473_v29, 7  ;;  %v10463_v29 = vshrl.u32 %v9433_v21, 16  ;;  %v4278_v16 = vor.u32 %v10468_v30, %v4275_v26  ;;  %v7877_v38 = vld [vmem:[#allocation12 + $0x30] sm:$0xff]  }
 0x2ce   : > { %7199 = vmatprep.mubr.bf16.mxu1 %v4223_v3  ;;  %7299 = vmatprep.mubr.bf16.mxu0 %v9699_v31  ;;  %v4239_v31 = vsel %vm1586_vm15, %v4227_v50, %v4238_v12  ;;  %v7878_v3 = vld [vmem:[#allocation12 + $0x38] sm:$0xff]  }
 0x2cf   : > { %7228 = vmatpush3.bf16.msra.mxu1 %v7869_v28  ;;  %v4246_v20 = vor.u32 %v4243_v7, %v10461_v33  ;;  %v4259_v59 = vrot.slane %v10463_v29, 7  ;;  %v4279_v8 = vsel %vm1586_vm15, %v4267_v0, %v4278_v16  ;;  %v4604_v28 = vld [vmem:[#allocation2 + $0x40] sm:$0xff] }
 0x2d0   : > { %7229 = vmatprep.subr.bf16.mxu1 %v7870_v60 }
 0x2d1   : > { %v4247_v22 = vsel %vm1586_vm15, %v4235_v34, %v4246_v20  ;;  %v4262_v25 = vor.u32 %v4259_v59, %v10465_v52  ;;  %v4271_v46 = vsel %vm1586_vm15, %v4259_v59, %v4270_v14 }
 0x2d3   : > { %7230 = vmatpush3.bf16.msra.mxu1 %v7870_v60  ;;  %v4263_v41 = vsel %vm1586_vm15, %v4251_v1, %v4262_v25 }
 0x2d4   : > { %7359 = vmatprep.subr.bf16.mxu1 %v9483_v10 }
 0x2d5   : > { %7200 = vmatmul.mubr.bf16.gmra.mrb[24].mxu1 %v4231_v15  ;;  %7300 = vmatmul.mubr.bf16.gmra.mrb[84].mxu0 %v9714_v37  ;;  %v4255_v37 = vsel %vm1586_vm15, %v4243_v7, %v4254_v63 }
 0x2d6   : > { %7203 = vmatprep.mubr.bf16.mxu1 %v4239_v31 }
 0x2dd   : > { %7204 = vmatmul.mubr.bf16.gmra.mrb[28].mxu1 %v4247_v22 }
 0x2de   : > { %7207 = vmatprep.mubr.bf16.mxu1 %v4255_v37 }
 0x2e5   : > { %7208 = vmatmul.mubr.bf16.gmra.mrb[32].mxu1 %v4263_v41 }
 0x2e6   : > { %7211 = vmatprep.mubr.bf16.mxu1 %v4271_v46 }
 0x2ed   : > { %7212 = vmatmul.mubr.bf16.gmra.mrb[36].mxu1 %v4279_v8 }
 0x2ee   : > { %7231 = vmatprep.mubr.bf16.mxu1 %v4601_v35 }
 0x2f5   : > { %7232 = vmatmul.mubr.bf16.vlgmr.msra.gmra.mrb[8].mxu1 %v4602_v9 }
 0x2f6   : > { %7367 = vmatpush3.bf16.msra.mxu1 %v9483_v10  ;;  %7235 = vmatprep.mubr.bf16.mxu1 %v4603_v47  ;;  %v4606_v10 = vld [vmem:[#allocation2 + $0x50] sm:$0xff] }
 0x2f7   : > { %7360 = vmatprep.subr.bf16.mxu1 %v9535_v53 }
 0x2fa   : > { %7368 = vmatpush3.bf16.msra.mxu1 %v9535_v53  ;;  %v7871_v53 = vld [vmem:[#allocation12] sm:$0xff]  }
 0x2fb   : > { %7361 = vmatprep.subr.bf16.mxu1 %v9546_v5  ;;  %7311 = vmatprep.subr.bf16.mxu0 %v7871_v53 }
 0x2fc   : > { %7312 = vmatpush3.bf16.msra.mxu0 %v7871_v53 }
 0x2fd   : > { %7236 = vmatmul.mubr.bf16.gmra.mrb[12].mxu1 %v4604_v28 }
 0x2fe   : > { %7239 = vmatprep.mubr.bf16.mxu1 %v4605_v39  ;;  %7369 = vmatpush3.bf16.msra.mxu1 %v9546_v5  ;;  %v7872_v5 = vld [vmem:[#allocation12 + $0x8] sm:$0xff]  }
 0x2ff   : > { %7362 = vmatprep.subr.bf16.mxu1 %v9561_v49  ;;  %7313 = vmatprep.subr.bf16.mxu0 %v7872_v5 }
 0x300   : > { %7314 = vmatpush3.bf16.msra.mxu0 %v7872_v5 }
 0x302   : > { %7370 = vmatpush3.bf16.msra.mxu1 %v9561_v49  ;;  %v7873_v49 = vld [vmem:[#allocation12 + $0x10] sm:$0xff]  }
 0x303   : > { %7363 = vmatprep.subr.bf16.mxu1 %v9578_v44  ;;  %7315 = vmatprep.subr.bf16.mxu0 %v7873_v49 }
 0x304   : > { %7316 = vmatpush3.bf16.msra.mxu0 %v7873_v49 }
 0x305   : > { %7240 = vmatmul.mubr.bf16.gmra.mrb[16].mxu1 %v4606_v10 }
 0x306   : > { %7243 = vmatprep.mubr.bf16.mxu1 %v9595_v13  ;;  %7371 = vmatpush3.bf16.msra.mxu1 %v9578_v44  ;;  %v4955_v44 = vld [vmem:[#allocation2 + $0xa8] sm:$0x1] }
 0x307   : > { %7364 = vmatprep.subr.bf16.mxu1 %v9591_v18 }
 0x30a   : > { %7372 = vmatpush3.bf16.msra.mxu1 %v9591_v18  ;;  %v5101_v18 = vshll.u32 %v4955_v44, 16 }
 0x30b   : > { %7365 = vmatprep.subr.bf16.mxu1 %v9610_v19 }
 0x30d   : > { %7244 = vmatmul.mubr.bf16.gmra.mrb[20].mxu1 %v9760_v62 }
 0x30e   : > { %7247 = vmatprep.mubr.bf16.mxu1 %v9627_v27  ;;  %7373 = vmatpush3.bf16.msra.mxu1 %v9610_v19 }
 0x30f   : > { %7366 = vmatprep.subr.bf16.mxu1 %v9623_v43 }
 0x312   : > { %7374 = vmatpush3.bf16.msra.mxu1 %v9623_v43 }
 0x315   : > { %7248 = vmatmul.mubr.bf16.gmra.mrb[24].mxu1 %v9643_v4 }
 0x316   : > { %7251 = vmatprep.mubr.bf16.mxu1 %v9655_v48 }
 0x31d   : > { %7252 = vmatmul.mubr.bf16.gmra.mrb[28].mxu1 %v9670_v55  ;;  %v7874_v55 = vld [vmem:[#allocation12 + $0x18] sm:$0xff]  }
 0x31e   : > { %7255 = vmatprep.mubr.bf16.mxu1 %v9694_v24  ;;  %7317 = vmatprep.subr.bf16.mxu0 %v7874_v55 }
 0x31f   : > { %7318 = vmatpush3.bf16.msra.mxu0 %v7874_v55 }
 0x325   : > { %7256 = vmatmul.mubr.bf16.gmra.mrb[32].mxu1 %v9433_v21  ;;  %v7875_v21 = vld [vmem:[#allocation12 + $0x20] sm:$0xff]  }
 0x326   : > { %7259 = vmatprep.mubr.bf16.mxu1 %v9450_v23  ;;  %v5103_v23 = vrot.slane %v5101_v18, 1  ;;  %7319 = vmatprep.subr.bf16.mxu0 %v7875_v21 }
 0x327   : > { %7320 = vmatpush3.bf16.msra.mxu0 %v7875_v21 }
 0x328   : > { %7321 = vmatprep.subr.bf16.mxu0 %v7876_v40 }
 0x32b   : > { %7322 = vmatpush3.bf16.msra.mxu0 %v7876_v40 }
 0x32c   : > { %7323 = vmatprep.subr.bf16.mxu0 %v7877_v38 }
 0x32d   : > { %7260 = vmatmul.mubr.bf16.gmra.mrb[36].mxu1 %v9502_v11  ;;  %v5104_v11 = vsel %vm2348_vm7, %v9520_v54, %v5103_v23  ;;  %v9948_v23 = vld [vmem:[%s10477_s26] ss:$0 sm:$0xff]  ;;  %s8058_s26 = scalar_lea.vmem %s8057_s23, 4096 }
 0x32e   : > { %7303 = vmatprep.mubr.bf16.mxu1 %v9719_v17  ;;  %p8060_p1 = scmp.lt.s32.totalorder %s8058_s26, %s8052_s8 }
 0x32f   : > { %7324 = vmatpush3.bf16.msra.mxu0 %v7877_v38 }
 0x330   : > { %7325 = vmatprep.subr.bf16.mxu0 %v7878_v3  ;;  %p8061_p13 = por %p8060_p1, %p8059_p3 }
 0x332   : > { %p8062_p6 = pnand %p8061_p13, %p8055_p10 }
 0x333   : > { %7326 = vmatpush3.bf16.msra.mxu0 %v7878_v3 }
 0x335   : > { %7304 = vmatmul.mubr.bf16.vlgmr.msra.gmra.mrb[32].mxu1 %v9473_v61 }
 0x336   : > { %7307 = vmatprep.mubr.bf16.mxu1 %v9524_v51 }
 0x33d   : > { %7308 = vmatmul.mubr.bf16.gmra.mrb[36].mxu1 %v5104_v11 }
 0x340   : > { %v9848_v13 = vpop.f32.mrb[32].mxu0 }
 0x341   : > { %v9850_v19 = vpop.f32.mrb[33].mxu0 }
 0x342   : > { %v9852_v43 = vpop.f32.mrb[34].mxu0 }
 0x343   : > { %v9854_v61 = vpop.f32.mrb[35].mxu0 }
 0x348   : > { %v9856_v51 = vpop.f32.mrb[36].mxu0 }
 0x349   : > { %v9858_v27 = vpop.f32.mrb[37].mxu0 }
 0x34a   : > { %v9860_v24 = vpop.f32.mrb[38].mxu0 }
 0x34b   : > { %v9862_v4 = vpop.f32.mrb[39].mxu0 }
 0x350   : > { %v9864_v48 = vpop.f32.mrb[40].mxu0 }
 0x351   : > { %v9866_v54 = vpop.f32.mrb[41].mxu0 }
 0x352   : > { %v9868_v17 = vpop.f32.mrb[42].mxu0 }
 0x353   : > { %v9870_v62 = vpop.f32.mrb[43].mxu0 }
 0x358   : > { %v9872_v6 = vpop.f32.mrb[44].mxu0 }
 0x359   : > { %v9874_v50 = vpop.f32.mrb[45].mxu0 }
 0x35a   : > { %v9876_v60 = vpop.f32.mrb[46].mxu0 }
 0x35b   : > { %v9878_v57 = vpop.f32.mrb[47].mxu0 }
 0x360   : > { %v9880_v34 = vpop.f32.mrb[48].mxu0 }
 0x361   : > { %v9882_v32 = vpop.f32.mrb[49].mxu0 }
 0x362   : > { %v9884_v58 = vpop.f32.mrb[50].mxu0 }
 0x363   : > { %v9886_v42 = vpop.f32.mrb[51].mxu0 }
 0x368   : > { %v9888_v12 = vpop.f32.mrb[52].mxu0 }
 0x369   : > { %v9890_v15 = vpop.f32.mrb[53].mxu0 }
 0x36a   : > { %v9892_v7 = vpop.f32.mrb[54].mxu0 }
 0x36b   : > { %v9894_v31 = vpop.f32.mrb[55].mxu0 }
 0x370   : > { %v9896_v1 = vpop.f32.mrb[56].mxu0 }
 0x371   : > { %10469 = vst [vmem:[#allocation33_spill] sm:$0xff] %v9896_v1  ;;  %v9898_v33 = vpop.f32.mrb[57].mxu0 }
 0x372   : > { %10470 = vst [vmem:[#allocation34_spill] sm:$0xff] %v9898_v33  ;;  %v9900_v20 = vpop.f32.mrb[58].mxu0 }
 0x373   : > { %10471 = vst [vmem:[#allocation35_spill] sm:$0xff] %v9900_v20  ;;  %v9902_v45 = vpop.f32.mrb[59].mxu0 }
 0x374   : > { %10472 = vst [vmem:[#allocation36_spill] sm:$0xff] %v9902_v45 }
 0x378   : > { %v9904_v63 = vpop.f32.mrb[60].mxu0 }
 0x379   : > { %10473 = vst [vmem:[#allocation37_spill] sm:$0xff] %v9904_v63  ;;  %v9906_v22 = vpop.f32.mrb[61].mxu0 }
 0x37a   : > { %10474 = vst [vmem:[#allocation38_spill] sm:$0xff] %v9906_v22  ;;  %v9908_v29 = vpop.f32.mrb[62].mxu0 }
 0x37b   : > { %10475 = vst [vmem:[#allocation39_spill] sm:$0xff] %v9908_v29  ;;  %v9910_v59 = vpop.f32.mrb[63].mxu0 }
 0x37c   : > { %10476 = vst [vmem:[#allocation40_spill] sm:$0xff] %v9910_v59 }
 0x380   : > { %v7281_v37 = vpop.f32.mrb[64].mxu0 }
 0x381   : > { %v5203_v56 = vpop.f32.mrb[65].mxu0 }
 0x382   : > { %v7282_v0 = vpop.f32.mrb[66].mxu0 }
 0x383   : > { %v5206_v52 = vpop.f32.mrb[67].mxu0 }
 0x388   : > { %v7285_v25 = vpop.f32.mrb[68].mxu0 }
 0x389   : > { %v5219_v36 = vpop.f32.mrb[69].mxu0 }
 0x38a   : > { %v7286_v14 = vpop.f32.mrb[70].mxu0 }
 0x38b   : > { %v5222_v41 = vpop.f32.mrb[71].mxu0 }
 0x390   : > { %v9912_v2 = vpop.f32.mrb[72].mxu0 }
 0x391   : > { %v9914_v26 = vpop.f32.mrb[73].mxu0 }
 0x392   : > { %v9916_v46 = vpop.f32.mrb[74].mxu0 }
 0x393   : > { %v9918_v30 = vpop.f32.mrb[75].mxu0 }
 0x398   : > { %v9920_v16 = vpop.f32.mrb[76].mxu0 }
 0x399   : > { %v9922_v8 = vpop.f32.mrb[77].mxu0 }
 0x39a   : > { %v9924_v35 = vpop.f32.mrb[78].mxu0 }
 0x39b   : > { %v9926_v9 = vpop.f32.mrb[79].mxu0 }
 0x3a0   : > { %v9928_v47 = vpop.f32.mrb[80].mxu0 }
 0x3a1   : > { %v9930_v28 = vpop.f32.mrb[81].mxu0 }
 0x3a2   : > { %v9932_v39 = vpop.f32.mrb[82].mxu0 }
 0x3a3   : > { %v9934_v10 = vpop.f32.mrb[83].mxu0 }
 0x3a8   : > { %v9936_v53 = vpop.f32.mrb[84].mxu0 }
 0x3a9   : > { %v9938_v5 = vpop.f32.mrb[85].mxu0 }
 0x3aa   : > { %v9940_v49 = vpop.f32.mrb[86].mxu0 }
 0x3ab   : > { %v9942_v44 = vpop.f32.mrb[87].mxu0 }
 0x3c8   : > { %v7233_v55 = vpop.f32.mrb[8].mxu1 }
 0x3c9   : > { %v7375_v18 = vadd.f32 %v7233_v55, %v9848_v13  ;;  %v4716_v21 = vpop.f32.mrb[9].mxu1 }
 0x3ca   : > { %v7377_v11 = vadd.f32 %v4716_v21, %v9850_v19  ;;  %v7234_v40 = vpop.f32.mrb[10].mxu1 }
 0x3cb   : > { %v7376_v38 = vadd.f32 %v7375_v18, %v7281_v37  ;;  %v7379_v3 = vadd.f32 %v7234_v40, %v9852_v43  ;;  %v4719_v59 = vpop.f32.mrb[11].mxu1 }
 0x3cc   : > { %v7378_v29 = vadd.f32 %v7377_v11, %v5203_v56  ;;  %v7381_v22 = vadd.f32 %v4719_v59, %v9854_v61 }
 0x3cd   : > { %v5467_v63 = vadd.f32 %v7376_v38, %v9948_v23  ;;  %v7380_v45 = vadd.f32 %v7379_v3, %v7282_v0 }
 0x3ce   : > { %v5465_v13 = vadd.f32 %v7378_v29, %v9948_v23  ;;  %v7382_v55 = vadd.f32 %v7381_v22, %v5206_v52 }
 0x3cf   : > { %v5468_v20 = vadd.f32 %v7380_v45, %v9948_v23  ;;  %v5499_v19 = vmax.f32 %v5467_v63, 0.0 }
 0x3d0   : > { %v5466_v33 = vadd.f32 %v7382_v55, %v9948_v23  ;;  %v7237_v1 = vpop.f32.mrb[12].mxu1  ;;  %v5497_v18 = vmax.f32 %v5465_v13, 0.0 }
 0x3d1   : > { %v5500_v21 = vmax.f32 %v5468_v20, 0.0  ;;  %v7383_v37 = vadd.f32 %v7237_v1, %v9856_v51  ;;  %v4732_v43 = vpop.f32.mrb[13].mxu1 }
 0x3d2   : > { %v5498_v56 = vmax.f32 %v5466_v33, 0.0  ;;  %v7385_v61 = vadd.f32 %v4732_v43, %v9858_v27  ;;  %v7238_v59 = vpop.f32.mrb[14].mxu1 }
 0x3d3   : > { %v5530_v11 = vpack.c.bf16 %v5500_v21, %v5499_v19  ;;  %v7384_v0 = vadd.f32 %v7383_v37, %v7285_v25  ;;  %v7387_v29 = vadd.f32 %v7238_v59, %v9860_v24  ;;  %v4735_v22 = vpop.f32.mrb[15].mxu1 }
 0x3d4   : > { %v7386_v52 = vadd.f32 %v7385_v61, %v5219_v36  ;;  %v7389_v45 = vadd.f32 %v4735_v22, %v9862_v4  ;;  %v5529_v40 = vpack.c.bf16 %v5498_v56, %v5497_v18 }
 0x3d5   : > { %v5471_v63 = vadd.f32 %v7384_v0, %v9948_v23  ;;  %v7388_v20 = vadd.f32 %v7387_v29, %v7286_v14 }
 0x3d6   : > { %v5469_v51 = vadd.f32 %v7386_v52, %v9948_v23  ;;  %v7390_v1 = vadd.f32 %v7389_v45, %v5222_v41  ;;  %7327 = vmatprep.mubr.bf16.mxu0 %v5529_v40 }
 0x3d7   : > { %v5472_v33 = vadd.f32 %v7388_v20, %v9948_v23  ;;  %7328 = vmatmul.mubr.bf16.vlgmr.msra.gmra.mrb[88].mxu0 %v5530_v11  ;;  %v5503_v38 = vmax.f32 %v5471_v63, 0.0 }
 0x3d8   : > { %v5470_v27 = vadd.f32 %v7390_v1, %v9948_v23  ;;  %v7241_v25 = vpop.f32.mrb[16].mxu1  ;;  %v5501_v4 = vmax.f32 %v5469_v51, 0.0 }
 0x3d9   : > { %v5504_v24 = vmax.f32 %v5472_v33, 0.0  ;;  %v7391_v36 = vadd.f32 %v7241_v25, %v9864_v48  ;;  %v4748_v3 = vpop.f32.mrb[17].mxu1 }
 0x3da   : > { %v5502_v13 = vmax.f32 %v5470_v27, 0.0  ;;  %v7393_v55 = vadd.f32 %v4748_v3, %v9866_v54  ;;  %v7242_v14 = vpop.f32.mrb[18].mxu1 }
 0x3db   : > { %v7392_v19 = vadd.f32 %v7391_v36, %v9912_v2  ;;  %v7395_v41 = vadd.f32 %v7242_v14, %v9868_v17  ;;  %v4751_v21 = vpop.f32.mrb[19].mxu1  ;;  %v5532_v37 = vpack.c.bf16 %v5504_v24, %v5503_v38 }
 0x3dc   : > { %v7394_v43 = vadd.f32 %v7393_v55, %v9914_v26  ;;  %v7397_v18 = vadd.f32 %v4751_v21, %v9870_v62  ;;  %v5531_v56 = vpack.c.bf16 %v5502_v13, %v5501_v4 }
 0x3dd   : > { %v5475_v61 = vadd.f32 %v7392_v19, %v9948_v23  ;;  %v7396_v48 = vadd.f32 %v7395_v41, %v9916_v46 }
 0x3de   : > { %v5473_v59 = vadd.f32 %v7394_v43, %v9948_v23  ;;  %v7398_v54 = vadd.f32 %v7397_v18, %v9918_v30  ;;  %7331 = vmatprep.mubr.bf16.mxu0 %v5531_v56 }
 0x3df   : > { %v5476_v2 = vadd.f32 %v7396_v48, %v9948_v23  ;;  %7332 = vmatmul.mubr.bf16.gmra.mrb[92].mxu0 %v5532_v37  ;;  %v5507_v0 = vmax.f32 %v5475_v61, 0.0 }
 0x3e0   : > { %v5474_v17 = vadd.f32 %v7398_v54, %v9948_v23  ;;  %v7245_v11 = vpop.f32.mrb[20].mxu1  ;;  %v5505_v22 = vmax.f32 %v5473_v59, 0.0 }
 0x3e1   : > { %v5508_v26 = vmax.f32 %v5476_v2, 0.0  ;;  %v7399_v62 = vadd.f32 %v7245_v11, %v9872_v6  ;;  %v4764_v29 = vpop.f32.mrb[21].mxu1 }
 0x3e2   : > { %v5506_v52 = vmax.f32 %v5474_v17, 0.0  ;;  %v7401_v46 = vadd.f32 %v4764_v29, %v9874_v50  ;;  %v7246_v45 = vpop.f32.mrb[22].mxu1 }
 0x3e3   : > { %v7400_v40 = vadd.f32 %v7399_v62, %v9920_v16  ;;  %v7403_v30 = vadd.f32 %v7246_v45, %v9876_v60  ;;  %v4767_v63 = vpop.f32.mrb[23].mxu1  ;;  %v5534_v20 = vpack.c.bf16 %v5508_v26, %v5507_v0 }
 0x3e4   : > { %v7402_v51 = vadd.f32 %v7401_v46, %v9922_v8  ;;  %v7405_v1 = vadd.f32 %v4767_v63, %v9878_v57  ;;  %v5533_v33 = vpack.c.bf16 %v5506_v52, %v5505_v22 }
 0x3e5   : > { %v5479_v27 = vadd.f32 %v7400_v40, %v9948_v23  ;;  %v7404_v6 = vadd.f32 %v7403_v30, %v9924_v35 }
 0x3e6   : > { %v5477_v25 = vadd.f32 %v7402_v51, %v9948_v23  ;;  %v7406_v50 = vadd.f32 %v7405_v1, %v9926_v9  ;;  %7335 = vmatprep.mubr.bf16.mxu0 %v5533_v33  ;;  %v10479_v1 = vld [vmem:[#allocation34_spill] sm:$0xff] }
 0x3e7   : > { %v5480_v16 = vadd.f32 %v7404_v6, %v9948_v23  ;;  %7336 = vmatmul.mubr.bf16.gmra.mrb[96].mxu0 %v5534_v20  ;;  %v5511_v24 = vmax.f32 %v5479_v27, 0.0  ;;  %v10480_v6 = vld [vmem:[#allocation35_spill] sm:$0xff] }
 0x3e8   : > { %v5478_v60 = vadd.f32 %v7406_v50, %v9948_v23  ;;  %v7249_v38 = vpop.f32.mrb[24].mxu1  ;;  %v5509_v3 = vmax.f32 %v5477_v25, 0.0 }
 0x3e9   : > { %v5512_v8 = vmax.f32 %v5480_v16, 0.0  ;;  %v7407_v57 = vadd.f32 %v7249_v38, %v9880_v34  ;;  %v4780_v36 = vpop.f32.mrb[25].mxu1 }
 0x3ea   : > { %v5510_v4 = vmax.f32 %v5478_v60, 0.0  ;;  %v7409_v35 = vadd.f32 %v4780_v36, %v9882_v32  ;;  %v7250_v13 = vpop.f32.mrb[26].mxu1  ;;  %v10481_v60 = vld [vmem:[#allocation36_spill] sm:$0xff] }
 0x3eb   : > { %v7408_v55 = vadd.f32 %v7407_v57, %v9928_v47  ;;  %v7411_v9 = vadd.f32 %v7250_v13, %v9884_v58  ;;  %v4783_v14 = vpop.f32.mrb[27].mxu1  ;;  %v5536_v19 = vpack.c.bf16 %v5512_v8, %v5511_v24  ;;  %v10482_v13 = vld [vmem:[#allocation37_spill] sm:$0xff] }
 0x3ec   : > { %v7410_v41 = vadd.f32 %v7409_v35, %v9930_v28  ;;  %v7413_v21 = vadd.f32 %v4783_v14, %v9886_v42  ;;  %v5535_v37 = vpack.c.bf16 %v5510_v4, %v5509_v3 }
 0x3ed   : > { %v5483_v43 = vadd.f32 %v7408_v55, %v9948_v23  ;;  %v7412_v34 = vadd.f32 %v7411_v9, %v9932_v39 }
 0x3ee   : > { %v5481_v18 = vadd.f32 %v7410_v41, %v9948_v23  ;;  %v7414_v32 = vadd.f32 %v7413_v21, %v9934_v10  ;;  %7339 = vmatprep.mubr.bf16.mxu0 %v5535_v37 }
 0x3ef   : > { %v5484_v47 = vadd.f32 %v7412_v34, %v9948_v23  ;;  %7340 = vmatmul.mubr.bf16.gmra.mrb[100].mxu0 %v5536_v19  ;;  %v5515_v61 = vmax.f32 %v5483_v43, 0.0  ;;  %v10483_v19 = vld [vmem:[#allocation38_spill] sm:$0xff]  ;;  %v10484_v34 = vld [vmem:[#allocation39_spill] sm:$0xff] }
 0x3f0   : > { %v5482_v58 = vadd.f32 %v7414_v32, %v9948_v23  ;;  %v7253_v56 = vpop.f32.mrb[28].mxu1  ;;  %v5513_v59 = vmax.f32 %v5481_v18, 0.0 }
 0x3f1   : > { %v5516_v28 = vmax.f32 %v5484_v47, 0.0  ;;  %v7415_v42 = vadd.f32 %v7253_v56, %v9888_v12  ;;  %v4796_v48 = vpop.f32.mrb[29].mxu1 }
 0x3f2   : > { %v5514_v54 = vmax.f32 %v5482_v58, 0.0  ;;  %v7417_v39 = vadd.f32 %v4796_v48, %v9890_v15  ;;  %v7254_v2 = vpop.f32.mrb[30].mxu1  ;;  %v10485_v58 = vld [vmem:[#allocation40_spill] sm:$0xff] }
 0x3f3   : > { %v7416_v17 = vadd.f32 %v7415_v42, %v9936_v53  ;;  %v7419_v10 = vadd.f32 %v7254_v2, %v9892_v7  ;;  %v4799_v11 = vpop.f32.mrb[31].mxu1  ;;  %v5538_v0 = vpack.c.bf16 %v5516_v28, %v5515_v61 }
 0x3f4   : > { %v7418_v26 = vadd.f32 %v7417_v39, %v9938_v5  ;;  %v7421_v62 = vadd.f32 %v4799_v11, %v9894_v31  ;;  %v5537_v29 = vpack.c.bf16 %v5514_v54, %v5513_v59 }
 0x3f5   : > { %v5487_v22 = vadd.f32 %v7416_v17, %v9948_v23  ;;  %v7420_v12 = vadd.f32 %v7419_v10, %v9940_v49  ;;  %v10478_v49 = vld [vmem:[#allocation33_spill] sm:$0xff]  ;;  %v10032_v17 = vld [vmem:[%s10486_s21] ss:$0 sm:$0xff]  ;;  %v7895_v10 = vld [vmem:[%s8538_s17 + $0x18] sm:$0xff]  }
 0x3f6   : > { %v5485_v52 = vadd.f32 %v7418_v26, %v9948_v23  ;;  %v7422_v15 = vadd.f32 %v7421_v62, %v9942_v44  ;;  %7343 = vmatprep.mubr.bf16.mxu0 %v5537_v29  ;;  %v5779_v11 = vunpack.c.l.bf16 %v7895_v10  ;;  %v7896_v26 = vld [vmem:[%s8538_s17 + $0x10] sm:$0xff]  }
 0x3f7   : > { %v5488_v53 = vadd.f32 %v7420_v12, %v9948_v23  ;;  %7344 = vmatmul.mubr.bf16.gmra.mrb[104].mxu0 %v5538_v0  ;;  %v5519_v46 = vmax.f32 %v5487_v22, 0.0  ;;  %v5777_v62 = vunpack.c.l.bf16 %v7896_v26  ;;  %v5780_v22 = vunpack.c.h.bf16 %v7895_v10 }
 0x3f8   : > { %v5486_v7 = vadd.f32 %v7422_v15, %v9948_v23  ;;  %v5517_v5 = vmax.f32 %v5485_v52, 0.0  ;;  %v5778_v15 = vunpack.c.h.bf16 %v7896_v26 }
 0x3f9   : > { %v5520_v45 = vmax.f32 %v5488_v53, 0.0 }
 0x3fa   : > { %v5518_v40 = vmax.f32 %v5486_v7, 0.0 }
 0x3fb   : > { %v5540_v31 = vpack.c.bf16 %v5520_v45, %v5519_v46 }
 0x3fc   : > { %v5539_v30 = vpack.c.bf16 %v5518_v40, %v5517_v5 }
 0x3fe   : > { %7347 = vmatprep.mubr.bf16.mxu0 %v5539_v30 }
 0x3ff   : > { %7348 = vmatmul.mubr.bf16.gmra.mrb[108].mxu0 %v5540_v31 }
 0x408   : > { %v7305_v63 = vpop.f32.mrb[32].mxu1 }
 0x409   : > { %v7423_v20 = vadd.f32 %v7305_v63, %v10478_v49  ;;  %v5299_v51 = vpop.f32.mrb[33].mxu1  ;;  %v7897_v49 = vld [vmem:[%s8538_s17 + $0x28] sm:$0xff]  }
 0x40a   : > { %v7424_v44 = vadd.f32 %v5299_v51, %v10479_v1  ;;  %v7306_v33 = vpop.f32.mrb[34].mxu1 }
 0x40b   : > { %v5491_v27 = vadd.f32 %v7423_v20, %v9948_v23  ;;  %v7425_v25 = vadd.f32 %v7306_v33, %v10480_v6  ;;  %v5302_v50 = vpop.f32.mrb[35].mxu1  ;;  %v5783_v20 = vunpack.c.l.bf16 %v7897_v49  ;;  %v7898_v33 = vld [vmem:[%s8538_s17 + $0x20] sm:$0xff]  }
 0x40c   : > { %v5489_v16 = vadd.f32 %v7424_v44, %v9948_v23  ;;  %v7426_v38 = vadd.f32 %v5302_v50, %v10481_v60 }
 0x40d   : > { %v5492_v24 = vadd.f32 %v7425_v25, %v9948_v23  ;;  %v5523_v57 = vmax.f32 %v5491_v27, 0.0  ;;  %v5781_v27 = vunpack.c.l.bf16 %v7898_v33 }
 0x40e   : > { %v5490_v8 = vadd.f32 %v7426_v38, %v9948_v23  ;;  %v5521_v3 = vmax.f32 %v5489_v16, 0.0  ;;  %v5784_v16 = vunpack.c.h.bf16 %v7897_v49 }
 0x40f   : > { %v5524_v36 = vmax.f32 %v5492_v24, 0.0 }
 0x410   : > { %v5522_v4 = vmax.f32 %v5490_v8, 0.0  ;;  %v7309_v35 = vpop.f32.mrb[36].mxu1  ;;  %v5782_v8 = vunpack.c.h.bf16 %v7898_v33 }
 0x411   : > { %v7427_v55 = vadd.f32 %v7309_v35, %v10482_v13  ;;  %v5315_v9 = vpop.f32.mrb[37].mxu1  ;;  %v5542_v14 = vpack.c.bf16 %v5524_v36, %v5523_v57 }
 0x412   : > { %v7428_v41 = vadd.f32 %v5315_v9, %v10483_v19  ;;  %v7310_v21 = vpop.f32.mrb[38].mxu1  ;;  %v5541_v37 = vpack.c.bf16 %v5522_v4, %v5521_v3  ;;  %v7899_v19 = vld [vmem:[%s8538_s17 + $0x38] sm:$0xff]  }
 0x413   : > { %v5495_v43 = vadd.f32 %v7427_v55, %v9948_v23  ;;  %v7429_v18 = vadd.f32 %v7310_v21, %v10484_v34  ;;  %v5318_v32 = vpop.f32.mrb[39].mxu1  ;;  %v7900_v34 = vld [vmem:[%s8538_s17 + $0x30] sm:$0xff]  }
 0x414   : > { %v5493_v47 = vadd.f32 %v7428_v41, %v9948_v23  ;;  %v7430_v56 = vadd.f32 %v5318_v32, %v10485_v58  ;;  %7351 = vmatprep.mubr.bf16.mxu0 %v5541_v37  ;;  %v5787_v41 = vunpack.c.l.bf16 %v7899_v19 }
 0x415   : > { %v5496_v61 = vadd.f32 %v7429_v18, %v9948_v23  ;;  %7352 = vmatmul.mubr.bf16.gmra.mrb[112].mxu0 %v5542_v14  ;;  %v5527_v42 = vmax.f32 %v5495_v43, 0.0  ;;  %v5785_v18 = vunpack.c.l.bf16 %v7900_v34 }
 0x416   : > { %v5494_v28 = vadd.f32 %v7430_v56, %v9948_v23  ;;  %v5525_v59 = vmax.f32 %v5493_v47, 0.0  ;;  %v5788_v56 = vunpack.c.h.bf16 %v7899_v19 }
 0x417   : > { %v5528_v48 = vmax.f32 %v5496_v61, 0.0 }
 0x418   : > { %v5526_v54 = vmax.f32 %v5494_v28, 0.0 }
 0x419   : > { %v5544_v39 = vpack.c.bf16 %v5528_v48, %v5527_v42  ;;  %v5786_v48 = vunpack.c.h.bf16 %v7900_v34 }
 0x41a   : > { %v5543_v2 = vpack.c.bf16 %v5526_v54, %v5525_v59 }
 0x41c   : > { %7355 = vmatprep.mubr.bf16.mxu0 %v5543_v2 }
 0x41d   : > { %7356 = vmatmul.mubr.bf16.gmra.mrb[116].mxu0 %v5544_v39 }
 0x4aa   : > { %v7329_v0 = vpop.f32.mrb[88].mxu0 }
 0x4ab   : > { %v5659_v23 = vadd.f32 %v7329_v0, %v10032_v17  ;;  %v5650_v29 = vpop.f32.mrb[89].mxu0 }
 0x4ac   : > { %v5651_v12 = vadd.f32 %v10032_v17, %v5650_v29  ;;  %v7330_v52 = vpop.f32.mrb[90].mxu0 }
 0x4ad   : > { %v5807_v53 = vadd.f32 %v5779_v11, %v5659_v23  ;;  %v5662_v7 = vadd.f32 %v7330_v52, %v10032_v17  ;;  %v5653_v46 = vpop.f32.mrb[91].mxu0  ;;  %v7901_v23 = vld [vmem:[%s8538_s17 + $0x48] sm:$0xff]  }
 0x4ae   : > { %v5805_v45 = vadd.f32 %v5777_v62, %v5651_v12  ;;  %v5654_v5 = vadd.f32 %v10032_v17, %v5653_v46  ;;  %v5791_v29 = vunpack.c.l.bf16 %v7901_v23 }
 0x4af   : > { %v5808_v40 = vadd.f32 %v5780_v22, %v5662_v7  ;;  %v5835_v30 = vmax.f32 %v5807_v53, 0.0 }
 0x4b0   : > { %v5806_v31 = vadd.f32 %v5778_v15, %v5654_v5  ;;  %v5833_v51 = vmax.f32 %v5805_v45, 0.0  ;;  %v7902_v15 = vld [vmem:[%s8538_s17 + $0x40] sm:$0xff]   ;;  %v5792_v5 = vunpack.c.h.bf16 %v7901_v23 }
 0x4b1   : > { %v5836_v63 = vmax.f32 %v5808_v40, 0.0  ;;  %v5789_v53 = vunpack.c.l.bf16 %v7902_v15 }
 0x4b2   : > { %v5834_v1 = vmax.f32 %v5806_v31, 0.0  ;;  %v7333_v44 = vpop.f32.mrb[92].mxu0 }
 0x4b3   : > { %v6444_v6 = vpack.c.bf16 %v5836_v63, %v5835_v30  ;;  %v5675_v25 = vadd.f32 %v7333_v44, %v10032_v17  ;;  %v5666_v50 = vpop.f32.mrb[93].mxu0  ;;  %v5790_v63 = vunpack.c.h.bf16 %v7902_v15 }
 0x4b4   : > { %v6439_v60 = vpack.c.bf16 %v5834_v1, %v5833_v51  ;;  %v5667_v38 = vadd.f32 %v10032_v17, %v5666_v50  ;;  %v7334_v24 = vpop.f32.mrb[94].mxu0  ;;  %v7903_v50 = vld [vmem:[%s8538_s17 + $0x58] sm:$0xff]  }
 0x4b5   : > { %6516 = vst [vmem:[%s10046_s27 + $0x8] sm:$0xff] %v6444_v6   ;;  %v5811_v57 = vadd.f32 %v5783_v20, %v5675_v25  ;;  %v5678_v36 = vadd.f32 %v7334_v24, %v10032_v17  ;;  %v5669_v3 = vpop.f32.mrb[95].mxu0 }
 0x4b6   : > { %6440 = vst [vmem:[%s10046_s27] sm:$0xff] %v6439_v60   ;;  %v5809_v4 = vadd.f32 %v5781_v27, %v5667_v38  ;;  %v5670_v35 = vadd.f32 %v10032_v17, %v5669_v3 }
 0x4b7   : > { %v5812_v13 = vadd.f32 %v5784_v16, %v5678_v36  ;;  %v5839_v9 = vmax.f32 %v5811_v57, 0.0  ;;  %v5795_v16 = vunpack.c.l.bf16 %v7903_v50 }
 0x4b8   : > { %v5810_v55 = vadd.f32 %v5782_v8, %v5670_v35  ;;  %v5837_v21 = vmax.f32 %v5809_v4, 0.0  ;;  %v7904_v8 = vld [vmem:[%s8538_s17 + $0x50] sm:$0xff]   ;;  %v5796_v35 = vunpack.c.h.bf16 %v7903_v50 }
 0x4b9   : > { %v5840_v14 = vmax.f32 %v5812_v13, 0.0  ;;  %v5793_v57 = vunpack.c.l.bf16 %v7904_v8 }
 0x4ba   : > { %v5838_v37 = vmax.f32 %v5810_v55, 0.0  ;;  %v7337_v43 = vpop.f32.mrb[96].mxu0 }
 0x4bb   : > { %v6454_v32 = vpack.c.bf16 %v5840_v14, %v5839_v9  ;;  %v5691_v47 = vadd.f32 %v7337_v43, %v10032_v17  ;;  %v5682_v58 = vpop.f32.mrb[97].mxu0  ;;  %v5794_v14 = vunpack.c.h.bf16 %v7904_v8 }
 0x4bc   : > { %v6449_v61 = vpack.c.bf16 %v5838_v37, %v5837_v21  ;;  %v5683_v28 = vadd.f32 %v10032_v17, %v5682_v58  ;;  %v7338_v42 = vpop.f32.mrb[98].mxu0  ;;  %v7905_v58 = vld [vmem:[%s8538_s17 + $0x68] sm:$0xff]  }
 0x4bd   : > { %6518 = vst [vmem:[%s10046_s27 + $0x18] sm:$0xff] %v6454_v32   ;;  %v5815_v59 = vadd.f32 %v5787_v41, %v5691_v47  ;;  %v5694_v54 = vadd.f32 %v7338_v42, %v10032_v17  ;;  %v5685_v39 = vpop.f32.mrb[99].mxu0 }
 0x4be   : > { %6517 = vst [vmem:[%s10046_s27 + $0x10] sm:$0xff] %v6449_v61   ;;  %v5813_v2 = vadd.f32 %v5785_v18, %v5683_v28  ;;  %v5686_v10 = vadd.f32 %v10032_v17, %v5685_v39 }
 0x4bf   : > { %v5816_v11 = vadd.f32 %v5788_v56, %v5694_v54  ;;  %v5843_v26 = vmax.f32 %v5815_v59, 0.0  ;;  %v5799_v56 = vunpack.c.l.bf16 %v7905_v58 }
 0x4c0   : > { %v5814_v0 = vadd.f32 %v5786_v48, %v5686_v10  ;;  %v5841_v22 = vmax.f32 %v5813_v2, 0.0  ;;  %v7906_v48 = vld [vmem:[%s8538_s17 + $0x60] sm:$0xff]   ;;  %v5800_v10 = vunpack.c.h.bf16 %v7905_v58 }
 0x4c1   : > { %v5844_v62 = vmax.f32 %v5816_v11, 0.0  ;;  %v5797_v59 = vunpack.c.l.bf16 %v7906_v48 }
 0x4c2   : > { %v5842_v12 = vmax.f32 %v5814_v0, 0.0  ;;  %v7341_v52 = vpop.f32.mrb[100].mxu0 }
 0x4c3   : > { %v6464_v7 = vpack.c.bf16 %v5844_v62, %v5843_v26  ;;  %v5707_v46 = vadd.f32 %v7341_v52, %v10032_v17  ;;  %v5698_v45 = vpop.f32.mrb[101].mxu0  ;;  %v5798_v62 = vunpack.c.h.bf16 %v7906_v48 }
 0x4c4   : > { %v6459_v40 = vpack.c.bf16 %v5842_v12, %v5841_v22  ;;  %v5699_v31 = vadd.f32 %v10032_v17, %v5698_v45  ;;  %v7342_v30 = vpop.f32.mrb[102].mxu0 }
 0x4c5   : > { %6520 = vst [vmem:[%s10046_s27 + $0x28] sm:$0xff] %v6464_v7   ;;  %v5819_v49 = vadd.f32 %v5791_v29, %v5707_v46  ;;  %v5710_v20 = vadd.f32 %v7342_v30, %v10032_v17  ;;  %v5701_v51 = vpop.f32.mrb[103].mxu0  ;;  %v7907_v30 = vld [vmem:[%s8538_s17 + $0x78] sm:$0xff]  }
 0x4c6   : > { %6519 = vst [vmem:[%s10046_s27 + $0x20] sm:$0xff] %v6459_v40   ;;  %v5817_v1 = vadd.f32 %v5789_v53, %v5699_v31  ;;  %v5702_v44 = vadd.f32 %v10032_v17, %v5701_v51 }
 0x4c7   : > { %v5820_v33 = vadd.f32 %v5792_v5, %v5710_v20  ;;  %v5847_v6 = vmax.f32 %v5819_v49, 0.0  ;;  %v7908_v20 = vld [vmem:[%s8538_s17 + $0x70] sm:$0xff]   ;;  %s6395_s17 = sshll.u32 %s10285_s24, 5 }
 0x4c8   : > { %v5818_v27 = vadd.f32 %v5790_v63, %v5702_v44  ;;  %v5845_v60 = vmax.f32 %v5817_v1, 0.0  ;;  %v5803_v63 = vunpack.c.l.bf16 %v7907_v30  ;;  %v5801_v51 = vunpack.c.l.bf16 %v7908_v20  ;;  %s6046_s16 = sadd.s32 %s6396_s3, %s6395_s17 }
 0x4c9   : > { %v5848_v25 = vmax.f32 %v5820_v33, 0.0  ;;  %v5804_v33 = vunpack.c.h.bf16 %v7907_v30  ;;  %s6397_s30 = sshll.u32 %s6046_s16, 6 }
 0x4ca   : > { %v5846_v38 = vmax.f32 %v5818_v27, 0.0  ;;  %v7345_v24 = vpop.f32.mrb[104].mxu0  ;;  %s10108_s19 = scalar_lea.hbm %s10489_s18, %s6397_s30 }
 0x4cb   : > { %v6474_v36 = vpack.c.bf16 %v5848_v25, %v5847_v6  ;;  %v5723_v3 = vadd.f32 %v7345_v24, %v10032_v17  ;;  %v5714_v4 = vpop.f32.mrb[105].mxu0  ;;  %v5802_v25 = vunpack.c.h.bf16 %v7908_v20 }
 0x4cc   : > { %v6469_v13 = vpack.c.bf16 %v5846_v38, %v5845_v60  ;;  %v5715_v55 = vadd.f32 %v10032_v17, %v5714_v4  ;;  %v7346_v9 = vpop.f32.mrb[106].mxu0  ;;  %v7909_v4 = vld [vmem:[%s8546_s9 + $0x8] sm:$0xff]  }
 0x4cd   : > { %6522 = vst [vmem:[%s10046_s27 + $0x38] sm:$0xff] %v6474_v36   ;;  %v5823_v19 = vadd.f32 %v5795_v16, %v5723_v3  ;;  %v5726_v41 = vadd.f32 %v7346_v9, %v10032_v17  ;;  %v5717_v21 = vpop.f32.mrb[107].mxu0 }
 0x4ce   : > { %6521 = vst [vmem:[%s10046_s27 + $0x30] sm:$0xff] %v6469_v13   ;;  %v5821_v37 = vadd.f32 %v5793_v57, %v5715_v55  ;;  %v5718_v43 = vadd.f32 %v10032_v17, %v5717_v21  ;;  %v7910_v13 = vld [vmem:[%s8546_s9] sm:$0xff]  }
 0x4cf   : > { %v5824_v34 = vadd.f32 %v5796_v35, %v5726_v41  ;;  %v5851_v32 = vmax.f32 %v5823_v19, 0.0  ;;  %v6003_v35 = vunpack.c.l.bf16 %v7909_v4  ;;  %v6001_v55 = vunpack.c.l.bf16 %v7910_v13 }
 0x4d0   : > { %v5822_v18 = vadd.f32 %v5794_v14, %v5718_v43  ;;  %v5849_v61 = vmax.f32 %v5821_v37, 0.0  ;;  %v6004_v43 = vunpack.c.h.bf16 %v7909_v4 }
 0x4d1   : > { %v5852_v47 = vmax.f32 %v5824_v34, 0.0  ;;  %v6002_v34 = vunpack.c.h.bf16 %v7910_v13 }
 0x4d2   : > { %v5850_v28 = vmax.f32 %v5822_v18, 0.0  ;;  %v7349_v42 = vpop.f32.mrb[108].mxu0 }
 0x4d3   : > { %v6484_v54 = vpack.c.bf16 %v5852_v47, %v5851_v32  ;;  %v5739_v39 = vadd.f32 %v7349_v42, %v10032_v17  ;;  %v5730_v2 = vpop.f32.mrb[109].mxu0 }
 0x4d4   : > { %v6479_v11 = vpack.c.bf16 %v5850_v28, %v5849_v61  ;;  %v5731_v0 = vadd.f32 %v10032_v17, %v5730_v2  ;;  %v7350_v26 = vpop.f32.mrb[110].mxu0 }
 0x4d5   : > { %6524 = vst [vmem:[%s10046_s27 + $0x48] sm:$0xff] %v6484_v54   ;;  %v5827_v23 = vadd.f32 %v5799_v56, %v5739_v39  ;;  %v5742_v29 = vadd.f32 %v7350_v26, %v10032_v17  ;;  %v5733_v22 = vpop.f32.mrb[111].mxu0 }
 0x4d6   : > { %6523 = vst [vmem:[%s10046_s27 + $0x40] sm:$0xff] %v6479_v11   ;;  %v5825_v12 = vadd.f32 %v5797_v59, %v5731_v0  ;;  %v5734_v52 = vadd.f32 %v10032_v17, %v5733_v22 }
 0x4d7   : > { %v5828_v15 = vadd.f32 %v5800_v10, %v5742_v29  ;;  %v5855_v7 = vmax.f32 %v5827_v23, 0.0 }
 0x4d8   : > { %v5826_v53 = vadd.f32 %v5798_v62, %v5734_v52  ;;  %v5853_v45 = vmax.f32 %v5825_v12, 0.0 }
 0x4d9   : > { %v5856_v46 = vmax.f32 %v5828_v15, 0.0 }
 0x4da   : > { %v5854_v5 = vmax.f32 %v5826_v53, 0.0 }
 0x4db   : > { %v6494_v40 = vpack.c.bf16 %v5856_v46, %v5855_v7 }
 0x4dc   : > { %v6489_v31 = vpack.c.bf16 %v5854_v5, %v5853_v45 }
 0x4dd   : > { %6526 = vst [vmem:[%s10046_s27 + $0x58] sm:$0xff] %v6494_v40  }
 0x4de   : > { %6525 = vst [vmem:[%s10046_s27 + $0x50] sm:$0xff] %v6489_v31  }
 0x4e8   : > { %v7353_v49 = vpop.f32.mrb[112].mxu0 }
 0x4e9   : > { %v5755_v1 = vadd.f32 %v7353_v49, %v10032_v17  ;;  %v5746_v44 = vpop.f32.mrb[113].mxu0 }
 0x4ea   : > { %v5747_v27 = vadd.f32 %v10032_v17, %v5746_v44  ;;  %v7354_v6 = vpop.f32.mrb[114].mxu0 }
 0x4eb   : > { %v5831_v50 = vadd.f32 %v5803_v63, %v5755_v1  ;;  %v5758_v16 = vadd.f32 %v7354_v6, %v10032_v17  ;;  %v5749_v60 = vpop.f32.mrb[115].mxu0 }
 0x4ec   : > { %v5829_v38 = vadd.f32 %v5801_v51, %v5747_v27  ;;  %v5750_v24 = vadd.f32 %v10032_v17, %v5749_v60 }
 0x4ed   : > { %v5832_v8 = vadd.f32 %v5804_v33, %v5758_v16  ;;  %v5859_v36 = vmax.f32 %v5831_v50, 0.0 }
 0x4ee   : > { %v5830_v57 = vadd.f32 %v5802_v25, %v5750_v24  ;;  %v5857_v9 = vmax.f32 %v5829_v38, 0.0 }
 0x4ef   : > { %v5860_v3 = vmax.f32 %v5832_v8, 0.0 }
 0x4f0   : > { %v5858_v14 = vmax.f32 %v5830_v57, 0.0  ;;  %v7357_v19 = vpop.f32.mrb[116].mxu0 }
 0x4f1   : > { %v6504_v41 = vpack.c.bf16 %v5860_v3, %v5859_v36  ;;  %v5771_v21 = vadd.f32 %v7357_v19, %v10032_v17  ;;  %v5762_v37 = vpop.f32.mrb[117].mxu0 }
 0x4f2   : > { %v6499_v18 = vpack.c.bf16 %v5858_v14, %v5857_v9  ;;  %v5763_v32 = vadd.f32 %v10032_v17, %v5762_v37  ;;  %v7358_v47 = vpop.f32.mrb[118].mxu0 }
 0x4f3   : > { %6528 = vst [vmem:[%s10046_s27 + $0x68] sm:$0xff] %v6504_v41   ;;  %v6007_v58 = vadd.f32 %v6003_v35, %v5771_v21  ;;  %v5774_v56 = vadd.f32 %v7358_v47, %v10032_v17  ;;  %v5765_v61 = vpop.f32.mrb[119].mxu0 }
 0x4f4   : > { %6527 = vst [vmem:[%s10046_s27 + $0x60] sm:$0xff] %v6499_v18   ;;  %v6005_v28 = vadd.f32 %v6001_v55, %v5763_v32  ;;  %v5766_v42 = vadd.f32 %v10032_v17, %v5765_v61 }
 0x4f5   : > { %v6008_v48 = vadd.f32 %v6004_v43, %v5774_v56  ;;  %v6011_v54 = vmax.f32 %v6007_v58, 0.0 }
 0x4f6   : > { %v6006_v59 = vadd.f32 %v6002_v34, %v5766_v42  ;;  %v6009_v2 = vmax.f32 %v6005_v28, 0.0 }
 0x4f7   : > { %v6012_v39 = vmax.f32 %v6008_v48, 0.0 }
 0x4f8   : > { %v6010_v10 = vmax.f32 %v6006_v59, 0.0 }
 0x4f9   : > { %v6514_v11 = vpack.c.bf16 %v6012_v39, %v6011_v54 }
 0x4fa   : > { %v6509_v0 = vpack.c.bf16 %v6010_v10, %v6009_v2 }
 0x4fb   : > { %6530 = vst [vmem:[%s10046_s27 + $0x78] sm:$0xff] %v6514_v11  }
 0x4fc   : > { %6529 = vst [vmem:[%s10046_s27 + $0x70] sm:$0xff] %v6509_v0  }
 0x4fd   : > { %8065 = shalt.err (!%p8062_p6)
}
 0x4fe   : > { %s8066_s5 = scalar_lea.hbm %s10108_s19, 2048  ;;  %s8070_s27 = scalar_lea.hbm %s10489_s18, 8192 }
 0x4ff   : > { %p8067_p0 = scmp.ne.s32.totalorder %s10108_s19, %s8066_s5  ;;  %p8071_p2 = scmp.lt.u32.totalorder %s10108_s19, %s10489_s18 }
 0x500   : > { %p8072_p5 = scmp.lt.u32.totalorder %s8070_s27, %s8066_s5  ;;  %p8074_p12 = scmp.lt.u32.totalorder %s8066_s5, %s10108_s19 }
 0x501   : > { %p8068_p7 = pnand %p8067_p0, %p10490_p8 }
 0x502   : > { %p8073_p11 = por %p8072_p5, %p8071_p2 }
 0x503   : > { %p8069_p4 = pneg %p8068_p7 }
 0x504   : > { %p8075_p9 = por %p8074_p12, %p8073_p11 }
 0x506   : > { %p8076_p10 = pnand %p8075_p9, %p8069_p4 }
 0x508   : > { %8079 = shalt.err (!%p8076_p10)
}
 0x509   : > { %s8204_s3 = smov 64   ;;  %s8205_s16 = smov 4  }
 0x50a   : > { %7647 = dma.vmem_to_hbm [thread:$0]  (%p10490_p8), %s10103_s28, 2048, %s10108_s19, %s6034_s25, %s8204_s3, %s8204_s3, %s8205_s16  }
 0x50b PF: > { %s10491_s30 = sld [smem:[#allocation20_spill]]  ;;  %s10492_s9 = sld [smem:[#allocation32_spill]] }
 0x50c   : > { %p7669_p3 = scmp.ge.s32.totalorder %s8188_s15, 2 }
 0x511   : > { %s6064_s24 = sand.u32 1, %s10491_s30   ;;  %p10493_p1 = scmp.ne.s32.totalorder %s10492_s9, 0 }
 0x512   : > { %s6065_s8 = scalar_lea.sflag [#allocation6], %s6064_s24 }
 0x513   : > { %p7660_p13 = pnand %p7669_p3, %p10493_p1 }
 0x515   : > { %8141 = dma.done.wait (!%p7660_p13), %s6065_s8, 2048  }
 0x516   : > { %8143 = vsyncadd (!%p7660_p13), %s6065_s8, 4294965248  ;;  %s28_s15 = sadd.s32 1, %s8188_s15   ;;  %s10494_s27 = sld [smem:[#allocation19_spill]] }
 0x517   : > { %p25_p6 = scmp.ge.s32.totalorder %s28_s15, 6   ;;  %s10495_s7 = sld [smem:[#allocation29_spill]] }
 0x518   : > { %s10496_s30 = sld [smem:[#allocation21_spill]]  ;;  %s10497_s12 = sld [smem:[#allocation28_spill]] }
 0x519   : > { %s10498_s22 = sld [smem:[#allocation25_spill]]  ;;  %s10499_s19 = sld [smem:[#allocation26_spill]] }
 0x51a   : > { %s10500_s28 = smov %s8156_s29  ;;  %s10502_s9 = smov %s8168_s10 }
 0x51b   : > { %s10504_s11 = smov %s8180_s13  ;;  %27 = sbr.rel (!%p25_p6) target bundleno = 17 (0x11), region = 130 }
 0x51d   : > { %s10501_s29 = smov %s10495_s7 }
 0x51e   : > { %s10503_s10 = smov %s10497_s12  ;;  %s10505_s12 = smov %s8184_s14 }
 0x51f   : > { %s10506_s13 = smov %s10498_s22  ;;  %s10507_s14 = smov %s10499_s19 }
 0x522   :  { %6070 = vsyncpa [#allocation5], 1 }
 0x523   :  { %6072 = vsyncpa [#allocation5 + $0x1], 1 }
 0x524   :  { %6073 = vsyncpa [#allocation8], 1 }
 0x525   :  { %6075 = vsyncpa [#allocation8 + $0x1], 1 }
 0x526   :  { %6076 = vsyncpa [#allocation11], 1 }
 0x527   :  { %6077 = vsyncpa [#allocation6], 1 }
 0x528   :  { %6079 = vsyncpa [#allocation6 + $0x1], 1 }

</bundles_post_ra>
